<compile_context>
chip_gen: v7x
topology: tpu7x:2x2x1
jax: 0.10.0
libtpu: 0.0.40
codegen_flags: <defaults>
</compile_context>

<pallas_src>
import functools

import numpy as np
import jax
import jax.numpy as jnp
from jax.experimental import pallas as pl
from jax.experimental.pallas import tpu as pltpu

# ----------------------- model hyper-parameters (small) -----------------------
IN_CHANNELS = 4
EMBEDDING_DIM = 8
NUM_EMBEDDINGS = 16
COMMITMENT_COST = 0.25
DECAY = 0.0                       # -> plain VectorQuantizer branch
HIDDEN_DIM = 32                   # hidden_dims = [32]
PRE_INTERM_LAYERS = 1
INTERM_LAYERS = 1
NUMBER_ARCHS = 5
NUMBER_LAYERS = 6
INPUT_SIZE = 12                   # divisible by 3
INPUT_SIZE_SMALL = INPUT_SIZE // 3

BN_EPS = 1e-5
C_PAD = 8                         # in_channels (4) padded to a full sublane tile
VEC_ROWS = 32                     # per-channel vectors padded to 32 rows

_VMEM = pl.BlockSpec(memory_space=pltpu.MemorySpace.VMEM)

# conv tap lane offsets (dh*W + dw) for the flattened (n, h, w) spatial axis
_OFFS_BIG = tuple((di - 1) * INPUT_SIZE + (dj - 1) for di in range(3) for dj in range(3))
_OFFS_SMALL = tuple((di - 1) * INPUT_SIZE_SMALL + (dj - 1) for di in range(3) for dj in range(3))

# rows of the packed mask slab
_MB0, _MS0, _SEL0, _VB, _VS = 0, 9, 18, 27, 28
_N_MASK = 29


def _vec_names():
    names = ["first_wa", "first_wl", "first_b"]
    for i in range(PRE_INTERM_LAYERS):
        names += [f"pre{i}_g1", f"pre{i}_b1", f"pre{i}_g2", f"pre{i}_b2"]
    names += ["emb_b", "emb_bn_g", "emb_bn_b"]
    for i in range(INTERM_LAYERS):
        names += [f"enc{i}_g1", f"enc{i}_b1", f"enc{i}_g2", f"enc{i}_b2"]
    names += ["prevq_b", "postvq_wa", "postvq_wl", "postvq_b"]
    for i in range(INTERM_LAYERS):
        names += [f"dec{i}_g1", f"dec{i}_b1", f"dec{i}_g2", f"dec{i}_b2"]
    names += ["tconv_b", "dec_bn_g", "dec_bn_b"]
    for i in range(PRE_INTERM_LAYERS):
        names += [f"post{i}_g1", f"post{i}_b1", f"post{i}_g2", f"post{i}_b2"]
    names += ["final_b", "final_bn_g", "final_bn_b"]
    return names


VEC_NAMES = _vec_names()
VIDX = {n: i for i, n in enumerate(VEC_NAMES)}


def _rup(n, m):
    return ((n + m - 1) // m) * m


# ===================== host-built 0/1 masks & sub/up-sample matrices ==========
@functools.lru_cache(maxsize=None)
def _const_masks(batch):
    hh, hs = INPUT_SIZE, INPUT_SIZE_SMALL
    mb, ms = batch * hh * hh, batch * hs * hs
    mbp, msp = _rup(mb, 128), _rup(ms, 128)

    mk = np.zeros((_N_MASK, 1, mbp), np.float32)
    idx = np.arange(mb)
    h = (idx % (hh * hh)) // hh
    w = idx % hh
    idx_s = np.arange(ms)
    hsm = (idx_s % (hs * hs)) // hs
    wsm = idx_s % hs
    for di in range(3):
        for dj in range(3):
            t = di * 3 + dj
            ok = ((h + di - 1 >= 0) & (h + di - 1 < hh)
                  & (w + dj - 1 >= 0) & (w + dj - 1 < hh))
            mk[_MB0 + t, 0, :mb] = ok
            oks = ((hsm + di - 1 >= 0) & (hsm + di - 1 < hs)
                   & (wsm + dj - 1 >= 0) & (wsm + dj - 1 < hs))
            mk[_MS0 + t, 0, :ms] = oks
            mk[_SEL0 + t, 0, :mb] = ((h % 3) == di) & ((w % 3) == dj)
    mk[_VB, 0, :mb] = 1.0
    mk[_VS, 0, :ms] = 1.0

    # D (mbp, msp): pick the centre big pixel (3ho+1, 3wo+1) of each small pixel.
    dmat = np.zeros((mbp, msp), np.float32)
    n_s = idx_s // (hs * hs)
    centers = n_s * hh * hh + (3 * hsm + 1) * hh + (3 * wsm + 1)
    dmat[centers, idx_s] = 1.0
    # U (msp, mbp): repeat each small pixel over its 3x3 big block.
    umat = np.zeros((msp, mbp), np.float32)
    n_b = idx // (hh * hh)
    src = n_b * hs * hs + (h // 3) * hs + (w // 3)
    umat[src, idx] = 1.0
    return mk, dmat, umat


# ============================== the fused kernel ==============================
def _fused_kernel(x_ref, emb_ref, mask_ref, dmat_ref, umat_ref, vec_ref,
                  first_wx_ref, wbig_ref, embw_ref, wsmall_ref, prevqw_ref,
                  cb_ref, cbt_ref, postvq_wq_ref, tconvw_ref,
                  recon_ref, scal_ref, *, mb, mbp, ms, msp):
    f32 = jnp.float32

    valid_b = mask_ref[_VB]                                   # (1, mbp)
    valid_s = mask_ref[_VS][:, :msp]                          # (1, msp)
    bmasks = [mask_ref[_MB0 + t] for t in range(9)]
    smasks = [mask_ref[_MS0 + t][:, :msp] for t in range(9)]
    sels = [mask_ref[_SEL0 + t] for t in range(9)]

    def cvec(name, c):
        return vec_ref[VIDX[name]][:c, :]                     # (c, 1) column

    def conv3x3(x, wcat, cout, masks, offs, mp):
        """x: (cin, mp) zero-padded lanes; wcat: (9*cout, cin) stacked taps."""
        zcat = jnp.dot(wcat, x, preferred_element_type=f32)   # one MXU matmul / conv
        acc = None
        for t in range(9):
            z = zcat[t * cout:(t + 1) * cout, :]
            if offs[t] != 0:
                z = pltpu.roll(z, shift=(-offs[t]) % mp, axis=1)   # XLU lane roll
            term = z * masks[t]
            acc = term if acc is None else acc + term
        return acc

    def bn(x, gname, bname, c, valid, count, act=None):
        g, b = cvec(gname, c), cvec(bname, c)
        inv = 1.0 / count
        mean = jnp.sum(x, axis=1, keepdims=True) * inv
        ex2 = jnp.sum(x * x, axis=1, keepdims=True) * inv
        var = jnp.maximum(ex2 - mean * mean, 0.0)
        y = ((x - mean) * (jax.lax.rsqrt(var + BN_EPS) * g) + b) * valid
        if act == "relu":
            y = jnp.maximum(y, 0.0)
        elif act == "tanh":
            y = jnp.tanh(y)
        return y

    def resblock(x, w1, w2, pfx, c, masks, offs, mp, valid, count):
        h = conv3x3(x, w1, c, masks, offs, mp)
        h = bn(h, pfx + "_g1", pfx + "_b1", c, valid, count, act="relu")
        h = conv3x3(h, w2, c, masks, offs, mp)
        h = bn(h, pfx + "_g2", pfx + "_b2", c, valid, count)
        return jnp.maximum(h + x, 0.0)

    # --------------------------------- encode ---------------------------------
    x = x_ref[...]                                            # (C_PAD, mbp)
    ea_b, el_b = emb_ref[0], emb_ref[1]                       # (1, mbp)
    ea_s, el_s = emb_ref[2][:, :msp], emb_ref[3][:, :msp]     # (1, msp)

    # 1x1 conv over [x, embedded_arch, embedded_layer]
    r = (jnp.dot(first_wx_ref[...], x, preferred_element_type=f32)
         + cvec("first_wa", C_PAD) * ea_b
         + cvec("first_wl", C_PAD) * el_b
         + cvec("first_b", C_PAD) * valid_b)

    skip = r
    for i in range(PRE_INTERM_LAYERS):
        r = resblock(r, wbig_ref[2 * i], wbig_ref[2 * i + 1], f"pre{i}",
                     C_PAD, bmasks, _OFFS_BIG, mbp, valid_b, mb)
    r = r + skip

    # embedding layer: 3x3 conv stride 3 == stride-1 conv then pick 3x3 centres
    z = conv3x3(r, embw_ref[...], HIDDEN_DIM, bmasks, _OFFS_BIG, mbp)
    r = jnp.dot(z, dmat_ref[...], preferred_element_type=f32)           # (hid, msp)
    r = r + cvec("emb_b", HIDDEN_DIM) * valid_s
    r = bn(r, "emb_bn_g", "emb_bn_b", HIDDEN_DIM, valid_s, ms)

    skip = r
    for i in range(INTERM_LAYERS):
        r = resblock(r, wsmall_ref[2 * i], wsmall_ref[2 * i + 1], f"enc{i}",
                     HIDDEN_DIM, smasks, _OFFS_SMALL, msp, valid_s, ms)
    r = r + skip

    # pre-VQ 3x3 conv (stride 1, pad 1), hidden -> embedding_dim
    r = conv3x3(r, prevqw_ref[...], EMBEDDING_DIM, smasks, _OFFS_SMALL, msp)
    r = r + cvec("prevq_b", EMBEDDING_DIM) * valid_s

    # ----------------------------------- VQ ------------------------------------
    # TODO(synk): forward values only; straight-through estimator / stop-gradients
    #             and EMA codebook updates (decay > 0) are not modeled.
    e = cb_ref[...]                                           # (K, D)
    et = cbt_ref[...]                                         # (D, K)
    k = e.shape[0]
    x2 = jnp.sum(r * r, axis=0, keepdims=True)                # (1, msp)
    e2 = jnp.sum(e * e, axis=1, keepdims=True)                # (K, 1)
    dist = e2 - 2.0 * jnp.dot(e, r, preferred_element_type=f32) + x2    # (K, msp)
    dmin = jnp.min(dist, axis=0, keepdims=True)
    iota_k = jax.lax.broadcasted_iota(jnp.int32, dist.shape, 0)
    first = jnp.min(jnp.where(dist == dmin, iota_k, k), axis=0, keepdims=True)
    enc = (iota_k == first).astype(f32) * valid_s             # one-hot, pads zeroed
    q = jnp.dot(et, enc, preferred_element_type=f32)          # (D, msp)
    diff = q - r
    mse = jnp.sum(diff * diff) * (1.0 / (ms * EMBEDDING_DIM))
    vq_loss = (1.0 + COMMITMENT_COST) * mse                   # q_latent + cc * e_latent
    avg = jnp.sum(enc, axis=1, keepdims=True) * (1.0 / ms)
    perp = jnp.exp(-jnp.sum(avg * jnp.log(avg + 1e-10)))
    li = jax.lax.broadcasted_iota(jnp.int32, (1, 128), 1)
    scal_ref[...] = jnp.where(li == 0, vq_loss, 0.0) + jnp.where(li == 1, perp, 0.0)

    # --------------------------------- decode ---------------------------------
    r = (jnp.dot(postvq_wq_ref[...], q, preferred_element_type=f32)
         + cvec("postvq_wa", HIDDEN_DIM) * ea_s
         + cvec("postvq_wl", HIDDEN_DIM) * el_s
         + cvec("postvq_b", HIDDEN_DIM) * valid_s)

    skip = r
    for i in range(INTERM_LAYERS):
        r = resblock(r, wsmall_ref[2 * INTERM_LAYERS + 2 * i],
                     wsmall_ref[2 * INTERM_LAYERS + 2 * i + 1], f"dec{i}",
                     HIDDEN_DIM, smasks, _OFFS_SMALL, msp, valid_s, ms)
    r = r + skip

    # conv-transpose stride 3: upsample (repeat) then per-tap 0/1 select
    xup = jnp.dot(r, umat_ref[...], preferred_element_type=f32)         # (hid, mbp)
    zcat = jnp.dot(tconvw_ref[...], xup, preferred_element_type=f32)    # (9*C_PAD, mbp)
    acc = None
    for t in range(9):
        term = zcat[t * C_PAD:(t + 1) * C_PAD, :] * sels[t]
        acc = term if acc is None else acc + term
    r = acc + cvec("tconv_b", C_PAD) * valid_b
    r = bn(r, "dec_bn_g", "dec_bn_b", C_PAD, valid_b, mb)

    skip = r
    for i in range(PRE_INTERM_LAYERS):
        r = resblock(r, wbig_ref[2 * PRE_INTERM_LAYERS + 2 * i],
                     wbig_ref[2 * PRE_INTERM_LAYERS + 2 * i + 1], f"post{i}",
                     C_PAD, bmasks, _OFFS_BIG, mbp, valid_b, mb)
    r = r + skip

    r = conv3x3(r, wbig_ref[4 * PRE_INTERM_LAYERS], C_PAD, bmasks, _OFFS_BIG, mbp)
    r = r + cvec("final_b", C_PAD) * valid_b
    r = bn(r, "final_bn_g", "final_bn_b", C_PAD, valid_b, mb, act="tanh")

    recon_ref[...] = r


# ============================ host-side weight prep ============================
def _pad2(a, rows, cols):
    a = a.astype(jnp.float32)
    return jnp.pad(a, ((0, rows - a.shape[0]), (0, cols - a.shape[1])))


def _wcat_conv(w, coutp, cinp):
    """Conv2d weight (Cout, Cin, 3, 3) -> stacked taps (9*coutp, cinp)."""
    w = w.astype(jnp.float32)
    w = jnp.pad(w, ((0, coutp - w.shape[0]), (0, cinp - w.shape[1]), (0, 0), (0, 0)))
    return jnp.transpose(w, (2, 3, 0, 1)).reshape(9 * coutp, cinp)


def _wcat_tconv(w, coutp):
    """ConvTranspose2d weight (Cin, Cout, 3, 3) -> stacked taps (9*coutp, Cin)."""
    w = jnp.transpose(w.astype(jnp.float32), (2, 3, 1, 0))    # (3, 3, Cout, Cin)
    w = jnp.pad(w, ((0, 0), (0, 0), (0, coutp - w.shape[2]), (0, 0)))
    return w.reshape(9 * coutp, w.shape[3])


# ================================ forward pass ================================
def forward(params, x, arch, layer):
    b = x.shape[0]
    hh, hs = INPUT_SIZE, INPUT_SIZE_SMALL
    mb, ms = b * hh * hh, b * hs * hs
    mbp, msp = _rup(mb, 128), _rup(ms, 128)
    cin, dd, hid, cp = IN_CHANNELS, EMBEDDING_DIM, HIDDEN_DIM, C_PAD

    arch = arch.astype(jnp.float32)
    layer = layer.astype(jnp.float32)

    # -------- tiny XLA prologue: conditioning embeddings + layout/packing --------
    ea_b = (arch @ params["embed_arch_big"]["w"].T + params["embed_arch_big"]["b"]).reshape(1, mb)
    el_b = (layer @ params["embed_layer_big"]["w"].T + params["embed_layer_big"]["b"]).reshape(1, mb)
    ea_s = (arch @ params["embed_arch_small"]["w"].T + params["embed_arch_small"]["b"]).reshape(1, ms)
    el_s = (layer @ params["embed_layer_small"]["w"].T + params["embed_layer_small"]["b"]).reshape(1, ms)
    emb = jnp.stack([_pad2(ea_b, 1, mbp), _pad2(el_b, 1, mbp),
                     _pad2(ea_s, 1, mbp), _pad2(el_s, 1, mbp)], axis=0)      # (4, 1, mbp)

    x_cm = jnp.transpose(x.astype(jnp.float32), (1, 0, 2, 3)).reshape(cin, mb)
    x_cm = _pad2(x_cm, cp, mbp)                                              # (cp, mbp)

    mk_np, d_np, u_np = _const_masks(b)
    masks = jnp.asarray(mk_np)
    dmat = jnp.asarray(d_np)
    umat = jnp.asarray(u_np)

    fl_w = params["first_layer"]["w"][:, :, 0, 0]             # (cin, cin+2)
    pv_w = params["post_vq_conv"]["w"][:, :, 0, 0]            # (hid, dd+2)

    # ---- per-channel vector slab ----
    def vrow(v):
        v = v.astype(jnp.float32).reshape(-1)
        return jnp.pad(v, (0, VEC_ROWS - v.shape[0]))

    vec_map = {
        "first_wa": fl_w[:, cin], "first_wl": fl_w[:, cin + 1],
        "first_b": params["first_layer"]["b"],
        "emb_b": params["emb_conv"]["b"],
        "emb_bn_g": params["emb_bn"]["g"], "emb_bn_b": params["emb_bn"]["b"],
        "prevq_b": params["pre_vq_conv"]["b"],
        "postvq_wa": pv_w[:, dd], "postvq_wl": pv_w[:, dd + 1],
        "postvq_b": params["post_vq_conv"]["b"],
        "tconv_b": params["dec_tconv"]["b"],
        "dec_bn_g": params["dec_bn"]["g"], "dec_bn_b": params["dec_bn"]["b"],
        "final_b": params["final_conv"]["b"],
        "final_bn_g": params["final_bn"]["g"], "final_bn_b": params["final_bn"]["b"],
    }
    for i, blk in enumerate(params["pre_blocks"]):
        vec_map.update({f"pre{i}_g1": blk["bn1_g"], f"pre{i}_b1": blk["bn1_b"],
                        f"pre{i}_g2": blk["bn2_g"], f"pre{i}_b2": blk["bn2_b"]})
    for i, blk in enumerate(params["enc_blocks"]):
        vec_map.update({f"enc{i}_g1": blk["bn1_g"], f"enc{i}_b1": blk["bn1_b"],
                        f"enc{i}_g2": blk["bn2_g"], f"enc{i}_b2": blk["bn2_b"]})
    for i, blk in enumerate(params["dec_blocks"]):
        vec_map.update({f"dec{i}_g1": blk["bn1_g"], f"dec{i}_b1": blk["bn1_b"],
                        f"dec{i}_g2": blk["bn2_g"], f"dec{i}_b2": blk["bn2_b"]})
    for i, blk in enumerate(params["post_blocks"]):
        vec_map.update({f"post{i}_g1": blk["bn1_g"], f"post{i}_b1": blk["bn1_b"],
                        f"post{i}_g2": blk["bn2_g"], f"post{i}_b2": blk["bn2_b"]})
    vecs = jnp.stack([vrow(vec_map[n]) for n in VEC_NAMES]).reshape(len(VEC_NAMES), VEC_ROWS, 1)

    # ---- stacked-tap weight slabs ----
    big_list = []
    for blk in params["pre_blocks"]:
        big_list += [_wcat_conv(blk["conv1_w"], cp, cp), _wcat_conv(blk["conv2_w"], cp, cp)]
    for blk in params["post_blocks"]:
        big_list += [_wcat_conv(blk["conv1_w"], cp, cp), _wcat_conv(blk["conv2_w"], cp, cp)]
    big_list.append(_wcat_conv(params["final_conv"]["w"], cp, cp))
    wbig = jnp.stack(big_list)                                # (n_big, 9*cp, cp)

    small_list = []
    for blk in params["enc_blocks"]:
        small_list += [_wcat_conv(blk["conv1_w"], hid, hid), _wcat_conv(blk["conv2_w"], hid, hid)]
    for blk in params["dec_blocks"]:
        small_list += [_wcat_conv(blk["conv1_w"], hid, hid), _wcat_conv(blk["conv2_w"], hid, hid)]
    wsmall = jnp.stack(small_list)                            # (n_small, 9*hid, hid)

    embw = _wcat_conv(params["emb_conv"]["w"], hid, cp)       # (9*hid, cp)
    prevqw = _wcat_conv(params["pre_vq_conv"]["w"], dd, hid)  # (9*dd, hid)
    tconvw = _wcat_tconv(params["dec_tconv"]["w"], cp)        # (9*cp, hid)

    first_wx = _pad2(fl_w[:, :cin], cp, cp)                   # (cp, cp)
    postvq_wq = pv_w[:, :dd].astype(jnp.float32)              # (hid, dd)
    cb = params["codebook"].astype(jnp.float32)               # (K, D)
    cbt = jnp.transpose(cb)                                   # (D, K)

    inputs = (x_cm, emb, masks, dmat, umat, vecs, first_wx, wbig, embw, wsmall,
              prevqw, cb, cbt, postvq_wq, tconvw)

    kern = functools.partial(_fused_kernel, mb=mb, mbp=mbp, ms=ms, msp=msp)
    recon_p, scal = pl.pallas_call(
        kern,
        out_shape=(jax.ShapeDtypeStruct((cp, mbp), jnp.float32),
                   jax.ShapeDtypeStruct((1, 128), jnp.float32)),
        in_specs=[_VMEM] * len(inputs),
        out_specs=(_VMEM, _VMEM),
    )(*inputs)

    recon = recon_p[:cin, :mb].reshape(cin, b, hh, hh).transpose(1, 0, 2, 3)
    return scal[0, 0], recon, scal[0, 1]


# ============================ deterministic params ============================
def init_params(key):
    keys = iter(jax.random.split(key, 128))

    def nrm(shape, scale=0.1):
        return scale * jax.random.normal(next(keys), shape, dtype=jnp.float32)

    def resblock(c):
        return {
            "conv1_w": nrm((c, c, 3, 3)),
            "bn1_g": jnp.ones((c,), jnp.float32), "bn1_b": jnp.zeros((c,), jnp.float32),
            "conv2_w": nrm((c, c, 3, 3)),
            "bn2_g": jnp.ones((c,), jnp.float32), "bn2_b": jnp.zeros((c,), jnp.float32),
        }

    C, Hd, Dd, K = IN_CHANNELS, HIDDEN_DIM, EMBEDDING_DIM, NUM_EMBEDDINGS
    H2, Hs2 = INPUT_SIZE ** 2, INPUT_SIZE_SMALL ** 2
    return {
        "first_layer": {"w": nrm((C, C + 2, 1, 1)), "b": jnp.zeros((C,), jnp.float32)},
        "pre_blocks": [resblock(C) for _ in range(PRE_INTERM_LAYERS)],
        "emb_conv": {"w": nrm((Hd, C, 3, 3)), "b": jnp.zeros((Hd,), jnp.float32)},
        "emb_bn": {"g": jnp.ones((Hd,), jnp.float32), "b": jnp.zeros((Hd,), jnp.float32)},
        "enc_blocks": [resblock(Hd) for _ in range(INTERM_LAYERS)],
        "pre_vq_conv": {"w": nrm((Dd, Hd, 3, 3)), "b": jnp.zeros((Dd,), jnp.float32)},
        "codebook": jax.random.uniform(next(keys), (K, Dd), jnp.float32, -1.0 / K, 1.0 / K),
        "post_vq_conv": {"w": nrm((Hd, Dd + 2, 1, 1)), "b": jnp.zeros((Hd,), jnp.float32)},
        "dec_blocks": [resblock(Hd) for _ in range(INTERM_LAYERS)],
        "dec_tconv": {"w": nrm((Hd, C, 3, 3)), "b": jnp.zeros((C,), jnp.float32)},  # (Cin, Cout, 3, 3)
        "dec_bn": {"g": jnp.ones((C,), jnp.float32), "b": jnp.zeros((C,), jnp.float32)},
        "post_blocks": [resblock(C) for _ in range(PRE_INTERM_LAYERS)],
        "final_conv": {"w": nrm((C, C, 3, 3)), "b": jnp.zeros((C,), jnp.float32)},
        "final_bn": {"g": jnp.ones((C,), jnp.float32), "b": jnp.zeros((C,), jnp.float32)},
        "embed_arch_big": {"w": nrm((H2, NUMBER_ARCHS)), "b": jnp.zeros((H2,), jnp.float32)},
        "embed_layer_big": {"w": nrm((H2, NUMBER_LAYERS)), "b": jnp.zeros((H2,), jnp.float32)},
        "embed_arch_small": {"w": nrm((Hs2, NUMBER_ARCHS)), "b": jnp.zeros((Hs2,), jnp.float32)},
        "embed_layer_small": {"w": nrm((Hs2, NUMBER_LAYERS)), "b": jnp.zeros((Hs2,), jnp.float32)},
    }


if __name__ == "__main__":
    key = jax.random.PRNGKey(0)
    kp, kx, ka, kl = jax.random.split(key, 4)
    params = init_params(kp)

    B = 2
    x = jax.random.normal(kx, (B, IN_CHANNELS, INPUT_SIZE, INPUT_SIZE), jnp.float32)
    arch = jax.nn.one_hot(jax.random.randint(ka, (B,), 0, NUMBER_ARCHS), NUMBER_ARCHS,
                          dtype=jnp.float32)
    layer = jax.nn.one_hot(jax.random.randint(kl, (B,), 0, NUMBER_LAYERS), NUMBER_LAYERS,
                           dtype=jnp.float32)

    fwd = jax.jit(forward)
    vq_loss, recon, perplexity = fwd(params, x, arch, layer)
    jax.block_until_ready((vq_loss, recon, perplexity))

    assert recon.shape == (B, IN_CHANNELS, INPUT_SIZE, INPUT_SIZE)
    assert vq_loss.shape == () and perplexity.shape == ()
    assert bool(jnp.isfinite(recon).all()) and bool(jnp.isfinite(vq_loss)) and bool(jnp.isfinite(perplexity))
    print("KERNEL_OK")
</pallas_src>

<mosaic_0001>
module attributes {stable_mosaic.version = 11 : i64} {
  func.func @_fused_kernel(%arg0: memref<8x384xf32, #tpu.memory_space<vmem>>, %arg1: memref<4x1x384xf32, #tpu.memory_space<vmem>>, %arg2: memref<29x1x384xf32, #tpu.memory_space<vmem>>, %arg3: memref<384x128xf32, #tpu.memory_space<vmem>>, %arg4: memref<128x384xf32, #tpu.memory_space<vmem>>, %arg5: memref<32x32x1xf32, #tpu.memory_space<vmem>>, %arg6: memref<8x8xf32, #tpu.memory_space<vmem>>, %arg7: memref<5x72x8xf32, #tpu.memory_space<vmem>>, %arg8: memref<288x8xf32, #tpu.memory_space<vmem>>, %arg9: memref<4x288x32xf32, #tpu.memory_space<vmem>>, %arg10: memref<72x32xf32, #tpu.memory_space<vmem>>, %arg11: memref<16x8xf32, #tpu.memory_space<vmem>>, %arg12: memref<8x16xf32, #tpu.memory_space<vmem>>, %arg13: memref<32x8xf32, #tpu.memory_space<vmem>>, %arg14: memref<72x32xf32, #tpu.memory_space<vmem>>, %arg15: memref<8x384xf32, #tpu.memory_space<vmem>>, %arg16: memref<1x128xf32, #tpu.memory_space<vmem>>) attributes {dimension_semantics = [], scalar_prefetch = 0 : i64, scratch_operands = 0 : i64, tpu.core_type = #tpu.core_type<tc>} {
    %c27 = arith.constant 27 : index
    %c0 = arith.constant 0 : index
    %c0_0 = arith.constant 0 : index
    %0 = vector.load %arg2[%c27, %c0, %c0_0] : memref<29x1x384xf32, #tpu.memory_space<vmem>>, vector<1x1x384xf32>
    %1 = vector.shape_cast %0 : vector<1x1x384xf32> to vector<1x384xf32>
    %c28 = arith.constant 28 : index
    %c0_1 = arith.constant 0 : index
    %c0_2 = arith.constant 0 : index
    %2 = vector.load %arg2[%c28, %c0_1, %c0_2] : memref<29x1x384xf32, #tpu.memory_space<vmem>>, vector<1x1x384xf32>
    %3 = vector.shape_cast %2 : vector<1x1x384xf32> to vector<1x384xf32>
    %4 = vector.extract_strided_slice %3 {offsets = [0, 0], sizes = [1, 128], strides = [1, 1]} : vector<1x384xf32> to vector<1x128xf32>
    %c0_3 = arith.constant 0 : index
    %c0_4 = arith.constant 0 : index
    %c0_5 = arith.constant 0 : index
    %5 = vector.load %arg2[%c0_3, %c0_4, %c0_5] : memref<29x1x384xf32, #tpu.memory_space<vmem>>, vector<1x1x384xf32>
    %6 = vector.shape_cast %5 : vector<1x1x384xf32> to vector<1x384xf32>
    %c1 = arith.constant 1 : index
    %c0_6 = arith.constant 0 : index
    %c0_7 = arith.constant 0 : index
    %7 = vector.load %arg2[%c1, %c0_6, %c0_7] : memref<29x1x384xf32, #tpu.memory_space<vmem>>, vector<1x1x384xf32>
    %8 = vector.shape_cast %7 : vector<1x1x384xf32> to vector<1x384xf32>
    %c2 = arith.constant 2 : index
    %c0_8 = arith.constant 0 : index
    %c0_9 = arith.constant 0 : index
    %9 = vector.load %arg2[%c2, %c0_8, %c0_9] : memref<29x1x384xf32, #tpu.memory_space<vmem>>, vector<1x1x384xf32>
    %10 = vector.shape_cast %9 : vector<1x1x384xf32> to vector<1x384xf32>
    %c3 = arith.constant 3 : index
    %c0_10 = arith.constant 0 : index
    %c0_11 = arith.constant 0 : index
    %11 = vector.load %arg2[%c3, %c0_10, %c0_11] : memref<29x1x384xf32, #tpu.memory_space<vmem>>, vector<1x1x384xf32>
    %12 = vector.shape_cast %11 : vector<1x1x384xf32> to vector<1x384xf32>
    %c4 = arith.constant 4 : index
    %c0_12 = arith.constant 0 : index
    %c0_13 = arith.constant 0 : index
    %13 = vector.load %arg2[%c4, %c0_12, %c0_13] : memref<29x1x384xf32, #tpu.memory_space<vmem>>, vector<1x1x384xf32>
    %14 = vector.shape_cast %13 : vector<1x1x384xf32> to vector<1x384xf32>
    %c5 = arith.constant 5 : index
    %c0_14 = arith.constant 0 : index
    %c0_15 = arith.constant 0 : index
    %15 = vector.load %arg2[%c5, %c0_14, %c0_15] : memref<29x1x384xf32, #tpu.memory_space<vmem>>, vector<1x1x384xf32>
    %16 = vector.shape_cast %15 : vector<1x1x384xf32> to vector<1x384xf32>
    %c6 = arith.constant 6 : index
    %c0_16 = arith.constant 0 : index
    %c0_17 = arith.constant 0 : index
    %17 = vector.load %arg2[%c6, %c0_16, %c0_17] : memref<29x1x384xf32, #tpu.memory_space<vmem>>, vector<1x1x384xf32>
    %18 = vector.shape_cast %17 : vector<1x1x384xf32> to vector<1x384xf32>
    %c7 = arith.constant 7 : index
    %c0_18 = arith.constant 0 : index
    %c0_19 = arith.constant 0 : index
    %19 = vector.load %arg2[%c7, %c0_18, %c0_19] : memref<29x1x384xf32, #tpu.memory_space<vmem>>, vector<1x1x384xf32>
    %20 = vector.shape_cast %19 : vector<1x1x384xf32> to vector<1x384xf32>
    %c8 = arith.constant 8 : index
    %c0_20 = arith.constant 0 : index
    %c0_21 = arith.constant 0 : index
    %21 = vector.load %arg2[%c8, %c0_20, %c0_21] : memref<29x1x384xf32, #tpu.memory_space<vmem>>, vector<1x1x384xf32>
    %22 = vector.shape_cast %21 : vector<1x1x384xf32> to vector<1x384xf32>
    %c9 = arith.constant 9 : index
    %c0_22 = arith.constant 0 : index
    %c0_23 = arith.constant 0 : index
    %23 = vector.load %arg2[%c9, %c0_22, %c0_23] : memref<29x1x384xf32, #tpu.memory_space<vmem>>, vector<1x1x384xf32>
    %24 = vector.shape_cast %23 : vector<1x1x384xf32> to vector<1x384xf32>
    %25 = vector.extract_strided_slice %24 {offsets = [0, 0], sizes = [1, 128], strides = [1, 1]} : vector<1x384xf32> to vector<1x128xf32>
    %c10 = arith.constant 10 : index
    %c0_24 = arith.constant 0 : index
    %c0_25 = arith.constant 0 : index
    %26 = vector.load %arg2[%c10, %c0_24, %c0_25] : memref<29x1x384xf32, #tpu.memory_space<vmem>>, vector<1x1x384xf32>
    %27 = vector.shape_cast %26 : vector<1x1x384xf32> to vector<1x384xf32>
    %28 = vector.extract_strided_slice %27 {offsets = [0, 0], sizes = [1, 128], strides = [1, 1]} : vector<1x384xf32> to vector<1x128xf32>
    %c11 = arith.constant 11 : index
    %c0_26 = arith.constant 0 : index
    %c0_27 = arith.constant 0 : index
    %29 = vector.load %arg2[%c11, %c0_26, %c0_27] : memref<29x1x384xf32, #tpu.memory_space<vmem>>, vector<1x1x384xf32>
    %30 = vector.shape_cast %29 : vector<1x1x384xf32> to vector<1x384xf32>
    %31 = vector.extract_strided_slice %30 {offsets = [0, 0], sizes = [1, 128], strides = [1, 1]} : vector<1x384xf32> to vector<1x128xf32>
    %c12 = arith.constant 12 : index
    %c0_28 = arith.constant 0 : index
    %c0_29 = arith.constant 0 : index
    %32 = vector.load %arg2[%c12, %c0_28, %c0_29] : memref<29x1x384xf32, #tpu.memory_space<vmem>>, vector<1x1x384xf32>
    %33 = vector.shape_cast %32 : vector<1x1x384xf32> to vector<1x384xf32>
    %34 = vector.extract_strided_slice %33 {offsets = [0, 0], sizes = [1, 128], strides = [1, 1]} : vector<1x384xf32> to vector<1x128xf32>
    %c13 = arith.constant 13 : index
    %c0_30 = arith.constant 0 : index
    %c0_31 = arith.constant 0 : index
    %35 = vector.load %arg2[%c13, %c0_30, %c0_31] : memref<29x1x384xf32, #tpu.memory_space<vmem>>, vector<1x1x384xf32>
    %36 = vector.shape_cast %35 : vector<1x1x384xf32> to vector<1x384xf32>
    %37 = vector.extract_strided_slice %36 {offsets = [0, 0], sizes = [1, 128], strides = [1, 1]} : vector<1x384xf32> to vector<1x128xf32>
    %c14 = arith.constant 14 : index
    %c0_32 = arith.constant 0 : index
    %c0_33 = arith.constant 0 : index
    %38 = vector.load %arg2[%c14, %c0_32, %c0_33] : memref<29x1x384xf32, #tpu.memory_space<vmem>>, vector<1x1x384xf32>
    %39 = vector.shape_cast %38 : vector<1x1x384xf32> to vector<1x384xf32>
    %40 = vector.extract_strided_slice %39 {offsets = [0, 0], sizes = [1, 128], strides = [1, 1]} : vector<1x384xf32> to vector<1x128xf32>
    %c15 = arith.constant 15 : index
    %c0_34 = arith.constant 0 : index
    %c0_35 = arith.constant 0 : index
    %41 = vector.load %arg2[%c15, %c0_34, %c0_35] : memref<29x1x384xf32, #tpu.memory_space<vmem>>, vector<1x1x384xf32>
    %42 = vector.shape_cast %41 : vector<1x1x384xf32> to vector<1x384xf32>
    %43 = vector.extract_strided_slice %42 {offsets = [0, 0], sizes = [1, 128], strides = [1, 1]} : vector<1x384xf32> to vector<1x128xf32>
    %c16 = arith.constant 16 : index
    %c0_36 = arith.constant 0 : index
    %c0_37 = arith.constant 0 : index
    %44 = vector.load %arg2[%c16, %c0_36, %c0_37] : memref<29x1x384xf32, #tpu.memory_space<vmem>>, vector<1x1x384xf32>
    %45 = vector.shape_cast %44 : vector<1x1x384xf32> to vector<1x384xf32>
    %46 = vector.extract_strided_slice %45 {offsets = [0, 0], sizes = [1, 128], strides = [1, 1]} : vector<1x384xf32> to vector<1x128xf32>
    %c17 = arith.constant 17 : index
    %c0_38 = arith.constant 0 : index
    %c0_39 = arith.constant 0 : index
    %47 = vector.load %arg2[%c17, %c0_38, %c0_39] : memref<29x1x384xf32, #tpu.memory_space<vmem>>, vector<1x1x384xf32>
    %48 = vector.shape_cast %47 : vector<1x1x384xf32> to vector<1x384xf32>
    %49 = vector.extract_strided_slice %48 {offsets = [0, 0], sizes = [1, 128], strides = [1, 1]} : vector<1x384xf32> to vector<1x128xf32>
    %c18 = arith.constant 18 : index
    %c0_40 = arith.constant 0 : index
    %c0_41 = arith.constant 0 : index
    %50 = vector.load %arg2[%c18, %c0_40, %c0_41] : memref<29x1x384xf32, #tpu.memory_space<vmem>>, vector<1x1x384xf32>
    %51 = vector.shape_cast %50 : vector<1x1x384xf32> to vector<1x384xf32>
    %c19 = arith.constant 19 : index
    %c0_42 = arith.constant 0 : index
    %c0_43 = arith.constant 0 : index
    %52 = vector.load %arg2[%c19, %c0_42, %c0_43] : memref<29x1x384xf32, #tpu.memory_space<vmem>>, vector<1x1x384xf32>
    %53 = vector.shape_cast %52 : vector<1x1x384xf32> to vector<1x384xf32>
    %c20 = arith.constant 20 : index
    %c0_44 = arith.constant 0 : index
    %c0_45 = arith.constant 0 : index
    %54 = vector.load %arg2[%c20, %c0_44, %c0_45] : memref<29x1x384xf32, #tpu.memory_space<vmem>>, vector<1x1x384xf32>
    %55 = vector.shape_cast %54 : vector<1x1x384xf32> to vector<1x384xf32>
    %c21 = arith.constant 21 : index
    %c0_46 = arith.constant 0 : index
    %c0_47 = arith.constant 0 : index
    %56 = vector.load %arg2[%c21, %c0_46, %c0_47] : memref<29x1x384xf32, #tpu.memory_space<vmem>>, vector<1x1x384xf32>
    %57 = vector.shape_cast %56 : vector<1x1x384xf32> to vector<1x384xf32>
    %c22 = arith.constant 22 : index
    %c0_48 = arith.constant 0 : index
    %c0_49 = arith.constant 0 : index
    %58 = vector.load %arg2[%c22, %c0_48, %c0_49] : memref<29x1x384xf32, #tpu.memory_space<vmem>>, vector<1x1x384xf32>
    %59 = vector.shape_cast %58 : vector<1x1x384xf32> to vector<1x384xf32>
    %c23 = arith.constant 23 : index
    %c0_50 = arith.constant 0 : index
    %c0_51 = arith.constant 0 : index
    %60 = vector.load %arg2[%c23, %c0_50, %c0_51] : memref<29x1x384xf32, #tpu.memory_space<vmem>>, vector<1x1x384xf32>
    %61 = vector.shape_cast %60 : vector<1x1x384xf32> to vector<1x384xf32>
    %c24 = arith.constant 24 : index
    %c0_52 = arith.constant 0 : index
    %c0_53 = arith.constant 0 : index
    %62 = vector.load %arg2[%c24, %c0_52, %c0_53] : memref<29x1x384xf32, #tpu.memory_space<vmem>>, vector<1x1x384xf32>
    %63 = vector.shape_cast %62 : vector<1x1x384xf32> to vector<1x384xf32>
    %c25 = arith.constant 25 : index
    %c0_54 = arith.constant 0 : index
    %c0_55 = arith.constant 0 : index
    %64 = vector.load %arg2[%c25, %c0_54, %c0_55] : memref<29x1x384xf32, #tpu.memory_space<vmem>>, vector<1x1x384xf32>
    %65 = vector.shape_cast %64 : vector<1x1x384xf32> to vector<1x384xf32>
    %c26 = arith.constant 26 : index
    %c0_56 = arith.constant 0 : index
    %c0_57 = arith.constant 0 : index
    %66 = vector.load %arg2[%c26, %c0_56, %c0_57] : memref<29x1x384xf32, #tpu.memory_space<vmem>>, vector<1x1x384xf32>
    %67 = vector.shape_cast %66 : vector<1x1x384xf32> to vector<1x384xf32>
    %c0_58 = arith.constant 0 : index
    %c0_59 = arith.constant 0 : index
    %68 = vector.load %arg0[%c0_58, %c0_59] : memref<8x384xf32, #tpu.memory_space<vmem>>, vector<8x384xf32>
    %c0_60 = arith.constant 0 : index
    %c0_61 = arith.constant 0 : index
    %c0_62 = arith.constant 0 : index
    %69 = vector.load %arg1[%c0_60, %c0_61, %c0_62] : memref<4x1x384xf32, #tpu.memory_space<vmem>>, vector<1x1x384xf32>
    %70 = vector.shape_cast %69 : vector<1x1x384xf32> to vector<1x384xf32>
    %c1_63 = arith.constant 1 : index
    %c0_64 = arith.constant 0 : index
    %c0_65 = arith.constant 0 : index
    %71 = vector.load %arg1[%c1_63, %c0_64, %c0_65] : memref<4x1x384xf32, #tpu.memory_space<vmem>>, vector<1x1x384xf32>
    %72 = vector.shape_cast %71 : vector<1x1x384xf32> to vector<1x384xf32>
    %c2_66 = arith.constant 2 : index
    %c0_67 = arith.constant 0 : index
    %c0_68 = arith.constant 0 : index
    %73 = vector.load %arg1[%c2_66, %c0_67, %c0_68] : memref<4x1x384xf32, #tpu.memory_space<vmem>>, vector<1x1x384xf32>
    %74 = vector.shape_cast %73 : vector<1x1x384xf32> to vector<1x384xf32>
    %75 = vector.extract_strided_slice %74 {offsets = [0, 0], sizes = [1, 128], strides = [1, 1]} : vector<1x384xf32> to vector<1x128xf32>
    %c3_69 = arith.constant 3 : index
    %c0_70 = arith.constant 0 : index
    %c0_71 = arith.constant 0 : index
    %76 = vector.load %arg1[%c3_69, %c0_70, %c0_71] : memref<4x1x384xf32, #tpu.memory_space<vmem>>, vector<1x1x384xf32>
    %77 = vector.shape_cast %76 : vector<1x1x384xf32> to vector<1x384xf32>
    %78 = vector.extract_strided_slice %77 {offsets = [0, 0], sizes = [1, 128], strides = [1, 1]} : vector<1x384xf32> to vector<1x128xf32>
    %c0_72 = arith.constant 0 : index
    %c0_73 = arith.constant 0 : index
    %79 = vector.load %arg6[%c0_72, %c0_73] : memref<8x8xf32, #tpu.memory_space<vmem>>, vector<8x8xf32>
    %cst = arith.constant dense<0.000000e+00> : vector<8x384xf32>
    %80 = tpu.matmul %79, %68, %cst {dimension_numbers = #tpu.dot_dimension_numbers<[1], [0], [0], [1], [0, 0, 1, 1], [], []>} : vector<8x8xf32>, vector<8x384xf32>, vector<8x384xf32> -> vector<8x384xf32>
    %c0_74 = arith.constant 0 : index
    %c0_75 = arith.constant 0 : index
    %c0_76 = arith.constant 0 : index
    %81 = vector.load %arg5[%c0_74, %c0_75, %c0_76] : memref<32x32x1xf32, #tpu.memory_space<vmem>>, vector<1x32x1xf32>
    %82 = vector.shape_cast %81 : vector<1x32x1xf32> to vector<32x1xf32>
    %83 = vector.extract_strided_slice %82 {offsets = [0, 0], sizes = [8, 1], strides = [1, 1]} : vector<32x1xf32> to vector<8x1xf32>
    %84 = vector.broadcast %83 : vector<8x1xf32> to vector<8x384xf32>
    %85 = vector.broadcast %70 : vector<1x384xf32> to vector<8x384xf32>
    %86 = arith.mulf %84, %85 : vector<8x384xf32>
    %87 = arith.addf %80, %86 : vector<8x384xf32>
    %c1_77 = arith.constant 1 : index
    %c0_78 = arith.constant 0 : index
    %c0_79 = arith.constant 0 : index
    %88 = vector.load %arg5[%c1_77, %c0_78, %c0_79] : memref<32x32x1xf32, #tpu.memory_space<vmem>>, vector<1x32x1xf32>
    %89 = vector.shape_cast %88 : vector<1x32x1xf32> to vector<32x1xf32>
    %90 = vector.extract_strided_slice %89 {offsets = [0, 0], sizes = [8, 1], strides = [1, 1]} : vector<32x1xf32> to vector<8x1xf32>
    %91 = vector.broadcast %90 : vector<8x1xf32> to vector<8x384xf32>
    %92 = vector.broadcast %72 : vector<1x384xf32> to vector<8x384xf32>
    %93 = arith.mulf %91, %92 : vector<8x384xf32>
    %94 = arith.addf %87, %93 : vector<8x384xf32>
    %c2_80 = arith.constant 2 : index
    %c0_81 = arith.constant 0 : index
    %c0_82 = arith.constant 0 : index
    %95 = vector.load %arg5[%c2_80, %c0_81, %c0_82] : memref<32x32x1xf32, #tpu.memory_space<vmem>>, vector<1x32x1xf32>
    %96 = vector.shape_cast %95 : vector<1x32x1xf32> to vector<32x1xf32>
    %97 = vector.extract_strided_slice %96 {offsets = [0, 0], sizes = [8, 1], strides = [1, 1]} : vector<32x1xf32> to vector<8x1xf32>
    %98 = vector.broadcast %97 : vector<8x1xf32> to vector<8x384xf32>
    %99 = vector.broadcast %1 : vector<1x384xf32> to vector<8x384xf32>
    %100 = arith.mulf %98, %99 : vector<8x384xf32>
    %101 = arith.addf %94, %100 : vector<8x384xf32>
    %c0_83 = arith.constant 0 : index
    %c0_84 = arith.constant 0 : index
    %c0_85 = arith.constant 0 : index
    %102 = vector.load %arg7[%c0_83, %c0_84, %c0_85] : memref<5x72x8xf32, #tpu.memory_space<vmem>>, vector<1x72x8xf32>
    %103 = vector.shape_cast %102 : vector<1x72x8xf32> to vector<72x8xf32>
    %c1_86 = arith.constant 1 : index
    %c0_87 = arith.constant 0 : index
    %c0_88 = arith.constant 0 : index
    %104 = vector.load %arg7[%c1_86, %c0_87, %c0_88] : memref<5x72x8xf32, #tpu.memory_space<vmem>>, vector<1x72x8xf32>
    %105 = vector.shape_cast %104 : vector<1x72x8xf32> to vector<72x8xf32>
    %cst_89 = arith.constant dense<0.000000e+00> : vector<72x384xf32>
    %106 = tpu.matmul %103, %101, %cst_89 {dimension_numbers = #tpu.dot_dimension_numbers<[1], [0], [0], [1], [0, 0, 1, 1], [], []>} : vector<72x8xf32>, vector<8x384xf32>, vector<72x384xf32> -> vector<72x384xf32>
    %107 = vector.extract_strided_slice %106 {offsets = [0, 0], sizes = [8, 384], strides = [1, 1]} : vector<72x384xf32> to vector<8x384xf32>
    %c13_i32 = arith.constant 13 : i32
    %108 = tpu.dynamic_rotate %107 by %c13_i32 dim 1 : vector<8x384xf32>, i32 -> vector<8x384xf32>
    %109 = vector.broadcast %6 : vector<1x384xf32> to vector<8x384xf32>
    %110 = arith.mulf %108, %109 : vector<8x384xf32>
    %111 = vector.extract_strided_slice %106 {offsets = [8, 0], sizes = [8, 384], strides = [1, 1]} : vector<72x384xf32> to vector<8x384xf32>
    %c12_i32 = arith.constant 12 : i32
    %112 = tpu.dynamic_rotate %111 by %c12_i32 dim 1 : vector<8x384xf32>, i32 -> vector<8x384xf32>
    %113 = vector.broadcast %8 : vector<1x384xf32> to vector<8x384xf32>
    %114 = arith.mulf %112, %113 : vector<8x384xf32>
    %115 = arith.addf %110, %114 : vector<8x384xf32>
    %116 = vector.extract_strided_slice %106 {offsets = [16, 0], sizes = [8, 384], strides = [1, 1]} : vector<72x384xf32> to vector<8x384xf32>
    %c11_i32 = arith.constant 11 : i32
    %117 = tpu.dynamic_rotate %116 by %c11_i32 dim 1 : vector<8x384xf32>, i32 -> vector<8x384xf32>
    %118 = vector.broadcast %10 : vector<1x384xf32> to vector<8x384xf32>
    %119 = arith.mulf %117, %118 : vector<8x384xf32>
    %120 = arith.addf %115, %119 : vector<8x384xf32>
    %121 = vector.extract_strided_slice %106 {offsets = [24, 0], sizes = [8, 384], strides = [1, 1]} : vector<72x384xf32> to vector<8x384xf32>
    %c1_i32 = arith.constant 1 : i32
    %122 = tpu.dynamic_rotate %121 by %c1_i32 dim 1 : vector<8x384xf32>, i32 -> vector<8x384xf32>
    %123 = vector.broadcast %12 : vector<1x384xf32> to vector<8x384xf32>
    %124 = arith.mulf %122, %123 : vector<8x384xf32>
    %125 = arith.addf %120, %124 : vector<8x384xf32>
    %126 = vector.extract_strided_slice %106 {offsets = [32, 0], sizes = [8, 384], strides = [1, 1]} : vector<72x384xf32> to vector<8x384xf32>
    %127 = vector.broadcast %14 : vector<1x384xf32> to vector<8x384xf32>
    %128 = arith.mulf %126, %127 : vector<8x384xf32>
    %129 = arith.addf %125, %128 : vector<8x384xf32>
    %130 = vector.extract_strided_slice %106 {offsets = [40, 0], sizes = [8, 384], strides = [1, 1]} : vector<72x384xf32> to vector<8x384xf32>
    %c383_i32 = arith.constant 383 : i32
    %131 = tpu.dynamic_rotate %130 by %c383_i32 dim 1 : vector<8x384xf32>, i32 -> vector<8x384xf32>
    %132 = vector.broadcast %16 : vector<1x384xf32> to vector<8x384xf32>
    %133 = arith.mulf %131, %132 : vector<8x384xf32>
    %134 = arith.addf %129, %133 : vector<8x384xf32>
    %135 = vector.extract_strided_slice %106 {offsets = [48, 0], sizes = [8, 384], strides = [1, 1]} : vector<72x384xf32> to vector<8x384xf32>
    %c373_i32 = arith.constant 373 : i32
    %136 = tpu.dynamic_rotate %135 by %c373_i32 dim 1 : vector<8x384xf32>, i32 -> vector<8x384xf32>
    %137 = vector.broadcast %18 : vector<1x384xf32> to vector<8x384xf32>
    %138 = arith.mulf %136, %137 : vector<8x384xf32>
    %139 = arith.addf %134, %138 : vector<8x384xf32>
    %140 = vector.extract_strided_slice %106 {offsets = [56, 0], sizes = [8, 384], strides = [1, 1]} : vector<72x384xf32> to vector<8x384xf32>
    %c372_i32 = arith.constant 372 : i32
    %141 = tpu.dynamic_rotate %140 by %c372_i32 dim 1 : vector<8x384xf32>, i32 -> vector<8x384xf32>
    %142 = vector.broadcast %20 : vector<1x384xf32> to vector<8x384xf32>
    %143 = arith.mulf %141, %142 : vector<8x384xf32>
    %144 = arith.addf %139, %143 : vector<8x384xf32>
    %145 = vector.extract_strided_slice %106 {offsets = [64, 0], sizes = [8, 384], strides = [1, 1]} : vector<72x384xf32> to vector<8x384xf32>
    %c371_i32 = arith.constant 371 : i32
    %146 = tpu.dynamic_rotate %145 by %c371_i32 dim 1 : vector<8x384xf32>, i32 -> vector<8x384xf32>
    %147 = vector.broadcast %22 : vector<1x384xf32> to vector<8x384xf32>
    %148 = arith.mulf %146, %147 : vector<8x384xf32>
    %149 = arith.addf %144, %148 : vector<8x384xf32>
    %c3_90 = arith.constant 3 : index
    %c0_91 = arith.constant 0 : index
    %c0_92 = arith.constant 0 : index
    %150 = vector.load %arg5[%c3_90, %c0_91, %c0_92] : memref<32x32x1xf32, #tpu.memory_space<vmem>>, vector<1x32x1xf32>
    %151 = vector.shape_cast %150 : vector<1x32x1xf32> to vector<32x1xf32>
    %152 = vector.extract_strided_slice %151 {offsets = [0, 0], sizes = [8, 1], strides = [1, 1]} : vector<32x1xf32> to vector<8x1xf32>
    %c4_93 = arith.constant 4 : index
    %c0_94 = arith.constant 0 : index
    %c0_95 = arith.constant 0 : index
    %153 = vector.load %arg5[%c4_93, %c0_94, %c0_95] : memref<32x32x1xf32, #tpu.memory_space<vmem>>, vector<1x32x1xf32>
    %154 = vector.shape_cast %153 : vector<1x32x1xf32> to vector<32x1xf32>
    %155 = vector.extract_strided_slice %154 {offsets = [0, 0], sizes = [8, 1], strides = [1, 1]} : vector<32x1xf32> to vector<8x1xf32>
    %cst_96 = arith.constant dense<0.000000e+00> : vector<8xf32>
    %156 = vector.multi_reduction <add>, %149, %cst_96 [1] : vector<8x384xf32> to vector<8xf32>
    %157 = vector.shape_cast %156 : vector<8xf32> to vector<8x1xf32>
    %cst_97 = arith.constant 0.00347222225 : f32
    %158 = vector.broadcast %cst_97 : f32 to vector<8x1xf32>
    %159 = arith.mulf %157, %158 : vector<8x1xf32>
    %160 = arith.mulf %149, %149 : vector<8x384xf32>
    %cst_98 = arith.constant dense<0.000000e+00> : vector<8xf32>
    %161 = vector.multi_reduction <add>, %160, %cst_98 [1] : vector<8x384xf32> to vector<8xf32>
    %162 = vector.shape_cast %161 : vector<8xf32> to vector<8x1xf32>
    %cst_99 = arith.constant 0.00347222225 : f32
    %163 = vector.broadcast %cst_99 : f32 to vector<8x1xf32>
    %164 = arith.mulf %162, %163 : vector<8x1xf32>
    %165 = arith.mulf %159, %159 : vector<8x1xf32>
    %166 = arith.subf %164, %165 : vector<8x1xf32>
    %cst_100 = arith.constant 0.000000e+00 : f32
    %167 = vector.broadcast %cst_100 : f32 to vector<8x1xf32>
    %168 = arith.maximumf %166, %167 : vector<8x1xf32>
    %169 = vector.broadcast %159 : vector<8x1xf32> to vector<8x384xf32>
    %170 = arith.subf %149, %169 : vector<8x384xf32>
    %cst_101 = arith.constant 9.99999974E-6 : f32
    %171 = vector.broadcast %cst_101 : f32 to vector<8x1xf32>
    %172 = arith.addf %168, %171 : vector<8x1xf32>
    %173 = math.rsqrt %172 : vector<8x1xf32>
    %174 = arith.mulf %173, %152 : vector<8x1xf32>
    %175 = vector.broadcast %174 : vector<8x1xf32> to vector<8x384xf32>
    %176 = arith.mulf %170, %175 : vector<8x384xf32>
    %177 = vector.broadcast %155 : vector<8x1xf32> to vector<8x384xf32>
    %178 = arith.addf %176, %177 : vector<8x384xf32>
    %179 = vector.broadcast %1 : vector<1x384xf32> to vector<8x384xf32>
    %180 = arith.mulf %178, %179 : vector<8x384xf32>
    %cst_102 = arith.constant 0.000000e+00 : f32
    %181 = vector.broadcast %cst_102 : f32 to vector<8x384xf32>
    %182 = arith.maximumf %180, %181 : vector<8x384xf32>
    %cst_103 = arith.constant dense<0.000000e+00> : vector<72x384xf32>
    %183 = tpu.matmul %105, %182, %cst_103 {dimension_numbers = #tpu.dot_dimension_numbers<[1], [0], [0], [1], [0, 0, 1, 1], [], []>} : vector<72x8xf32>, vector<8x384xf32>, vector<72x384xf32> -> vector<72x384xf32>
    %184 = vector.extract_strided_slice %183 {offsets = [0, 0], sizes = [8, 384], strides = [1, 1]} : vector<72x384xf32> to vector<8x384xf32>
    %c13_i32_104 = arith.constant 13 : i32
    %185 = tpu.dynamic_rotate %184 by %c13_i32_104 dim 1 : vector<8x384xf32>, i32 -> vector<8x384xf32>
    %186 = vector.broadcast %6 : vector<1x384xf32> to vector<8x384xf32>
    %187 = arith.mulf %185, %186 : vector<8x384xf32>
    %188 = vector.extract_strided_slice %183 {offsets = [8, 0], sizes = [8, 384], strides = [1, 1]} : vector<72x384xf32> to vector<8x384xf32>
    %c12_i32_105 = arith.constant 12 : i32
    %189 = tpu.dynamic_rotate %188 by %c12_i32_105 dim 1 : vector<8x384xf32>, i32 -> vector<8x384xf32>
    %190 = vector.broadcast %8 : vector<1x384xf32> to vector<8x384xf32>
    %191 = arith.mulf %189, %190 : vector<8x384xf32>
    %192 = arith.addf %187, %191 : vector<8x384xf32>
    %193 = vector.extract_strided_slice %183 {offsets = [16, 0], sizes = [8, 384], strides = [1, 1]} : vector<72x384xf32> to vector<8x384xf32>
    %c11_i32_106 = arith.constant 11 : i32
    %194 = tpu.dynamic_rotate %193 by %c11_i32_106 dim 1 : vector<8x384xf32>, i32 -> vector<8x384xf32>
    %195 = vector.broadcast %10 : vector<1x384xf32> to vector<8x384xf32>
    %196 = arith.mulf %194, %195 : vector<8x384xf32>
    %197 = arith.addf %192, %196 : vector<8x384xf32>
    %198 = vector.extract_strided_slice %183 {offsets = [24, 0], sizes = [8, 384], strides = [1, 1]} : vector<72x384xf32> to vector<8x384xf32>
    %c1_i32_107 = arith.constant 1 : i32
    %199 = tpu.dynamic_rotate %198 by %c1_i32_107 dim 1 : vector<8x384xf32>, i32 -> vector<8x384xf32>
    %200 = vector.broadcast %12 : vector<1x384xf32> to vector<8x384xf32>
    %201 = arith.mulf %199, %200 : vector<8x384xf32>
    %202 = arith.addf %197, %201 : vector<8x384xf32>
    %203 = vector.extract_strided_slice %183 {offsets = [32, 0], sizes = [8, 384], strides = [1, 1]} : vector<72x384xf32> to vector<8x384xf32>
    %204 = vector.broadcast %14 : vector<1x384xf32> to vector<8x384xf32>
    %205 = arith.mulf %203, %204 : vector<8x384xf32>
    %206 = arith.addf %202, %205 : vector<8x384xf32>
    %207 = vector.extract_strided_slice %183 {offsets = [40, 0], sizes = [8, 384], strides = [1, 1]} : vector<72x384xf32> to vector<8x384xf32>
    %c383_i32_108 = arith.constant 383 : i32
    %208 = tpu.dynamic_rotate %207 by %c383_i32_108 dim 1 : vector<8x384xf32>, i32 -> vector<8x384xf32>
    %209 = vector.broadcast %16 : vector<1x384xf32> to vector<8x384xf32>
    %210 = arith.mulf %208, %209 : vector<8x384xf32>
    %211 = arith.addf %206, %210 : vector<8x384xf32>
    %212 = vector.extract_strided_slice %183 {offsets = [48, 0], sizes = [8, 384], strides = [1, 1]} : vector<72x384xf32> to vector<8x384xf32>
    %c373_i32_109 = arith.constant 373 : i32
    %213 = tpu.dynamic_rotate %212 by %c373_i32_109 dim 1 : vector<8x384xf32>, i32 -> vector<8x384xf32>
    %214 = vector.broadcast %18 : vector<1x384xf32> to vector<8x384xf32>
    %215 = arith.mulf %213, %214 : vector<8x384xf32>
    %216 = arith.addf %211, %215 : vector<8x384xf32>
    %217 = vector.extract_strided_slice %183 {offsets = [56, 0], sizes = [8, 384], strides = [1, 1]} : vector<72x384xf32> to vector<8x384xf32>
    %c372_i32_110 = arith.constant 372 : i32
    %218 = tpu.dynamic_rotate %217 by %c372_i32_110 dim 1 : vector<8x384xf32>, i32 -> vector<8x384xf32>
    %219 = vector.broadcast %20 : vector<1x384xf32> to vector<8x384xf32>
    %220 = arith.mulf %218, %219 : vector<8x384xf32>
    %221 = arith.addf %216, %220 : vector<8x384xf32>
    %222 = vector.extract_strided_slice %183 {offsets = [64, 0], sizes = [8, 384], strides = [1, 1]} : vector<72x384xf32> to vector<8x384xf32>
    %c371_i32_111 = arith.constant 371 : i32
    %223 = tpu.dynamic_rotate %222 by %c371_i32_111 dim 1 : vector<8x384xf32>, i32 -> vector<8x384xf32>
    %224 = vector.broadcast %22 : vector<1x384xf32> to vector<8x384xf32>
    %225 = arith.mulf %223, %224 : vector<8x384xf32>
    %226 = arith.addf %221, %225 : vector<8x384xf32>
    %c5_112 = arith.constant 5 : index
    %c0_113 = arith.constant 0 : index
    %c0_114 = arith.constant 0 : index
    %227 = vector.load %arg5[%c5_112, %c0_113, %c0_114] : memref<32x32x1xf32, #tpu.memory_space<vmem>>, vector<1x32x1xf32>
    %228 = vector.shape_cast %227 : vector<1x32x1xf32> to vector<32x1xf32>
    %229 = vector.extract_strided_slice %228 {offsets = [0, 0], sizes = [8, 1], strides = [1, 1]} : vector<32x1xf32> to vector<8x1xf32>
    %c6_115 = arith.constant 6 : index
    %c0_116 = arith.constant 0 : index
    %c0_117 = arith.constant 0 : index
    %230 = vector.load %arg5[%c6_115, %c0_116, %c0_117] : memref<32x32x1xf32, #tpu.memory_space<vmem>>, vector<1x32x1xf32>
    %231 = vector.shape_cast %230 : vector<1x32x1xf32> to vector<32x1xf32>
    %232 = vector.extract_strided_slice %231 {offsets = [0, 0], sizes = [8, 1], strides = [1, 1]} : vector<32x1xf32> to vector<8x1xf32>
    %cst_118 = arith.constant dense<0.000000e+00> : vector<8xf32>
    %233 = vector.multi_reduction <add>, %226, %cst_118 [1] : vector<8x384xf32> to vector<8xf32>
    %234 = vector.shape_cast %233 : vector<8xf32> to vector<8x1xf32>
    %cst_119 = arith.constant 0.00347222225 : f32
    %235 = vector.broadcast %cst_119 : f32 to vector<8x1xf32>
    %236 = arith.mulf %234, %235 : vector<8x1xf32>
    %237 = arith.mulf %226, %226 : vector<8x384xf32>
    %cst_120 = arith.constant dense<0.000000e+00> : vector<8xf32>
    %238 = vector.multi_reduction <add>, %237, %cst_120 [1] : vector<8x384xf32> to vector<8xf32>
    %239 = vector.shape_cast %238 : vector<8xf32> to vector<8x1xf32>
    %cst_121 = arith.constant 0.00347222225 : f32
    %240 = vector.broadcast %cst_121 : f32 to vector<8x1xf32>
    %241 = arith.mulf %239, %240 : vector<8x1xf32>
    %242 = arith.mulf %236, %236 : vector<8x1xf32>
    %243 = arith.subf %241, %242 : vector<8x1xf32>
    %cst_122 = arith.constant 0.000000e+00 : f32
    %244 = vector.broadcast %cst_122 : f32 to vector<8x1xf32>
    %245 = arith.maximumf %243, %244 : vector<8x1xf32>
    %246 = vector.broadcast %236 : vector<8x1xf32> to vector<8x384xf32>
    %247 = arith.subf %226, %246 : vector<8x384xf32>
    %cst_123 = arith.constant 9.99999974E-6 : f32
    %248 = vector.broadcast %cst_123 : f32 to vector<8x1xf32>
    %249 = arith.addf %245, %248 : vector<8x1xf32>
    %250 = math.rsqrt %249 : vector<8x1xf32>
    %251 = arith.mulf %250, %229 : vector<8x1xf32>
    %252 = vector.broadcast %251 : vector<8x1xf32> to vector<8x384xf32>
    %253 = arith.mulf %247, %252 : vector<8x384xf32>
    %254 = vector.broadcast %232 : vector<8x1xf32> to vector<8x384xf32>
    %255 = arith.addf %253, %254 : vector<8x384xf32>
    %256 = vector.broadcast %1 : vector<1x384xf32> to vector<8x384xf32>
    %257 = arith.mulf %255, %256 : vector<8x384xf32>
    %258 = arith.addf %257, %101 : vector<8x384xf32>
    %cst_124 = arith.constant 0.000000e+00 : f32
    %259 = vector.broadcast %cst_124 : f32 to vector<8x384xf32>
    %260 = arith.maximumf %258, %259 : vector<8x384xf32>
    %261 = arith.addf %260, %101 : vector<8x384xf32>
    %c0_125 = arith.constant 0 : index
    %c0_126 = arith.constant 0 : index
    %262 = vector.load %arg8[%c0_125, %c0_126] : memref<288x8xf32, #tpu.memory_space<vmem>>, vector<288x8xf32>
    %cst_127 = arith.constant dense<0.000000e+00> : vector<288x384xf32>
    %263 = tpu.matmul %262, %261, %cst_127 {dimension_numbers = #tpu.dot_dimension_numbers<[1], [0], [0], [1], [0, 0, 1, 1], [], []>} : vector<288x8xf32>, vector<8x384xf32>, vector<288x384xf32> -> vector<288x384xf32>
    %264 = vector.extract_strided_slice %263 {offsets = [0, 0], sizes = [32, 384], strides = [1, 1]} : vector<288x384xf32> to vector<32x384xf32>
    %c13_i32_128 = arith.constant 13 : i32
    %265 = tpu.dynamic_rotate %264 by %c13_i32_128 dim 1 : vector<32x384xf32>, i32 -> vector<32x384xf32>
    %266 = vector.broadcast %6 : vector<1x384xf32> to vector<32x384xf32>
    %267 = arith.mulf %265, %266 : vector<32x384xf32>
    %268 = vector.extract_strided_slice %263 {offsets = [32, 0], sizes = [32, 384], strides = [1, 1]} : vector<288x384xf32> to vector<32x384xf32>
    %c12_i32_129 = arith.constant 12 : i32
    %269 = tpu.dynamic_rotate %268 by %c12_i32_129 dim 1 : vector<32x384xf32>, i32 -> vector<32x384xf32>
    %270 = vector.broadcast %8 : vector<1x384xf32> to vector<32x384xf32>
    %271 = arith.mulf %269, %270 : vector<32x384xf32>
    %272 = arith.addf %267, %271 : vector<32x384xf32>
    %273 = vector.extract_strided_slice %263 {offsets = [64, 0], sizes = [32, 384], strides = [1, 1]} : vector<288x384xf32> to vector<32x384xf32>
    %c11_i32_130 = arith.constant 11 : i32
    %274 = tpu.dynamic_rotate %273 by %c11_i32_130 dim 1 : vector<32x384xf32>, i32 -> vector<32x384xf32>
    %275 = vector.broadcast %10 : vector<1x384xf32> to vector<32x384xf32>
    %276 = arith.mulf %274, %275 : vector<32x384xf32>
    %277 = arith.addf %272, %276 : vector<32x384xf32>
    %278 = vector.extract_strided_slice %263 {offsets = [96, 0], sizes = [32, 384], strides = [1, 1]} : vector<288x384xf32> to vector<32x384xf32>
    %c1_i32_131 = arith.constant 1 : i32
    %279 = tpu.dynamic_rotate %278 by %c1_i32_131 dim 1 : vector<32x384xf32>, i32 -> vector<32x384xf32>
    %280 = vector.broadcast %12 : vector<1x384xf32> to vector<32x384xf32>
    %281 = arith.mulf %279, %280 : vector<32x384xf32>
    %282 = arith.addf %277, %281 : vector<32x384xf32>
    %283 = vector.extract_strided_slice %263 {offsets = [128, 0], sizes = [32, 384], strides = [1, 1]} : vector<288x384xf32> to vector<32x384xf32>
    %284 = vector.broadcast %14 : vector<1x384xf32> to vector<32x384xf32>
    %285 = arith.mulf %283, %284 : vector<32x384xf32>
    %286 = arith.addf %282, %285 : vector<32x384xf32>
    %287 = vector.extract_strided_slice %263 {offsets = [160, 0], sizes = [32, 384], strides = [1, 1]} : vector<288x384xf32> to vector<32x384xf32>
    %c383_i32_132 = arith.constant 383 : i32
    %288 = tpu.dynamic_rotate %287 by %c383_i32_132 dim 1 : vector<32x384xf32>, i32 -> vector<32x384xf32>
    %289 = vector.broadcast %16 : vector<1x384xf32> to vector<32x384xf32>
    %290 = arith.mulf %288, %289 : vector<32x384xf32>
    %291 = arith.addf %286, %290 : vector<32x384xf32>
    %292 = vector.extract_strided_slice %263 {offsets = [192, 0], sizes = [32, 384], strides = [1, 1]} : vector<288x384xf32> to vector<32x384xf32>
    %c373_i32_133 = arith.constant 373 : i32
    %293 = tpu.dynamic_rotate %292 by %c373_i32_133 dim 1 : vector<32x384xf32>, i32 -> vector<32x384xf32>
    %294 = vector.broadcast %18 : vector<1x384xf32> to vector<32x384xf32>
    %295 = arith.mulf %293, %294 : vector<32x384xf32>
    %296 = arith.addf %291, %295 : vector<32x384xf32>
    %297 = vector.extract_strided_slice %263 {offsets = [224, 0], sizes = [32, 384], strides = [1, 1]} : vector<288x384xf32> to vector<32x384xf32>
    %c372_i32_134 = arith.constant 372 : i32
    %298 = tpu.dynamic_rotate %297 by %c372_i32_134 dim 1 : vector<32x384xf32>, i32 -> vector<32x384xf32>
    %299 = vector.broadcast %20 : vector<1x384xf32> to vector<32x384xf32>
    %300 = arith.mulf %298, %299 : vector<32x384xf32>
    %301 = arith.addf %296, %300 : vector<32x384xf32>
    %302 = vector.extract_strided_slice %263 {offsets = [256, 0], sizes = [32, 384], strides = [1, 1]} : vector<288x384xf32> to vector<32x384xf32>
    %c371_i32_135 = arith.constant 371 : i32
    %303 = tpu.dynamic_rotate %302 by %c371_i32_135 dim 1 : vector<32x384xf32>, i32 -> vector<32x384xf32>
    %304 = vector.broadcast %22 : vector<1x384xf32> to vector<32x384xf32>
    %305 = arith.mulf %303, %304 : vector<32x384xf32>
    %306 = arith.addf %301, %305 : vector<32x384xf32>
    %c0_136 = arith.constant 0 : index
    %c0_137 = arith.constant 0 : index
    %307 = vector.load %arg3[%c0_136, %c0_137] : memref<384x128xf32, #tpu.memory_space<vmem>>, vector<384x128xf32>
    %cst_138 = arith.constant dense<0.000000e+00> : vector<32x128xf32>
    %308 = tpu.matmul %306, %307, %cst_138 {dimension_numbers = #tpu.dot_dimension_numbers<[1], [0], [0], [1], [0, 0, 1, 1], [], []>} : vector<32x384xf32>, vector<384x128xf32>, vector<32x128xf32> -> vector<32x128xf32>
    %c7_139 = arith.constant 7 : index
    %c0_140 = arith.constant 0 : index
    %c0_141 = arith.constant 0 : index
    %309 = vector.load %arg5[%c7_139, %c0_140, %c0_141] : memref<32x32x1xf32, #tpu.memory_space<vmem>>, vector<1x32x1xf32>
    %310 = vector.shape_cast %309 : vector<1x32x1xf32> to vector<32x1xf32>
    %311 = vector.broadcast %310 : vector<32x1xf32> to vector<32x128xf32>
    %312 = vector.broadcast %4 : vector<1x128xf32> to vector<32x128xf32>
    %313 = arith.mulf %311, %312 : vector<32x128xf32>
    %314 = arith.addf %308, %313 : vector<32x128xf32>
    %c8_142 = arith.constant 8 : index
    %c0_143 = arith.constant 0 : index
    %c0_144 = arith.constant 0 : index
    %315 = vector.load %arg5[%c8_142, %c0_143, %c0_144] : memref<32x32x1xf32, #tpu.memory_space<vmem>>, vector<1x32x1xf32>
    %316 = vector.shape_cast %315 : vector<1x32x1xf32> to vector<32x1xf32>
    %c9_145 = arith.constant 9 : index
    %c0_146 = arith.constant 0 : index
    %c0_147 = arith.constant 0 : index
    %317 = vector.load %arg5[%c9_145, %c0_146, %c0_147] : memref<32x32x1xf32, #tpu.memory_space<vmem>>, vector<1x32x1xf32>
    %318 = vector.shape_cast %317 : vector<1x32x1xf32> to vector<32x1xf32>
    %cst_148 = arith.constant dense<0.000000e+00> : vector<32xf32>
    %319 = vector.multi_reduction <add>, %314, %cst_148 [1] : vector<32x128xf32> to vector<32xf32>
    %320 = vector.shape_cast %319 : vector<32xf32> to vector<32x1xf32>
    %cst_149 = arith.constant 3.125000e-02 : f32
    %321 = vector.broadcast %cst_149 : f32 to vector<32x1xf32>
    %322 = arith.mulf %320, %321 : vector<32x1xf32>
    %323 = arith.mulf %314, %314 : vector<32x128xf32>
    %cst_150 = arith.constant dense<0.000000e+00> : vector<32xf32>
    %324 = vector.multi_reduction <add>, %323, %cst_150 [1] : vector<32x128xf32> to vector<32xf32>
    %325 = vector.shape_cast %324 : vector<32xf32> to vector<32x1xf32>
    %cst_151 = arith.constant 3.125000e-02 : f32
    %326 = vector.broadcast %cst_151 : f32 to vector<32x1xf32>
    %327 = arith.mulf %325, %326 : vector<32x1xf32>
    %328 = arith.mulf %322, %322 : vector<32x1xf32>
    %329 = arith.subf %327, %328 : vector<32x1xf32>
    %cst_152 = arith.constant 0.000000e+00 : f32
    %330 = vector.broadcast %cst_152 : f32 to vector<32x1xf32>
    %331 = arith.maximumf %329, %330 : vector<32x1xf32>
    %332 = vector.broadcast %322 : vector<32x1xf32> to vector<32x128xf32>
    %333 = arith.subf %314, %332 : vector<32x128xf32>
    %cst_153 = arith.constant 9.99999974E-6 : f32
    %334 = vector.broadcast %cst_153 : f32 to vector<32x1xf32>
    %335 = arith.addf %331, %334 : vector<32x1xf32>
    %336 = math.rsqrt %335 : vector<32x1xf32>
    %337 = arith.mulf %336, %316 : vector<32x1xf32>
    %338 = vector.broadcast %337 : vector<32x1xf32> to vector<32x128xf32>
    %339 = arith.mulf %333, %338 : vector<32x128xf32>
    %340 = vector.broadcast %318 : vector<32x1xf32> to vector<32x128xf32>
    %341 = arith.addf %339, %340 : vector<32x128xf32>
    %342 = vector.broadcast %4 : vector<1x128xf32> to vector<32x128xf32>
    %343 = arith.mulf %341, %342 : vector<32x128xf32>
    %c0_154 = arith.constant 0 : index
    %c0_155 = arith.constant 0 : index
    %c0_156 = arith.constant 0 : index
    %344 = vector.load %arg9[%c0_154, %c0_155, %c0_156] : memref<4x288x32xf32, #tpu.memory_space<vmem>>, vector<1x288x32xf32>
    %345 = vector.shape_cast %344 : vector<1x288x32xf32> to vector<288x32xf32>
    %c1_157 = arith.constant 1 : index
    %c0_158 = arith.constant 0 : index
    %c0_159 = arith.constant 0 : index
    %346 = vector.load %arg9[%c1_157, %c0_158, %c0_159] : memref<4x288x32xf32, #tpu.memory_space<vmem>>, vector<1x288x32xf32>
    %347 = vector.shape_cast %346 : vector<1x288x32xf32> to vector<288x32xf32>
    %cst_160 = arith.constant dense<0.000000e+00> : vector<288x128xf32>
    %348 = tpu.matmul %345, %343, %cst_160 {dimension_numbers = #tpu.dot_dimension_numbers<[1], [0], [0], [1], [0, 0, 1, 1], [], []>} : vector<288x32xf32>, vector<32x128xf32>, vector<288x128xf32> -> vector<288x128xf32>
    %349 = vector.extract_strided_slice %348 {offsets = [0, 0], sizes = [32, 128], strides = [1, 1]} : vector<288x128xf32> to vector<32x128xf32>
    %c5_i32 = arith.constant 5 : i32
    %350 = tpu.dynamic_rotate %349 by %c5_i32 dim 1 : vector<32x128xf32>, i32 -> vector<32x128xf32>
    %351 = vector.broadcast %25 : vector<1x128xf32> to vector<32x128xf32>
    %352 = arith.mulf %350, %351 : vector<32x128xf32>
    %353 = vector.extract_strided_slice %348 {offsets = [32, 0], sizes = [32, 128], strides = [1, 1]} : vector<288x128xf32> to vector<32x128xf32>
    %c4_i32 = arith.constant 4 : i32
    %354 = tpu.dynamic_rotate %353 by %c4_i32 dim 1 : vector<32x128xf32>, i32 -> vector<32x128xf32>
    %355 = vector.broadcast %28 : vector<1x128xf32> to vector<32x128xf32>
    %356 = arith.mulf %354, %355 : vector<32x128xf32>
    %357 = arith.addf %352, %356 : vector<32x128xf32>
    %358 = vector.extract_strided_slice %348 {offsets = [64, 0], sizes = [32, 128], strides = [1, 1]} : vector<288x128xf32> to vector<32x128xf32>
    %c3_i32 = arith.constant 3 : i32
    %359 = tpu.dynamic_rotate %358 by %c3_i32 dim 1 : vector<32x128xf32>, i32 -> vector<32x128xf32>
    %360 = vector.broadcast %31 : vector<1x128xf32> to vector<32x128xf32>
    %361 = arith.mulf %359, %360 : vector<32x128xf32>
    %362 = arith.addf %357, %361 : vector<32x128xf32>
    %363 = vector.extract_strided_slice %348 {offsets = [96, 0], sizes = [32, 128], strides = [1, 1]} : vector<288x128xf32> to vector<32x128xf32>
    %c1_i32_161 = arith.constant 1 : i32
    %364 = tpu.dynamic_rotate %363 by %c1_i32_161 dim 1 : vector<32x128xf32>, i32 -> vector<32x128xf32>
    %365 = vector.broadcast %34 : vector<1x128xf32> to vector<32x128xf32>
    %366 = arith.mulf %364, %365 : vector<32x128xf32>
    %367 = arith.addf %362, %366 : vector<32x128xf32>
    %368 = vector.extract_strided_slice %348 {offsets = [128, 0], sizes = [32, 128], strides = [1, 1]} : vector<288x128xf32> to vector<32x128xf32>
    %369 = vector.broadcast %37 : vector<1x128xf32> to vector<32x128xf32>
    %370 = arith.mulf %368, %369 : vector<32x128xf32>
    %371 = arith.addf %367, %370 : vector<32x128xf32>
    %372 = vector.extract_strided_slice %348 {offsets = [160, 0], sizes = [32, 128], strides = [1, 1]} : vector<288x128xf32> to vector<32x128xf32>
    %c127_i32 = arith.constant 127 : i32
    %373 = tpu.dynamic_rotate %372 by %c127_i32 dim 1 : vector<32x128xf32>, i32 -> vector<32x128xf32>
    %374 = vector.broadcast %40 : vector<1x128xf32> to vector<32x128xf32>
    %375 = arith.mulf %373, %374 : vector<32x128xf32>
    %376 = arith.addf %371, %375 : vector<32x128xf32>
    %377 = vector.extract_strided_slice %348 {offsets = [192, 0], sizes = [32, 128], strides = [1, 1]} : vector<288x128xf32> to vector<32x128xf32>
    %c125_i32 = arith.constant 125 : i32
    %378 = tpu.dynamic_rotate %377 by %c125_i32 dim 1 : vector<32x128xf32>, i32 -> vector<32x128xf32>
    %379 = vector.broadcast %43 : vector<1x128xf32> to vector<32x128xf32>
    %380 = arith.mulf %378, %379 : vector<32x128xf32>
    %381 = arith.addf %376, %380 : vector<32x128xf32>
    %382 = vector.extract_strided_slice %348 {offsets = [224, 0], sizes = [32, 128], strides = [1, 1]} : vector<288x128xf32> to vector<32x128xf32>
    %c124_i32 = arith.constant 124 : i32
    %383 = tpu.dynamic_rotate %382 by %c124_i32 dim 1 : vector<32x128xf32>, i32 -> vector<32x128xf32>
    %384 = vector.broadcast %46 : vector<1x128xf32> to vector<32x128xf32>
    %385 = arith.mulf %383, %384 : vector<32x128xf32>
    %386 = arith.addf %381, %385 : vector<32x128xf32>
    %387 = vector.extract_strided_slice %348 {offsets = [256, 0], sizes = [32, 128], strides = [1, 1]} : vector<288x128xf32> to vector<32x128xf32>
    %c123_i32 = arith.constant 123 : i32
    %388 = tpu.dynamic_rotate %387 by %c123_i32 dim 1 : vector<32x128xf32>, i32 -> vector<32x128xf32>
    %389 = vector.broadcast %49 : vector<1x128xf32> to vector<32x128xf32>
    %390 = arith.mulf %388, %389 : vector<32x128xf32>
    %391 = arith.addf %386, %390 : vector<32x128xf32>
    %c10_162 = arith.constant 10 : index
    %c0_163 = arith.constant 0 : index
    %c0_164 = arith.constant 0 : index
    %392 = vector.load %arg5[%c10_162, %c0_163, %c0_164] : memref<32x32x1xf32, #tpu.memory_space<vmem>>, vector<1x32x1xf32>
    %393 = vector.shape_cast %392 : vector<1x32x1xf32> to vector<32x1xf32>
    %c11_165 = arith.constant 11 : index
    %c0_166 = arith.constant 0 : index
    %c0_167 = arith.constant 0 : index
    %394 = vector.load %arg5[%c11_165, %c0_166, %c0_167] : memref<32x32x1xf32, #tpu.memory_space<vmem>>, vector<1x32x1xf32>
    %395 = vector.shape_cast %394 : vector<1x32x1xf32> to vector<32x1xf32>
    %cst_168 = arith.constant dense<0.000000e+00> : vector<32xf32>
    %396 = vector.multi_reduction <add>, %391, %cst_168 [1] : vector<32x128xf32> to vector<32xf32>
    %397 = vector.shape_cast %396 : vector<32xf32> to vector<32x1xf32>
    %cst_169 = arith.constant 3.125000e-02 : f32
    %398 = vector.broadcast %cst_169 : f32 to vector<32x1xf32>
    %399 = arith.mulf %397, %398 : vector<32x1xf32>
    %400 = arith.mulf %391, %391 : vector<32x128xf32>
    %cst_170 = arith.constant dense<0.000000e+00> : vector<32xf32>
    %401 = vector.multi_reduction <add>, %400, %cst_170 [1] : vector<32x128xf32> to vector<32xf32>
    %402 = vector.shape_cast %401 : vector<32xf32> to vector<32x1xf32>
    %cst_171 = arith.constant 3.125000e-02 : f32
    %403 = vector.broadcast %cst_171 : f32 to vector<32x1xf32>
    %404 = arith.mulf %402, %403 : vector<32x1xf32>
    %405 = arith.mulf %399, %399 : vector<32x1xf32>
    %406 = arith.subf %404, %405 : vector<32x1xf32>
    %cst_172 = arith.constant 0.000000e+00 : f32
    %407 = vector.broadcast %cst_172 : f32 to vector<32x1xf32>
    %408 = arith.maximumf %406, %407 : vector<32x1xf32>
    %409 = vector.broadcast %399 : vector<32x1xf32> to vector<32x128xf32>
    %410 = arith.subf %391, %409 : vector<32x128xf32>
    %cst_173 = arith.constant 9.99999974E-6 : f32
    %411 = vector.broadcast %cst_173 : f32 to vector<32x1xf32>
    %412 = arith.addf %408, %411 : vector<32x1xf32>
    %413 = math.rsqrt %412 : vector<32x1xf32>
    %414 = arith.mulf %413, %393 : vector<32x1xf32>
    %415 = vector.broadcast %414 : vector<32x1xf32> to vector<32x128xf32>
    %416 = arith.mulf %410, %415 : vector<32x128xf32>
    %417 = vector.broadcast %395 : vector<32x1xf32> to vector<32x128xf32>
    %418 = arith.addf %416, %417 : vector<32x128xf32>
    %419 = vector.broadcast %4 : vector<1x128xf32> to vector<32x128xf32>
    %420 = arith.mulf %418, %419 : vector<32x128xf32>
    %cst_174 = arith.constant 0.000000e+00 : f32
    %421 = vector.broadcast %cst_174 : f32 to vector<32x128xf32>
    %422 = arith.maximumf %420, %421 : vector<32x128xf32>
    %cst_175 = arith.constant dense<0.000000e+00> : vector<288x128xf32>
    %423 = tpu.matmul %347, %422, %cst_175 {dimension_numbers = #tpu.dot_dimension_numbers<[1], [0], [0], [1], [0, 0, 1, 1], [], []>} : vector<288x32xf32>, vector<32x128xf32>, vector<288x128xf32> -> vector<288x128xf32>
    %424 = vector.extract_strided_slice %423 {offsets = [0, 0], sizes = [32, 128], strides = [1, 1]} : vector<288x128xf32> to vector<32x128xf32>
    %c5_i32_176 = arith.constant 5 : i32
    %425 = tpu.dynamic_rotate %424 by %c5_i32_176 dim 1 : vector<32x128xf32>, i32 -> vector<32x128xf32>
    %426 = vector.broadcast %25 : vector<1x128xf32> to vector<32x128xf32>
    %427 = arith.mulf %425, %426 : vector<32x128xf32>
    %428 = vector.extract_strided_slice %423 {offsets = [32, 0], sizes = [32, 128], strides = [1, 1]} : vector<288x128xf32> to vector<32x128xf32>
    %c4_i32_177 = arith.constant 4 : i32
    %429 = tpu.dynamic_rotate %428 by %c4_i32_177 dim 1 : vector<32x128xf32>, i32 -> vector<32x128xf32>
    %430 = vector.broadcast %28 : vector<1x128xf32> to vector<32x128xf32>
    %431 = arith.mulf %429, %430 : vector<32x128xf32>
    %432 = arith.addf %427, %431 : vector<32x128xf32>
    %433 = vector.extract_strided_slice %423 {offsets = [64, 0], sizes = [32, 128], strides = [1, 1]} : vector<288x128xf32> to vector<32x128xf32>
    %c3_i32_178 = arith.constant 3 : i32
    %434 = tpu.dynamic_rotate %433 by %c3_i32_178 dim 1 : vector<32x128xf32>, i32 -> vector<32x128xf32>
    %435 = vector.broadcast %31 : vector<1x128xf32> to vector<32x128xf32>
    %436 = arith.mulf %434, %435 : vector<32x128xf32>
    %437 = arith.addf %432, %436 : vector<32x128xf32>
    %438 = vector.extract_strided_slice %423 {offsets = [96, 0], sizes = [32, 128], strides = [1, 1]} : vector<288x128xf32> to vector<32x128xf32>
    %c1_i32_179 = arith.constant 1 : i32
    %439 = tpu.dynamic_rotate %438 by %c1_i32_179 dim 1 : vector<32x128xf32>, i32 -> vector<32x128xf32>
    %440 = vector.broadcast %34 : vector<1x128xf32> to vector<32x128xf32>
    %441 = arith.mulf %439, %440 : vector<32x128xf32>
    %442 = arith.addf %437, %441 : vector<32x128xf32>
    %443 = vector.extract_strided_slice %423 {offsets = [128, 0], sizes = [32, 128], strides = [1, 1]} : vector<288x128xf32> to vector<32x128xf32>
    %444 = vector.broadcast %37 : vector<1x128xf32> to vector<32x128xf32>
    %445 = arith.mulf %443, %444 : vector<32x128xf32>
    %446 = arith.addf %442, %445 : vector<32x128xf32>
    %447 = vector.extract_strided_slice %423 {offsets = [160, 0], sizes = [32, 128], strides = [1, 1]} : vector<288x128xf32> to vector<32x128xf32>
    %c127_i32_180 = arith.constant 127 : i32
    %448 = tpu.dynamic_rotate %447 by %c127_i32_180 dim 1 : vector<32x128xf32>, i32 -> vector<32x128xf32>
    %449 = vector.broadcast %40 : vector<1x128xf32> to vector<32x128xf32>
    %450 = arith.mulf %448, %449 : vector<32x128xf32>
    %451 = arith.addf %446, %450 : vector<32x128xf32>
    %452 = vector.extract_strided_slice %423 {offsets = [192, 0], sizes = [32, 128], strides = [1, 1]} : vector<288x128xf32> to vector<32x128xf32>
    %c125_i32_181 = arith.constant 125 : i32
    %453 = tpu.dynamic_rotate %452 by %c125_i32_181 dim 1 : vector<32x128xf32>, i32 -> vector<32x128xf32>
    %454 = vector.broadcast %43 : vector<1x128xf32> to vector<32x128xf32>
    %455 = arith.mulf %453, %454 : vector<32x128xf32>
    %456 = arith.addf %451, %455 : vector<32x128xf32>
    %457 = vector.extract_strided_slice %423 {offsets = [224, 0], sizes = [32, 128], strides = [1, 1]} : vector<288x128xf32> to vector<32x128xf32>
    %c124_i32_182 = arith.constant 124 : i32
    %458 = tpu.dynamic_rotate %457 by %c124_i32_182 dim 1 : vector<32x128xf32>, i32 -> vector<32x128xf32>
    %459 = vector.broadcast %46 : vector<1x128xf32> to vector<32x128xf32>
    %460 = arith.mulf %458, %459 : vector<32x128xf32>
    %461 = arith.addf %456, %460 : vector<32x128xf32>
    %462 = vector.extract_strided_slice %423 {offsets = [256, 0], sizes = [32, 128], strides = [1, 1]} : vector<288x128xf32> to vector<32x128xf32>
    %c123_i32_183 = arith.constant 123 : i32
    %463 = tpu.dynamic_rotate %462 by %c123_i32_183 dim 1 : vector<32x128xf32>, i32 -> vector<32x128xf32>
    %464 = vector.broadcast %49 : vector<1x128xf32> to vector<32x128xf32>
    %465 = arith.mulf %463, %464 : vector<32x128xf32>
    %466 = arith.addf %461, %465 : vector<32x128xf32>
    %c12_184 = arith.constant 12 : index
    %c0_185 = arith.constant 0 : index
    %c0_186 = arith.constant 0 : index
    %467 = vector.load %arg5[%c12_184, %c0_185, %c0_186] : memref<32x32x1xf32, #tpu.memory_space<vmem>>, vector<1x32x1xf32>
    %468 = vector.shape_cast %467 : vector<1x32x1xf32> to vector<32x1xf32>
    %c13_187 = arith.constant 13 : index
    %c0_188 = arith.constant 0 : index
    %c0_189 = arith.constant 0 : index
    %469 = vector.load %arg5[%c13_187, %c0_188, %c0_189] : memref<32x32x1xf32, #tpu.memory_space<vmem>>, vector<1x32x1xf32>
    %470 = vector.shape_cast %469 : vector<1x32x1xf32> to vector<32x1xf32>
    %cst_190 = arith.constant dense<0.000000e+00> : vector<32xf32>
    %471 = vector.multi_reduction <add>, %466, %cst_190 [1] : vector<32x128xf32> to vector<32xf32>
    %472 = vector.shape_cast %471 : vector<32xf32> to vector<32x1xf32>
    %cst_191 = arith.constant 3.125000e-02 : f32
    %473 = vector.broadcast %cst_191 : f32 to vector<32x1xf32>
    %474 = arith.mulf %472, %473 : vector<32x1xf32>
    %475 = arith.mulf %466, %466 : vector<32x128xf32>
    %cst_192 = arith.constant dense<0.000000e+00> : vector<32xf32>
    %476 = vector.multi_reduction <add>, %475, %cst_192 [1] : vector<32x128xf32> to vector<32xf32>
    %477 = vector.shape_cast %476 : vector<32xf32> to vector<32x1xf32>
    %cst_193 = arith.constant 3.125000e-02 : f32
    %478 = vector.broadcast %cst_193 : f32 to vector<32x1xf32>
    %479 = arith.mulf %477, %478 : vector<32x1xf32>
    %480 = arith.mulf %474, %474 : vector<32x1xf32>
    %481 = arith.subf %479, %480 : vector<32x1xf32>
    %cst_194 = arith.constant 0.000000e+00 : f32
    %482 = vector.broadcast %cst_194 : f32 to vector<32x1xf32>
    %483 = arith.maximumf %481, %482 : vector<32x1xf32>
    %484 = vector.broadcast %474 : vector<32x1xf32> to vector<32x128xf32>
    %485 = arith.subf %466, %484 : vector<32x128xf32>
    %cst_195 = arith.constant 9.99999974E-6 : f32
    %486 = vector.broadcast %cst_195 : f32 to vector<32x1xf32>
    %487 = arith.addf %483, %486 : vector<32x1xf32>
    %488 = math.rsqrt %487 : vector<32x1xf32>
    %489 = arith.mulf %488, %468 : vector<32x1xf32>
    %490 = vector.broadcast %489 : vector<32x1xf32> to vector<32x128xf32>
    %491 = arith.mulf %485, %490 : vector<32x128xf32>
    %492 = vector.broadcast %470 : vector<32x1xf32> to vector<32x128xf32>
    %493 = arith.addf %491, %492 : vector<32x128xf32>
    %494 = vector.broadcast %4 : vector<1x128xf32> to vector<32x128xf32>
    %495 = arith.mulf %493, %494 : vector<32x128xf32>
    %496 = arith.addf %495, %343 : vector<32x128xf32>
    %cst_196 = arith.constant 0.000000e+00 : f32
    %497 = vector.broadcast %cst_196 : f32 to vector<32x128xf32>
    %498 = arith.maximumf %496, %497 : vector<32x128xf32>
    %499 = arith.addf %498, %343 : vector<32x128xf32>
    %c0_197 = arith.constant 0 : index
    %c0_198 = arith.constant 0 : index
    %500 = vector.load %arg10[%c0_197, %c0_198] : memref<72x32xf32, #tpu.memory_space<vmem>>, vector<72x32xf32>
    %cst_199 = arith.constant dense<0.000000e+00> : vector<72x128xf32>
    %501 = tpu.matmul %500, %499, %cst_199 {dimension_numbers = #tpu.dot_dimension_numbers<[1], [0], [0], [1], [0, 0, 1, 1], [], []>} : vector<72x32xf32>, vector<32x128xf32>, vector<72x128xf32> -> vector<72x128xf32>
    %502 = vector.extract_strided_slice %501 {offsets = [0, 0], sizes = [8, 128], strides = [1, 1]} : vector<72x128xf32> to vector<8x128xf32>
    %c5_i32_200 = arith.constant 5 : i32
    %503 = tpu.dynamic_rotate %502 by %c5_i32_200 dim 1 : vector<8x128xf32>, i32 -> vector<8x128xf32>
    %504 = vector.broadcast %25 : vector<1x128xf32> to vector<8x128xf32>
    %505 = arith.mulf %503, %504 : vector<8x128xf32>
    %506 = vector.extract_strided_slice %501 {offsets = [8, 0], sizes = [8, 128], strides = [1, 1]} : vector<72x128xf32> to vector<8x128xf32>
    %c4_i32_201 = arith.constant 4 : i32
    %507 = tpu.dynamic_rotate %506 by %c4_i32_201 dim 1 : vector<8x128xf32>, i32 -> vector<8x128xf32>
    %508 = vector.broadcast %28 : vector<1x128xf32> to vector<8x128xf32>
    %509 = arith.mulf %507, %508 : vector<8x128xf32>
    %510 = arith.addf %505, %509 : vector<8x128xf32>
    %511 = vector.extract_strided_slice %501 {offsets = [16, 0], sizes = [8, 128], strides = [1, 1]} : vector<72x128xf32> to vector<8x128xf32>
    %c3_i32_202 = arith.constant 3 : i32
    %512 = tpu.dynamic_rotate %511 by %c3_i32_202 dim 1 : vector<8x128xf32>, i32 -> vector<8x128xf32>
    %513 = vector.broadcast %31 : vector<1x128xf32> to vector<8x128xf32>
    %514 = arith.mulf %512, %513 : vector<8x128xf32>
    %515 = arith.addf %510, %514 : vector<8x128xf32>
    %516 = vector.extract_strided_slice %501 {offsets = [24, 0], sizes = [8, 128], strides = [1, 1]} : vector<72x128xf32> to vector<8x128xf32>
    %c1_i32_203 = arith.constant 1 : i32
    %517 = tpu.dynamic_rotate %516 by %c1_i32_203 dim 1 : vector<8x128xf32>, i32 -> vector<8x128xf32>
    %518 = vector.broadcast %34 : vector<1x128xf32> to vector<8x128xf32>
    %519 = arith.mulf %517, %518 : vector<8x128xf32>
    %520 = arith.addf %515, %519 : vector<8x128xf32>
    %521 = vector.extract_strided_slice %501 {offsets = [32, 0], sizes = [8, 128], strides = [1, 1]} : vector<72x128xf32> to vector<8x128xf32>
    %522 = vector.broadcast %37 : vector<1x128xf32> to vector<8x128xf32>
    %523 = arith.mulf %521, %522 : vector<8x128xf32>
    %524 = arith.addf %520, %523 : vector<8x128xf32>
    %525 = vector.extract_strided_slice %501 {offsets = [40, 0], sizes = [8, 128], strides = [1, 1]} : vector<72x128xf32> to vector<8x128xf32>
    %c127_i32_204 = arith.constant 127 : i32
    %526 = tpu.dynamic_rotate %525 by %c127_i32_204 dim 1 : vector<8x128xf32>, i32 -> vector<8x128xf32>
    %527 = vector.broadcast %40 : vector<1x128xf32> to vector<8x128xf32>
    %528 = arith.mulf %526, %527 : vector<8x128xf32>
    %529 = arith.addf %524, %528 : vector<8x128xf32>
    %530 = vector.extract_strided_slice %501 {offsets = [48, 0], sizes = [8, 128], strides = [1, 1]} : vector<72x128xf32> to vector<8x128xf32>
    %c125_i32_205 = arith.constant 125 : i32
    %531 = tpu.dynamic_rotate %530 by %c125_i32_205 dim 1 : vector<8x128xf32>, i32 -> vector<8x128xf32>
    %532 = vector.broadcast %43 : vector<1x128xf32> to vector<8x128xf32>
    %533 = arith.mulf %531, %532 : vector<8x128xf32>
    %534 = arith.addf %529, %533 : vector<8x128xf32>
    %535 = vector.extract_strided_slice %501 {offsets = [56, 0], sizes = [8, 128], strides = [1, 1]} : vector<72x128xf32> to vector<8x128xf32>
    %c124_i32_206 = arith.constant 124 : i32
    %536 = tpu.dynamic_rotate %535 by %c124_i32_206 dim 1 : vector<8x128xf32>, i32 -> vector<8x128xf32>
    %537 = vector.broadcast %46 : vector<1x128xf32> to vector<8x128xf32>
    %538 = arith.mulf %536, %537 : vector<8x128xf32>
    %539 = arith.addf %534, %538 : vector<8x128xf32>
    %540 = vector.extract_strided_slice %501 {offsets = [64, 0], sizes = [8, 128], strides = [1, 1]} : vector<72x128xf32> to vector<8x128xf32>
    %c123_i32_207 = arith.constant 123 : i32
    %541 = tpu.dynamic_rotate %540 by %c123_i32_207 dim 1 : vector<8x128xf32>, i32 -> vector<8x128xf32>
    %542 = vector.broadcast %49 : vector<1x128xf32> to vector<8x128xf32>
    %543 = arith.mulf %541, %542 : vector<8x128xf32>
    %544 = arith.addf %539, %543 : vector<8x128xf32>
    %c14_208 = arith.constant 14 : index
    %c0_209 = arith.constant 0 : index
    %c0_210 = arith.constant 0 : index
    %545 = vector.load %arg5[%c14_208, %c0_209, %c0_210] : memref<32x32x1xf32, #tpu.memory_space<vmem>>, vector<1x32x1xf32>
    %546 = vector.shape_cast %545 : vector<1x32x1xf32> to vector<32x1xf32>
    %547 = vector.extract_strided_slice %546 {offsets = [0, 0], sizes = [8, 1], strides = [1, 1]} : vector<32x1xf32> to vector<8x1xf32>
    %548 = vector.broadcast %547 : vector<8x1xf32> to vector<8x128xf32>
    %549 = vector.broadcast %4 : vector<1x128xf32> to vector<8x128xf32>
    %550 = arith.mulf %548, %549 : vector<8x128xf32>
    %551 = arith.addf %544, %550 : vector<8x128xf32>
    %c0_211 = arith.constant 0 : index
    %c0_212 = arith.constant 0 : index
    %552 = vector.load %arg11[%c0_211, %c0_212] : memref<16x8xf32, #tpu.memory_space<vmem>>, vector<16x8xf32>
    %c0_213 = arith.constant 0 : index
    %c0_214 = arith.constant 0 : index
    %553 = vector.load %arg12[%c0_213, %c0_214] : memref<8x16xf32, #tpu.memory_space<vmem>>, vector<8x16xf32>
    %554 = arith.mulf %551, %551 : vector<8x128xf32>
    %cst_215 = arith.constant dense<0.000000e+00> : vector<128xf32>
    %555 = vector.multi_reduction <add>, %554, %cst_215 [0] : vector<8x128xf32> to vector<128xf32>
    %556 = vector.shape_cast %555 : vector<128xf32> to vector<1x128xf32>
    %557 = arith.mulf %552, %552 : vector<16x8xf32>
    %cst_216 = arith.constant dense<0.000000e+00> : vector<16xf32>
    %558 = vector.multi_reduction <add>, %557, %cst_216 [1] : vector<16x8xf32> to vector<16xf32>
    %559 = vector.shape_cast %558 : vector<16xf32> to vector<16x1xf32>
    %cst_217 = arith.constant dense<0.000000e+00> : vector<16x128xf32>
    %560 = tpu.matmul %552, %551, %cst_217 {dimension_numbers = #tpu.dot_dimension_numbers<[1], [0], [0], [1], [0, 0, 1, 1], [], []>} : vector<16x8xf32>, vector<8x128xf32>, vector<16x128xf32> -> vector<16x128xf32>
    %cst_218 = arith.constant 2.000000e+00 : f32
    %561 = vector.broadcast %cst_218 : f32 to vector<16x128xf32>
    %562 = arith.mulf %561, %560 : vector<16x128xf32>
    %563 = vector.broadcast %559 : vector<16x1xf32> to vector<16x128xf32>
    %564 = arith.subf %563, %562 : vector<16x128xf32>
    %565 = vector.broadcast %556 : vector<1x128xf32> to vector<16x128xf32>
    %566 = arith.addf %564, %565 : vector<16x128xf32>
    %cst_219 = arith.constant dense<0x7F800000> : vector<128xf32>
    %567 = vector.multi_reduction <minimumf>, %566, %cst_219 [0] : vector<16x128xf32> to vector<128xf32>
    %568 = vector.shape_cast %567 : vector<128xf32> to vector<1x128xf32>
    %569 = tpu.iota {dimensions = array<i32: 0>} : vector<16x128xi32>
    %570 = vector.broadcast %568 : vector<1x128xf32> to vector<16x128xf32>
    %571 = arith.cmpf oeq, %566, %570 : vector<16x128xf32>
    %c16_i32 = arith.constant 16 : i32
    %572 = vector.broadcast %c16_i32 : i32 to vector<16x128xi32>
    %573 = arith.select %571, %569, %572 : vector<16x128xi1>, vector<16x128xi32>
    %cst_220 = arith.constant dense<2147483647> : vector<128xi32>
    %574 = vector.multi_reduction <minsi>, %573, %cst_220 [0] : vector<16x128xi32> to vector<128xi32>
    %575 = vector.shape_cast %574 : vector<128xi32> to vector<1x128xi32>
    %576 = vector.broadcast %575 : vector<1x128xi32> to vector<16x128xi32>
    %577 = arith.cmpi eq, %569, %576 : vector<16x128xi32>
    %578 = arith.extui %577 : vector<16x128xi1> to vector<16x128xi32>
    %579 = arith.sitofp %578 : vector<16x128xi32> to vector<16x128xf32>
    %580 = vector.broadcast %4 : vector<1x128xf32> to vector<16x128xf32>
    %581 = arith.mulf %579, %580 : vector<16x128xf32>
    %cst_221 = arith.constant dense<0.000000e+00> : vector<8x128xf32>
    %582 = tpu.matmul %553, %581, %cst_221 {dimension_numbers = #tpu.dot_dimension_numbers<[1], [0], [0], [1], [0, 0, 1, 1], [], []>} : vector<8x16xf32>, vector<16x128xf32>, vector<8x128xf32> -> vector<8x128xf32>
    %583 = arith.subf %582, %551 : vector<8x128xf32>
    %584 = arith.mulf %583, %583 : vector<8x128xf32>
    %585 = vector.shape_cast %584 : vector<8x128xf32> to vector<1x8x128xf32>
    %cst_222 = arith.constant dense<0.000000e+00> : vector<1xf32>
    %586 = vector.multi_reduction <add>, %585, %cst_222 [1, 2] : vector<1x8x128xf32> to vector<1xf32>
    %587 = vector.shape_cast %586 : vector<1xf32> to vector<1x1x1xf32>
    %588 = vector.extract %587[0, 0, 0] : f32 from vector<1x1x1xf32>
    %cst_223 = arith.constant 3.906250e-03 : f32
    %589 = arith.mulf %588, %cst_223 : f32
    %cst_224 = arith.constant 1.250000e+00 : f32
    %590 = arith.mulf %cst_224, %589 : f32
    %cst_225 = arith.constant dense<0.000000e+00> : vector<16xf32>
    %591 = vector.multi_reduction <add>, %581, %cst_225 [1] : vector<16x128xf32> to vector<16xf32>
    %592 = vector.shape_cast %591 : vector<16xf32> to vector<16x1xf32>
    %cst_226 = arith.constant 3.125000e-02 : f32
    %593 = vector.broadcast %cst_226 : f32 to vector<16x1xf32>
    %594 = arith.mulf %592, %593 : vector<16x1xf32>
    %cst_227 = arith.constant 1.000000e-10 : f32
    %595 = vector.broadcast %cst_227 : f32 to vector<16x1xf32>
    %596 = arith.addf %594, %595 : vector<16x1xf32>
    %597 = math.log %596 : vector<16x1xf32>
    %598 = arith.mulf %594, %597 : vector<16x1xf32>
    %599 = vector.shape_cast %598 : vector<16x1xf32> to vector<1x16x1xf32>
    %cst_228 = arith.constant dense<0.000000e+00> : vector<1xf32>
    %600 = vector.multi_reduction <add>, %599, %cst_228 [1, 2] : vector<1x16x1xf32> to vector<1xf32>
    %601 = vector.shape_cast %600 : vector<1xf32> to vector<1x1x1xf32>
    %602 = vector.extract %601[0, 0, 0] : f32 from vector<1x1x1xf32>
    %cst_229 = arith.constant 0.000000e+00 : f32
    %603 = arith.subf %cst_229, %602 : f32
    %604 = math.exp %603 : f32
    %605 = tpu.iota {dimensions = array<i32: 1>} : vector<1x128xi32>
    %c0_i32 = arith.constant 0 : i32
    %606 = vector.broadcast %c0_i32 : i32 to vector<1x128xi32>
    %607 = arith.cmpi eq, %605, %606 : vector<1x128xi32>
    %cst_230 = arith.constant 0.000000e+00 : f32
    %608 = vector.broadcast %590 : f32 to vector<1x128xf32>
    %609 = vector.broadcast %cst_230 : f32 to vector<1x128xf32>
    %610 = arith.select %607, %608, %609 : vector<1x128xi1>, vector<1x128xf32>
    %c1_i32_231 = arith.constant 1 : i32
    %611 = vector.broadcast %c1_i32_231 : i32 to vector<1x128xi32>
    %612 = arith.cmpi eq, %605, %611 : vector<1x128xi32>
    %cst_232 = arith.constant 0.000000e+00 : f32
    %613 = vector.broadcast %604 : f32 to vector<1x128xf32>
    %614 = vector.broadcast %cst_232 : f32 to vector<1x128xf32>
    %615 = arith.select %612, %613, %614 : vector<1x128xi1>, vector<1x128xf32>
    %616 = arith.addf %610, %615 : vector<1x128xf32>
    %c0_233 = arith.constant 0 : index
    %c0_234 = arith.constant 0 : index
    %617 = vector.load %arg16[%c0_233, %c0_234] : memref<1x128xf32, #tpu.memory_space<vmem>>, vector<1x128xf32>
    tpu.vector_store %arg16[%c0_233, %c0_234], %616 {strides = array<i32>} : memref<1x128xf32, #tpu.memory_space<vmem>>, vector<1x128xf32>,
    %c0_235 = arith.constant 0 : index
    %c0_236 = arith.constant 0 : index
    %618 = vector.load %arg13[%c0_235, %c0_236] : memref<32x8xf32, #tpu.memory_space<vmem>>, vector<32x8xf32>
    %cst_237 = arith.constant dense<0.000000e+00> : vector<32x128xf32>
    %619 = tpu.matmul %618, %582, %cst_237 {dimension_numbers = #tpu.dot_dimension_numbers<[1], [0], [0], [1], [0, 0, 1, 1], [], []>} : vector<32x8xf32>, vector<8x128xf32>, vector<32x128xf32> -> vector<32x128xf32>
    %c15_238 = arith.constant 15 : index
    %c0_239 = arith.constant 0 : index
    %c0_240 = arith.constant 0 : index
    %620 = vector.load %arg5[%c15_238, %c0_239, %c0_240] : memref<32x32x1xf32, #tpu.memory_space<vmem>>, vector<1x32x1xf32>
    %621 = vector.shape_cast %620 : vector<1x32x1xf32> to vector<32x1xf32>
    %622 = vector.broadcast %621 : vector<32x1xf32> to vector<32x128xf32>
    %623 = vector.broadcast %75 : vector<1x128xf32> to vector<32x128xf32>
    %624 = arith.mulf %622, %623 : vector<32x128xf32>
    %625 = arith.addf %619, %624 : vector<32x128xf32>
    %c16_241 = arith.constant 16 : index
    %c0_242 = arith.constant 0 : index
    %c0_243 = arith.constant 0 : index
    %626 = vector.load %arg5[%c16_241, %c0_242, %c0_243] : memref<32x32x1xf32, #tpu.memory_space<vmem>>, vector<1x32x1xf32>
    %627 = vector.shape_cast %626 : vector<1x32x1xf32> to vector<32x1xf32>
    %628 = vector.broadcast %627 : vector<32x1xf32> to vector<32x128xf32>
    %629 = vector.broadcast %78 : vector<1x128xf32> to vector<32x128xf32>
    %630 = arith.mulf %628, %629 : vector<32x128xf32>
    %631 = arith.addf %625, %630 : vector<32x128xf32>
    %c17_244 = arith.constant 17 : index
    %c0_245 = arith.constant 0 : index
    %c0_246 = arith.constant 0 : index
    %632 = vector.load %arg5[%c17_244, %c0_245, %c0_246] : memref<32x32x1xf32, #tpu.memory_space<vmem>>, vector<1x32x1xf32>
    %633 = vector.shape_cast %632 : vector<1x32x1xf32> to vector<32x1xf32>
    %634 = vector.broadcast %633 : vector<32x1xf32> to vector<32x128xf32>
    %635 = vector.broadcast %4 : vector<1x128xf32> to vector<32x128xf32>
    %636 = arith.mulf %634, %635 : vector<32x128xf32>
    %637 = arith.addf %631, %636 : vector<32x128xf32>
    %c2_247 = arith.constant 2 : index
    %c0_248 = arith.constant 0 : index
    %c0_249 = arith.constant 0 : index
    %638 = vector.load %arg9[%c2_247, %c0_248, %c0_249] : memref<4x288x32xf32, #tpu.memory_space<vmem>>, vector<1x288x32xf32>
    %639 = vector.shape_cast %638 : vector<1x288x32xf32> to vector<288x32xf32>
    %c3_250 = arith.constant 3 : index
    %c0_251 = arith.constant 0 : index
    %c0_252 = arith.constant 0 : index
    %640 = vector.load %arg9[%c3_250, %c0_251, %c0_252] : memref<4x288x32xf32, #tpu.memory_space<vmem>>, vector<1x288x32xf32>
    %641 = vector.shape_cast %640 : vector<1x288x32xf32> to vector<288x32xf32>
    %cst_253 = arith.constant dense<0.000000e+00> : vector<288x128xf32>
    %642 = tpu.matmul %639, %637, %cst_253 {dimension_numbers = #tpu.dot_dimension_numbers<[1], [0], [0], [1], [0, 0, 1, 1], [], []>} : vector<288x32xf32>, vector<32x128xf32>, vector<288x128xf32> -> vector<288x128xf32>
    %643 = vector.extract_strided_slice %642 {offsets = [0, 0], sizes = [32, 128], strides = [1, 1]} : vector<288x128xf32> to vector<32x128xf32>
    %c5_i32_254 = arith.constant 5 : i32
    %644 = tpu.dynamic_rotate %643 by %c5_i32_254 dim 1 : vector<32x128xf32>, i32 -> vector<32x128xf32>
    %645 = vector.broadcast %25 : vector<1x128xf32> to vector<32x128xf32>
    %646 = arith.mulf %644, %645 : vector<32x128xf32>
    %647 = vector.extract_strided_slice %642 {offsets = [32, 0], sizes = [32, 128], strides = [1, 1]} : vector<288x128xf32> to vector<32x128xf32>
    %c4_i32_255 = arith.constant 4 : i32
    %648 = tpu.dynamic_rotate %647 by %c4_i32_255 dim 1 : vector<32x128xf32>, i32 -> vector<32x128xf32>
    %649 = vector.broadcast %28 : vector<1x128xf32> to vector<32x128xf32>
    %650 = arith.mulf %648, %649 : vector<32x128xf32>
    %651 = arith.addf %646, %650 : vector<32x128xf32>
    %652 = vector.extract_strided_slice %642 {offsets = [64, 0], sizes = [32, 128], strides = [1, 1]} : vector<288x128xf32> to vector<32x128xf32>
    %c3_i32_256 = arith.constant 3 : i32
    %653 = tpu.dynamic_rotate %652 by %c3_i32_256 dim 1 : vector<32x128xf32>, i32 -> vector<32x128xf32>
    %654 = vector.broadcast %31 : vector<1x128xf32> to vector<32x128xf32>
    %655 = arith.mulf %653, %654 : vector<32x128xf32>
    %656 = arith.addf %651, %655 : vector<32x128xf32>
    %657 = vector.extract_strided_slice %642 {offsets = [96, 0], sizes = [32, 128], strides = [1, 1]} : vector<288x128xf32> to vector<32x128xf32>
    %c1_i32_257 = arith.constant 1 : i32
    %658 = tpu.dynamic_rotate %657 by %c1_i32_257 dim 1 : vector<32x128xf32>, i32 -> vector<32x128xf32>
    %659 = vector.broadcast %34 : vector<1x128xf32> to vector<32x128xf32>
    %660 = arith.mulf %658, %659 : vector<32x128xf32>
    %661 = arith.addf %656, %660 : vector<32x128xf32>
    %662 = vector.extract_strided_slice %642 {offsets = [128, 0], sizes = [32, 128], strides = [1, 1]} : vector<288x128xf32> to vector<32x128xf32>
    %663 = vector.broadcast %37 : vector<1x128xf32> to vector<32x128xf32>
    %664 = arith.mulf %662, %663 : vector<32x128xf32>
    %665 = arith.addf %661, %664 : vector<32x128xf32>
    %666 = vector.extract_strided_slice %642 {offsets = [160, 0], sizes = [32, 128], strides = [1, 1]} : vector<288x128xf32> to vector<32x128xf32>
    %c127_i32_258 = arith.constant 127 : i32
    %667 = tpu.dynamic_rotate %666 by %c127_i32_258 dim 1 : vector<32x128xf32>, i32 -> vector<32x128xf32>
    %668 = vector.broadcast %40 : vector<1x128xf32> to vector<32x128xf32>
    %669 = arith.mulf %667, %668 : vector<32x128xf32>
    %670 = arith.addf %665, %669 : vector<32x128xf32>
    %671 = vector.extract_strided_slice %642 {offsets = [192, 0], sizes = [32, 128], strides = [1, 1]} : vector<288x128xf32> to vector<32x128xf32>
    %c125_i32_259 = arith.constant 125 : i32
    %672 = tpu.dynamic_rotate %671 by %c125_i32_259 dim 1 : vector<32x128xf32>, i32 -> vector<32x128xf32>
    %673 = vector.broadcast %43 : vector<1x128xf32> to vector<32x128xf32>
    %674 = arith.mulf %672, %673 : vector<32x128xf32>
    %675 = arith.addf %670, %674 : vector<32x128xf32>
    %676 = vector.extract_strided_slice %642 {offsets = [224, 0], sizes = [32, 128], strides = [1, 1]} : vector<288x128xf32> to vector<32x128xf32>
    %c124_i32_260 = arith.constant 124 : i32
    %677 = tpu.dynamic_rotate %676 by %c124_i32_260 dim 1 : vector<32x128xf32>, i32 -> vector<32x128xf32>
    %678 = vector.broadcast %46 : vector<1x128xf32> to vector<32x128xf32>
    %679 = arith.mulf %677, %678 : vector<32x128xf32>
    %680 = arith.addf %675, %679 : vector<32x128xf32>
    %681 = vector.extract_strided_slice %642 {offsets = [256, 0], sizes = [32, 128], strides = [1, 1]} : vector<288x128xf32> to vector<32x128xf32>
    %c123_i32_261 = arith.constant 123 : i32
    %682 = tpu.dynamic_rotate %681 by %c123_i32_261 dim 1 : vector<32x128xf32>, i32 -> vector<32x128xf32>
    %683 = vector.broadcast %49 : vector<1x128xf32> to vector<32x128xf32>
    %684 = arith.mulf %682, %683 : vector<32x128xf32>
    %685 = arith.addf %680, %684 : vector<32x128xf32>
    %c18_262 = arith.constant 18 : index
    %c0_263 = arith.constant 0 : index
    %c0_264 = arith.constant 0 : index
    %686 = vector.load %arg5[%c18_262, %c0_263, %c0_264] : memref<32x32x1xf32, #tpu.memory_space<vmem>>, vector<1x32x1xf32>
    %687 = vector.shape_cast %686 : vector<1x32x1xf32> to vector<32x1xf32>
    %c19_265 = arith.constant 19 : index
    %c0_266 = arith.constant 0 : index
    %c0_267 = arith.constant 0 : index
    %688 = vector.load %arg5[%c19_265, %c0_266, %c0_267] : memref<32x32x1xf32, #tpu.memory_space<vmem>>, vector<1x32x1xf32>
    %689 = vector.shape_cast %688 : vector<1x32x1xf32> to vector<32x1xf32>
    %cst_268 = arith.constant dense<0.000000e+00> : vector<32xf32>
    %690 = vector.multi_reduction <add>, %685, %cst_268 [1] : vector<32x128xf32> to vector<32xf32>
    %691 = vector.shape_cast %690 : vector<32xf32> to vector<32x1xf32>
    %cst_269 = arith.constant 3.125000e-02 : f32
    %692 = vector.broadcast %cst_269 : f32 to vector<32x1xf32>
    %693 = arith.mulf %691, %692 : vector<32x1xf32>
    %694 = arith.mulf %685, %685 : vector<32x128xf32>
    %cst_270 = arith.constant dense<0.000000e+00> : vector<32xf32>
    %695 = vector.multi_reduction <add>, %694, %cst_270 [1] : vector<32x128xf32> to vector<32xf32>
    %696 = vector.shape_cast %695 : vector<32xf32> to vector<32x1xf32>
    %cst_271 = arith.constant 3.125000e-02 : f32
    %697 = vector.broadcast %cst_271 : f32 to vector<32x1xf32>
    %698 = arith.mulf %696, %697 : vector<32x1xf32>
    %699 = arith.mulf %693, %693 : vector<32x1xf32>
    %700 = arith.subf %698, %699 : vector<32x1xf32>
    %cst_272 = arith.constant 0.000000e+00 : f32
    %701 = vector.broadcast %cst_272 : f32 to vector<32x1xf32>
    %702 = arith.maximumf %700, %701 : vector<32x1xf32>
    %703 = vector.broadcast %693 : vector<32x1xf32> to vector<32x128xf32>
    %704 = arith.subf %685, %703 : vector<32x128xf32>
    %cst_273 = arith.constant 9.99999974E-6 : f32
    %705 = vector.broadcast %cst_273 : f32 to vector<32x1xf32>
    %706 = arith.addf %702, %705 : vector<32x1xf32>
    %707 = math.rsqrt %706 : vector<32x1xf32>
    %708 = arith.mulf %707, %687 : vector<32x1xf32>
    %709 = vector.broadcast %708 : vector<32x1xf32> to vector<32x128xf32>
    %710 = arith.mulf %704, %709 : vector<32x128xf32>
    %711 = vector.broadcast %689 : vector<32x1xf32> to vector<32x128xf32>
    %712 = arith.addf %710, %711 : vector<32x128xf32>
    %713 = vector.broadcast %4 : vector<1x128xf32> to vector<32x128xf32>
    %714 = arith.mulf %712, %713 : vector<32x128xf32>
    %cst_274 = arith.constant 0.000000e+00 : f32
    %715 = vector.broadcast %cst_274 : f32 to vector<32x128xf32>
    %716 = arith.maximumf %714, %715 : vector<32x128xf32>
    %cst_275 = arith.constant dense<0.000000e+00> : vector<288x128xf32>
    %717 = tpu.matmul %641, %716, %cst_275 {dimension_numbers = #tpu.dot_dimension_numbers<[1], [0], [0], [1], [0, 0, 1, 1], [], []>} : vector<288x32xf32>, vector<32x128xf32>, vector<288x128xf32> -> vector<288x128xf32>
    %718 = vector.extract_strided_slice %717 {offsets = [0, 0], sizes = [32, 128], strides = [1, 1]} : vector<288x128xf32> to vector<32x128xf32>
    %c5_i32_276 = arith.constant 5 : i32
    %719 = tpu.dynamic_rotate %718 by %c5_i32_276 dim 1 : vector<32x128xf32>, i32 -> vector<32x128xf32>
    %720 = vector.broadcast %25 : vector<1x128xf32> to vector<32x128xf32>
    %721 = arith.mulf %719, %720 : vector<32x128xf32>
    %722 = vector.extract_strided_slice %717 {offsets = [32, 0], sizes = [32, 128], strides = [1, 1]} : vector<288x128xf32> to vector<32x128xf32>
    %c4_i32_277 = arith.constant 4 : i32
    %723 = tpu.dynamic_rotate %722 by %c4_i32_277 dim 1 : vector<32x128xf32>, i32 -> vector<32x128xf32>
    %724 = vector.broadcast %28 : vector<1x128xf32> to vector<32x128xf32>
    %725 = arith.mulf %723, %724 : vector<32x128xf32>
    %726 = arith.addf %721, %725 : vector<32x128xf32>
    %727 = vector.extract_strided_slice %717 {offsets = [64, 0], sizes = [32, 128], strides = [1, 1]} : vector<288x128xf32> to vector<32x128xf32>
    %c3_i32_278 = arith.constant 3 : i32
    %728 = tpu.dynamic_rotate %727 by %c3_i32_278 dim 1 : vector<32x128xf32>, i32 -> vector<32x128xf32>
    %729 = vector.broadcast %31 : vector<1x128xf32> to vector<32x128xf32>
    %730 = arith.mulf %728, %729 : vector<32x128xf32>
    %731 = arith.addf %726, %730 : vector<32x128xf32>
    %732 = vector.extract_strided_slice %717 {offsets = [96, 0], sizes = [32, 128], strides = [1, 1]} : vector<288x128xf32> to vector<32x128xf32>
    %c1_i32_279 = arith.constant 1 : i32
    %733 = tpu.dynamic_rotate %732 by %c1_i32_279 dim 1 : vector<32x128xf32>, i32 -> vector<32x128xf32>
    %734 = vector.broadcast %34 : vector<1x128xf32> to vector<32x128xf32>
    %735 = arith.mulf %733, %734 : vector<32x128xf32>
    %736 = arith.addf %731, %735 : vector<32x128xf32>
    %737 = vector.extract_strided_slice %717 {offsets = [128, 0], sizes = [32, 128], strides = [1, 1]} : vector<288x128xf32> to vector<32x128xf32>
    %738 = vector.broadcast %37 : vector<1x128xf32> to vector<32x128xf32>
    %739 = arith.mulf %737, %738 : vector<32x128xf32>
    %740 = arith.addf %736, %739 : vector<32x128xf32>
    %741 = vector.extract_strided_slice %717 {offsets = [160, 0], sizes = [32, 128], strides = [1, 1]} : vector<288x128xf32> to vector<32x128xf32>
    %c127_i32_280 = arith.constant 127 : i32
    %742 = tpu.dynamic_rotate %741 by %c127_i32_280 dim 1 : vector<32x128xf32>, i32 -> vector<32x128xf32>
    %743 = vector.broadcast %40 : vector<1x128xf32> to vector<32x128xf32>
    %744 = arith.mulf %742, %743 : vector<32x128xf32>
    %745 = arith.addf %740, %744 : vector<32x128xf32>
    %746 = vector.extract_strided_slice %717 {offsets = [192, 0], sizes = [32, 128], strides = [1, 1]} : vector<288x128xf32> to vector<32x128xf32>
    %c125_i32_281 = arith.constant 125 : i32
    %747 = tpu.dynamic_rotate %746 by %c125_i32_281 dim 1 : vector<32x128xf32>, i32 -> vector<32x128xf32>
    %748 = vector.broadcast %43 : vector<1x128xf32> to vector<32x128xf32>
    %749 = arith.mulf %747, %748 : vector<32x128xf32>
    %750 = arith.addf %745, %749 : vector<32x128xf32>
    %751 = vector.extract_strided_slice %717 {offsets = [224, 0], sizes = [32, 128], strides = [1, 1]} : vector<288x128xf32> to vector<32x128xf32>
    %c124_i32_282 = arith.constant 124 : i32
    %752 = tpu.dynamic_rotate %751 by %c124_i32_282 dim 1 : vector<32x128xf32>, i32 -> vector<32x128xf32>
    %753 = vector.broadcast %46 : vector<1x128xf32> to vector<32x128xf32>
    %754 = arith.mulf %752, %753 : vector<32x128xf32>
    %755 = arith.addf %750, %754 : vector<32x128xf32>
    %756 = vector.extract_strided_slice %717 {offsets = [256, 0], sizes = [32, 128], strides = [1, 1]} : vector<288x128xf32> to vector<32x128xf32>
    %c123_i32_283 = arith.constant 123 : i32
    %757 = tpu.dynamic_rotate %756 by %c123_i32_283 dim 1 : vector<32x128xf32>, i32 -> vector<32x128xf32>
    %758 = vector.broadcast %49 : vector<1x128xf32> to vector<32x128xf32>
    %759 = arith.mulf %757, %758 : vector<32x128xf32>
    %760 = arith.addf %755, %759 : vector<32x128xf32>
    %c20_284 = arith.constant 20 : index
    %c0_285 = arith.constant 0 : index
    %c0_286 = arith.constant 0 : index
    %761 = vector.load %arg5[%c20_284, %c0_285, %c0_286] : memref<32x32x1xf32, #tpu.memory_space<vmem>>, vector<1x32x1xf32>
    %762 = vector.shape_cast %761 : vector<1x32x1xf32> to vector<32x1xf32>
    %c21_287 = arith.constant 21 : index
    %c0_288 = arith.constant 0 : index
    %c0_289 = arith.constant 0 : index
    %763 = vector.load %arg5[%c21_287, %c0_288, %c0_289] : memref<32x32x1xf32, #tpu.memory_space<vmem>>, vector<1x32x1xf32>
    %764 = vector.shape_cast %763 : vector<1x32x1xf32> to vector<32x1xf32>
    %cst_290 = arith.constant dense<0.000000e+00> : vector<32xf32>
    %765 = vector.multi_reduction <add>, %760, %cst_290 [1] : vector<32x128xf32> to vector<32xf32>
    %766 = vector.shape_cast %765 : vector<32xf32> to vector<32x1xf32>
    %cst_291 = arith.constant 3.125000e-02 : f32
    %767 = vector.broadcast %cst_291 : f32 to vector<32x1xf32>
    %768 = arith.mulf %766, %767 : vector<32x1xf32>
    %769 = arith.mulf %760, %760 : vector<32x128xf32>
    %cst_292 = arith.constant dense<0.000000e+00> : vector<32xf32>
    %770 = vector.multi_reduction <add>, %769, %cst_292 [1] : vector<32x128xf32> to vector<32xf32>
    %771 = vector.shape_cast %770 : vector<32xf32> to vector<32x1xf32>
    %cst_293 = arith.constant 3.125000e-02 : f32
    %772 = vector.broadcast %cst_293 : f32 to vector<32x1xf32>
    %773 = arith.mulf %771, %772 : vector<32x1xf32>
    %774 = arith.mulf %768, %768 : vector<32x1xf32>
    %775 = arith.subf %773, %774 : vector<32x1xf32>
    %cst_294 = arith.constant 0.000000e+00 : f32
    %776 = vector.broadcast %cst_294 : f32 to vector<32x1xf32>
    %777 = arith.maximumf %775, %776 : vector<32x1xf32>
    %778 = vector.broadcast %768 : vector<32x1xf32> to vector<32x128xf32>
    %779 = arith.subf %760, %778 : vector<32x128xf32>
    %cst_295 = arith.constant 9.99999974E-6 : f32
    %780 = vector.broadcast %cst_295 : f32 to vector<32x1xf32>
    %781 = arith.addf %777, %780 : vector<32x1xf32>
    %782 = math.rsqrt %781 : vector<32x1xf32>
    %783 = arith.mulf %782, %762 : vector<32x1xf32>
    %784 = vector.broadcast %783 : vector<32x1xf32> to vector<32x128xf32>
    %785 = arith.mulf %779, %784 : vector<32x128xf32>
    %786 = vector.broadcast %764 : vector<32x1xf32> to vector<32x128xf32>
    %787 = arith.addf %785, %786 : vector<32x128xf32>
    %788 = vector.broadcast %4 : vector<1x128xf32> to vector<32x128xf32>
    %789 = arith.mulf %787, %788 : vector<32x128xf32>
    %790 = arith.addf %789, %637 : vector<32x128xf32>
    %cst_296 = arith.constant 0.000000e+00 : f32
    %791 = vector.broadcast %cst_296 : f32 to vector<32x128xf32>
    %792 = arith.maximumf %790, %791 : vector<32x128xf32>
    %793 = arith.addf %792, %637 : vector<32x128xf32>
    %c0_297 = arith.constant 0 : index
    %c0_298 = arith.constant 0 : index
    %794 = vector.load %arg4[%c0_297, %c0_298] : memref<128x384xf32, #tpu.memory_space<vmem>>, vector<128x384xf32>
    %cst_299 = arith.constant dense<0.000000e+00> : vector<32x384xf32>
    %795 = tpu.matmul %793, %794, %cst_299 {dimension_numbers = #tpu.dot_dimension_numbers<[1], [0], [0], [1], [0, 0, 1, 1], [], []>} : vector<32x128xf32>, vector<128x384xf32>, vector<32x384xf32> -> vector<32x384xf32>
    %c0_300 = arith.constant 0 : index
    %c0_301 = arith.constant 0 : index
    %796 = vector.load %arg14[%c0_300, %c0_301] : memref<72x32xf32, #tpu.memory_space<vmem>>, vector<72x32xf32>
    %cst_302 = arith.constant dense<0.000000e+00> : vector<72x384xf32>
    %797 = tpu.matmul %796, %795, %cst_302 {dimension_numbers = #tpu.dot_dimension_numbers<[1], [0], [0], [1], [0, 0, 1, 1], [], []>} : vector<72x32xf32>, vector<32x384xf32>, vector<72x384xf32> -> vector<72x384xf32>
    %798 = vector.extract_strided_slice %797 {offsets = [0, 0], sizes = [8, 384], strides = [1, 1]} : vector<72x384xf32> to vector<8x384xf32>
    %799 = vector.broadcast %51 : vector<1x384xf32> to vector<8x384xf32>
    %800 = arith.mulf %798, %799 : vector<8x384xf32>
    %801 = vector.extract_strided_slice %797 {offsets = [8, 0], sizes = [8, 384], strides = [1, 1]} : vector<72x384xf32> to vector<8x384xf32>
    %802 = vector.broadcast %53 : vector<1x384xf32> to vector<8x384xf32>
    %803 = arith.mulf %801, %802 : vector<8x384xf32>
    %804 = arith.addf %800, %803 : vector<8x384xf32>
    %805 = vector.extract_strided_slice %797 {offsets = [16, 0], sizes = [8, 384], strides = [1, 1]} : vector<72x384xf32> to vector<8x384xf32>
    %806 = vector.broadcast %55 : vector<1x384xf32> to vector<8x384xf32>
    %807 = arith.mulf %805, %806 : vector<8x384xf32>
    %808 = arith.addf %804, %807 : vector<8x384xf32>
    %809 = vector.extract_strided_slice %797 {offsets = [24, 0], sizes = [8, 384], strides = [1, 1]} : vector<72x384xf32> to vector<8x384xf32>
    %810 = vector.broadcast %57 : vector<1x384xf32> to vector<8x384xf32>
    %811 = arith.mulf %809, %810 : vector<8x384xf32>
    %812 = arith.addf %808, %811 : vector<8x384xf32>
    %813 = vector.extract_strided_slice %797 {offsets = [32, 0], sizes = [8, 384], strides = [1, 1]} : vector<72x384xf32> to vector<8x384xf32>
    %814 = vector.broadcast %59 : vector<1x384xf32> to vector<8x384xf32>
    %815 = arith.mulf %813, %814 : vector<8x384xf32>
    %816 = arith.addf %812, %815 : vector<8x384xf32>
    %817 = vector.extract_strided_slice %797 {offsets = [40, 0], sizes = [8, 384], strides = [1, 1]} : vector<72x384xf32> to vector<8x384xf32>
    %818 = vector.broadcast %61 : vector<1x384xf32> to vector<8x384xf32>
    %819 = arith.mulf %817, %818 : vector<8x384xf32>
    %820 = arith.addf %816, %819 : vector<8x384xf32>
    %821 = vector.extract_strided_slice %797 {offsets = [48, 0], sizes = [8, 384], strides = [1, 1]} : vector<72x384xf32> to vector<8x384xf32>
    %822 = vector.broadcast %63 : vector<1x384xf32> to vector<8x384xf32>
    %823 = arith.mulf %821, %822 : vector<8x384xf32>
    %824 = arith.addf %820, %823 : vector<8x384xf32>
    %825 = vector.extract_strided_slice %797 {offsets = [56, 0], sizes = [8, 384], strides = [1, 1]} : vector<72x384xf32> to vector<8x384xf32>
    %826 = vector.broadcast %65 : vector<1x384xf32> to vector<8x384xf32>
    %827 = arith.mulf %825, %826 : vector<8x384xf32>
    %828 = arith.addf %824, %827 : vector<8x384xf32>
    %829 = vector.extract_strided_slice %797 {offsets = [64, 0], sizes = [8, 384], strides = [1, 1]} : vector<72x384xf32> to vector<8x384xf32>
    %830 = vector.broadcast %67 : vector<1x384xf32> to vector<8x384xf32>
    %831 = arith.mulf %829, %830 : vector<8x384xf32>
    %832 = arith.addf %828, %831 : vector<8x384xf32>
    %c22_303 = arith.constant 22 : index
    %c0_304 = arith.constant 0 : index
    %c0_305 = arith.constant 0 : index
    %833 = vector.load %arg5[%c22_303, %c0_304, %c0_305] : memref<32x32x1xf32, #tpu.memory_space<vmem>>, vector<1x32x1xf32>
    %834 = vector.shape_cast %833 : vector<1x32x1xf32> to vector<32x1xf32>
    %835 = vector.extract_strided_slice %834 {offsets = [0, 0], sizes = [8, 1], strides = [1, 1]} : vector<32x1xf32> to vector<8x1xf32>
    %836 = vector.broadcast %835 : vector<8x1xf32> to vector<8x384xf32>
    %837 = vector.broadcast %1 : vector<1x384xf32> to vector<8x384xf32>
    %838 = arith.mulf %836, %837 : vector<8x384xf32>
    %839 = arith.addf %832, %838 : vector<8x384xf32>
    %c23_306 = arith.constant 23 : index
    %c0_307 = arith.constant 0 : index
    %c0_308 = arith.constant 0 : index
    %840 = vector.load %arg5[%c23_306, %c0_307, %c0_308] : memref<32x32x1xf32, #tpu.memory_space<vmem>>, vector<1x32x1xf32>
    %841 = vector.shape_cast %840 : vector<1x32x1xf32> to vector<32x1xf32>
    %842 = vector.extract_strided_slice %841 {offsets = [0, 0], sizes = [8, 1], strides = [1, 1]} : vector<32x1xf32> to vector<8x1xf32>
    %c24_309 = arith.constant 24 : index
    %c0_310 = arith.constant 0 : index
    %c0_311 = arith.constant 0 : index
    %843 = vector.load %arg5[%c24_309, %c0_310, %c0_311] : memref<32x32x1xf32, #tpu.memory_space<vmem>>, vector<1x32x1xf32>
    %844 = vector.shape_cast %843 : vector<1x32x1xf32> to vector<32x1xf32>
    %845 = vector.extract_strided_slice %844 {offsets = [0, 0], sizes = [8, 1], strides = [1, 1]} : vector<32x1xf32> to vector<8x1xf32>
    %cst_312 = arith.constant dense<0.000000e+00> : vector<8xf32>
    %846 = vector.multi_reduction <add>, %839, %cst_312 [1] : vector<8x384xf32> to vector<8xf32>
    %847 = vector.shape_cast %846 : vector<8xf32> to vector<8x1xf32>
    %cst_313 = arith.constant 0.00347222225 : f32
    %848 = vector.broadcast %cst_313 : f32 to vector<8x1xf32>
    %849 = arith.mulf %847, %848 : vector<8x1xf32>
    %850 = arith.mulf %839, %839 : vector<8x384xf32>
    %cst_314 = arith.constant dense<0.000000e+00> : vector<8xf32>
    %851 = vector.multi_reduction <add>, %850, %cst_314 [1] : vector<8x384xf32> to vector<8xf32>
    %852 = vector.shape_cast %851 : vector<8xf32> to vector<8x1xf32>
    %cst_315 = arith.constant 0.00347222225 : f32
    %853 = vector.broadcast %cst_315 : f32 to vector<8x1xf32>
    %854 = arith.mulf %852, %853 : vector<8x1xf32>
    %855 = arith.mulf %849, %849 : vector<8x1xf32>
    %856 = arith.subf %854, %855 : vector<8x1xf32>
    %cst_316 = arith.constant 0.000000e+00 : f32
    %857 = vector.broadcast %cst_316 : f32 to vector<8x1xf32>
    %858 = arith.maximumf %856, %857 : vector<8x1xf32>
    %859 = vector.broadcast %849 : vector<8x1xf32> to vector<8x384xf32>
    %860 = arith.subf %839, %859 : vector<8x384xf32>
    %cst_317 = arith.constant 9.99999974E-6 : f32
    %861 = vector.broadcast %cst_317 : f32 to vector<8x1xf32>
    %862 = arith.addf %858, %861 : vector<8x1xf32>
    %863 = math.rsqrt %862 : vector<8x1xf32>
    %864 = arith.mulf %863, %842 : vector<8x1xf32>
    %865 = vector.broadcast %864 : vector<8x1xf32> to vector<8x384xf32>
    %866 = arith.mulf %860, %865 : vector<8x384xf32>
    %867 = vector.broadcast %845 : vector<8x1xf32> to vector<8x384xf32>
    %868 = arith.addf %866, %867 : vector<8x384xf32>
    %869 = vector.broadcast %1 : vector<1x384xf32> to vector<8x384xf32>
    %870 = arith.mulf %868, %869 : vector<8x384xf32>
    %c2_318 = arith.constant 2 : index
    %c0_319 = arith.constant 0 : index
    %c0_320 = arith.constant 0 : index
    %871 = vector.load %arg7[%c2_318, %c0_319, %c0_320] : memref<5x72x8xf32, #tpu.memory_space<vmem>>, vector<1x72x8xf32>
    %872 = vector.shape_cast %871 : vector<1x72x8xf32> to vector<72x8xf32>
    %c3_321 = arith.constant 3 : index
    %c0_322 = arith.constant 0 : index
    %c0_323 = arith.constant 0 : index
    %873 = vector.load %arg7[%c3_321, %c0_322, %c0_323] : memref<5x72x8xf32, #tpu.memory_space<vmem>>, vector<1x72x8xf32>
    %874 = vector.shape_cast %873 : vector<1x72x8xf32> to vector<72x8xf32>
    %cst_324 = arith.constant dense<0.000000e+00> : vector<72x384xf32>
    %875 = tpu.matmul %872, %870, %cst_324 {dimension_numbers = #tpu.dot_dimension_numbers<[1], [0], [0], [1], [0, 0, 1, 1], [], []>} : vector<72x8xf32>, vector<8x384xf32>, vector<72x384xf32> -> vector<72x384xf32>
    %876 = vector.extract_strided_slice %875 {offsets = [0, 0], sizes = [8, 384], strides = [1, 1]} : vector<72x384xf32> to vector<8x384xf32>
    %c13_i32_325 = arith.constant 13 : i32
    %877 = tpu.dynamic_rotate %876 by %c13_i32_325 dim 1 : vector<8x384xf32>, i32 -> vector<8x384xf32>
    %878 = vector.broadcast %6 : vector<1x384xf32> to vector<8x384xf32>
    %879 = arith.mulf %877, %878 : vector<8x384xf32>
    %880 = vector.extract_strided_slice %875 {offsets = [8, 0], sizes = [8, 384], strides = [1, 1]} : vector<72x384xf32> to vector<8x384xf32>
    %c12_i32_326 = arith.constant 12 : i32
    %881 = tpu.dynamic_rotate %880 by %c12_i32_326 dim 1 : vector<8x384xf32>, i32 -> vector<8x384xf32>
    %882 = vector.broadcast %8 : vector<1x384xf32> to vector<8x384xf32>
    %883 = arith.mulf %881, %882 : vector<8x384xf32>
    %884 = arith.addf %879, %883 : vector<8x384xf32>
    %885 = vector.extract_strided_slice %875 {offsets = [16, 0], sizes = [8, 384], strides = [1, 1]} : vector<72x384xf32> to vector<8x384xf32>
    %c11_i32_327 = arith.constant 11 : i32
    %886 = tpu.dynamic_rotate %885 by %c11_i32_327 dim 1 : vector<8x384xf32>, i32 -> vector<8x384xf32>
    %887 = vector.broadcast %10 : vector<1x384xf32> to vector<8x384xf32>
    %888 = arith.mulf %886, %887 : vector<8x384xf32>
    %889 = arith.addf %884, %888 : vector<8x384xf32>
    %890 = vector.extract_strided_slice %875 {offsets = [24, 0], sizes = [8, 384], strides = [1, 1]} : vector<72x384xf32> to vector<8x384xf32>
    %c1_i32_328 = arith.constant 1 : i32
    %891 = tpu.dynamic_rotate %890 by %c1_i32_328 dim 1 : vector<8x384xf32>, i32 -> vector<8x384xf32>
    %892 = vector.broadcast %12 : vector<1x384xf32> to vector<8x384xf32>
    %893 = arith.mulf %891, %892 : vector<8x384xf32>
    %894 = arith.addf %889, %893 : vector<8x384xf32>
    %895 = vector.extract_strided_slice %875 {offsets = [32, 0], sizes = [8, 384], strides = [1, 1]} : vector<72x384xf32> to vector<8x384xf32>
    %896 = vector.broadcast %14 : vector<1x384xf32> to vector<8x384xf32>
    %897 = arith.mulf %895, %896 : vector<8x384xf32>
    %898 = arith.addf %894, %897 : vector<8x384xf32>
    %899 = vector.extract_strided_slice %875 {offsets = [40, 0], sizes = [8, 384], strides = [1, 1]} : vector<72x384xf32> to vector<8x384xf32>
    %c383_i32_329 = arith.constant 383 : i32
    %900 = tpu.dynamic_rotate %899 by %c383_i32_329 dim 1 : vector<8x384xf32>, i32 -> vector<8x384xf32>
    %901 = vector.broadcast %16 : vector<1x384xf32> to vector<8x384xf32>
    %902 = arith.mulf %900, %901 : vector<8x384xf32>
    %903 = arith.addf %898, %902 : vector<8x384xf32>
    %904 = vector.extract_strided_slice %875 {offsets = [48, 0], sizes = [8, 384], strides = [1, 1]} : vector<72x384xf32> to vector<8x384xf32>
    %c373_i32_330 = arith.constant 373 : i32
    %905 = tpu.dynamic_rotate %904 by %c373_i32_330 dim 1 : vector<8x384xf32>, i32 -> vector<8x384xf32>
    %906 = vector.broadcast %18 : vector<1x384xf32> to vector<8x384xf32>
    %907 = arith.mulf %905, %906 : vector<8x384xf32>
    %908 = arith.addf %903, %907 : vector<8x384xf32>
    %909 = vector.extract_strided_slice %875 {offsets = [56, 0], sizes = [8, 384], strides = [1, 1]} : vector<72x384xf32> to vector<8x384xf32>
    %c372_i32_331 = arith.constant 372 : i32
    %910 = tpu.dynamic_rotate %909 by %c372_i32_331 dim 1 : vector<8x384xf32>, i32 -> vector<8x384xf32>
    %911 = vector.broadcast %20 : vector<1x384xf32> to vector<8x384xf32>
    %912 = arith.mulf %910, %911 : vector<8x384xf32>
    %913 = arith.addf %908, %912 : vector<8x384xf32>
    %914 = vector.extract_strided_slice %875 {offsets = [64, 0], sizes = [8, 384], strides = [1, 1]} : vector<72x384xf32> to vector<8x384xf32>
    %c371_i32_332 = arith.constant 371 : i32
    %915 = tpu.dynamic_rotate %914 by %c371_i32_332 dim 1 : vector<8x384xf32>, i32 -> vector<8x384xf32>
    %916 = vector.broadcast %22 : vector<1x384xf32> to vector<8x384xf32>
    %917 = arith.mulf %915, %916 : vector<8x384xf32>
    %918 = arith.addf %913, %917 : vector<8x384xf32>
    %c25_333 = arith.constant 25 : index
    %c0_334 = arith.constant 0 : index
    %c0_335 = arith.constant 0 : index
    %919 = vector.load %arg5[%c25_333, %c0_334, %c0_335] : memref<32x32x1xf32, #tpu.memory_space<vmem>>, vector<1x32x1xf32>
    %920 = vector.shape_cast %919 : vector<1x32x1xf32> to vector<32x1xf32>
    %921 = vector.extract_strided_slice %920 {offsets = [0, 0], sizes = [8, 1], strides = [1, 1]} : vector<32x1xf32> to vector<8x1xf32>
    %c26_336 = arith.constant 26 : index
    %c0_337 = arith.constant 0 : index
    %c0_338 = arith.constant 0 : index
    %922 = vector.load %arg5[%c26_336, %c0_337, %c0_338] : memref<32x32x1xf32, #tpu.memory_space<vmem>>, vector<1x32x1xf32>
    %923 = vector.shape_cast %922 : vector<1x32x1xf32> to vector<32x1xf32>
    %924 = vector.extract_strided_slice %923 {offsets = [0, 0], sizes = [8, 1], strides = [1, 1]} : vector<32x1xf32> to vector<8x1xf32>
    %cst_339 = arith.constant dense<0.000000e+00> : vector<8xf32>
    %925 = vector.multi_reduction <add>, %918, %cst_339 [1] : vector<8x384xf32> to vector<8xf32>
    %926 = vector.shape_cast %925 : vector<8xf32> to vector<8x1xf32>
    %cst_340 = arith.constant 0.00347222225 : f32
    %927 = vector.broadcast %cst_340 : f32 to vector<8x1xf32>
    %928 = arith.mulf %926, %927 : vector<8x1xf32>
    %929 = arith.mulf %918, %918 : vector<8x384xf32>
    %cst_341 = arith.constant dense<0.000000e+00> : vector<8xf32>
    %930 = vector.multi_reduction <add>, %929, %cst_341 [1] : vector<8x384xf32> to vector<8xf32>
    %931 = vector.shape_cast %930 : vector<8xf32> to vector<8x1xf32>
    %cst_342 = arith.constant 0.00347222225 : f32
    %932 = vector.broadcast %cst_342 : f32 to vector<8x1xf32>
    %933 = arith.mulf %931, %932 : vector<8x1xf32>
    %934 = arith.mulf %928, %928 : vector<8x1xf32>
    %935 = arith.subf %933, %934 : vector<8x1xf32>
    %cst_343 = arith.constant 0.000000e+00 : f32
    %936 = vector.broadcast %cst_343 : f32 to vector<8x1xf32>
    %937 = arith.maximumf %935, %936 : vector<8x1xf32>
    %938 = vector.broadcast %928 : vector<8x1xf32> to vector<8x384xf32>
    %939 = arith.subf %918, %938 : vector<8x384xf32>
    %cst_344 = arith.constant 9.99999974E-6 : f32
    %940 = vector.broadcast %cst_344 : f32 to vector<8x1xf32>
    %941 = arith.addf %937, %940 : vector<8x1xf32>
    %942 = math.rsqrt %941 : vector<8x1xf32>
    %943 = arith.mulf %942, %921 : vector<8x1xf32>
    %944 = vector.broadcast %943 : vector<8x1xf32> to vector<8x384xf32>
    %945 = arith.mulf %939, %944 : vector<8x384xf32>
    %946 = vector.broadcast %924 : vector<8x1xf32> to vector<8x384xf32>
    %947 = arith.addf %945, %946 : vector<8x384xf32>
    %948 = vector.broadcast %1 : vector<1x384xf32> to vector<8x384xf32>
    %949 = arith.mulf %947, %948 : vector<8x384xf32>
    %cst_345 = arith.constant 0.000000e+00 : f32
    %950 = vector.broadcast %cst_345 : f32 to vector<8x384xf32>
    %951 = arith.maximumf %949, %950 : vector<8x384xf32>
    %cst_346 = arith.constant dense<0.000000e+00> : vector<72x384xf32>
    %952 = tpu.matmul %874, %951, %cst_346 {dimension_numbers = #tpu.dot_dimension_numbers<[1], [0], [0], [1], [0, 0, 1, 1], [], []>} : vector<72x8xf32>, vector<8x384xf32>, vector<72x384xf32> -> vector<72x384xf32>
    %953 = vector.extract_strided_slice %952 {offsets = [0, 0], sizes = [8, 384], strides = [1, 1]} : vector<72x384xf32> to vector<8x384xf32>
    %c13_i32_347 = arith.constant 13 : i32
    %954 = tpu.dynamic_rotate %953 by %c13_i32_347 dim 1 : vector<8x384xf32>, i32 -> vector<8x384xf32>
    %955 = vector.broadcast %6 : vector<1x384xf32> to vector<8x384xf32>
    %956 = arith.mulf %954, %955 : vector<8x384xf32>
    %957 = vector.extract_strided_slice %952 {offsets = [8, 0], sizes = [8, 384], strides = [1, 1]} : vector<72x384xf32> to vector<8x384xf32>
    %c12_i32_348 = arith.constant 12 : i32
    %958 = tpu.dynamic_rotate %957 by %c12_i32_348 dim 1 : vector<8x384xf32>, i32 -> vector<8x384xf32>
    %959 = vector.broadcast %8 : vector<1x384xf32> to vector<8x384xf32>
    %960 = arith.mulf %958, %959 : vector<8x384xf32>
    %961 = arith.addf %956, %960 : vector<8x384xf32>
    %962 = vector.extract_strided_slice %952 {offsets = [16, 0], sizes = [8, 384], strides = [1, 1]} : vector<72x384xf32> to vector<8x384xf32>
    %c11_i32_349 = arith.constant 11 : i32
    %963 = tpu.dynamic_rotate %962 by %c11_i32_349 dim 1 : vector<8x384xf32>, i32 -> vector<8x384xf32>
    %964 = vector.broadcast %10 : vector<1x384xf32> to vector<8x384xf32>
    %965 = arith.mulf %963, %964 : vector<8x384xf32>
    %966 = arith.addf %961, %965 : vector<8x384xf32>
    %967 = vector.extract_strided_slice %952 {offsets = [24, 0], sizes = [8, 384], strides = [1, 1]} : vector<72x384xf32> to vector<8x384xf32>
    %c1_i32_350 = arith.constant 1 : i32
    %968 = tpu.dynamic_rotate %967 by %c1_i32_350 dim 1 : vector<8x384xf32>, i32 -> vector<8x384xf32>
    %969 = vector.broadcast %12 : vector<1x384xf32> to vector<8x384xf32>
    %970 = arith.mulf %968, %969 : vector<8x384xf32>
    %971 = arith.addf %966, %970 : vector<8x384xf32>
    %972 = vector.extract_strided_slice %952 {offsets = [32, 0], sizes = [8, 384], strides = [1, 1]} : vector<72x384xf32> to vector<8x384xf32>
    %973 = vector.broadcast %14 : vector<1x384xf32> to vector<8x384xf32>
    %974 = arith.mulf %972, %973 : vector<8x384xf32>
    %975 = arith.addf %971, %974 : vector<8x384xf32>
    %976 = vector.extract_strided_slice %952 {offsets = [40, 0], sizes = [8, 384], strides = [1, 1]} : vector<72x384xf32> to vector<8x384xf32>
    %c383_i32_351 = arith.constant 383 : i32
    %977 = tpu.dynamic_rotate %976 by %c383_i32_351 dim 1 : vector<8x384xf32>, i32 -> vector<8x384xf32>
    %978 = vector.broadcast %16 : vector<1x384xf32> to vector<8x384xf32>
    %979 = arith.mulf %977, %978 : vector<8x384xf32>
    %980 = arith.addf %975, %979 : vector<8x384xf32>
    %981 = vector.extract_strided_slice %952 {offsets = [48, 0], sizes = [8, 384], strides = [1, 1]} : vector<72x384xf32> to vector<8x384xf32>
    %c373_i32_352 = arith.constant 373 : i32
    %982 = tpu.dynamic_rotate %981 by %c373_i32_352 dim 1 : vector<8x384xf32>, i32 -> vector<8x384xf32>
    %983 = vector.broadcast %18 : vector<1x384xf32> to vector<8x384xf32>
    %984 = arith.mulf %982, %983 : vector<8x384xf32>
    %985 = arith.addf %980, %984 : vector<8x384xf32>
    %986 = vector.extract_strided_slice %952 {offsets = [56, 0], sizes = [8, 384], strides = [1, 1]} : vector<72x384xf32> to vector<8x384xf32>
    %c372_i32_353 = arith.constant 372 : i32
    %987 = tpu.dynamic_rotate %986 by %c372_i32_353 dim 1 : vector<8x384xf32>, i32 -> vector<8x384xf32>
    %988 = vector.broadcast %20 : vector<1x384xf32> to vector<8x384xf32>
    %989 = arith.mulf %987, %988 : vector<8x384xf32>
    %990 = arith.addf %985, %989 : vector<8x384xf32>
    %991 = vector.extract_strided_slice %952 {offsets = [64, 0], sizes = [8, 384], strides = [1, 1]} : vector<72x384xf32> to vector<8x384xf32>
    %c371_i32_354 = arith.constant 371 : i32
    %992 = tpu.dynamic_rotate %991 by %c371_i32_354 dim 1 : vector<8x384xf32>, i32 -> vector<8x384xf32>
    %993 = vector.broadcast %22 : vector<1x384xf32> to vector<8x384xf32>
    %994 = arith.mulf %992, %993 : vector<8x384xf32>
    %995 = arith.addf %990, %994 : vector<8x384xf32>
    %c27_355 = arith.constant 27 : index
    %c0_356 = arith.constant 0 : index
    %c0_357 = arith.constant 0 : index
    %996 = vector.load %arg5[%c27_355, %c0_356, %c0_357] : memref<32x32x1xf32, #tpu.memory_space<vmem>>, vector<1x32x1xf32>
    %997 = vector.shape_cast %996 : vector<1x32x1xf32> to vector<32x1xf32>
    %998 = vector.extract_strided_slice %997 {offsets = [0, 0], sizes = [8, 1], strides = [1, 1]} : vector<32x1xf32> to vector<8x1xf32>
    %c28_358 = arith.constant 28 : index
    %c0_359 = arith.constant 0 : index
    %c0_360 = arith.constant 0 : index
    %999 = vector.load %arg5[%c28_358, %c0_359, %c0_360] : memref<32x32x1xf32, #tpu.memory_space<vmem>>, vector<1x32x1xf32>
    %1000 = vector.shape_cast %999 : vector<1x32x1xf32> to vector<32x1xf32>
    %1001 = vector.extract_strided_slice %1000 {offsets = [0, 0], sizes = [8, 1], strides = [1, 1]} : vector<32x1xf32> to vector<8x1xf32>
    %cst_361 = arith.constant dense<0.000000e+00> : vector<8xf32>
    %1002 = vector.multi_reduction <add>, %995, %cst_361 [1] : vector<8x384xf32> to vector<8xf32>
    %1003 = vector.shape_cast %1002 : vector<8xf32> to vector<8x1xf32>
    %cst_362 = arith.constant 0.00347222225 : f32
    %1004 = vector.broadcast %cst_362 : f32 to vector<8x1xf32>
    %1005 = arith.mulf %1003, %1004 : vector<8x1xf32>
    %1006 = arith.mulf %995, %995 : vector<8x384xf32>
    %cst_363 = arith.constant dense<0.000000e+00> : vector<8xf32>
    %1007 = vector.multi_reduction <add>, %1006, %cst_363 [1] : vector<8x384xf32> to vector<8xf32>
    %1008 = vector.shape_cast %1007 : vector<8xf32> to vector<8x1xf32>
    %cst_364 = arith.constant 0.00347222225 : f32
    %1009 = vector.broadcast %cst_364 : f32 to vector<8x1xf32>
    %1010 = arith.mulf %1008, %1009 : vector<8x1xf32>
    %1011 = arith.mulf %1005, %1005 : vector<8x1xf32>
    %1012 = arith.subf %1010, %1011 : vector<8x1xf32>
    %cst_365 = arith.constant 0.000000e+00 : f32
    %1013 = vector.broadcast %cst_365 : f32 to vector<8x1xf32>
    %1014 = arith.maximumf %1012, %1013 : vector<8x1xf32>
    %1015 = vector.broadcast %1005 : vector<8x1xf32> to vector<8x384xf32>
    %1016 = arith.subf %995, %1015 : vector<8x384xf32>
    %cst_366 = arith.constant 9.99999974E-6 : f32
    %1017 = vector.broadcast %cst_366 : f32 to vector<8x1xf32>
    %1018 = arith.addf %1014, %1017 : vector<8x1xf32>
    %1019 = math.rsqrt %1018 : vector<8x1xf32>
    %1020 = arith.mulf %1019, %998 : vector<8x1xf32>
    %1021 = vector.broadcast %1020 : vector<8x1xf32> to vector<8x384xf32>
    %1022 = arith.mulf %1016, %1021 : vector<8x384xf32>
    %1023 = vector.broadcast %1001 : vector<8x1xf32> to vector<8x384xf32>
    %1024 = arith.addf %1022, %1023 : vector<8x384xf32>
    %1025 = vector.broadcast %1 : vector<1x384xf32> to vector<8x384xf32>
    %1026 = arith.mulf %1024, %1025 : vector<8x384xf32>
    %1027 = arith.addf %1026, %870 : vector<8x384xf32>
    %cst_367 = arith.constant 0.000000e+00 : f32
    %1028 = vector.broadcast %cst_367 : f32 to vector<8x384xf32>
    %1029 = arith.maximumf %1027, %1028 : vector<8x384xf32>
    %1030 = arith.addf %1029, %870 : vector<8x384xf32>
    %c4_368 = arith.constant 4 : index
    %c0_369 = arith.constant 0 : index
    %c0_370 = arith.constant 0 : index
    %1031 = vector.load %arg7[%c4_368, %c0_369, %c0_370] : memref<5x72x8xf32, #tpu.memory_space<vmem>>, vector<1x72x8xf32>
    %1032 = vector.shape_cast %1031 : vector<1x72x8xf32> to vector<72x8xf32>
    %cst_371 = arith.constant dense<0.000000e+00> : vector<72x384xf32>
    %1033 = tpu.matmul %1032, %1030, %cst_371 {dimension_numbers = #tpu.dot_dimension_numbers<[1], [0], [0], [1], [0, 0, 1, 1], [], []>} : vector<72x8xf32>, vector<8x384xf32>, vector<72x384xf32> -> vector<72x384xf32>
    %1034 = vector.extract_strided_slice %1033 {offsets = [0, 0], sizes = [8, 384], strides = [1, 1]} : vector<72x384xf32> to vector<8x384xf32>
    %c13_i32_372 = arith.constant 13 : i32
    %1035 = tpu.dynamic_rotate %1034 by %c13_i32_372 dim 1 : vector<8x384xf32>, i32 -> vector<8x384xf32>
    %1036 = vector.broadcast %6 : vector<1x384xf32> to vector<8x384xf32>
    %1037 = arith.mulf %1035, %1036 : vector<8x384xf32>
    %1038 = vector.extract_strided_slice %1033 {offsets = [8, 0], sizes = [8, 384], strides = [1, 1]} : vector<72x384xf32> to vector<8x384xf32>
    %c12_i32_373 = arith.constant 12 : i32
    %1039 = tpu.dynamic_rotate %1038 by %c12_i32_373 dim 1 : vector<8x384xf32>, i32 -> vector<8x384xf32>
    %1040 = vector.broadcast %8 : vector<1x384xf32> to vector<8x384xf32>
    %1041 = arith.mulf %1039, %1040 : vector<8x384xf32>
    %1042 = arith.addf %1037, %1041 : vector<8x384xf32>
    %1043 = vector.extract_strided_slice %1033 {offsets = [16, 0], sizes = [8, 384], strides = [1, 1]} : vector<72x384xf32> to vector<8x384xf32>
    %c11_i32_374 = arith.constant 11 : i32
    %1044 = tpu.dynamic_rotate %1043 by %c11_i32_374 dim 1 : vector<8x384xf32>, i32 -> vector<8x384xf32>
    %1045 = vector.broadcast %10 : vector<1x384xf32> to vector<8x384xf32>
    %1046 = arith.mulf %1044, %1045 : vector<8x384xf32>
    %1047 = arith.addf %1042, %1046 : vector<8x384xf32>
    %1048 = vector.extract_strided_slice %1033 {offsets = [24, 0], sizes = [8, 384], strides = [1, 1]} : vector<72x384xf32> to vector<8x384xf32>
    %c1_i32_375 = arith.constant 1 : i32
    %1049 = tpu.dynamic_rotate %1048 by %c1_i32_375 dim 1 : vector<8x384xf32>, i32 -> vector<8x384xf32>
    %1050 = vector.broadcast %12 : vector<1x384xf32> to vector<8x384xf32>
    %1051 = arith.mulf %1049, %1050 : vector<8x384xf32>
    %1052 = arith.addf %1047, %1051 : vector<8x384xf32>
    %1053 = vector.extract_strided_slice %1033 {offsets = [32, 0], sizes = [8, 384], strides = [1, 1]} : vector<72x384xf32> to vector<8x384xf32>
    %1054 = vector.broadcast %14 : vector<1x384xf32> to vector<8x384xf32>
    %1055 = arith.mulf %1053, %1054 : vector<8x384xf32>
    %1056 = arith.addf %1052, %1055 : vector<8x384xf32>
    %1057 = vector.extract_strided_slice %1033 {offsets = [40, 0], sizes = [8, 384], strides = [1, 1]} : vector<72x384xf32> to vector<8x384xf32>
    %c383_i32_376 = arith.constant 383 : i32
    %1058 = tpu.dynamic_rotate %1057 by %c383_i32_376 dim 1 : vector<8x384xf32>, i32 -> vector<8x384xf32>
    %1059 = vector.broadcast %16 : vector<1x384xf32> to vector<8x384xf32>
    %1060 = arith.mulf %1058, %1059 : vector<8x384xf32>
    %1061 = arith.addf %1056, %1060 : vector<8x384xf32>
    %1062 = vector.extract_strided_slice %1033 {offsets = [48, 0], sizes = [8, 384], strides = [1, 1]} : vector<72x384xf32> to vector<8x384xf32>
    %c373_i32_377 = arith.constant 373 : i32
    %1063 = tpu.dynamic_rotate %1062 by %c373_i32_377 dim 1 : vector<8x384xf32>, i32 -> vector<8x384xf32>
    %1064 = vector.broadcast %18 : vector<1x384xf32> to vector<8x384xf32>
    %1065 = arith.mulf %1063, %1064 : vector<8x384xf32>
    %1066 = arith.addf %1061, %1065 : vector<8x384xf32>
    %1067 = vector.extract_strided_slice %1033 {offsets = [56, 0], sizes = [8, 384], strides = [1, 1]} : vector<72x384xf32> to vector<8x384xf32>
    %c372_i32_378 = arith.constant 372 : i32
    %1068 = tpu.dynamic_rotate %1067 by %c372_i32_378 dim 1 : vector<8x384xf32>, i32 -> vector<8x384xf32>
    %1069 = vector.broadcast %20 : vector<1x384xf32> to vector<8x384xf32>
    %1070 = arith.mulf %1068, %1069 : vector<8x384xf32>
    %1071 = arith.addf %1066, %1070 : vector<8x384xf32>
    %1072 = vector.extract_strided_slice %1033 {offsets = [64, 0], sizes = [8, 384], strides = [1, 1]} : vector<72x384xf32> to vector<8x384xf32>
    %c371_i32_379 = arith.constant 371 : i32
    %1073 = tpu.dynamic_rotate %1072 by %c371_i32_379 dim 1 : vector<8x384xf32>, i32 -> vector<8x384xf32>
    %1074 = vector.broadcast %22 : vector<1x384xf32> to vector<8x384xf32>
    %1075 = arith.mulf %1073, %1074 : vector<8x384xf32>
    %1076 = arith.addf %1071, %1075 : vector<8x384xf32>
    %c29 = arith.constant 29 : index
    %c0_380 = arith.constant 0 : index
    %c0_381 = arith.constant 0 : index
    %1077 = vector.load %arg5[%c29, %c0_380, %c0_381] : memref<32x32x1xf32, #tpu.memory_space<vmem>>, vector<1x32x1xf32>
    %1078 = vector.shape_cast %1077 : vector<1x32x1xf32> to vector<32x1xf32>
    %1079 = vector.extract_strided_slice %1078 {offsets = [0, 0], sizes = [8, 1], strides = [1, 1]} : vector<32x1xf32> to vector<8x1xf32>
    %1080 = vector.broadcast %1079 : vector<8x1xf32> to vector<8x384xf32>
    %1081 = vector.broadcast %1 : vector<1x384xf32> to vector<8x384xf32>
    %1082 = arith.mulf %1080, %1081 : vector<8x384xf32>
    %1083 = arith.addf %1076, %1082 : vector<8x384xf32>
    %c30 = arith.constant 30 : index
    %c0_382 = arith.constant 0 : index
    %c0_383 = arith.constant 0 : index
    %1084 = vector.load %arg5[%c30, %c0_382, %c0_383] : memref<32x32x1xf32, #tpu.memory_space<vmem>>, vector<1x32x1xf32>
    %1085 = vector.shape_cast %1084 : vector<1x32x1xf32> to vector<32x1xf32>
    %1086 = vector.extract_strided_slice %1085 {offsets = [0, 0], sizes = [8, 1], strides = [1, 1]} : vector<32x1xf32> to vector<8x1xf32>
    %c31 = arith.constant 31 : index
    %c0_384 = arith.constant 0 : index
    %c0_385 = arith.constant 0 : index
    %1087 = vector.load %arg5[%c31, %c0_384, %c0_385] : memref<32x32x1xf32, #tpu.memory_space<vmem>>, vector<1x32x1xf32>
    %1088 = vector.shape_cast %1087 : vector<1x32x1xf32> to vector<32x1xf32>
    %1089 = vector.extract_strided_slice %1088 {offsets = [0, 0], sizes = [8, 1], strides = [1, 1]} : vector<32x1xf32> to vector<8x1xf32>
    %cst_386 = arith.constant dense<0.000000e+00> : vector<8xf32>
    %1090 = vector.multi_reduction <add>, %1083, %cst_386 [1] : vector<8x384xf32> to vector<8xf32>
    %1091 = vector.shape_cast %1090 : vector<8xf32> to vector<8x1xf32>
    %cst_387 = arith.constant 0.00347222225 : f32
    %1092 = vector.broadcast %cst_387 : f32 to vector<8x1xf32>
    %1093 = arith.mulf %1091, %1092 : vector<8x1xf32>
    %1094 = arith.mulf %1083, %1083 : vector<8x384xf32>
    %cst_388 = arith.constant dense<0.000000e+00> : vector<8xf32>
    %1095 = vector.multi_reduction <add>, %1094, %cst_388 [1] : vector<8x384xf32> to vector<8xf32>
    %1096 = vector.shape_cast %1095 : vector<8xf32> to vector<8x1xf32>
    %cst_389 = arith.constant 0.00347222225 : f32
    %1097 = vector.broadcast %cst_389 : f32 to vector<8x1xf32>
    %1098 = arith.mulf %1096, %1097 : vector<8x1xf32>
    %1099 = arith.mulf %1093, %1093 : vector<8x1xf32>
    %1100 = arith.subf %1098, %1099 : vector<8x1xf32>
    %cst_390 = arith.constant 0.000000e+00 : f32
    %1101 = vector.broadcast %cst_390 : f32 to vector<8x1xf32>
    %1102 = arith.maximumf %1100, %1101 : vector<8x1xf32>
    %1103 = vector.broadcast %1093 : vector<8x1xf32> to vector<8x384xf32>
    %1104 = arith.subf %1083, %1103 : vector<8x384xf32>
    %cst_391 = arith.constant 9.99999974E-6 : f32
    %1105 = vector.broadcast %cst_391 : f32 to vector<8x1xf32>
    %1106 = arith.addf %1102, %1105 : vector<8x1xf32>
    %1107 = math.rsqrt %1106 : vector<8x1xf32>
    %1108 = arith.mulf %1107, %1086 : vector<8x1xf32>
    %1109 = vector.broadcast %1108 : vector<8x1xf32> to vector<8x384xf32>
    %1110 = arith.mulf %1104, %1109 : vector<8x384xf32>
    %1111 = vector.broadcast %1089 : vector<8x1xf32> to vector<8x384xf32>
    %1112 = arith.addf %1110, %1111 : vector<8x384xf32>
    %1113 = vector.broadcast %1 : vector<1x384xf32> to vector<8x384xf32>
    %1114 = arith.mulf %1112, %1113 : vector<8x384xf32>
    %1115 = math.tanh %1114 : vector<8x384xf32>
    %c0_392 = arith.constant 0 : index
    %c0_393 = arith.constant 0 : index
    %1116 = vector.load %arg15[%c0_392, %c0_393] : memref<8x384xf32, #tpu.memory_space<vmem>>, vector<8x384xf32>
    tpu.vector_store %arg15[%c0_392, %c0_393], %1115 {strides = array<i32>} : memref<8x384xf32, #tpu.memory_space<vmem>>, vector<8x384xf32>,
    return
  }
}

</mosaic_0001>

<bundles_post_ra>
// kernel: forward.1
= control target key start
LH: loop header
LB: loop body
LE: loop exit
PB: predicated region body
PF: predicated region fallthrough
CT: control target
= control target key end

     0   :  { %v14657_v2 = vmov 0.0   ;;  %vm145_vm0 = vcmask 64512   ;;  %v10158_v4 = vmov 0   ;;  %vm10159_vm1 = vmmov 0   ;;  %s10160_s28 = smov 13   ;;  %s10161_s29 = smov 12   ;;  %s14639_s0 = inlined_call_operand.vmem [shape: f32[8,384], index: 0, kind: input, shape index: {}]   ;;  %s14640_s6 = inlined_call_operand.vmem [shape: f32[8,8], index: 6, kind: input, shape index: {}]   ;;  %s14641_s5 = inlined_call_operand.vmem [shape: f32[32,32,1], index: 5, kind: input, shape index: {}]   ;;  %s14642_s1 = inlined_call_operand.vmem [shape: f32[4,1,384], index: 1, kind: input, shape index: {}]   ;;  %s14643_s2 = inlined_call_operand.vmem [shape: f32[29,1,384], index: 2, kind: input, shape index: {}]   ;;  %s14644_s7 = inlined_call_operand.vmem [shape: f32[5,72,8], index: 7, kind: input, shape index: {}]   ;;  %s14645_s8 = inlined_call_operand.vmem [shape: f32[288,8], index: 8, kind: input, shape index: {}]   ;;  %s14646_s3 = inlined_call_operand.vmem [shape: f32[384,128], index: 3, kind: input, shape index: {}]   ;;  %s14647_s9 = inlined_call_operand.vmem [shape: f32[4,288,32], index: 9, kind: input, shape index: {}]   ;;  %s14648_s10 = inlined_call_operand.vmem [shape: f32[72,32], index: 10, kind: input, shape index: {}]   ;;  %s14649_s11 = inlined_call_operand.vmem [shape: f32[16,8], index: 11, kind: input, shape index: {}]   ;;  %s14650_s12 = inlined_call_operand.vmem [shape: f32[8,16], index: 12, kind: input, shape index: {}]   ;;  %s14651_s13 = inlined_call_operand.vmem [shape: f32[32,8], index: 13, kind: input, shape index: {}]   ;;  %s14652_s4 = inlined_call_operand.vmem [shape: f32[128,384], index: 4, kind: input, shape index: {}]   ;;  %s14653_s14 = inlined_call_operand.vmem [shape: f32[72,32], index: 14, kind: input, shape index: {}]   ;;  %s14654_s16 = inlined_call_operand.vmem [shape: f32[1,128], index: 16, kind: output, shape index: {1}]   ;;  %s14655_s15 = inlined_call_operand.vmem [shape: f32[8,384], index: 15, kind: output, shape index: {0}]  }
   0x1   :  { %14798 = sst [smem:[#allocation76_spill]] %s14639_s0  ;;  %213 = vmatprep.mubr.f32.mxu1 %v14657_v2  ;;  %v119_v3 = vld [vmem:[%s14640_s6] sm:$0xff]  ;;  %10091 = vset.pattern.permute.xlu0 %v10158_v4  ;;  %v127_v9 = vlaneseq  ;;  %v8302_v18 = vld [vmem:[%s14643_s2 + $0x51] sm:$0x7]  ;;  %v349_v52 = vld [vmem:[%s14644_s7 + $0x8] sm:$0xff]  ;;  %s14776_s30 = smov 11  }
   0x2   :  { %s14799_s23 = sld [smem:[#allocation76_spill]]  ;;  %v120_v6 = vld [vmem:[%s14641_s5] sm:$0xff]  ;;  %10092 = vset.pattern.permute.xlu1 %v10158_v4  ;;  %458 = vmatprep.mubr.f32.mxu0 %v14657_v2  ;;  %v350_v53 = vld [vmem:[%s14644_s7 + $0x10] sm:$0xff]  ;;  %v351_v54 = vld [vmem:[%s14644_s7 + $0x18] sm:$0xff]  ;;  %s10163_s0 = smov 1   ;;  %vm2987_vm10 = vcmask 261120  }
   0x3   :  { %123 = vperm.xlu0 %10091, %v120_v6   ;;  %v8336_v7 = vld [vmem:[%s14641_s5 + $0x40] sm:$0xff]  ;;  %v10292_v10 = vshrl.u32 %v127_v9, 7  ;;  %v353_v56 = vld [vmem:[%s14644_s7 + $0x28] sm:$0xff]  ;;  %v354_v57 = vld [vmem:[%s14644_s7 + $0x30] sm:$0xff]  ;;  %s10164_s17 = smov 127   ;;  %s14774_s18 = smov 117  }
   0x4   :  { %v8335_v8 = vld [vmem:[%s14641_s5 + $0x20] sm:$0xff]  ;;  %323 = vperm.xlu1 %10092, %v8336_v7   ;;  %v355_v58 = vld [vmem:[%s14644_s7 + $0x38] sm:$0xff]  ;;  %s14772_s6 = smov 116   ;;  %s14770_s19 = smov 115  }
   0x5   :  { %14800 = vst [vmem:[#allocation2_spill] sm:$0xff] %v10292_v10  ;;  %v10295_v11 = vsub.s32 0, %v10292_v10  ;;  %v112_v12 = vld [vmem:[%s14642_s1] sm:$0x7]  ;;  %v10301_v14 = vsub.s32 1, %v10292_v10  ;;  %v10308_v17 = vsub.s32 2, %v10292_v10 }
   0x6   :  { %v8330_v16 = vld [vmem:[%s14642_s1 + $0x3] sm:$0x7]  ;;  %s10169_s20 = smov 4   ;;  %s10170_s21 = smov 3  }
   0x7   :  { %294 = vperm.xlu0 %10091, %v8335_v8   ;;  %14801 = vst [vmem:[#allocation3_spill] sm:$0xff] %v10295_v11  ;;  %14802 = vst [vmem:[#allocation4_spill] sm:$0xff] %v10301_v14  ;;  %v130_v15 = vrot.slane %v112_v12, %v10295_v11  ;;  %v134_v19 = vrot.slane %v112_v12, %v10301_v14  ;;  %v301_v20 = vrot.slane %v8330_v16, %v10295_v11  ;;  %v348_v50 = vld [vmem:[%s14644_s7] sm:$0xff]  ;;  %s10171_s22 = smov 125  }
   0x8   :  { %v110_v0 = vld [vmem:[%s14799_s23 + $0x8] sm:$0xff]  ;;  %v109_v1 = vld [vmem:[%s14799_s23] sm:$0xff]  ;;  %v111_v5 = vld [vmem:[%s14799_s23 + $0x10] sm:$0xff]  ;;  %14803 = vst [vmem:[#allocation5_spill] sm:$0xff] %v10308_v17  ;;  %v305_v23 = vrot.slane %v8330_v16, %v10301_v14  ;;  %v10317_v24 = vrot.slane %v8302_v18, %v10301_v14  ;;  %v10320_v26 = vrot.slane %v8302_v18, %v10295_v11  ;;  %v138_v27 = vrot.slane %v112_v12, %v10308_v17  ;;  %s10172_s23 = smov 124  }
   0x9   :  { %149 = vmatprep.subr.mxu1 %v110_v0  ;;  %v309_v33 = vrot.slane %v8330_v16, %v10308_v17  ;;  %v10326_v38 = vrot.slane %v8302_v18, %v10308_v17  ;;  %v352_v55 = vld [vmem:[%s14644_s7 + $0x20] sm:$0xff] }
   0xa   :  { %150 = vmatpush1.msra.mxu1 %v109_v1  ;;  %14804 = vst [vmem:[#allocation6_spill] sm:$0xff] %v10317_v24  ;;  %14805 = vst [vmem:[#allocation7_spill] sm:$0xff] %v10320_v26  ;;  %v356_v59 = vld [vmem:[%s14644_s7 + $0x40] sm:$0xff] }
   0xb   :  { %8333 = vmatmul.mubr.msk.f32.vlgmr.msra.gmra.mrb[0].mxu1 %vm145_vm0, %v119_v3  ;;  %9264 = vmatprep.subr.mxu1 %v14657_v2  ;;  %14806 = vst [vmem:[#allocation8_spill] sm:$0xff] %v10326_v38 }
   0xc   :  { %9265 = vmatpush3.msra.mxu1 %v111_v5  ;;  %9266 = vmatprep.mubr.msk.f32.mxu1 %vm10159_vm1, %v14657_v2 }
   0xd   :  { %9269 = vmatprep.subr.mxu1 %v14657_v2 }
   0xf   :  { %9267 = vmatmul.mubr.msk.f32.vlgmr.msra.gmra.mrb[2].mxu1 %vm145_vm0, %v119_v3 }
  0x10   :  { %9271 = vmatprep.mubr.msk.f32.mxu1 %vm10159_vm1, %v14657_v2 }
  0x82   :  { %v124_v13 = vpop.permute.xlu0 %123 }
  0x83   :  { %v142_v21 = vmul.f32 %v130_v15, %v124_v13  ;;  %v324_v25 = vpop.permute.xlu1 %323  ;;  %v143_v29 = vmul.f32 %v134_v19, %v124_v13  ;;  %v144_v40 = vmul.f32 %v138_v27, %v124_v13 }
  0x84   :  { %v343_v36 = vmul.f32 %v10317_v24, %v324_v25  ;;  %v342_v39 = vmul.f32 %v10320_v26, %v324_v25  ;;  %v344_v47 = vmul.f32 %v10326_v38, %v324_v25 }
  0x86   :  { %v295_v22 = vpop.permute.xlu0 %294 }
  0x87   :  { %v313_v30 = vmul.f32 %v301_v20, %v295_v22  ;;  %v314_v34 = vmul.f32 %v305_v23, %v295_v22  ;;  %v315_v44 = vmul.f32 %v309_v33, %v295_v22 }
  0xde   :  { %v215_v28 = vpop.f32.mrb[0].mxu1 }
  0xdf   :  { %v216_v31 = vadd.f32 %v215_v28, %v142_v21  ;;  %v217_v32 = vpop.f32.mrb[1].mxu1 }
  0xe0   :  { %v218_v35 = vadd.f32 %v217_v32, %v143_v29 }
  0xe1   :  { %v316_v37 = vadd.f32 %v313_v30, %v216_v31 }
  0xe2   :  { %v317_v41 = vadd.f32 %v314_v34, %v218_v35  ;;  %v286_v42 = vpop.f32.mrb[2].mxu1 }
  0xe3   :  { %v287_v43 = vadd.f32 %v286_v42, %v144_v40  ;;  %v9268_v45 = vpop.f32.mrb[3].mxu1  ;;  %v10332_v49 = vadd.f32 %v342_v39, %v316_v37 }
  0xe4   :  { %v10329_v46 = vadd.f32 %v343_v36, %v317_v41 }
  0xe5   :  { %v318_v48 = vadd.f32 %v315_v44, %v287_v43 }
  0xe6   :  { %394 = vmatprep.subr.mxu0 %v10329_v46 }
  0xe7   :  { %v10338_v51 = vadd.f32 %v344_v47, %v318_v48  ;;  %395 = vmatpush1.msra.mxu0 %v10332_v49 }
  0xe8   :  { %8346 = vmatmul.mubr.msk.f32.vlgmr.msra.gmra.mrb[0].mxu0 %vm145_vm0, %v348_v50 }
  0xe9   :  { %9270 = vmatpush3.msra.mxu1 %v10338_v51  ;;  %464 = vmatprep.mubr.f32.mxu0 %v14657_v2 }
  0xea   :  { %9272 = vmatmul.mubr.msk.f32.vlgmr.msra.gmra.mrb[4].mxu1 %vm145_vm0, %v348_v50  ;;  %9298 = vmatprep.subr.mxu1 %v14657_v2 }
  0xeb   :  { %9274 = vmatprep.mubr.msk.f32.mxu1 %vm10159_vm1, %v14657_v2 }
  0xec   :  { %8347 = vmatmul.mubr.msk.f32.gmra.mrb[2].mxu0 %vm145_vm0, %v349_v52 }
  0xed   :  { %470 = vmatprep.mubr.f32.mxu0 %v14657_v2 }
  0xee   :  { %9275 = vmatmul.mubr.msk.f32.gmra.mrb[6].mxu1 %vm145_vm0, %v349_v52 }
  0xef   :  { %9277 = vmatprep.mubr.msk.f32.mxu1 %vm10159_vm1, %v14657_v2 }
  0xf0   :  { %8348 = vmatmul.mubr.msk.f32.gmra.mrb[4].mxu0 %vm145_vm0, %v350_v53 }
  0xf1   :  { %476 = vmatprep.mubr.f32.mxu0 %v14657_v2 }
  0xf2   :  { %9278 = vmatmul.mubr.msk.f32.gmra.mrb[8].mxu1 %vm145_vm0, %v350_v53  ;;  %v8307_v53 = vld [vmem:[%s14643_s2 + $0xc] sm:$0x7] }
  0xf3   :  { %9280 = vmatprep.mubr.msk.f32.mxu1 %vm10159_vm1, %v14657_v2 }
  0xf4   :  { %8349 = vmatmul.mubr.msk.f32.gmra.mrb[6].mxu0 %vm145_vm0, %v351_v54 }
  0xf5   :  { %482 = vmatprep.mubr.f32.mxu0 %v14657_v2 }
  0xf6   :  { %9281 = vmatmul.mubr.msk.f32.gmra.mrb[10].mxu1 %vm145_vm0, %v351_v54  ;;  %v10446_v54 = vand.u32 127, %v127_v9  ;;  %v8305_v9 = vld [vmem:[%s14643_s2 + $0x6] sm:$0x7] }
  0xf7   :  { %9283 = vmatprep.mubr.msk.f32.mxu1 %vm10159_vm1, %v14657_v2 }
  0xf8   :  { %8350 = vmatmul.mubr.msk.f32.gmra.mrb[8].mxu0 %vm145_vm0, %v352_v55  ;;  %vm660_vm2 = vcmp.lt.s32.totalorder %v10446_v54, 12  ;;  %vm631_vm3 = vcmp.lt.s32.totalorder %v10446_v54, 13  ;;  %vm692_vm4 = vcmp.lt.s32.totalorder %v10446_v54, 11  ;;  %vm724_vm5 = vcmp.lt.s32.totalorder %v10446_v54, 1 }
  0xf9   :  { %488 = vmatprep.mubr.f32.mxu0 %v14657_v2  ;;  %vm778_vm6 = vcmp.lt.s32.totalorder %v10446_v54, 127  ;;  %vm14787_vm7 = vcmp.lt.s32.totalorder %v10446_v54, 117  ;;  %vm14786_vm8 = vcmp.lt.s32.totalorder %v10446_v54, 116  ;;  %vm14785_vm9 = vcmp.lt.s32.totalorder %v10446_v54, 115 }
  0xfa   :  { %9284 = vmatmul.mubr.msk.f32.gmra.mrb[12].mxu1 %vm145_vm0, %v352_v55 }
  0xfb   :  { %9286 = vmatprep.mubr.msk.f32.mxu1 %vm10159_vm1, %v14657_v2 }
  0xfc   :  { %8351 = vmatmul.mubr.msk.f32.gmra.mrb[10].mxu0 %vm145_vm0, %v353_v56 }
  0xfd   :  { %494 = vmatprep.mubr.f32.mxu0 %v14657_v2 }
  0xfe   :  { %9287 = vmatmul.mubr.msk.f32.gmra.mrb[14].mxu1 %vm145_vm0, %v353_v56  ;;  %v56_v56 = vld [vmem:[%s14643_s2] sm:$0x7] }
  0xff   :  { %9289 = vmatprep.mubr.msk.f32.mxu1 %vm10159_vm1, %v14657_v2 }
 0x100   :  { %8352 = vmatmul.mubr.msk.f32.gmra.mrb[12].mxu0 %vm145_vm0, %v354_v57 }
 0x101   :  { %500 = vmatprep.mubr.f32.mxu0 %v14657_v2 }
 0x102   :  { %9290 = vmatmul.mubr.msk.f32.gmra.mrb[16].mxu1 %vm145_vm0, %v354_v57  ;;  %v8304_v57 = vld [vmem:[%s14643_s2 + $0x3] sm:$0x7] }
 0x103   :  { %9292 = vmatprep.mubr.msk.f32.mxu1 %vm10159_vm1, %v14657_v2 }
 0x104   :  { %8353 = vmatmul.mubr.msk.f32.gmra.mrb[14].mxu0 %vm145_vm0, %v355_v58 }
 0x105   :  { %506 = vmatprep.mubr.f32.mxu0 %v14657_v2 }
 0x106   :  { %9293 = vmatmul.mubr.msk.f32.gmra.mrb[18].mxu1 %vm145_vm0, %v355_v58  ;;  %v10455_v58 = vrot.slane %v8307_v53, %v10295_v11 }
 0x107   :  { %9295 = vmatprep.mubr.msk.f32.mxu1 %vm10159_vm1, %v14657_v2 }
 0x108   :  { %8354 = vmatmul.mubr.msk.f32.gmra.mrb[16].mxu0 %vm145_vm0, %v356_v59  ;;  %14807 = vst [vmem:[#allocation9_spill] sm:$0xff] %v10455_v58 }
 0x109   :  { %1039 = vmatprep.mubr.f32.mxu0 %v14657_v2 }
 0x10a   :  { %9296 = vmatmul.mubr.msk.f32.gmra.mrb[20].mxu1 %vm145_vm0, %v356_v59  ;;  %v10458_v59 = vrot.slane %v8307_v53, %v10301_v14 }
 0x10b   :  { %9300 = vmatprep.mubr.msk.f32.mxu1 %vm10159_vm1, %v14657_v2 }
 0x10c   :  { %14808 = vst [vmem:[#allocation10_spill] sm:$0xff] %v10458_v59 }
 0x1bb   :  { %v460_v60 = vpop.f32.mrb[0].mxu0 }
 0x1bc   :  { %623 = vrot.lane.b32.xlu1 %v460_v60, %s10160_s28  ;;  %v462_v61 = vpop.f32.mrb[1].mxu0 }
 0x1bd   :  { %625 = vrot.lane.b32.xlu0 %v462_v61, %s10160_s28  ;;  %v579_v62 = vpop.f32.mrb[4].mxu1  ;;  %v10465_v61 = vrot.slane %v8307_v53, %v10308_v17 }
 0x1be   :  { %v9273_v63 = vpop.f32.mrb[5].mxu1 }
 0x1bf   :  { %v466_v0 = vpop.f32.mrb[2].mxu0  ;;  %14809 = vst [vmem:[#allocation11_spill] sm:$0xff] %v10465_v61  ;;  %v10472_v63 = vrot.slane %v56_v56, %v10295_v11 }
 0x1c0   :  { %627 = vrot.lane.b32.xlu1 %v579_v62, %s10160_s28  ;;  %v468_v1 = vpop.f32.mrb[3].mxu0  ;;  %v10469_v62 = vrot.slane %v56_v56, %v10301_v14 }
 0x1c1   :  { %654 = vrot.lane.b32.xlu0 %v466_v0, %s10161_s29  ;;  %v584_v3 = vpop.f32.mrb[6].mxu1  ;;  %14811 = vst [vmem:[#allocation13_spill] sm:$0xff] %v10472_v63  ;;  %v8306_v0 = vld [vmem:[%s14643_s2 + $0x9] sm:$0x7] }
 0x1c2   :  { %v9276_v4 = vpop.f32.mrb[7].mxu1  ;;  %14810 = vst [vmem:[#allocation12_spill] sm:$0xff] %v10469_v62 }
 0x1c3   :  { %v472_v5 = vpop.f32.mrb[4].mxu0  ;;  %v10481_v4 = vrot.slane %v8304_v57, %v10301_v14 }
 0x1c4   :  { %656 = vrot.lane.b32.xlu1 %v468_v1, %s10161_s29  ;;  %v474_v6 = vpop.f32.mrb[5].mxu0 }
 0x1c5   :  { %658 = vrot.lane.b32.xlu0 %v584_v3, %s10161_s29  ;;  %v589_v7 = vpop.f32.mrb[8].mxu1  ;;  %v10478_v3 = vrot.slane %v56_v56, %v10308_v17  ;;  %14813 = vst [vmem:[#allocation15_spill] sm:$0xff] %v10481_v4 }
 0x1c6   :  { %v9279_v8 = vpop.f32.mrb[9].mxu1 }
 0x1c7   :  { %v478_v12 = vpop.f32.mrb[6].mxu0  ;;  %14812 = vst [vmem:[#allocation14_spill] sm:$0xff] %v10478_v3  ;;  %v10493_v8 = vrot.slane %v8305_v9, %v10301_v14 }
 0x1c8   :  { %686 = vrot.lane.b32.xlu1 %v472_v5, %s14776_s30  ;;  %v480_v13 = vpop.f32.mrb[7].mxu0  ;;  %v10484_v5 = vrot.slane %v8304_v57, %v10295_v11 }
 0x1c9   :  { %688 = vrot.lane.b32.xlu0 %v474_v6, %s14776_s30  ;;  %v594_v15 = vpop.f32.mrb[10].mxu1  ;;  %v10487_v6 = vrot.slane %v8304_v57, %v10308_v17  ;;  %14816 = vst [vmem:[#allocation18_spill] sm:$0xff] %v10493_v8 }
 0x1ca   :  { %v9282_v16 = vpop.f32.mrb[11].mxu1  ;;  %14814 = vst [vmem:[#allocation16_spill] sm:$0xff] %v10484_v5 }
 0x1cb   :  { %v10420_v18 = vpop.f32.mrb[8].mxu0  ;;  %14815 = vst [vmem:[#allocation17_spill] sm:$0xff] %v10487_v6  ;;  %v10505_v16 = vrot.slane %v8306_v0, %v10301_v14 }
 0x1cc   :  { %690 = vrot.lane.b32.xlu1 %v589_v7, %s14776_s30  ;;  %v10423_v19 = vpop.f32.mrb[9].mxu0 }
 0x1cd   :  { %718 = vrot.lane.b32.xlu0 %v478_v12, %s10163_s0  ;;  %v10426_v20 = vpop.f32.mrb[12].mxu1  ;;  %v10496_v12 = vrot.slane %v8305_v9, %v10295_v11  ;;  %14819 = vst [vmem:[#allocation21_spill] sm:$0xff] %v10505_v16 }
 0x1ce   :  { %v9285_v21 = vpop.f32.mrb[13].mxu1 }
 0x1cf   :  { %v490_v22 = vpop.f32.mrb[10].mxu0  ;;  %14817 = vst [vmem:[#allocation19_spill] sm:$0xff] %v10496_v12 }
 0x1d0   :  { %720 = vrot.lane.b32.xlu1 %v480_v13, %s10163_s0  ;;  %v492_v23 = vpop.f32.mrb[11].mxu0 }
 0x1d1   :  { %722 = vrot.lane.b32.xlu0 %v594_v15, %s10163_s0  ;;  %v604_v25 = vpop.f32.mrb[14].mxu1  ;;  %v10501_v15 = vrot.slane %v8305_v9, %v10308_v17 }
 0x1d2   :  { %v9288_v27 = vpop.f32.mrb[15].mxu1 }
 0x1d3   :  { %v496_v28 = vpop.f32.mrb[12].mxu0  ;;  %14818 = vst [vmem:[#allocation20_spill] sm:$0xff] %v10501_v15  ;;  %v10514_v27 = vrot.slane %v8306_v0, %v10295_v11 }
 0x1d4   :  { %772 = vrot.lane.b32.xlu1 %v490_v22, %s10164_s17  ;;  %v498_v29 = vpop.f32.mrb[13].mxu0 }
 0x1d5   :  { %774 = vrot.lane.b32.xlu0 %v492_v23, %s10164_s17  ;;  %v609_v30 = vpop.f32.mrb[16].mxu1  ;;  %14820 = vst [vmem:[#allocation22_spill] sm:$0xff] %v10514_v27 }
 0x1d6   :  { %v9291_v31 = vpop.f32.mrb[17].mxu1 }
 0x1d7   :  { %v502_v32 = vpop.f32.mrb[14].mxu0 }
 0x1d8   :  { %776 = vrot.lane.b32.xlu1 %v604_v25, %s10164_s17  ;;  %v504_v33 = vpop.f32.mrb[15].mxu0 }
 0x1d9   :  { %804 = vrot.lane.b32.xlu0 %v496_v28, %s14774_s18  ;;  %v614_v34 = vpop.f32.mrb[18].mxu1 }
 0x1da   :  { %v9294_v35 = vpop.f32.mrb[19].mxu1 }
 0x1db   :  { %v508_v36 = vpop.f32.mrb[16].mxu0 }
 0x1dc   :  { %806 = vrot.lane.b32.xlu1 %v498_v29, %s14774_s18  ;;  %v510_v37 = vpop.f32.mrb[17].mxu0 }
 0x1dd   :  { %808 = vrot.lane.b32.xlu0 %v609_v30, %s14774_s18  ;;  %v619_v39 = vpop.f32.mrb[20].mxu1 }
 0x1de   :  { %v9297_v40 = vpop.f32.mrb[21].mxu1 }
 0x1e0   :  { %836 = vrot.lane.b32.xlu1 %v502_v32, %s14772_s6  ;;  %v10522_v32 = vrot.slane %v8306_v0, %v10308_v17 }
 0x1e1   :  { %838 = vrot.lane.b32.xlu0 %v504_v33, %s14772_s6 }
 0x1e2   :  { %14821 = vst [vmem:[#allocation23_spill] sm:$0xff] %v10522_v32 }
 0x1e4   :  { %840 = vrot.lane.b32.xlu1 %v614_v34, %s14772_s6 }
 0x1e5   :  { %868 = vrot.lane.b32.xlu0 %v508_v36, %s14770_s19 }
 0x1e8   :  { %870 = vrot.lane.b32.xlu1 %v510_v37, %s14770_s19 }
 0x1e9   :  { %872 = vrot.lane.b32.xlu0 %v619_v39, %s14770_s19 }
 0x22e   :  { %v624_v41 = vpop.permute.xlu1 %623 }
 0x22f   :  { %v626_v42 = vpop.permute.xlu0 %625 }
 0x230   :  { %v633_v29 = vsel %vm631_vm3, %v624_v41, %v626_v42 }
 0x232   :  { %v628_v43 = vpop.permute.xlu1 %627 }
 0x233   :  { %v655_v44 = vpop.permute.xlu0 %654  ;;  %v634_v22 = vsel %vm631_vm3, %v628_v43, %v624_v41  ;;  %v632_v30 = vsel %vm631_vm3, %v626_v42, %v628_v43  ;;  %v8308_v41 = vld [vmem:[%s14643_s2 + $0xf] sm:$0x7]  ;;  %v652_v43 = vmul.f32 %v10469_v62, %v633_v29  ;;  %v767_v29 = vmul.f32 %v10458_v59, %v10423_v19 }
 0x234   :  { %v651_v37 = vmul.f32 %v10472_v63, %v634_v22  ;;  %v10548_v9 = vrot.slane %v8308_v41, %v10295_v11  ;;  %v10551_v0 = vrot.slane %v8308_v41, %v10301_v14 }
 0x236   :  { %v657_v45 = vpop.permute.xlu1 %656  ;;  %14822 = vst [vmem:[#allocation24_spill] sm:$0xff] %v10548_v9  ;;  %14823 = vst [vmem:[#allocation25_spill] sm:$0xff] %v10551_v0 }
 0x237   :  { %v659_v47 = vpop.permute.xlu0 %658  ;;  %v662_v13 = vsel %vm660_vm2, %v655_v44, %v657_v45 }
 0x238   :  { %v663_v7 = vsel %vm660_vm2, %v659_v47, %v655_v44  ;;  %v661_v23 = vsel %vm660_vm2, %v657_v45, %v659_v47  ;;  %v681_v33 = vmul.f32 %v10481_v4, %v662_v13  ;;  %v653_v44 = vmul.f32 %v10478_v3, %v632_v30 }
 0x239   :  { %v680_v31 = vmul.f32 %v10484_v5, %v663_v7  ;;  %v682_v39 = vmul.f32 %v10487_v6, %v661_v23  ;;  %v768_v30 = vmul.f32 %v10465_v61, %v10426_v20 }
 0x23a   :  { %v687_v48 = vpop.permute.xlu1 %686  ;;  %v684_v57 = vadd.f32 %v681_v33, %v652_v43 }
 0x23b   :  { %v689_v50 = vpop.permute.xlu0 %688 }
 0x23c   :  { %v694_v34 = vsel %vm692_vm4, %v687_v48, %v689_v50 }
 0x23e   :  { %v691_v52 = vpop.permute.xlu1 %690 }
 0x23f   :  { %v719_v55 = vpop.permute.xlu0 %718  ;;  %v695_v25 = vsel %vm692_vm4, %v691_v52, %v687_v48  ;;  %v693_v35 = vsel %vm692_vm4, %v689_v50, %v691_v52  ;;  %v683_v50 = vadd.f32 %v680_v31, %v651_v37  ;;  %v713_v52 = vmul.f32 %v10493_v8, %v694_v34  ;;  %v8310_v37 = vld [vmem:[%s14643_s2 + $0x15] sm:$0x7] }
 0x240   :  { %v712_v40 = vmul.f32 %v10496_v12, %v695_v25  ;;  %v714_v53 = vmul.f32 %v10501_v15, %v693_v35  ;;  %v766_v25 = vmul.f32 %v10455_v58, %v10420_v18 }
 0x241   :  { %v716_v33 = vadd.f32 %v713_v52, %v684_v57  ;;  %v10593_v52 = vrot.slane %v8310_v37, %v10301_v14 }
 0x242   :  { %v721_v60 = vpop.permute.xlu1 %720  ;;  %v715_v7 = vadd.f32 %v712_v40, %v683_v50 }
 0x243   :  { %v723_v1 = vpop.permute.xlu0 %722  ;;  %v726_v45 = vsel %vm724_vm5, %v719_v55, %v721_v60  ;;  %14829 = vst [vmem:[#allocation31_spill] sm:$0xff] %v10593_v52 }
 0x244   :  { %v727_v36 = vsel %vm724_vm5, %v723_v1, %v719_v55  ;;  %v725_v47 = vsel %vm724_vm5, %v721_v60, %v723_v1  ;;  %v10554_v55 = vrot.slane %v8308_v41, %v10308_v17  ;;  %v8309_v60 = vld [vmem:[%s14643_s2 + $0x12] sm:$0x7]  ;;  %v685_v1 = vadd.f32 %v682_v39, %v653_v44 }
 0x245   :  { %v744_v56 = vmul.f32 %v10514_v27, %v727_v36  ;;  %v745_v13 = vmul.f32 %v10505_v16, %v726_v45  ;;  %v746_v22 = vmul.f32 %v10522_v32, %v725_v47  ;;  %v10569_v36 = vrot.slane %v8309_v60, %v10295_v11 }
 0x246   :  { %v773_v21 = vpop.permute.xlu1 %772  ;;  %14824 = vst [vmem:[#allocation26_spill] sm:$0xff] %v10554_v55  ;;  %v717_v34 = vadd.f32 %v714_v53, %v685_v1  ;;  %v10577_v19 = vrot.slane %v8309_v60, %v10301_v14  ;;  %v10580_v20 = vrot.slane %v8309_v60, %v10308_v17  ;;  %v10590_v47 = vrot.slane %v8310_v37, %v10295_v11 }
 0x247   :  { %v775_v28 = vpop.permute.xlu0 %774  ;;  %v747_v35 = vadd.f32 %v744_v56, %v715_v7  ;;  %14825 = vst [vmem:[#allocation27_spill] sm:$0xff] %v10569_v36  ;;  %v748_v39 = vadd.f32 %v745_v13, %v716_v33  ;;  %v10596_v53 = vrot.slane %v8310_v37, %v10308_v17 }
 0x248   :  { %v780_v18 = vsel %vm778_vm6, %v773_v21, %v775_v28  ;;  %14826 = vst [vmem:[#allocation28_spill] sm:$0xff] %v10577_v19  ;;  %14827 = vst [vmem:[#allocation29_spill] sm:$0xff] %v10580_v20  ;;  %v749_v40 = vadd.f32 %v746_v22, %v717_v34 }
 0x249   :  { %14828 = vst [vmem:[#allocation30_spill] sm:$0xff] %v10590_v47  ;;  %14830 = vst [vmem:[#allocation32_spill] sm:$0xff] %v10596_v53  ;;  %v769_v56 = vadd.f32 %v766_v25, %v747_v35  ;;  %v770_v13 = vadd.f32 %v767_v29, %v748_v39 }
 0x24a   :  { %v777_v42 = vpop.permute.xlu1 %776  ;;  %v771_v22 = vadd.f32 %v768_v30, %v749_v40 }
 0x24b   :  { %v805_v48 = vpop.permute.xlu0 %804  ;;  %v779_v41 = vsel %vm778_vm6, %v775_v28, %v777_v42  ;;  %v781_v43 = vsel %vm778_vm6, %v777_v42, %v773_v21  ;;  %v8311_v28 = vld [vmem:[%s14643_s2 + $0x18] sm:$0x7]  ;;  %v798_v21 = vmul.f32 %v10548_v9, %v780_v18 }
 0x24c   :  { %v799_v60 = vmul.f32 %v10551_v0, %v779_v41  ;;  %v800_v1 = vmul.f32 %v10554_v55, %v781_v43  ;;  %v10613_v34 = vrot.slane %v8311_v28, %v10295_v11  ;;  %v10623_v30 = vrot.slane %v8311_v28, %v10301_v14 }
 0x24d   :  { %v801_v18 = vadd.f32 %v798_v21, %v769_v56  ;;  %v10626_v39 = vrot.slane %v8311_v28, %v10308_v17 }
 0x24e   :  { %v807_v23 = vpop.permute.xlu1 %806  ;;  %14831 = vst [vmem:[#allocation33_spill] sm:$0xff] %v10613_v34  ;;  %14832 = vst [vmem:[#allocation34_spill] sm:$0xff] %v10623_v30  ;;  %v802_v40 = vadd.f32 %v799_v60, %v770_v13  ;;  %v803_v41 = vadd.f32 %v800_v1, %v771_v22 }
 0x24f   :  { %v809_v31 = vpop.permute.xlu0 %808  ;;  %v812_v45 = vsel %vm14787_vm7, %v805_v48, %v807_v23  ;;  %14833 = vst [vmem:[#allocation35_spill] sm:$0xff] %v10626_v39 }
 0x250   :  { %v811_v42 = vsel %vm14787_vm7, %v807_v23, %v809_v31  ;;  %v813_v57 = vsel %vm14787_vm7, %v809_v31, %v805_v48  ;;  %v830_v25 = vmul.f32 %v10569_v36, %v812_v45 }
 0x251   :  { %v831_v23 = vmul.f32 %v10577_v19, %v811_v42  ;;  %v832_v48 = vmul.f32 %v10580_v20, %v813_v57 }
 0x252   :  { %v837_v44 = vpop.permute.xlu1 %836 }
 0x253   :  { %v839_v50 = vpop.permute.xlu0 %838  ;;  %v834_v57 = vadd.f32 %v831_v23, %v802_v40 }
 0x254   :  { %v844_v7 = vsel %vm14786_vm8, %v837_v44, %v839_v50 }
 0x255   :  { %v862_v29 = vmul.f32 %v10590_v47, %v844_v7 }
 0x256   :  { %v841_v33 = vpop.permute.xlu1 %840 }
 0x257   :  { %v843_v31 = vsel %vm14786_vm8, %v839_v50, %v841_v33  ;;  %v845_v35 = vsel %vm14786_vm8, %v841_v33, %v837_v44  ;;  %v869_v37 = vpop.permute.xlu0 %868  ;;  %v833_v50 = vadd.f32 %v830_v25, %v801_v18  ;;  %v835_v44 = vadd.f32 %v832_v48, %v803_v41 }
 0x258   :  { %v863_v43 = vmul.f32 %v10593_v52, %v843_v31  ;;  %v864_v45 = vmul.f32 %v10596_v53, %v845_v35 }
 0x259   :  { %v865_v7 = vadd.f32 %v862_v29, %v833_v50 }
 0x25a   :  { %v871_v42 = vpop.permute.xlu1 %870  ;;  %v866_v1 = vadd.f32 %v863_v43, %v834_v57  ;;  %v867_v13 = vadd.f32 %v864_v45, %v835_v44 }
 0x25b   :  { %v876_v56 = vsel %vm14785_vm9, %v869_v37, %v871_v42  ;;  %v873_v21 = vpop.permute.xlu0 %872 }
 0x25c   :  { %v894_v33 = vmul.f32 %v10613_v34, %v876_v56  ;;  %v875_v28 = vsel %vm14785_vm9, %v871_v42, %v873_v21  ;;  %v877_v60 = vsel %vm14785_vm9, %v873_v21, %v869_v37  ;;  %v8365_v37 = vld [vmem:[%s14641_s5 + $0x80] sm:$0xff] }
 0x25d   :  { %v895_v22 = vmul.f32 %v10623_v30, %v875_v28  ;;  %v896_v25 = vmul.f32 %v10626_v39, %v877_v60  ;;  %v8364_v28 = vld [vmem:[%s14641_s5 + $0x60] sm:$0xff] }
 0x25e   :  { %v897_v23 = vadd.f32 %v894_v33, %v865_v7 }
 0x25f   :  { %v898_v48 = vadd.f32 %v895_v22, %v866_v1  ;;  %v899_v31 = vadd.f32 %v896_v25, %v867_v13 }
 0x260   :  { %v909_v35 = vmul.f32 %v897_v23, %v897_v23 }
 0x261   :  { %v904_v18 = vadd.f32 %v898_v48, %v897_v23  ;;  %v910_v29 = vmul.f32 %v898_v48, %v898_v48  ;;  %v911_v41 = vmul.f32 %v899_v31, %v899_v31 }
 0x263   :  { %v905_v40 = vadd.f32 %v904_v18, %v899_v31  ;;  %v912_v50 = vadd.f32 %v910_v29, %v909_v35 }
 0x265   :  { %906 = vadd.xlane.f32.xlu1 %v905_v40  ;;  %v913_v42 = vadd.f32 %v912_v50, %v911_v41 }
 0x267   :  { %914 = vadd.xlane.f32.xlu0 %v913_v42 }
 0x276   :  { %936 = vperm.xlu1 %10092, %v8365_v37  }
 0x2f2   :  { %v907_v43 = vpop.xlane.xlu1 %906 }
 0x2f3   :  { %v908_v45 = vmul.f32 0.0034722222, %v907_v43 }
 0x2f4   :  { %v915_v57 = vpop.xlane.xlu0 %914 }
 0x2f5   :  { %v916_v44 = vmul.f32 0.0034722222, %v915_v57  ;;  %v917_v56 = vmul.f32 %v908_v45, %v908_v45  ;;  %v920_v13 = vsub.f32 %v897_v23, %v908_v45  ;;  %v921_v22 = vsub.f32 %v898_v48, %v908_v45  ;;  %v8337_v23 = vld [vmem:[%s14644_s7 + $0x48] sm:$0xff]  ;;  %v8338_v48 = vld [vmem:[%s14644_s7 + $0x50] sm:$0xff] }
 0x2f6   :  { %v922_v25 = vsub.f32 %v899_v31, %v908_v45  ;;  %v937_v41 = vpop.permute.xlu1 %936  ;;  %v8339_v31 = vld [vmem:[%s14644_s7 + $0x58] sm:$0xff]  ;;  %v8340_v45 = vld [vmem:[%s14644_s7 + $0x60] sm:$0xff] }
 0x2f7   :  { %v918_v21 = vsub.f32 %v916_v44, %v917_v56 }
 0x2f9   :  { %v919_v7 = vmax.f32 %v918_v21, 0.0 }
 0x2fb   :  { %v923_v33 = vadd.f32 1e-05, %v919_v7 }
 0x2fd   :  { %10093 = vrsqrt.f32 %v923_v33  ;;  %v8341_v33 = vld [vmem:[%s14644_s7 + $0x68] sm:$0xff] }
 0x307   :  { %v10094_v60 = vpop.eup %10093 }
 0x308   :  { %v925_v1 = vmul.f32 %v10094_v60, %v8364_v28  ;;  %v8342_v28 = vld [vmem:[%s14644_s7 + $0x70] sm:$0xff]  ;;  %v8343_v60 = vld [vmem:[%s14644_s7 + $0x78] sm:$0xff] }
 0x30a   :  { %928 = vperm.xlu0 %10091, %v925_v1   ;;  %v8344_v1 = vld [vmem:[%s14644_s7 + $0x80] sm:$0xff] }
 0x389   :  { %v929_v35 = vpop.permute.xlu0 %928 }
 0x38a   :  { %v931_v18 = vmul.f32 %v929_v35, %v920_v13  ;;  %v932_v29 = vmul.f32 %v929_v35, %v921_v22  ;;  %v933_v40 = vmul.f32 %v929_v35, %v922_v25  ;;  %v8345_v13 = vld [vmem:[%s14644_s7 + $0x88] sm:$0xff] }
 0x38c   :  { %v939_v50 = vadd.f32 %v937_v41, %v931_v18  ;;  %v941_v42 = vadd.f32 %v937_v41, %v933_v40  ;;  %v940_v37 = vadd.f32 %v937_v41, %v932_v29 }
 0x38e   :  { %v943_v43 = vmul.f32 %v940_v37, %v10317_v24  ;;  %v944_v57 = vmul.f32 %v941_v42, %v10326_v38  ;;  %v942_v44 = vmul.f32 %v939_v50, %v10320_v26 }
 0x390   :  { %v946_v56 = vmax.f32 %v943_v43, 0.0  ;;  %v947_v21 = vmax.f32 %v944_v57, 0.0  ;;  %v945_v7 = vmax.f32 %v942_v44, 0.0 }
 0x392   :  { %975 = vmatprep.subr.mxu0 %v946_v56  ;;  %9299 = vmatpush3.msra.mxu1 %v947_v21 }
 0x393   :  { %976 = vmatpush1.msra.mxu0 %v945_v7  ;;  %9301 = vmatmul.mubr.msk.f32.vlgmr.msra.gmra.mrb[22].mxu1 %vm145_vm0, %v8337_v23 }
 0x394   :  { %8366 = vmatmul.mubr.msk.f32.vlgmr.msra.gmra.mrb[18].mxu0 %vm145_vm0, %v8337_v23  ;;  %9303 = vmatprep.mubr.msk.f32.mxu1 %vm10159_vm1, %v14657_v2 }
 0x395   :  { %1045 = vmatprep.mubr.f32.mxu0 %v14657_v2 }
 0x397   :  { %9304 = vmatmul.mubr.msk.f32.gmra.mrb[24].mxu1 %vm145_vm0, %v8338_v48 }
 0x398   :  { %8367 = vmatmul.mubr.msk.f32.gmra.mrb[20].mxu0 %vm145_vm0, %v8338_v48  ;;  %9306 = vmatprep.mubr.msk.f32.mxu1 %vm10159_vm1, %v14657_v2 }
 0x399   :  { %1051 = vmatprep.mubr.f32.mxu0 %v14657_v2 }
 0x39b   :  { %9307 = vmatmul.mubr.msk.f32.gmra.mrb[26].mxu1 %vm145_vm0, %v8339_v31 }
 0x39c   :  { %8368 = vmatmul.mubr.msk.f32.gmra.mrb[22].mxu0 %vm145_vm0, %v8339_v31  ;;  %9309 = vmatprep.mubr.msk.f32.mxu1 %vm10159_vm1, %v14657_v2 }
 0x39d   :  { %1057 = vmatprep.mubr.f32.mxu0 %v14657_v2 }
 0x39f   :  { %9310 = vmatmul.mubr.msk.f32.gmra.mrb[28].mxu1 %vm145_vm0, %v8340_v45 }
 0x3a0   :  { %8369 = vmatmul.mubr.msk.f32.gmra.mrb[24].mxu0 %vm145_vm0, %v8340_v45  ;;  %9312 = vmatprep.mubr.msk.f32.mxu1 %vm10159_vm1, %v14657_v2 }
 0x3a1   :  { %1063 = vmatprep.mubr.f32.mxu0 %v14657_v2 }
 0x3a3   :  { %9313 = vmatmul.mubr.msk.f32.gmra.mrb[30].mxu1 %vm145_vm0, %v8341_v33 }
 0x3a4   :  { %8370 = vmatmul.mubr.msk.f32.gmra.mrb[26].mxu0 %vm145_vm0, %v8341_v33  ;;  %9315 = vmatprep.mubr.msk.f32.mxu1 %vm10159_vm1, %v14657_v2 }
 0x3a5   :  { %1069 = vmatprep.mubr.f32.mxu0 %v14657_v2 }
 0x3a7   :  { %9316 = vmatmul.mubr.msk.f32.gmra.mrb[32].mxu1 %vm145_vm0, %v8342_v28 }
 0x3a8   :  { %8371 = vmatmul.mubr.msk.f32.gmra.mrb[28].mxu0 %vm145_vm0, %v8342_v28  ;;  %9318 = vmatprep.mubr.msk.f32.mxu1 %vm10159_vm1, %v14657_v2 }
 0x3a9   :  { %1075 = vmatprep.mubr.f32.mxu0 %v14657_v2 }
 0x3ab   :  { %9319 = vmatmul.mubr.msk.f32.gmra.mrb[34].mxu1 %vm145_vm0, %v8343_v60 }
 0x3ac   :  { %8372 = vmatmul.mubr.msk.f32.gmra.mrb[30].mxu0 %vm145_vm0, %v8343_v60  ;;  %9321 = vmatprep.mubr.msk.f32.mxu1 %vm10159_vm1, %v14657_v2 }
 0x3ad   :  { %1081 = vmatprep.mubr.f32.mxu0 %v14657_v2 }
 0x3af   :  { %9322 = vmatmul.mubr.msk.f32.gmra.mrb[36].mxu1 %vm145_vm0, %v8344_v1 }
 0x3b0   :  { %8373 = vmatmul.mubr.msk.f32.gmra.mrb[32].mxu0 %vm145_vm0, %v8344_v1  ;;  %9324 = vmatprep.mubr.msk.f32.mxu1 %vm10159_vm1, %v14657_v2 }
 0x3b1   :  { %1087 = vmatprep.mubr.f32.mxu0 %v14657_v2 }
 0x3b3   :  { %9325 = vmatmul.mubr.msk.f32.gmra.mrb[38].mxu1 %vm145_vm0, %v8345_v13 }
 0x3b4   :  { %8374 = vmatmul.mubr.msk.f32.gmra.mrb[34].mxu0 %vm145_vm0, %v8345_v13 }
 0x3b5   :  { %1589 = vmatprep.mubr.f32.mxu0 %v14657_v2 }
 0x466   :  { %v1160_v22 = vpop.f32.mrb[22].mxu1 }
 0x467   :  { %1208 = vrot.lane.b32.xlu1 %v1160_v22, %s10160_s28  ;;  %v1041_v25 = vpop.f32.mrb[18].mxu0  ;;  %v9302_v35 = vpop.f32.mrb[23].mxu1 }
 0x468   :  { %v1043_v18 = vpop.f32.mrb[19].mxu0 }
 0x469   :  { %1206 = vrot.lane.b32.xlu0 %v1043_v18, %s10160_s28 }
 0x46a   :  { %v1165_v29 = vpop.f32.mrb[24].mxu1 }
 0x46b   :  { %1204 = vrot.lane.b32.xlu1 %v1041_v25, %s10160_s28  ;;  %v9305_v40 = vpop.f32.mrb[25].mxu1  ;;  %v1047_v41 = vpop.f32.mrb[20].mxu0 }
 0x46c   :  { %v1049_v50 = vpop.f32.mrb[21].mxu0 }
 0x46d   :  { %1220 = vrot.lane.b32.xlu0 %v1165_v29, %s10161_s29 }
 0x46e   :  { %v1170_v42 = vpop.f32.mrb[26].mxu1 }
 0x46f   :  { %1218 = vrot.lane.b32.xlu1 %v1049_v50, %s10161_s29  ;;  %v1053_v37 = vpop.f32.mrb[22].mxu0  ;;  %v9308_v43 = vpop.f32.mrb[27].mxu1 }
 0x470   :  { %v1055_v57 = vpop.f32.mrb[23].mxu0 }
 0x471   :  { %1216 = vrot.lane.b32.xlu0 %v1047_v41, %s10161_s29 }
 0x472   :  { %v1175_v44 = vpop.f32.mrb[28].mxu1 }
 0x473   :  { %1235 = vrot.lane.b32.xlu1 %v1170_v42, %s14776_s30  ;;  %v1059_v56 = vpop.f32.mrb[24].mxu0  ;;  %v9311_v21 = vpop.f32.mrb[29].mxu1 }
 0x474   :  { %v1061_v7 = vpop.f32.mrb[25].mxu0 }
 0x475   :  { %1233 = vrot.lane.b32.xlu0 %v1055_v57, %s14776_s30 }
 0x476   :  { %v10726_v23 = vpop.f32.mrb[30].mxu1 }
 0x477   :  { %1231 = vrot.lane.b32.xlu1 %v1053_v37, %s14776_s30  ;;  %v10729_v48 = vpop.f32.mrb[26].mxu0  ;;  %v9314_v31 = vpop.f32.mrb[31].mxu1 }
 0x478   :  { %v10731_v45 = vpop.f32.mrb[27].mxu0 }
 0x479   :  { %1250 = vrot.lane.b32.xlu0 %v1175_v44, %s10163_s0 }
 0x47a   :  { %v1185_v33 = vpop.f32.mrb[32].mxu1 }
 0x47b   :  { %1248 = vrot.lane.b32.xlu1 %v1061_v7, %s10163_s0  ;;  %v1071_v28 = vpop.f32.mrb[28].mxu0  ;;  %v9317_v60 = vpop.f32.mrb[33].mxu1 }
 0x47c   :  { %v1073_v1 = vpop.f32.mrb[29].mxu0 }
 0x47d   :  { %1246 = vrot.lane.b32.xlu0 %v1059_v56, %s10163_s0 }
 0x47e   :  { %v1190_v13 = vpop.f32.mrb[34].mxu1 }
 0x47f   :  { %1271 = vrot.lane.b32.xlu1 %v1185_v33, %s10164_s17  ;;  %v9320_v22 = vpop.f32.mrb[35].mxu1  ;;  %v1077_v25 = vpop.f32.mrb[30].mxu0 }
 0x480   :  { %v1079_v35 = vpop.f32.mrb[31].mxu0 }
 0x481   :  { %1269 = vrot.lane.b32.xlu0 %v1073_v1, %s10164_s17 }
 0x482   :  { %v1195_v18 = vpop.f32.mrb[36].mxu1 }
 0x483   :  { %1267 = vrot.lane.b32.xlu1 %v1071_v28, %s10164_s17  ;;  %v1083_v29 = vpop.f32.mrb[32].mxu0  ;;  %v9323_v40 = vpop.f32.mrb[37].mxu1 }
 0x484   :  { %v1085_v41 = vpop.f32.mrb[33].mxu0 }
 0x485   :  { %1286 = vrot.lane.b32.xlu0 %v1190_v13, %s14774_s18 }
 0x486   :  { %v1200_v50 = vpop.f32.mrb[38].mxu1 }
 0x487   :  { %1284 = vrot.lane.b32.xlu1 %v1079_v35, %s14774_s18  ;;  %v1089_v42 = vpop.f32.mrb[34].mxu0  ;;  %v9326_v37 = vpop.f32.mrb[39].mxu1 }
 0x488   :  { %v1091_v43 = vpop.f32.mrb[35].mxu0 }
 0x489   :  { %1282 = vrot.lane.b32.xlu0 %v1077_v25, %s14774_s18 }
 0x48b   :  { %1301 = vrot.lane.b32.xlu1 %v1195_v18, %s14772_s6 }
 0x48d   :  { %1299 = vrot.lane.b32.xlu0 %v1085_v41, %s14772_s6 }
 0x48f   :  { %1297 = vrot.lane.b32.xlu1 %v1083_v29, %s14772_s6 }
 0x491   :  { %1312 = vrot.lane.b32.xlu0 %v1089_v42, %s14770_s19 }
 0x493   :  { %1314 = vrot.lane.b32.xlu1 %v1091_v43, %s14770_s19 }
 0x495   :  { %1316 = vrot.lane.b32.xlu0 %v1200_v50, %s14770_s19 }
 0x4d9   :  { %v1209_v57 = vpop.permute.xlu1 %1208 }
 0x4db   :  { %v1207_v44 = vpop.permute.xlu0 %1206 }
 0x4dd   :  { %v1205_v56 = vpop.permute.xlu1 %1204 }
 0x4de   :  { %v1211_v29 = vsel %vm631_vm3, %v1205_v56, %v1207_v44  ;;  %v1212_v50 = vsel %vm631_vm3, %v1209_v57, %v1205_v56 }
 0x4df   :  { %v1221_v21 = vpop.permute.xlu0 %1220  ;;  %v1214_v10 = vmul.f32 %v1211_v29, %v10469_v62 }
 0x4e1   :  { %v1219_v7 = vpop.permute.xlu1 %1218 }
 0x4e2   :  { %v1222_v42 = vsel %vm660_vm2, %v1219_v7, %v1221_v21 }
 0x4e3   :  { %v1217_v31 = vpop.permute.xlu0 %1216 }
 0x4e4   :  { %v1223_v25 = vsel %vm660_vm2, %v1217_v31, %v1219_v7  ;;  %v1224_v18 = vsel %vm660_vm2, %v1221_v21, %v1217_v31  ;;  %v1210_v31 = vsel %vm631_vm3, %v1207_v44, %v1209_v57  ;;  %v1227_v57 = vmul.f32 %v1222_v42, %v10487_v6 }
 0x4e5   :  { %v1236_v33 = vpop.permute.xlu1 %1235  ;;  %v1226_v37 = vmul.f32 %v1223_v25, %v10481_v4  ;;  %v1225_v2 = vmul.f32 %v1224_v18, %v10484_v5 }
 0x4e7   :  { %v1234_v28 = vpop.permute.xlu0 %1233  ;;  %v1229_v18 = vadd.f32 %v1226_v37, %v1214_v10 }
 0x4e8   :  { %v1237_v56 = vsel %vm692_vm4, %v1234_v28, %v1236_v33 }
 0x4e9   :  { %v1232_v60 = vpop.permute.xlu1 %1231 }
 0x4ea   :  { %v1238_v40 = vsel %vm692_vm4, %v1232_v60, %v1234_v28  ;;  %v1239_v43 = vsel %vm692_vm4, %v1236_v33, %v1232_v60  ;;  %v1213_v60 = vmul.f32 %v1212_v50, %v10472_v63  ;;  %v1215_v33 = vmul.f32 %v1210_v31, %v10478_v3 }
 0x4eb   :  { %v1251_v1 = vpop.permute.xlu0 %1250  ;;  %v1241_v21 = vmul.f32 %v1238_v40, %v10493_v8  ;;  %v1240_v44 = vmul.f32 %v1239_v43, %v10496_v12  ;;  %v1242_v40 = vmul.f32 %v1237_v56, %v10501_v15  ;;  %v1262_v31 = vmul.f32 %v10731_v45, %v10458_v59 }
 0x4ec   :  { %v1228_v28 = vadd.f32 %v1225_v2, %v1213_v60  ;;  %v1230_v4 = vadd.f32 %v1227_v57, %v1215_v33  ;;  %v1263_v57 = vmul.f32 %v10726_v23, %v10465_v61 }
 0x4ed   :  { %v1249_v13 = vpop.permute.xlu1 %1248  ;;  %v1244_v50 = vadd.f32 %v1241_v21, %v1229_v18  ;;  %v1261_v21 = vmul.f32 %v10729_v48, %v10455_v58 }
 0x4ee   :  { %v1252_v11 = vsel %vm724_vm5, %v1249_v13, %v1251_v1  ;;  %v1243_v42 = vadd.f32 %v1240_v44, %v1228_v28 }
 0x4ef   :  { %v1247_v22 = vpop.permute.xlu0 %1246  ;;  %v1257_v43 = vmul.f32 %v1252_v11, %v10522_v32 }
 0x4f0   :  { %v1253_v14 = vsel %vm724_vm5, %v1247_v22, %v1249_v13  ;;  %v1254_v7 = vsel %vm724_vm5, %v1251_v1, %v1247_v22  ;;  %v1245_v13 = vadd.f32 %v1242_v40, %v1230_v4 }
 0x4f1   :  { %v1272_v35 = vpop.permute.xlu1 %1271  ;;  %v1256_v29 = vmul.f32 %v1253_v14, %v10505_v16  ;;  %v1255_v22 = vmul.f32 %v1254_v7, %v10514_v27 }
 0x4f2   :  { %v1260_v7 = vadd.f32 %v1257_v43, %v1245_v13 }
 0x4f3   :  { %v1270_v41 = vpop.permute.xlu0 %1269  ;;  %v1259_v10 = vadd.f32 %v1256_v29, %v1244_v50  ;;  %v1258_v14 = vadd.f32 %v1255_v22, %v1243_v42 }
 0x4f4   :  { %v1273_v2 = vsel %vm778_vm6, %v1270_v41, %v1272_v35  ;;  %v1266_v40 = vadd.f32 %v1263_v57, %v1260_v7 }
 0x4f5   :  { %v1268_v17 = vpop.permute.xlu1 %1267  ;;  %v1265_v45 = vadd.f32 %v1262_v31, %v1259_v10  ;;  %v1277_v44 = vmul.f32 %v1273_v2, %v10551_v0 }
 0x4f6   :  { %v1274_v1 = vsel %vm778_vm6, %v1268_v17, %v1270_v41  ;;  %v1275_v56 = vsel %vm778_vm6, %v1272_v35, %v1268_v17  ;;  %v1264_v35 = vadd.f32 %v1261_v21, %v1258_v14 }
 0x4f7   :  { %v1287_v25 = vpop.permute.xlu0 %1286  ;;  %v1276_v4 = vmul.f32 %v1274_v1, %v10548_v9  ;;  %v1278_v18 = vmul.f32 %v1275_v56, %v10554_v55  ;;  %v1280_v42 = vadd.f32 %v1277_v44, %v1265_v45 }
 0x4f9   :  { %v1285_v8 = vpop.permute.xlu1 %1284  ;;  %v1279_v22 = vadd.f32 %v1276_v4, %v1264_v35  ;;  %v1281_v10 = vadd.f32 %v1278_v18, %v1266_v40  ;;  %v8385_v40 = vld [vmem:[%s14641_s5 + $0xc0] sm:$0xff] }
 0x4fa   :  { %v1288_v60 = vsel %vm14787_vm7, %v1285_v8, %v1287_v25 }
 0x4fb   :  { %v1283_v12 = vpop.permute.xlu0 %1282 }
 0x4fc   :  { %v1289_v11 = vsel %vm14787_vm7, %v1283_v12, %v1285_v8  ;;  %v1290_v17 = vsel %vm14787_vm7, %v1287_v25, %v1283_v12  ;;  %v1292_v8 = vmul.f32 %v1288_v60, %v10577_v19 }
 0x4fd   :  { %v1302_v37 = vpop.permute.xlu1 %1301  ;;  %v1291_v48 = vmul.f32 %v1289_v11, %v10569_v36  ;;  %v1293_v12 = vmul.f32 %v1290_v17, %v10580_v20 }
 0x4fe   :  { %v1295_v2 = vadd.f32 %v1292_v8, %v1280_v42 }
 0x4ff   :  { %v1300_v41 = vpop.permute.xlu0 %1299  ;;  %v1294_v1 = vadd.f32 %v1291_v48, %v1279_v22 }
 0x500   :  { %v1303_v29 = vsel %vm14786_vm8, %v1300_v41, %v1302_v37 }
 0x501   :  { %v1298_v33 = vpop.permute.xlu1 %1297  ;;  %v1307_v43 = vmul.f32 %v1303_v29, %v10593_v52 }
 0x502   :  { %v1304_v23 = vsel %vm14786_vm8, %v1298_v33, %v1300_v41  ;;  %v1305_v28 = vsel %vm14786_vm8, %v1302_v37, %v1298_v33  ;;  %v1296_v37 = vadd.f32 %v1293_v12, %v1281_v10 }
 0x503   :  { %v1306_v25 = vmul.f32 %v1304_v23, %v10590_v47  ;;  %v1313_v50 = vpop.permute.xlu0 %1312  ;;  %v1308_v13 = vmul.f32 %v1305_v28, %v10596_v53  ;;  %v1310_v7 = vadd.f32 %v1307_v43, %v1295_v2  ;;  %v2544_v47 = vld [vmem:[%s14646_s3 + $0x8] sm:$0xff] }
 0x505   :  { %v1315_v14 = vpop.permute.xlu1 %1314  ;;  %v1309_v56 = vadd.f32 %v1306_v25, %v1294_v1  ;;  %v1311_v41 = vadd.f32 %v1308_v13, %v1296_v37  ;;  %v8384_v13 = vld [vmem:[%s14641_s5 + $0xa0] sm:$0xff] }
 0x506   :  { %v1319_v31 = vsel %vm14785_vm9, %v1313_v50, %v1315_v14 }
 0x507   :  { %v1321_v11 = vmul.f32 %v1319_v31, %v10613_v34  ;;  %v1317_v21 = vpop.permute.xlu0 %1316  ;;  %v1381_v31 = vld [vmem:[%s14645_s8] sm:$0xff]  ;;  %v2560_v34 = vld [vmem:[%s14646_s3 + $0x88] sm:$0xff] }
 0x508   :  { %v1318_v4 = vsel %vm14785_vm9, %v1315_v14, %v1317_v21  ;;  %v1320_v60 = vsel %vm14785_vm9, %v1317_v21, %v1313_v50  ;;  %9329 = vmatprep.mubr.msk.f32.mxu1 %vm145_vm0, %v1381_v31 }
 0x509   :  { %v1324_v57 = vadd.f32 %v1321_v11, %v1309_v56  ;;  %v1322_v45 = vmul.f32 %v1318_v4, %v10623_v30  ;;  %v1323_v44 = vmul.f32 %v1320_v60, %v10626_v39 }
 0x50b   :  { %v1325_v17 = vadd.f32 %v1322_v45, %v1310_v7  ;;  %v1326_v35 = vadd.f32 %v1323_v44, %v1311_v41  ;;  %v1336_v48 = vmul.f32 %v1324_v57, %v1324_v57 }
 0x50d   :  { %v1331_v18 = vadd.f32 %v1325_v17, %v1324_v57  ;;  %v1337_v29 = vmul.f32 %v1325_v17, %v1325_v17  ;;  %v1338_v8 = vmul.f32 %v1326_v35, %v1326_v35 }
 0x50f   :  { %v1332_v33 = vadd.f32 %v1331_v18, %v1326_v35  ;;  %v1339_v23 = vadd.f32 %v1337_v29, %v1336_v48 }
 0x511   :  { %1333 = vadd.xlane.f32.xlu1 %v1332_v33  ;;  %v1340_v28 = vadd.f32 %v1339_v23, %v1338_v8 }
 0x513   :  { %1341 = vadd.xlane.f32.xlu0 %v1340_v28 }
 0x522   :  { %1363 = vperm.xlu1 %10092, %v8385_v40  }
 0x59e   :  { %v1334_v22 = vpop.xlane.xlu1 %1333 }
 0x59f   :  { %v1335_v12 = vmul.f32 0.0034722222, %v1334_v22 }
 0x5a0   :  { %v1342_v25 = vpop.xlane.xlu0 %1341 }
 0x5a1   :  { %v1343_v50 = vmul.f32 0.0034722222, %v1342_v25  ;;  %v1344_v42 = vmul.f32 %v1335_v12, %v1335_v12  ;;  %v1347_v37 = vsub.f32 %v1324_v57, %v1335_v12  ;;  %v1348_v56 = vsub.f32 %v1325_v17, %v1335_v12  ;;  %v1382_v25 = vld [vmem:[%s14645_s8 + $0x8] sm:$0xff] }
 0x5a2   :  { %v1349_v11 = vsub.f32 %v1326_v35, %v1335_v12  ;;  %v1364_v41 = vpop.permute.xlu1 %1363 }
 0x5a3   :  { %v1345_v43 = vsub.f32 %v1343_v50, %v1344_v42  ;;  %v1383_v50 = vld [vmem:[%s14645_s8 + $0x10] sm:$0xff]  ;;  %v1386_v42 = vld [vmem:[%s14645_s8 + $0x28] sm:$0xff] }
 0x5a5   :  { %v1346_v10 = vmax.f32 %v1345_v43, 0.0  ;;  %v1387_v43 = vld [vmem:[%s14645_s8 + $0x30] sm:$0xff] }
 0x5a7   :  { %v1350_v1 = vadd.f32 1e-05, %v1346_v10  ;;  %v1388_v10 = vld [vmem:[%s14645_s8 + $0x38] sm:$0xff] }
 0x5a9   :  { %10095 = vrsqrt.f32 %v1350_v1  ;;  %v1389_v1 = vld [vmem:[%s14645_s8 + $0x40] sm:$0xff] }
 0x5b3   :  { %v10096_v14 = vpop.eup %10095 }
 0x5b4   :  { %v1352_v2 = vmul.f32 %v10096_v14, %v8384_v13  ;;  %v1390_v13 = vld [vmem:[%s14645_s8 + $0x48] sm:$0xff]  ;;  %v1391_v14 = vld [vmem:[%s14645_s8 + $0x50] sm:$0xff] }
 0x5b6   :  { %1355 = vperm.xlu0 %10091, %v1352_v2   ;;  %v1392_v2 = vld [vmem:[%s14645_s8 + $0x58] sm:$0xff] }
 0x635   :  { %v1356_v21 = vpop.permute.xlu0 %1355 }
 0x636   :  { %v1358_v7 = vmul.f32 %v1356_v21, %v1347_v37  ;;  %v1359_v4 = vmul.f32 %v1356_v21, %v1348_v56  ;;  %v1360_v60 = vmul.f32 %v1356_v21, %v1349_v11  ;;  %v1394_v37 = vld [vmem:[%s14645_s8 + $0x68] sm:$0xff]  ;;  %v1395_v56 = vld [vmem:[%s14645_s8 + $0x70] sm:$0xff]  ;;  %v1396_v11 = vld [vmem:[%s14645_s8 + $0x78] sm:$0xff] }
 0x637   :  { %v1397_v21 = vld [vmem:[%s14645_s8 + $0x80] sm:$0xff] }
 0x638   :  { %v1366_v45 = vadd.f32 %v1364_v41, %v1358_v7  ;;  %v1367_v44 = vadd.f32 %v1364_v41, %v1359_v4  ;;  %v1368_v18 = vadd.f32 %v1364_v41, %v1360_v60  ;;  %v1398_v7 = vld [vmem:[%s14645_s8 + $0x88] sm:$0xff]  ;;  %v1399_v4 = vld [vmem:[%s14645_s8 + $0x90] sm:$0xff]  ;;  %v1400_v60 = vld [vmem:[%s14645_s8 + $0x98] sm:$0xff] }
 0x639   :  { %v1401_v41 = vld [vmem:[%s14645_s8 + $0xa0] sm:$0xff] }
 0x63a   :  { %v1369_v48 = vmul.f32 %v1366_v45, %v10320_v26  ;;  %v1370_v29 = vmul.f32 %v1367_v44, %v10317_v24  ;;  %v1371_v33 = vmul.f32 %v1368_v18, %v10326_v38  ;;  %v1402_v45 = vld [vmem:[%s14645_s8 + $0xa8] sm:$0xff]  ;;  %v1403_v44 = vld [vmem:[%s14645_s8 + $0xb0] sm:$0xff]  ;;  %v1404_v18 = vld [vmem:[%s14645_s8 + $0xb8] sm:$0xff] }
 0x63c   :  { %v1373_v8 = vadd.f32 %v1370_v29, %v10329_v46  ;;  %v1374_v57 = vadd.f32 %v1371_v33, %v10338_v51  ;;  %v1372_v17 = vadd.f32 %v1369_v48, %v10332_v49  ;;  %v1405_v48 = vld [vmem:[%s14645_s8 + $0xc0] sm:$0xff]  ;;  %v1406_v29 = vld [vmem:[%s14645_s8 + $0xc8] sm:$0xff]  ;;  %v1407_v33 = vld [vmem:[%s14645_s8 + $0xd0] sm:$0xff] }
 0x63e   :  { %v1376_v35 = vmax.f32 %v1373_v8, 0.0  ;;  %v1377_v23 = vmax.f32 %v1374_v57, 0.0  ;;  %v1375_v28 = vmax.f32 %v1372_v17, 0.0  ;;  %v1408_v8 = vld [vmem:[%s14645_s8 + $0xd8] sm:$0xff]  ;;  %v1409_v57 = vld [vmem:[%s14645_s8 + $0xe0] sm:$0xff]  ;;  %v1410_v17 = vld [vmem:[%s14645_s8 + $0xe8] sm:$0xff] }
 0x640   :  { %v1379_v40 = vadd.f32 %v1376_v35, %v10329_v46  ;;  %v1380_v22 = vadd.f32 %v1377_v23, %v10338_v51  ;;  %v1378_v12 = vadd.f32 %v1375_v28, %v10332_v49  ;;  %v1384_v46 = vld [vmem:[%s14645_s8 + $0x18] sm:$0xff]  ;;  %v14834_v49 = vmov 0.0   ;;  %v1385_v51 = vld [vmem:[%s14645_s8 + $0x20] sm:$0xff]  ;;  %v1411_v35 = vld [vmem:[%s14645_s8 + $0xf0] sm:$0xff] }
 0x641   :  { %v1412_v23 = vld [vmem:[%s14645_s8 + $0xf8] sm:$0xff]  ;;  %v1413_v28 = vld [vmem:[%s14645_s8 + $0x100] sm:$0xff] }
 0x642   :  { %1525 = vmatprep.subr.mxu0 %v1379_v40  ;;  %9327 = vmatprep.subr.mxu1 %v1380_v22  ;;  %v1414_v40 = vld [vmem:[%s14645_s8 + $0x108] sm:$0xff] }
 0x643   :  { %1526 = vmatpush1.msra.mxu0 %v1378_v12  ;;  %9328 = vmatpush3.msra.mxu1 %v1380_v22  ;;  %v1415_v22 = vld [vmem:[%s14645_s8 + $0x110] sm:$0xff]  ;;  %v1416_v12 = vld [vmem:[%s14645_s8 + $0x118] sm:$0xff] }
 0x644   :  { %8386 = vmatmul.mubr.msk.f32.vlgmr.msra.gmra.mrb[36].mxu0 %vm145_vm0, %v1381_v31  ;;  %9330 = vmatmul.mubr.msk.f32.vlgmr.msra.gmra.mrb[40].mxu1 %vm145_vm0, %v1382_v25  ;;  %v1393_v31 = vld [vmem:[%s14645_s8 + $0x60] sm:$0xff]  ;;  %s10173_s8 = smov 123  }
 0x645   :  { %9332 = vmatprep.mubr.msk.f32.mxu1 %vm145_vm0, %v1383_v50  ;;  %1595 = vmatprep.mubr.f32.mxu0 %v14834_v49 }
 0x648   :  { %9333 = vmatmul.mubr.msk.f32.gmra.mrb[42].mxu1 %vm145_vm0, %v1384_v46  ;;  %8387 = vmatmul.mubr.msk.f32.gmra.mrb[38].mxu0 %vm145_vm0, %v1382_v25 }
 0x649   :  { %1601 = vmatprep.mubr.f32.mxu0 %v14834_v49  ;;  %9335 = vmatprep.mubr.msk.f32.mxu1 %vm145_vm0, %v1385_v51 }
 0x64c   :  { %8388 = vmatmul.mubr.msk.f32.gmra.mrb[40].mxu0 %vm145_vm0, %v1383_v50  ;;  %9336 = vmatmul.mubr.msk.f32.gmra.mrb[44].mxu1 %vm145_vm0, %v1386_v42 }
 0x64d   :  { %9338 = vmatprep.mubr.msk.f32.mxu1 %vm145_vm0, %v1387_v43  ;;  %1607 = vmatprep.mubr.f32.mxu0 %v14834_v49 }
 0x650   :  { %9339 = vmatmul.mubr.msk.f32.gmra.mrb[46].mxu1 %vm145_vm0, %v1388_v10  ;;  %8389 = vmatmul.mubr.msk.f32.gmra.mrb[42].mxu0 %vm145_vm0, %v1384_v46 }
 0x651   :  { %1613 = vmatprep.mubr.f32.mxu0 %v14834_v49  ;;  %9341 = vmatprep.mubr.msk.f32.mxu1 %vm145_vm0, %v1389_v1 }
 0x654   :  { %8390 = vmatmul.mubr.msk.f32.gmra.mrb[44].mxu0 %vm145_vm0, %v1385_v51  ;;  %9342 = vmatmul.mubr.msk.f32.gmra.mrb[48].mxu1 %vm145_vm0, %v1390_v13 }
 0x655   :  { %9344 = vmatprep.mubr.msk.f32.mxu1 %vm145_vm0, %v1391_v14  ;;  %1619 = vmatprep.mubr.f32.mxu0 %v14834_v49 }
 0x658   :  { %9345 = vmatmul.mubr.msk.f32.gmra.mrb[50].mxu1 %vm145_vm0, %v1392_v2  ;;  %8391 = vmatmul.mubr.msk.f32.gmra.mrb[46].mxu0 %vm145_vm0, %v1386_v42 }
 0x659   :  { %1625 = vmatprep.mubr.f32.mxu0 %v14834_v49  ;;  %9347 = vmatprep.mubr.msk.f32.mxu1 %vm145_vm0, %v1393_v31 }
 0x65c   :  { %8392 = vmatmul.mubr.msk.f32.gmra.mrb[48].mxu0 %vm145_vm0, %v1387_v43  ;;  %9348 = vmatmul.mubr.msk.f32.gmra.mrb[52].mxu1 %vm145_vm0, %v1394_v37 }
 0x65d   :  { %1631 = vmatprep.mubr.f32.mxu0 %v14834_v49  ;;  %9350 = vmatprep.mubr.msk.f32.mxu1 %vm145_vm0, %v1395_v56 }
 0x660   :  { %8393 = vmatmul.mubr.msk.f32.gmra.mrb[50].mxu0 %vm145_vm0, %v1388_v10  ;;  %9351 = vmatmul.mubr.msk.f32.gmra.mrb[54].mxu1 %vm145_vm0, %v1396_v11 }
 0x661   :  { %1637 = vmatprep.mubr.f32.mxu0 %v14834_v49  ;;  %9353 = vmatprep.mubr.msk.f32.mxu1 %vm145_vm0, %v1397_v21 }
 0x664   :  { %8394 = vmatmul.mubr.msk.f32.gmra.mrb[52].mxu0 %vm145_vm0, %v1389_v1  ;;  %9354 = vmatmul.mubr.msk.f32.gmra.mrb[56].mxu1 %vm145_vm0, %v1398_v7 }
 0x665   :  { %1643 = vmatprep.mubr.f32.mxu0 %v14834_v49  ;;  %9356 = vmatprep.mubr.msk.f32.mxu1 %vm145_vm0, %v1399_v4 }
 0x668   :  { %8395 = vmatmul.mubr.msk.f32.gmra.mrb[54].mxu0 %vm145_vm0, %v1390_v13  ;;  %9357 = vmatmul.mubr.msk.f32.gmra.mrb[58].mxu1 %vm145_vm0, %v1400_v60 }
 0x669   :  { %1649 = vmatprep.mubr.f32.mxu0 %v14834_v49  ;;  %9359 = vmatprep.mubr.msk.f32.mxu1 %vm145_vm0, %v1401_v41 }
 0x66c   :  { %8396 = vmatmul.mubr.msk.f32.gmra.mrb[56].mxu0 %vm145_vm0, %v1391_v14  ;;  %9360 = vmatmul.mubr.msk.f32.gmra.mrb[60].mxu1 %vm145_vm0, %v1402_v45 }
 0x66d   :  { %1655 = vmatprep.mubr.f32.mxu0 %v14834_v49  ;;  %9362 = vmatprep.mubr.msk.f32.mxu1 %vm145_vm0, %v1403_v44 }
 0x670   :  { %8397 = vmatmul.mubr.msk.f32.gmra.mrb[58].mxu0 %vm145_vm0, %v1392_v2  ;;  %9363 = vmatmul.mubr.msk.f32.gmra.mrb[62].mxu1 %vm145_vm0, %v1404_v18 }
 0x671   :  { %1661 = vmatprep.mubr.f32.mxu0 %v14834_v49  ;;  %9365 = vmatprep.mubr.msk.f32.mxu1 %vm145_vm0, %v1405_v48 }
 0x674   :  { %8398 = vmatmul.mubr.msk.f32.gmra.mrb[60].mxu0 %vm145_vm0, %v1393_v31  ;;  %9366 = vmatmul.mubr.msk.f32.gmra.mrb[64].mxu1 %vm145_vm0, %v1406_v29 }
 0x675   :  { %1667 = vmatprep.mubr.f32.mxu0 %v14834_v49  ;;  %9368 = vmatprep.mubr.msk.f32.mxu1 %vm145_vm0, %v1407_v33 }
 0x678   :  { %8399 = vmatmul.mubr.msk.f32.gmra.mrb[62].mxu0 %vm145_vm0, %v1394_v37  ;;  %9369 = vmatmul.mubr.msk.f32.gmra.mrb[66].mxu1 %vm145_vm0, %v1408_v8 }
 0x679   :  { %1673 = vmatprep.mubr.f32.mxu0 %v14834_v49  ;;  %9371 = vmatprep.mubr.msk.f32.mxu1 %vm145_vm0, %v1409_v57 }
 0x67c   :  { %8400 = vmatmul.mubr.msk.f32.gmra.mrb[64].mxu0 %vm145_vm0, %v1395_v56  ;;  %9372 = vmatmul.mubr.msk.f32.gmra.mrb[68].mxu1 %vm145_vm0, %v1410_v17 }
 0x67d   :  { %1679 = vmatprep.mubr.f32.mxu0 %v14834_v49  ;;  %9374 = vmatprep.mubr.msk.f32.mxu1 %vm145_vm0, %v1411_v35 }
 0x680   :  { %8401 = vmatmul.mubr.msk.f32.gmra.mrb[66].mxu0 %vm145_vm0, %v1396_v11  ;;  %9375 = vmatmul.mubr.msk.f32.gmra.mrb[70].mxu1 %vm145_vm0, %v1412_v23 }
 0x681   :  { %1685 = vmatprep.mubr.f32.mxu0 %v14834_v49  ;;  %9377 = vmatprep.mubr.msk.f32.mxu1 %vm145_vm0, %v1413_v28 }
 0x684   :  { %8402 = vmatmul.mubr.msk.f32.gmra.mrb[68].mxu0 %vm145_vm0, %v1397_v21  ;;  %9378 = vmatmul.mubr.msk.f32.gmra.mrb[72].mxu1 %vm145_vm0, %v1414_v40 }
 0x685   :  { %1691 = vmatprep.mubr.f32.mxu0 %v14834_v49  ;;  %9380 = vmatprep.mubr.msk.f32.mxu1 %vm145_vm0, %v1415_v22 }
 0x688   :  { %8403 = vmatmul.mubr.msk.f32.gmra.mrb[70].mxu0 %vm145_vm0, %v1398_v7  ;;  %9381 = vmatmul.mubr.msk.f32.gmra.mrb[74].mxu1 %vm145_vm0, %v1416_v12 }
 0x689   :  { %1697 = vmatprep.mubr.f32.mxu0 %v14834_v49 }
 0x68c   :  { %8404 = vmatmul.mubr.msk.f32.gmra.mrb[72].mxu0 %vm145_vm0, %v1399_v4 }
 0x68d   :  { %1703 = vmatprep.mubr.f32.mxu0 %v14834_v49 }
 0x690   :  { %8405 = vmatmul.mubr.msk.f32.gmra.mrb[74].mxu0 %vm145_vm0, %v1400_v60 }
 0x691   :  { %1709 = vmatprep.mubr.f32.mxu0 %v14834_v49 }
 0x694   :  { %8406 = vmatmul.mubr.msk.f32.gmra.mrb[76].mxu0 %vm145_vm0, %v1401_v41 }
 0x695   :  { %1715 = vmatprep.mubr.f32.mxu0 %v14834_v49 }
 0x698   :  { %8407 = vmatmul.mubr.msk.f32.gmra.mrb[78].mxu0 %vm145_vm0, %v1402_v45 }
 0x699   :  { %1721 = vmatprep.mubr.f32.mxu0 %v14834_v49 }
 0x69c   :  { %8408 = vmatmul.mubr.msk.f32.gmra.mrb[80].mxu0 %vm145_vm0, %v1403_v44 }
 0x69d   :  { %1727 = vmatprep.mubr.f32.mxu0 %v14834_v49 }
 0x6a0   :  { %8409 = vmatmul.mubr.msk.f32.gmra.mrb[82].mxu0 %vm145_vm0, %v1404_v18 }
 0x6a1   :  { %1733 = vmatprep.mubr.f32.mxu0 %v14834_v49 }
 0x6a4   :  { %8410 = vmatmul.mubr.msk.f32.gmra.mrb[84].mxu0 %vm145_vm0, %v1405_v48 }
 0x6a5   :  { %1739 = vmatprep.mubr.f32.mxu0 %v14834_v49 }
 0x6a8   :  { %8411 = vmatmul.mubr.msk.f32.gmra.mrb[86].mxu0 %vm145_vm0, %v1406_v29 }
 0x6a9   :  { %1745 = vmatprep.mubr.f32.mxu0 %v14834_v49 }
 0x6ac   :  { %8412 = vmatmul.mubr.msk.f32.gmra.mrb[88].mxu0 %vm145_vm0, %v1407_v33 }
 0x6ad   :  { %1751 = vmatprep.mubr.f32.mxu0 %v14834_v49 }
 0x6b0   :  { %8413 = vmatmul.mubr.msk.f32.gmra.mrb[90].mxu0 %vm145_vm0, %v1408_v8 }
 0x6b1   :  { %1757 = vmatprep.mubr.f32.mxu0 %v14834_v49 }
 0x6b4   :  { %8414 = vmatmul.mubr.msk.f32.gmra.mrb[92].mxu0 %vm145_vm0, %v1409_v57 }
 0x6b5   :  { %1763 = vmatprep.mubr.f32.mxu0 %v14834_v49 }
 0x6b8   :  { %8415 = vmatmul.mubr.msk.f32.gmra.mrb[94].mxu0 %vm145_vm0, %v1410_v17 }
 0x6b9   :  { %1769 = vmatprep.mubr.f32.mxu0 %v14834_v49 }
 0x6bc   :  { %8416 = vmatmul.mubr.msk.f32.gmra.mrb[96].mxu0 %vm145_vm0, %v1411_v35 }
 0x6bd   :  { %1775 = vmatprep.mubr.f32.mxu0 %v14834_v49 }
 0x6c0   :  { %8417 = vmatmul.mubr.msk.f32.gmra.mrb[98].mxu0 %vm145_vm0, %v1412_v23 }
 0x6c1   :  { %1781 = vmatprep.mubr.f32.mxu0 %v14834_v49 }
 0x6c4   :  { %8418 = vmatmul.mubr.msk.f32.gmra.mrb[100].mxu0 %vm145_vm0, %v1413_v28 }
 0x6c5   :  { %1787 = vmatprep.mubr.f32.mxu0 %v14834_v49 }
 0x6c8   :  { %8419 = vmatmul.mubr.msk.f32.gmra.mrb[102].mxu0 %vm145_vm0, %v1414_v40 }
 0x6c9   :  { %1793 = vmatprep.mubr.f32.mxu0 %v14834_v49 }
 0x6cc   :  { %8420 = vmatmul.mubr.msk.f32.gmra.mrb[104].mxu0 %vm145_vm0, %v1415_v22 }
 0x6cd   :  { %1799 = vmatprep.mubr.f32.mxu0 %v14834_v49 }
 0x6d0   :  { %8421 = vmatmul.mubr.msk.f32.gmra.mrb[106].mxu0 %vm145_vm0, %v1416_v12 }
 0x717   :  { %v1591_v25 = vpop.f32.mrb[36].mxu0  ;;  %v9331_v50 = vpop.f32.mrb[40].mxu1 }
 0x718   :  { %v1872_v46 = vpop.f32.mrb[41].mxu1  ;;  %2051 = vrot.lane.b32.xlu1 %v1591_v25, %s10160_s28  ;;  %v1593_v51 = vpop.f32.mrb[37].mxu0 }
 0x719   :  { %2059 = vrot.lane.b32.xlu0 %v1593_v51, %s10160_s28 }
 0x71b   :  { %v9334_v42 = vpop.f32.mrb[42].mxu1  ;;  %v1597_v43 = vpop.f32.mrb[38].mxu0 }
 0x71c   :  { %v1882_v10 = vpop.f32.mrb[43].mxu1  ;;  %2069 = vrot.lane.b32.xlu1 %v9331_v50, %s10160_s28  ;;  %v1599_v1 = vpop.f32.mrb[39].mxu0 }
 0x71d   :  { %2073 = vrot.lane.b32.xlu0 %v9334_v42, %s10160_s28 }
 0x71f   :  { %v1603_v13 = vpop.f32.mrb[40].mxu0  ;;  %v9337_v14 = vpop.f32.mrb[44].mxu1 }
 0x720   :  { %2067 = vrot.lane.b32.xlu1 %v1872_v46, %s10160_s28  ;;  %v1605_v2 = vpop.f32.mrb[41].mxu0  ;;  %v1892_v31 = vpop.f32.mrb[45].mxu1 }
 0x721   :  { %2061 = vrot.lane.b32.xlu0 %v1599_v1, %s10160_s28 }
 0x723   :  { %v9340_v37 = vpop.f32.mrb[46].mxu1  ;;  %v1609_v56 = vpop.f32.mrb[42].mxu0 }
 0x724   :  { %2053 = vrot.lane.b32.xlu1 %v1597_v43, %s10160_s28  ;;  %v1902_v11 = vpop.f32.mrb[47].mxu1  ;;  %v1611_v21 = vpop.f32.mrb[43].mxu0 }
 0x725   :  { %2071 = vrot.lane.b32.xlu0 %v1882_v10, %s10160_s28 }
 0x727   :  { %v1615_v7 = vpop.f32.mrb[44].mxu0  ;;  %v9343_v4 = vpop.f32.mrb[48].mxu1 }
 0x728   :  { %2063 = vrot.lane.b32.xlu1 %v1605_v2, %s10160_s28  ;;  %v1617_v60 = vpop.f32.mrb[45].mxu0  ;;  %v1912_v41 = vpop.f32.mrb[49].mxu1 }
 0x729   :  { %2117 = vrot.lane.b32.xlu0 %v9337_v14, %s10161_s29 }
 0x72b   :  { %v9346_v45 = vpop.f32.mrb[50].mxu1  ;;  %v1621_v44 = vpop.f32.mrb[46].mxu0 }
 0x72c   :  { %2121 = vrot.lane.b32.xlu1 %v9340_v37, %s10161_s29  ;;  %v1922_v18 = vpop.f32.mrb[51].mxu1  ;;  %v1623_v48 = vpop.f32.mrb[47].mxu0 }
 0x72d   :  { %2055 = vrot.lane.b32.xlu0 %v1603_v13, %s10160_s28 }
 0x72f   :  { %v1627_v29 = vpop.f32.mrb[48].mxu0  ;;  %v9349_v33 = vpop.f32.mrb[52].mxu1 }
 0x730   :  { %2119 = vrot.lane.b32.xlu1 %v1902_v11, %s10161_s29  ;;  %v1629_v8 = vpop.f32.mrb[49].mxu0  ;;  %v1932_v57 = vpop.f32.mrb[53].mxu1 }
 0x731   :  { %2115 = vrot.lane.b32.xlu0 %v1892_v31, %s10161_s29 }
 0x733   :  { %v1633_v17 = vpop.f32.mrb[50].mxu0  ;;  %v9352_v35 = vpop.f32.mrb[54].mxu1 }
 0x734   :  { %2065 = vrot.lane.b32.xlu1 %v1611_v21, %s10160_s28  ;;  %v1635_v23 = vpop.f32.mrb[51].mxu0  ;;  %v1942_v28 = vpop.f32.mrb[55].mxu1 }
 0x735   :  { %2057 = vrot.lane.b32.xlu0 %v1609_v56, %s10160_s28 }
 0x737   :  { %v1639_v40 = vpop.f32.mrb[52].mxu0  ;;  %v11072_v22 = vpop.f32.mrb[56].mxu1 }
 0x738   :  { %2099 = vrot.lane.b32.xlu1 %v1615_v7, %s10161_s29  ;;  %v1641_v12 = vpop.f32.mrb[53].mxu0  ;;  %v11075_v25 = vpop.f32.mrb[57].mxu1 }
 0x739   :  { %2107 = vrot.lane.b32.xlu0 %v1617_v60, %s10161_s29 }
 0x73b   :  { %v1645_v50 = vpop.f32.mrb[54].mxu0  ;;  %v11078_v46 = vpop.f32.mrb[58].mxu1 }
 0x73c   :  { %2177 = vrot.lane.b32.xlu1 %v9343_v4, %s14776_s30  ;;  %v1647_v51 = vpop.f32.mrb[55].mxu0  ;;  %v11081_v42 = vpop.f32.mrb[59].mxu1 }
 0x73d   :  { %2181 = vrot.lane.b32.xlu0 %v9346_v45, %s14776_s30 }
 0x73f   :  { %v1651_v43 = vpop.f32.mrb[56].mxu0  ;;  %v9361_v10 = vpop.f32.mrb[60].mxu1 }
 0x740   :  { %2175 = vrot.lane.b32.xlu1 %v1912_v41, %s14776_s30  ;;  %v1653_v1 = vpop.f32.mrb[57].mxu0  ;;  %v1972_v13 = vpop.f32.mrb[61].mxu1 }
 0x741   :  { %2109 = vrot.lane.b32.xlu0 %v1623_v48, %s10161_s29 }
 0x743   :  { %v1657_v14 = vpop.f32.mrb[58].mxu0  ;;  %v9364_v2 = vpop.f32.mrb[62].mxu1 }
 0x744   :  { %2101 = vrot.lane.b32.xlu1 %v1621_v44, %s10161_s29  ;;  %v1659_v31 = vpop.f32.mrb[59].mxu0  ;;  %v1982_v37 = vpop.f32.mrb[63].mxu1 }
 0x745   :  { %2103 = vrot.lane.b32.xlu0 %v1627_v29, %s10161_s29 }
 0x747   :  { %v1663_v56 = vpop.f32.mrb[60].mxu0  ;;  %v9367_v11 = vpop.f32.mrb[64].mxu1 }
 0x748   :  { %2179 = vrot.lane.b32.xlu1 %v1922_v18, %s14776_s30  ;;  %v1665_v21 = vpop.f32.mrb[61].mxu0  ;;  %v1992_v7 = vpop.f32.mrb[65].mxu1 }
 0x749   :  { %2237 = vrot.lane.b32.xlu0 %v9349_v33, %s10163_s0 }
 0x74b   :  { %v1669_v4 = vpop.f32.mrb[62].mxu0  ;;  %v11090_v60 = vpop.f32.mrb[66].mxu1 }
 0x74c   :  { %2111 = vrot.lane.b32.xlu1 %v1629_v8, %s10161_s29  ;;  %v1671_v41 = vpop.f32.mrb[63].mxu0  ;;  %v2002_v45 = vpop.f32.mrb[67].mxu1 }
 0x74d   :  { %2235 = vrot.lane.b32.xlu0 %v1932_v57, %s10163_s0 }
 0x74f   :  { %v1675_v44 = vpop.f32.mrb[64].mxu0  ;;  %v9373_v48 = vpop.f32.mrb[68].mxu1 }
 0x750   :  { %2113 = vrot.lane.b32.xlu1 %v1635_v23, %s10161_s29  ;;  %v1677_v29 = vpop.f32.mrb[65].mxu0  ;;  %v2012_v38 = vpop.f32.mrb[69].mxu1 }
 0x751   :  { %2105 = vrot.lane.b32.xlu0 %v1633_v17, %s10161_s29 }
 0x753   :  { %v1681_v18 = vpop.f32.mrb[66].mxu0  ;;  %v11096_v24 = vpop.f32.mrb[70].mxu1 }
 0x754   :  { %2159 = vrot.lane.b32.xlu1 %v1639_v40, %s14776_s30  ;;  %v1683_v33 = vpop.f32.mrb[67].mxu0  ;;  %v2022_v26 = vpop.f32.mrb[71].mxu1 }
 0x755   :  { %2241 = vrot.lane.b32.xlu0 %v9352_v35, %s10163_s0 }
 0x757   :  { %v11100_v8 = vpop.f32.mrb[68].mxu0  ;;  %v11102_v57 = vpop.f32.mrb[72].mxu1 }
 0x758   :  { %2161 = vrot.lane.b32.xlu1 %v1645_v50, %s14776_s30  ;;  %v11105_v23 = vpop.f32.mrb[69].mxu0  ;;  %v2032_v49 = vpop.f32.mrb[73].mxu1 }
 0x759   :  { %2239 = vrot.lane.b32.xlu0 %v1942_v28, %s10163_s0 }
 0x75b   :  { %v11108_v17 = vpop.f32.mrb[70].mxu0  ;;  %v11110_v39 = vpop.f32.mrb[74].mxu1 }
 0x75c   :  { %2163 = vrot.lane.b32.xlu1 %v1651_v43, %s14776_s30  ;;  %v11113_v40 = vpop.f32.mrb[71].mxu0  ;;  %v11115_v35 = vpop.f32.mrb[75].mxu1 }
 0x75d   :  { %2167 = vrot.lane.b32.xlu0 %v1641_v12, %s14776_s30 }
 0x75f   :  { %v11118_v53 = vpop.f32.mrb[72].mxu0 }
 0x760   :  { %2321 = vrot.lane.b32.xlu1 %v9361_v10, %s10164_s17  ;;  %v11121_v50 = vpop.f32.mrb[73].mxu0 }
 0x761   :  { %2169 = vrot.lane.b32.xlu0 %v1647_v51, %s14776_s30 }
 0x763   :  { %v11124_v28 = vpop.f32.mrb[74].mxu0 }
 0x764   :  { %2173 = vrot.lane.b32.xlu1 %v1659_v31, %s14776_s30  ;;  %v11127_v20 = vpop.f32.mrb[75].mxu0 }
 0x765   :  { %2319 = vrot.lane.b32.xlu0 %v1972_v13, %s10164_s17 }
 0x767   :  { %v1711_v43 = vpop.f32.mrb[76].mxu0 }
 0x768   :  { %2323 = vrot.lane.b32.xlu1 %v1982_v37, %s10164_s17  ;;  %v1713_v12 = vpop.f32.mrb[77].mxu0 }
 0x769   :  { %2171 = vrot.lane.b32.xlu0 %v1653_v1, %s14776_s30 }
 0x76b   :  { %v1717_v55 = vpop.f32.mrb[78].mxu0 }
 0x76c   :  { %2381 = vrot.lane.b32.xlu1 %v9367_v11, %s14774_s18  ;;  %v1719_v10 = vpop.f32.mrb[79].mxu0 }
 0x76d   :  { %2165 = vrot.lane.b32.xlu0 %v1657_v14, %s14776_s30  ;;  %s14958_s30 = smov 116  }
 0x76f   :  { %v11134_v51 = vpop.f32.mrb[80].mxu0 }
 0x770   :  { %2227 = vrot.lane.b32.xlu1 %v1665_v21, %s10163_s0  ;;  %v11137_v31 = vpop.f32.mrb[81].mxu0 }
 0x771   :  { %2325 = vrot.lane.b32.xlu0 %v9364_v2, %s10164_s17 }
 0x773   :  { %v11140_v13 = vpop.f32.mrb[82].mxu0 }
 0x774   :  { %2379 = vrot.lane.b32.xlu1 %v1992_v7, %s14774_s18  ;;  %v11143_v37 = vpop.f32.mrb[83].mxu0 }
 0x775   :  { %2219 = vrot.lane.b32.xlu0 %v1663_v56, %s10163_s0 }
 0x777   :  { %v11146_v1 = vpop.f32.mrb[84].mxu0 }
 0x778   :  { %2229 = vrot.lane.b32.xlu1 %v1671_v41, %s10163_s0  ;;  %v11149_v14 = vpop.f32.mrb[85].mxu0 }
 0x779   :  { %2221 = vrot.lane.b32.xlu0 %v1669_v4, %s10163_s0 }
 0x77b   :  { %v11152_v11 = vpop.f32.mrb[86].mxu0 }
 0x77c   :  { %2441 = vrot.lane.b32.xlu1 %v9373_v48, %s14772_s6  ;;  %v11155_v2 = vpop.f32.mrb[87].mxu0 }
 0x77d   :  { %2383 = vrot.lane.b32.xlu0 %v2002_v45, %s14774_s18 }
 0x77f   :  { %v11158_v21 = vpop.f32.mrb[88].mxu0 }
 0x780   :  { %2231 = vrot.lane.b32.xlu1 %v1677_v29, %s10163_s0  ;;  %v11161_v56 = vpop.f32.mrb[89].mxu0 }
 0x781   :  { %2223 = vrot.lane.b32.xlu0 %v1675_v44, %s10163_s0 }
 0x783   :  { %v11164_v7 = vpop.f32.mrb[90].mxu0 }
 0x784   :  { %2233 = vrot.lane.b32.xlu1 %v1683_v33, %s10163_s0  ;;  %v11167_v4 = vpop.f32.mrb[91].mxu0 }
 0x785   :  { %2439 = vrot.lane.b32.xlu0 %v2012_v38, %s14772_s6 }
 0x787   :  { %v11170_v41 = vpop.f32.mrb[92].mxu0 }
 0x788   :  { %2499 = vrot.lane.b32.xlu1 %v2032_v49, %s14770_s19  ;;  %v11173_v45 = vpop.f32.mrb[93].mxu0 }
 0x789   :  { %2225 = vrot.lane.b32.xlu0 %v1681_v18, %s10163_s0  ;;  %v2559_v18 = vld [vmem:[%s14646_s3 + $0x80] sm:$0xff] }
 0x78a   :  { %v11176_v48 = vpop.permute.xlu1 %2051  ;;  %v9884_v52 = vpack.c.bf16 %v2560_v34, %v2559_v18  ;;  %v2561_v34 = vld [vmem:[%s14646_s3 + $0x90] sm:$0xff]  ;;  %v2562_v18 = vld [vmem:[%s14646_s3 + $0x98] sm:$0xff] }
 0x78b   :  { %v11178_v29 = vpop.permute.xlu0 %2059  ;;  %v11180_v44 = vpop.f32.mrb[94].mxu0 }
 0x78c   :  { %2303 = vrot.lane.b32.xlu1 %v1711_v43, %s10164_s17  ;;  %v11183_v33 = vpop.f32.mrb[95].mxu0  ;;  %9885 = vmatprep.subr.bf16.mxu1 %v9884_v52  ;;  %v2545_v52 = vld [vmem:[%s14646_s3 + $0x10] sm:$0xff] }
 0x78d   :  { %2443 = vrot.lane.b32.xlu0 %v2022_v26, %s14772_s6  ;;  %v2543_v26 = vld [vmem:[%s14646_s3] sm:$0xff] }
 0x78e   :  { %v11186_v38 = vpop.permute.xlu1 %2069  ;;  %v9886_v19 = vpack.c.bf16 %v2544_v47, %v2543_v26  ;;  %v9888_v47 = vpack.c.bf16 %v2562_v18, %v2561_v34  ;;  %v2563_v34 = vld [vmem:[%s14646_s3 + $0xa0] sm:$0xff]  ;;  %v2564_v18 = vld [vmem:[%s14646_s3 + $0xa8] sm:$0xff] }
 0x78f   :  { %v11188_v30 = vpop.permute.xlu0 %2073  ;;  %v11190_v49 = vpop.f32.mrb[96].mxu0 }
 0x790   :  { %2311 = vrot.lane.b32.xlu1 %v1713_v12, %s10164_s17  ;;  %v11199_v43 = vpop.f32.mrb[97].mxu0  ;;  %9887 = vmatpush3.bf16.msra.mxu1 %v9886_v19  ;;  %v2546_v19 = vld [vmem:[%s14646_s3 + $0x18] sm:$0xff] }
 0x791   :  { %2501 = vrot.lane.b32.xlu0 %v11102_v57, %s14770_s19  ;;  %v9890_v26 = vpack.c.bf16 %v2546_v19, %v2545_v52  ;;  %9889 = vmatprep.subr.bf16.mxu1 %v9888_v47  ;;  %v9892_v52 = vpack.c.bf16 %v2564_v18, %v2563_v34  ;;  %v2547_v47 = vld [vmem:[%s14646_s3 + $0x20] sm:$0xff]  ;;  %v2548_v19 = vld [vmem:[%s14646_s3 + $0x28] sm:$0xff]  ;;  %v2565_v34 = vld [vmem:[%s14646_s3 + $0xb0] sm:$0xff] }
 0x792   :  { %v11209_v36 = vpop.permute.xlu1 %2067  ;;  %v2566_v18 = vld [vmem:[%s14646_s3 + $0xb8] sm:$0xff] }
 0x793   :  { %v11211_v0 = vpop.permute.xlu0 %2061  ;;  %v11213_v12 = vpop.f32.mrb[98].mxu0 }
 0x794   :  { %2305 = vrot.lane.b32.xlu1 %v1717_v55, %s10164_s17  ;;  %v11222_v57 = vpop.f32.mrb[99].mxu0  ;;  %9891 = vmatpush3.bf16.msra.mxu1 %v9890_v26  ;;  %v9894_v26 = vpack.c.bf16 %v2548_v19, %v2547_v47  ;;  %v9896_v47 = vpack.c.bf16 %v2566_v18, %v2565_v34  ;;  %v2550_v19 = vld [vmem:[%s14646_s3 + $0x38] sm:$0xff]  ;;  %v2567_v34 = vld [vmem:[%s14646_s3 + $0xc0] sm:$0xff]  ;;  %v2568_v18 = vld [vmem:[%s14646_s3 + $0xc8] sm:$0xff] }
 0x795   :  { %2313 = vrot.lane.b32.xlu0 %v1719_v10, %s10164_s17  ;;  %9893 = vmatprep.subr.bf16.mxu1 %v9892_v52  ;;  %v2549_v52 = vld [vmem:[%s14646_s3 + $0x30] sm:$0xff] }
 0x796   :  { %v11231_v9 = vpop.permute.xlu1 %2053 }
 0x797   :  { %v11233_v16 = vpop.permute.xlu0 %2071  ;;  %v11235_v55 = vpop.f32.mrb[100].mxu0 }
 0x798   :  { %2307 = vrot.lane.b32.xlu1 %v11134_v51, %s10164_s17  ;;  %v11245_v10 = vpop.f32.mrb[101].mxu0  ;;  %9895 = vmatpush3.bf16.msra.mxu1 %v9894_v26  ;;  %v9898_v26 = vpack.c.bf16 %v2550_v19, %v2549_v52  ;;  %v9900_v52 = vpack.c.bf16 %v2568_v18, %v2567_v34  ;;  %v2552_v19 = vld [vmem:[%s14646_s3 + $0x48] sm:$0xff]  ;;  %v2569_v34 = vld [vmem:[%s14646_s3 + $0xd0] sm:$0xff]  ;;  %v2570_v18 = vld [vmem:[%s14646_s3 + $0xd8] sm:$0xff] }
 0x799   :  { %2315 = vrot.lane.b32.xlu0 %v11137_v31, %s10164_s17  ;;  %9897 = vmatprep.subr.bf16.mxu1 %v9896_v47  ;;  %v2551_v47 = vld [vmem:[%s14646_s3 + $0x40] sm:$0xff] }
 0x79a   :  { %v11255_v27 = vpop.permute.xlu1 %2063 }
 0x79b   :  { %v11257_v32 = vpop.permute.xlu0 %2117  ;;  %v11259_v51 = vpop.f32.mrb[102].mxu0 }
 0x79c   :  { %14835 = vst [vmem:[#allocation36_spill] sm:$0xff] %v11257_v32  ;;  %2309 = vrot.lane.b32.xlu1 %v11140_v13, %s10164_s17  ;;  %v11269_v31 = vpop.f32.mrb[103].mxu0  ;;  %9899 = vmatpush3.bf16.msra.mxu1 %v9898_v26  ;;  %v9902_v26 = vpack.c.bf16 %v2552_v19, %v2551_v47  ;;  %v9904_v47 = vpack.c.bf16 %v2570_v18, %v2569_v34  ;;  %v2554_v19 = vld [vmem:[%s14646_s3 + $0x58] sm:$0xff]  ;;  %v2572_v34 = vld [vmem:[%s14646_s3 + $0xe8] sm:$0xff] }
 0x79d   :  { %2363 = vrot.lane.b32.xlu0 %v11146_v1, %s14774_s18  ;;  %9901 = vmatprep.subr.bf16.mxu1 %v9900_v52  ;;  %v2553_v52 = vld [vmem:[%s14646_s3 + $0x50] sm:$0xff] }
 0x79e   :  { %v11279_v15 = vpop.permute.xlu1 %2121 }
 0x79f   :  { %14836 = vst [vmem:[#allocation37_spill] sm:$0xff] %v11279_v15  ;;  %v11281_v6 = vpop.permute.xlu0 %2055  ;;  %v11283_v13 = vpop.f32.mrb[104].mxu0 }
 0x7a0   :  { %2317 = vrot.lane.b32.xlu1 %v11143_v37, %s10164_s17  ;;  %v11293_v1 = vpop.f32.mrb[105].mxu0  ;;  %9903 = vmatpush3.bf16.msra.mxu1 %v9902_v26  ;;  %v9906_v26 = vpack.c.bf16 %v2554_v19, %v2553_v52 }
 0x7a1   :  { %2371 = vrot.lane.b32.xlu0 %v11149_v14, %s14774_s18  ;;  %9905 = vmatprep.subr.bf16.mxu1 %v9904_v47  ;;  %v2556_v47 = vld [vmem:[%s14646_s3 + $0x68] sm:$0xff] }
 0x7a2   :  { %v11303_v15 = vpop.permute.xlu1 %2119 }
 0x7a3   :  { %14837 = vst [vmem:[#allocation38_spill] sm:$0xff] %v11303_v15  ;;  %v11305_v5 = vpop.permute.xlu0 %2115  ;;  %v11307_v37 = vpop.f32.mrb[106].mxu0 }
 0x7a4   :  { %2365 = vrot.lane.b32.xlu1 %v11152_v11, %s14774_s18  ;;  %v11317_v14 = vpop.f32.mrb[107].mxu0  ;;  %9907 = vmatpush3.bf16.msra.mxu1 %v9906_v26  ;;  %v2571_v11 = vld [vmem:[%s14646_s3 + $0xe0] sm:$0xff] }
 0x7a5   :  { %2373 = vrot.lane.b32.xlu0 %v11155_v2, %s14774_s18  ;;  %v9908_v18 = vpack.c.bf16 %v2572_v34, %v2571_v11  ;;  %v2555_v2 = vld [vmem:[%s14646_s3 + $0x60] sm:$0xff]  ;;  %v2574_v11 = vld [vmem:[%s14646_s3 + $0xf8] sm:$0xff] }
 0x7a6   :  { %v11327_v15 = vpop.permute.xlu1 %2065  ;;  %v9910_v52 = vpack.c.bf16 %v2556_v47, %v2555_v2 }
 0x7a7   :  { %v11329_v32 = vpop.permute.xlu0 %2057  ;;  %9909 = vmatprep.subr.bf16.mxu1 %v9908_v18  ;;  %v2558_v18 = vld [vmem:[%s14646_s3 + $0x78] sm:$0xff] }
 0x7a8   :  { %2367 = vrot.lane.b32.xlu1 %v11158_v21, %s14774_s18  ;;  %9911 = vmatpush3.bf16.msra.mxu1 %v9910_v52  ;;  %v2573_v21 = vld [vmem:[%s14646_s3 + $0xf0] sm:$0xff] }
 0x7a9   :  { %2425 = vrot.lane.b32.xlu0 %v11180_v44, %s14772_s6  ;;  %v9912_v34 = vpack.c.bf16 %v2574_v11, %v2573_v21  ;;  %v2557_v44 = vld [vmem:[%s14646_s3 + $0x70] sm:$0xff]  ;;  %v2576_v21 = vld [vmem:[%s14646_s3 + $0x108] sm:$0xff] }
 0x7aa   :  { %v11347_v19 = vpop.permute.xlu1 %2099  ;;  %v9914_v2 = vpack.c.bf16 %v2558_v18, %v2557_v44 }
 0x7ab   :  { %v11349_v26 = vpop.permute.xlu0 %2107  ;;  %9913 = vmatprep.subr.bf16.mxu1 %v9912_v34 }
 0x7ac   :  { %2375 = vrot.lane.b32.xlu1 %v11161_v56, %s14774_s18  ;;  %9915 = vmatpush3.bf16.msra.mxu1 %v9914_v2  ;;  %v2575_v56 = vld [vmem:[%s14646_s3 + $0x100] sm:$0xff] }
 0x7ad   :  { %2433 = vrot.lane.b32.xlu0 %v11183_v33, %s14772_s6  ;;  %v11379_v11 = vpack.c.bf16 %v2576_v21, %v2575_v56 }
 0x7ae   :  { %v11367_v47 = vpop.permute.xlu1 %2177 }
 0x7af   :  { %v11369_v52 = vpop.permute.xlu0 %2181  ;;  %14838 = vst [vmem:[#allocation39_spill] sm:$0xff] %v11379_v11  ;;  %9917 = vmatprep.subr.bf16.mxu1 %v11379_v11 }
 0x7b0   :  { %2423 = vrot.lane.b32.xlu1 %v11170_v41, %s14772_s6 }
 0x7b1   :  { %2427 = vrot.lane.b32.xlu0 %v11190_v49, %s14772_s6 }
 0x7b2   :  { %v11383_v33 = vpop.permute.xlu1 %2175 }
 0x7b3   :  { %v11386_v34 = vpop.permute.xlu0 %2109 }
 0x7b4   :  { %2431 = vrot.lane.b32.xlu1 %v11173_v45, %s14772_s6 }
 0x7b5   :  { %2483 = vrot.lane.b32.xlu0 %v11235_v55, %s14770_s19 }
 0x7b6   :  { %v11392_v44 = vpop.permute.xlu1 %2101 }
 0x7b7   :  { %v11394_v41 = vpop.permute.xlu0 %2103 }
 0x7b8   :  { %2377 = vrot.lane.b32.xlu1 %v11167_v4, %s14774_s18 }
 0x7b9   :  { %2491 = vrot.lane.b32.xlu0 %v11245_v10, %s14770_s19 }
 0x7ba   :  { %v11400_v49 = vpop.permute.xlu1 %2179 }
 0x7bb   :  { %v11402_v18 = vpop.permute.xlu0 %2237 }
 0x7bc   :  { %14839 = vst [vmem:[#allocation40_spill] sm:$0xff] %v11402_v18  ;;  %2435 = vrot.lane.b32.xlu1 %v11199_v43, %s14772_s6 }
 0x7bd   :  { %2385 = vrot.lane.b32.xlu0 %v11090_v60, %s14774_s18 }
 0x7be   :  { %v11408_v45 = vpop.permute.xlu1 %2111 }
 0x7bf   :  { %v11410_v55 = vpop.permute.xlu0 %2235 }
 0x7c0   :  { %2369 = vrot.lane.b32.xlu1 %v11164_v7, %s14774_s18  ;;  %s14959_s18 = smov 115  }
 0x7c1   :  { %2503 = vrot.lane.b32.xlu0 %v11115_v35, %s14770_s19 }
 0x7c2   :  { %v11416_v4 = vpop.permute.xlu1 %2113 }
 0x7c3   :  { %v11418_v10 = vpop.permute.xlu0 %2105 }
 0x7c4   :  { %2437 = vrot.lane.b32.xlu1 %v11222_v57, %s14772_s6 }
 0x7c5   :  { %2445 = vrot.lane.b32.xlu0 %v11096_v24, %s14772_s6 }
 0x7c6   :  { %v11424_v60 = vpop.permute.xlu1 %2159 }
 0x7c7   :  { %v11426_v43 = vpop.permute.xlu0 %2241 }
 0x7c8   :  { %14840 = vst [vmem:[#allocation41_spill] sm:$0xff] %v11426_v43  ;;  %2429 = vrot.lane.b32.xlu1 %v11213_v12, %s14772_s6 }
 0x7c9   :  { %2485 = vrot.lane.b32.xlu0 %v11259_v51, %s14770_s19 }
 0x7ca   :  { %v11432_v35 = vpop.permute.xlu1 %2161 }
 0x7cb   :  { %v11434_v7 = vpop.permute.xlu0 %2239 }
 0x7cc   :  { %14841 = vst [vmem:[#allocation42_spill] sm:$0xff] %v11434_v7  ;;  %2493 = vrot.lane.b32.xlu1 %v11269_v31, %s14770_s19  ;;  %v8458_v31 = vld [vmem:[%s14641_s5 + $0xe0] sm:$0xff] }
 0x7cd   :  { %2487 = vrot.lane.b32.xlu0 %v11283_v13, %s14770_s19 }
 0x7ce   :  { %v11440_v24 = vpop.permute.xlu1 %2163 }
 0x7cf   :  { %v11442_v57 = vpop.permute.xlu0 %2167 }
 0x7d0   :  { %2495 = vrot.lane.b32.xlu1 %v11293_v1, %s14770_s19  ;;  %v8459_v1 = vld [vmem:[%s14641_s5 + $0xe8] sm:$0xff] }
 0x7d1   :  { %2497 = vrot.lane.b32.xlu0 %v11317_v14, %s14770_s19 }
 0x7d2   :  { %v11448_v12 = vpop.permute.xlu1 %2321 }
 0x7d3   :  { %14842 = vst [vmem:[#allocation43_spill] sm:$0xff] %v11448_v12  ;;  %v11450_v51 = vpop.permute.xlu0 %2169 }
 0x7d4   :  { %2505 = vrot.lane.b32.xlu1 %v11110_v39, %s14770_s19  ;;  %v8460_v39 = vld [vmem:[%s14641_s5 + $0xf0] sm:$0xff] }
 0x7d5   :  { %2489 = vrot.lane.b32.xlu0 %v11307_v37, %s14770_s19  ;;  %v8461_v37 = vld [vmem:[%s14641_s5 + $0xf8] sm:$0xff] }
 0x7d6   :  { %v11459_v13 = vpop.permute.xlu1 %2173 }
 0x7d7   :  { %v11464_v14 = vpop.permute.xlu0 %2319 }
 0x7d8   :  { %14843 = vst [vmem:[#allocation44_spill] sm:$0xff] %v11464_v14  ;;  %2598 = vperm.xlu1 %10092, %v8458_v31  }
 0x7d9   :  { %2603 = vperm.xlu0 %10091, %v8459_v1  }
 0x7da   :  { %v11469_v2 = vpop.permute.xlu1 %2323 }
 0x7db   :  { %14844 = vst [vmem:[#allocation45_spill] sm:$0xff] %v11469_v2  ;;  %v11474_v56 = vpop.permute.xlu0 %2171 }
 0x7dc   :  { %14845 = vst [vmem:[#allocation46_spill] sm:$0xff] %v11474_v56  ;;  %2608 = vperm.xlu1 %10092, %v8460_v39  }
 0x7dd   :  { %2613 = vperm.xlu0 %10091, %v8461_v37  }
 0x7de   :  { %v11476_v21 = vpop.permute.xlu1 %2381 }
 0x7df   :  { %14846 = vst [vmem:[#allocation47_spill] sm:$0xff] %v11476_v21  ;;  %v11478_v11 = vpop.permute.xlu0 %2165 }
 0x7e0   :  { %14847 = vst [vmem:[#allocation48_spill] sm:$0xff] %v11478_v11 }
 0x7e2   :  { %v11480_v31 = vpop.permute.xlu1 %2227 }
 0x7e3   :  { %v11482_v1 = vpop.permute.xlu0 %2325 }
 0x7e4   :  { %14848 = vst [vmem:[#allocation49_spill] sm:$0xff] %v11482_v1 }
 0x7e6   :  { %v11484_v12 = vpop.permute.xlu1 %2379 }
 0x7e7   :  { %14849 = vst [vmem:[#allocation50_spill] sm:$0xff] %v11484_v12  ;;  %v11486_v43 = vpop.permute.xlu0 %2219 }
 0x7ea   :  { %v11488_v2 = vpop.permute.xlu1 %2229 }
 0x7eb   :  { %14850 = vst [vmem:[#allocation51_spill] sm:$0xff] %v11488_v2  ;;  %v11490_v7 = vpop.permute.xlu0 %2221 }
 0x7ee   :  { %v11492_v14 = vpop.permute.xlu1 %2441 }
 0x7ef   :  { %14851 = vst [vmem:[#allocation52_spill] sm:$0xff] %v11492_v14  ;;  %v11494_v39 = vpop.permute.xlu0 %2383  ;;  %v11514_v14 = vmul.f32 %v11072_v22, %v10465_v61 }
 0x7f0   :  { %14852 = vst [vmem:[#allocation53_spill] sm:$0xff] %v11494_v39 }
 0x7f1   :  { %14859 = vst [vmem:[#allocation60_spill] sm:$0xff] %v11514_v14  ;;  %v11538_v14 = vmul.f32 %v11105_v23, %v10458_v59  ;;  %v11558_v23 = vmul.f32 %v11118_v53, %v10455_v58  ;;  %v11578_v53 = vmul.f32 %v11127_v20, %v10458_v59  ;;  %v2077_v20 = vsel %vm631_vm3, %v11255_v27, %v11233_v16 }
 0x7f2   :  { %v11496_v37 = vpop.permute.xlu1 %2231 }
 0x7f3   :  { %v11498_v21 = vpop.permute.xlu0 %2223  ;;  %14865 = vst [vmem:[#allocation66_spill] sm:$0xff] %v11558_v23  ;;  %14868 = vst [vmem:[#allocation69_spill] sm:$0xff] %v11578_v53  ;;  %v14875_v23 = vld [vmem:[#allocation15_spill] sm:$0xff] }
 0x7f4   :  { %14853 = vst [vmem:[#allocation54_spill] sm:$0xff] %v11498_v21  ;;  %v11520_v21 = vmul.f32 %v11075_v25, %v10465_v61  ;;  %v11542_v25 = vmul.f32 %v11108_v17, %v10455_v58  ;;  %v2075_v17 = vsel %vm631_vm3, %v11178_v29, %v11209_v36 }
 0x7f6   :  { %v11500_v18 = vpop.permute.xlu1 %2233  ;;  %14863 = vst [vmem:[#allocation64_spill] sm:$0xff] %v11542_v25  ;;  %v2583_v25 = vld [vmem:[%s14646_s3 + $0x140] sm:$0xff] }
 0x7f7   :  { %14854 = vst [vmem:[#allocation55_spill] sm:$0xff] %v11500_v18  ;;  %v11502_v11 = vpop.permute.xlu0 %2439 }
 0x7f8   :  { %14855 = vst [vmem:[#allocation56_spill] sm:$0xff] %v11502_v11  ;;  %v11524_v11 = vmul.f32 %v11078_v46, %v10465_v61  ;;  %v2079_v46 = vsel %vm631_vm3, %v11176_v48, %v11178_v29 }
 0x7fa   :  { %v11504_v1 = vpop.permute.xlu1 %2499  ;;  %14860 = vst [vmem:[#allocation61_spill] sm:$0xff] %v11524_v11 }
 0x7fb   :  { %14856 = vst [vmem:[#allocation57_spill] sm:$0xff] %v11504_v1  ;;  %v11506_v12 = vpop.permute.xlu0 %2225  ;;  %v11528_v1 = vmul.f32 %v11081_v42, %v10465_v61  ;;  %v2083_v42 = vsel %vm631_vm3, %v11209_v36, %v11176_v48  ;;  %v2076_v61 = vsel %vm631_vm3, %v11211_v0, %v11186_v38  ;;  %v11570_v48 = vmul.f32 %v11121_v50, %v10458_v59 }
 0x7fc   :  { %14857 = vst [vmem:[#allocation58_spill] sm:$0xff] %v11506_v12  ;;  %v2084_v36 = vsel %vm631_vm3, %v11186_v38, %v11231_v9  ;;  %v2087_v50 = vmul.f32 %v2083_v42, %v10472_v63  ;;  %v2089_v38 = vmul.f32 %v2075_v17, %v10478_v3  ;;  %v2078_v42 = vsel %vm631_vm3, %v11327_v15, %v11188_v30 }
 0x7fd   :  { %14861 = vst [vmem:[#allocation62_spill] sm:$0xff] %v11528_v1  ;;  %14866 = vst [vmem:[#allocation67_spill] sm:$0xff] %v11570_v48  ;;  %v14874_v48 = vld [vmem:[#allocation16_spill] sm:$0xff] }
 0x7fe   :  { %v11508_v56 = vpop.permute.xlu1 %2303 }
 0x7ff   :  { %v11510_v2 = vpop.permute.xlu0 %2443 }
 0x800   :  { %14858 = vst [vmem:[#allocation59_spill] sm:$0xff] %v11510_v2  ;;  %v11532_v2 = vmul.f32 %v11100_v8, %v10455_v58  ;;  %v11554_v8 = vmul.f32 %v11113_v40, %v10458_v59  ;;  %v11574_v40 = vmul.f32 %v11124_v28, %v10455_v58  ;;  %v2080_v28 = vsel %vm631_vm3, %v11231_v9, %v11211_v0 }
 0x801   :  { %v2092_v59 = vmul.f32 %v2076_v61, %v10478_v3  ;;  %v2085_v9 = vsel %vm631_vm3, %v11233_v16, %v11281_v6  ;;  %v2090_v0 = vmul.f32 %v2084_v36, %v10472_v63  ;;  %v2086_v61 = vsel %vm631_vm3, %v11188_v30, %v11329_v32 }
 0x802   :  { %v11516_v39 = vpop.permute.xlu1 %2311  ;;  %14864 = vst [vmem:[#allocation65_spill] sm:$0xff] %v11554_v8  ;;  %14867 = vst [vmem:[#allocation68_spill] sm:$0xff] %v11574_v40  ;;  %v2091_v17 = vmul.f32 %v2080_v28, %v10469_v62  ;;  %v2123_v16 = vsel %vm660_vm2, %v11349_v26, %v11305_v5  ;;  %v2127_v36 = vsel %vm660_vm2, %v11347_v19, %v11349_v26  ;;  %v2582_v8 = vld [vmem:[%s14646_s3 + $0x138] sm:$0xff] }
 0x803   :  { %v11534_v22 = vpop.permute.xlu0 %2501  ;;  %v2093_v53 = vmul.f32 %v2085_v9, %v10472_v63  ;;  %v2082_v28 = vsel %vm631_vm3, %v11329_v32, %v11327_v15  ;;  %v2096_v26 = vmul.f32 %v2086_v61, %v10472_v63  ;;  %v2136_v15 = vmul.f32 %v2127_v36, %v14875_v23  ;;  %v14876_v32 = vld [vmem:[#allocation17_spill] sm:$0xff] }
 0x804   :  { %14862 = vst [vmem:[#allocation63_spill] sm:$0xff] %v11534_v22  ;;  %v2088_v22 = vmul.f32 %v2079_v46, %v10469_v62  ;;  %v2081_v46 = vsel %vm631_vm3, %v11281_v6, %v11255_v27  ;;  %v2131_v27 = vsel %vm660_vm2, %v11305_v5, %v11347_v19  ;;  %v2095_v6 = vmul.f32 %v2077_v20, %v10478_v3  ;;  %v14872_v20 = vld [vmem:[#allocation36_spill] sm:$0xff] }
 0x805   :  { %v2094_v40 = vmul.f32 %v2081_v46, %v10469_v62  ;;  %v2124_v5 = vsel %vm660_vm2, %v11386_v34, %v14872_v20  ;;  %v2098_v19 = vmul.f32 %v2078_v42, %v10478_v3  ;;  %v2135_v9 = vmul.f32 %v2131_v27, %v14874_v48  ;;  %v14877_v42 = vld [vmem:[#allocation38_spill] sm:$0xff] }
 0x806   :  { %v11584_v29 = vpop.permute.xlu1 %2305  ;;  %v2132_v46 = vsel %vm660_vm2, %v14872_v20, %v11392_v44  ;;  %v2133_v61 = vsel %vm660_vm2, %v14877_v42, %v11394_v41  ;;  %v2097_v27 = vmul.f32 %v2082_v28, %v10469_v62  ;;  %v2140_v3 = vmul.f32 %v2124_v5, %v14876_v32  ;;  %v14879_v20 = vld [vmem:[#allocation37_spill] sm:$0xff] }
 0x807   :  { %14869 = vst [vmem:[#allocation70_spill] sm:$0xff] %v11584_v29  ;;  %v11596_v58 = vpop.permute.xlu0 %2313  ;;  %v2125_v36 = vsel %vm660_vm2, %v11408_v45, %v14877_v42  ;;  %v2126_v28 = vsel %vm660_vm2, %v11416_v4, %v14879_v20  ;;  %v2130_v5 = vsel %vm660_vm2, %v11418_v10, %v11416_v4  ;;  %v2134_v42 = vsel %vm660_vm2, %v14879_v20, %v11418_v10  ;;  %v2579_v20 = vld [vmem:[%s14646_s3 + $0x120] sm:$0xff]  ;;  %v2586_v29 = vld [vmem:[%s14646_s3 + $0x158] sm:$0xff] }
 0x808   :  { %14870 = vst [vmem:[#allocation71_spill] sm:$0xff] %v11596_v58  ;;  %v2147_v63 = vadd.f32 %v2135_v9, %v2087_v50  ;;  %v2141_v4 = vmul.f32 %v2133_v61, %v14874_v48  ;;  %v2191_v10 = vsel %vm692_vm4, %v11383_v33, %v11424_v60  ;;  %v2581_v50 = vld [vmem:[%s14646_s3 + $0x130] sm:$0xff]  ;;  %v2143_v1 = vmul.f32 %v2125_v36, %v14876_v32  ;;  %v2584_v58 = vld [vmem:[%s14646_s3 + $0x148] sm:$0xff] }
 0x809   :  { %v11738_v12 = vadd.f32 %v2140_v3, %v2092_v59  ;;  %v2588_v59 = vld [vmem:[%s14646_s3 + $0x168] sm:$0xff] }
 0x80a   :  { %v11631_v30 = vpop.permute.xlu1 %2307 }
 0x80b   :  { %14871 = vst [vmem:[#allocation72_spill] sm:$0xff] %v11631_v30  ;;  %v11643_v11 = vpop.permute.xlu0 %2315  ;;  %v2137_v30 = vmul.f32 %v2123_v16, %v14876_v32  ;;  %v2129_v16 = vsel %vm660_vm2, %v11394_v41, %v11408_v45  ;;  %v2577_v45 = vld [vmem:[%s14646_s3 + $0x110] sm:$0xff] }
 0x80c   :  { %14873 = vst [vmem:[#allocation36_spill] sm:$0xff] %v11643_v11  ;;  %v2128_v11 = vsel %vm660_vm2, %v11392_v44, %v11386_v34  ;;  %v2138_v44 = vmul.f32 %v2132_v46, %v14874_v48  ;;  %v2578_v46 = vld [vmem:[%s14646_s3 + $0x118] sm:$0xff]  ;;  %v2142_v61 = vmul.f32 %v2129_v16, %v14875_v23  ;;  %v2585_v16 = vld [vmem:[%s14646_s3 + $0x150] sm:$0xff] }
 0x80d   :  { %v2139_v62 = vmul.f32 %v2128_v11, %v14875_v23  ;;  %v11710_v11 = vadd.f32 %v2136_v15, %v2088_v22  ;;  %v11712_v9 = vadd.f32 %v2137_v30, %v2089_v38  ;;  %v2146_v22 = vmul.f32 %v2126_v28, %v14876_v32  ;;  %v14881_v28 = vld [vmem:[#allocation19_spill] sm:$0xff] }
 0x80e   :  { %v11672_v34 = vpop.permute.xlu1 %2309  ;;  %v2144_v38 = vmul.f32 %v2134_v42, %v14874_v48  ;;  %v2145_v30 = vmul.f32 %v2130_v5, %v14875_v23  ;;  %v11730_v36 = vpack.c.bf16 %v2578_v46, %v2577_v45  ;;  %v2150_v18 = vadd.f32 %v2138_v44, %v2090_v0 }
 0x80f   :  { %14878 = vst [vmem:[#allocation38_spill] sm:$0xff] %v11672_v34  ;;  %v11687_v41 = vpop.permute.xlu0 %2363  ;;  %v2580_v34 = vld [vmem:[%s14646_s3 + $0x128] sm:$0xff]  ;;  %v2195_v32 = vmul.f32 %v2191_v10, %v14881_v28  ;;  %v2151_v48 = vadd.f32 %v2139_v62, %v2091_v17  ;;  %v2153_v45 = vadd.f32 %v2141_v4, %v2093_v53  ;;  %v11745_v46 = vpack.c.bf16 %v2582_v8, %v2581_v50  ;;  %v14885_v4 = vld [vmem:[#allocation20_spill] sm:$0xff]  ;;  %v14886_v50 = vld [vmem:[#allocation18_spill] sm:$0xff] }
 0x810   :  { %v11743_v5 = vpack.c.bf16 %v2580_v34, %v2579_v20  ;;  %v11747_v23 = vpack.c.bf16 %v2584_v58, %v2583_v25  ;;  %v2154_v3 = vadd.f32 %v2142_v61, %v2094_v40  ;;  %v2155_v0 = vadd.f32 %v2143_v1, %v2095_v6  ;;  %v2589_v58 = vld [vmem:[%s14646_s3 + $0x170] sm:$0xff]  ;;  %v2590_v25 = vld [vmem:[%s14646_s3 + $0x178] sm:$0xff] }
 0x811   :  { %v2192_v62 = vsel %vm692_vm4, %v11367_v47, %v11432_v35  ;;  %v11759_v53 = vpack.c.bf16 %v2586_v29, %v2585_v16  ;;  %v2158_v8 = vadd.f32 %v2146_v22, %v2098_v19  ;;  %v2156_v17 = vadd.f32 %v2144_v38, %v2096_v26  ;;  %v14887_v22 = vld [vmem:[#allocation46_spill] sm:$0xff] }
 0x812   :  { %v11728_v15 = vpop.permute.xlu1 %2317  ;;  %v2157_v34 = vadd.f32 %v2145_v30, %v2097_v27  ;;  %v2183_v1 = vsel %vm692_vm4, %v11442_v57, %v11383_v33  ;;  %v2207_v29 = vadd.f32 %v2195_v32, %v2147_v63  ;;  %v2193_v6 = vsel %vm692_vm4, %v11400_v49, %v11440_v24 }
 0x813   :  { %14880 = vst [vmem:[#allocation37_spill] sm:$0xff] %v11728_v15  ;;  %v11741_v42 = vpop.permute.xlu0 %2371  ;;  %v2587_v15 = vld [vmem:[%s14646_s3 + $0x160] sm:$0xff]  ;;  %14882 = vst [vmem:[#allocation73_spill] sm:$0xff] %v11759_v53  ;;  %v2187_v19 = vsel %vm692_vm4, %v11424_v60, %v11442_v57  ;;  %v2198_v44 = vmul.f32 %v2192_v62, %v14881_v28  ;;  %v2188_v63 = vsel %vm692_vm4, %v11432_v35, %v11450_v51  ;;  %s10168_s3 = smov 5  }
 0x814   :  { %v11783_v27 = vpack.c.bf16 %v2588_v59, %v2587_v15  ;;  %v2243_v33 = vsel %vm724_vm5, %v11480_v31, %v11410_v55  ;;  %v11794_v32 = vpack.c.bf16 %v2590_v25, %v2589_v58  ;;  %v2197_v60 = vmul.f32 %v2183_v1, %v14885_v4  ;;  %v14888_v15 = vld [vmem:[#allocation48_spill] sm:$0xff]  ;;  %v14890_v25 = vld [vmem:[#allocation22_spill] sm:$0xff] }
 0x815   :  { %v2184_v57 = vsel %vm692_vm4, %v11450_v51, %v11367_v47  ;;  %v2186_v10 = vsel %vm692_vm4, %v11459_v13, %v11369_v52  ;;  %v2251_v35 = vsel %vm724_vm5, %v11410_v55, %v11486_v43  ;;  %v2201_v20 = vmul.f32 %v2193_v6, %v14881_v28 }
 0x816   :  { %v11771_v40 = vpop.permute.xlu1 %2365  ;;  %14883 = vst [vmem:[#allocation74_spill] sm:$0xff] %v11783_v27  ;;  %14884 = vst [vmem:[#allocation75_spill] sm:$0xff] %v11794_v32  ;;  %v2196_v61 = vmul.f32 %v2187_v19, %v14886_v50  ;;  %v2189_v38 = vsel %vm692_vm4, %v11440_v24, %v14887_v22  ;;  %v2247_v47 = vsel %vm724_vm5, %v11486_v43, %v11480_v31  ;;  %v14889_v24 = vld [vmem:[#allocation23_spill] sm:$0xff]  ;;  %v14891_v19 = vld [vmem:[#allocation21_spill] sm:$0xff] }
 0x817   :  { %v11781_v26 = vpop.permute.xlu0 %2373  ;;  %v2199_v30 = vmul.f32 %v2188_v63, %v14886_v50  ;;  %v2185_v55 = vsel %vm692_vm4, %v14887_v22, %v11400_v49  ;;  %v2194_v16 = vsel %vm692_vm4, %v11369_v52, %v14888_v15  ;;  %v2257_v59 = vmul.f32 %v2243_v33, %v14889_v24  ;;  %v14892_v22 = vld [vmem:[#allocation40_spill] sm:$0xff]  ;;  %v14893_v32 = vld [vmem:[#allocation51_spill] sm:$0xff] }
 0x818   :  { %v2200_v43 = vmul.f32 %v2184_v57, %v14885_v4  ;;  %v2206_v31 = vmul.f32 %v2186_v10, %v14885_v4  ;;  %v2190_v58 = vsel %vm692_vm4, %v14888_v15, %v11459_v13  ;;  %v2255_v49 = vmul.f32 %v2251_v35, %v14890_v25  ;;  %v14907_v27 = vld [vmem:[#allocation31_spill] sm:$0xff] }
 0x819   :  { %v2210_v1 = vadd.f32 %v2198_v44, %v2150_v18  ;;  %v2209_v6 = vadd.f32 %v2197_v60, %v11712_v9  ;;  %v2202_v52 = vmul.f32 %v2189_v38, %v14886_v50  ;;  %v2256_v63 = vmul.f32 %v2247_v47, %v14891_v19 }
 0x81a   :  { %v11819_v51 = vpop.permute.xlu1 %2367  ;;  %v11843_v33 = vadd.f32 %v2201_v20, %v2153_v45  ;;  %v2203_v57 = vmul.f32 %v2185_v55, %v14885_v4  ;;  %v2204_v10 = vmul.f32 %v2194_v16, %v14881_v28  ;;  %v2244_v13 = vsel %vm724_vm5, %v14893_v32, %v14892_v22  ;;  %v14906_v28 = vld [vmem:[#allocation30_spill] sm:$0xff] }
 0x81b   :  { %v11831_v62 = vpop.permute.xlu0 %2425  ;;  %v2208_v18 = vadd.f32 %v2196_v61, %v11710_v11  ;;  %v2211_v9 = vadd.f32 %v2199_v30, %v2151_v48  ;;  %v2205_v44 = vmul.f32 %v2190_v58, %v14886_v50  ;;  %v2269_v60 = vadd.f32 %v2257_v59, %v2209_v6 }
 0x81c   :  { %v2212_v45 = vadd.f32 %v2200_v43, %v11738_v12  ;;  %v11858_v20 = vadd.f32 %v2206_v31, %v2158_v8  ;;  %v2267_v38 = vadd.f32 %v2255_v49, %v2207_v29  ;;  %v2252_v47 = vsel %vm724_vm5, %v14892_v22, %v11490_v7  ;;  %v14894_v12 = vld [vmem:[#allocation44_spill] sm:$0xff]  ;;  %v14895_v31 = vld [vmem:[#allocation42_spill] sm:$0xff] }
 0x81d   :  { %v2214_v55 = vadd.f32 %v2202_v52, %v2154_v3  ;;  %v2268_v16 = vadd.f32 %v2256_v63, %v2208_v18  ;;  %v2260_v11 = vmul.f32 %v2244_v13, %v14889_v24  ;;  %v2248_v48 = vsel %vm724_vm5, %v11490_v7, %v14893_v32  ;;  %v14897_v52 = vld [vmem:[#allocation24_spill] sm:$0xff] }
 0x81e   :  { %v11851_v15 = vpop.permute.xlu1 %2375  ;;  %v2215_v61 = vadd.f32 %v2203_v57, %v2155_v0  ;;  %v2216_v30 = vadd.f32 %v2204_v10, %v2156_v17  ;;  %v2327_v8 = vsel %vm778_vm6, %v11516_v39, %v14894_v12  ;;  %v2331_v3 = vsel %vm778_vm6, %v11508_v56, %v11516_v39  ;;  %v14896_v39 = vld [vmem:[#allocation50_spill] sm:$0xff]  ;;  %v14898_v57 = vld [vmem:[#allocation25_spill] sm:$0xff] }
 0x81f   :  { %v11855_v35 = vpop.permute.xlu0 %2433  ;;  %v2217_v59 = vadd.f32 %v2205_v44, %v2157_v34  ;;  %v2258_v43 = vmul.f32 %v2252_v47, %v14890_v25  ;;  %v2245_v7 = vsel %vm724_vm5, %v11496_v37, %v14895_v31  ;;  %v11885_v0 = vadd.f32 %v11520_v21, %v2269_v60  ;;  %v14901_v44 = vld [vmem:[#allocation55_spill] sm:$0xff]  ;;  %v14903_v47 = vld [vmem:[#allocation28_spill] sm:$0xff] }
 0x820   :  { %v2259_v32 = vmul.f32 %v2248_v48, %v14891_v19  ;;  %v2291_v58 = vadd.f32 %v11532_v2, %v2267_v38  ;;  %v2387_v34 = vsel %vm14787_vm7, %v11741_v42, %v14896_v39  ;;  %v2391_v49 = vsel %vm14787_vm7, %v11687_v41, %v11741_v42  ;;  %v14899_v2 = vld [vmem:[#allocation54_spill] sm:$0xff]  ;;  %v14900_v42 = vld [vmem:[#allocation41_spill] sm:$0xff] }
 0x821   :  { %v2272_v6 = vadd.f32 %v2260_v11, %v2212_v45  ;;  %v2292_v21 = vadd.f32 %v11538_v14, %v2268_v16  ;;  %v2339_v63 = vmul.f32 %v2331_v3, %v14897_v52  ;;  %v2340_v10 = vmul.f32 %v2327_v8, %v14898_v57  ;;  %v14902_v45 = vld [vmem:[#allocation27_spill] sm:$0xff]  ;;  %v14904_v11 = vld [vmem:[#allocation56_spill] sm:$0xff] }
 0x822   :  { %v11877_v29 = vpop.permute.xlu1 %2423  ;;  %v2263_v22 = vmul.f32 %v2245_v7, %v14889_v24  ;;  %v2249_v13 = vsel %vm724_vm5, %v14899_v2, %v11496_v37  ;;  %v2253_v18 = vsel %vm724_vm5, %v14895_v31, %v14899_v2  ;;  %v2246_v14 = vsel %vm724_vm5, %v14901_v44, %v14900_v42  ;;  %v14905_v7 = vld [vmem:[#allocation58_spill] sm:$0xff] }
 0x823   :  { %v11887_v17 = vpop.permute.xlu0 %2427  ;;  %v2399_v38 = vmul.f32 %v2391_v49, %v14902_v45  ;;  %v2400_v16 = vmul.f32 %v2387_v34, %v14903_v47  ;;  %v2270_v3 = vadd.f32 %v2258_v43, %v2210_v1  ;;  %v2271_v31 = vadd.f32 %v2259_v32, %v2211_v9 }
 0x824   :  { %v2250_v2 = vsel %vm724_vm5, %v14905_v7, %v14901_v44  ;;  %v2254_v34 = vsel %vm724_vm5, %v14900_v42, %v14905_v7  ;;  %v2351_v49 = vadd.f32 %v2339_v63, %v2291_v58  ;;  %v2352_v4 = vadd.f32 %v2340_v10, %v2292_v21  ;;  %v14908_v63 = vld [vmem:[#allocation70_spill] sm:$0xff]  ;;  %v14909_v10 = vld [vmem:[#allocation43_spill] sm:$0xff] }
 0x825   :  { %v2275_v53 = vadd.f32 %v2263_v22, %v2215_v61  ;;  %v2261_v1 = vmul.f32 %v2253_v18, %v14890_v25  ;;  %v2262_v9 = vmul.f32 %v2249_v13, %v14891_v19  ;;  %v2266_v43 = vmul.f32 %v2246_v14, %v14889_v24  ;;  %v14910_v13 = vld [vmem:[#allocation57_spill] sm:$0xff] }
 0x826   :  { %v2432_v60 = vpop.permute.xlu1 %2431  ;;  %v2264_v44 = vmul.f32 %v2254_v34, %v14890_v25  ;;  %v2411_v42 = vadd.f32 %v2399_v38, %v2351_v49  ;;  %v2412_v58 = vadd.f32 %v2400_v16, %v2352_v4  ;;  %v2335_v61 = vsel %vm778_vm6, %v14894_v12, %v11508_v56  ;;  %v14911_v38 = vld [vmem:[#allocation33_spill] sm:$0xff]  ;;  %v14913_v34 = vld [vmem:[#allocation71_spill] sm:$0xff] }
 0x827   :  { %v2447_v48 = vsel %vm14786_vm8, %v2432_v60, %v14904_v11  ;;  %v2451_v37 = vsel %vm14786_vm8, %v11877_v29, %v2432_v60  ;;  %v11923_v8 = vpop.permute.xlu0 %2483  ;;  %v2265_v11 = vmul.f32 %v2250_v2, %v14891_v19  ;;  %v2336_v22 = vsel %vm778_vm6, %v14909_v10, %v14908_v63 }
 0x828   :  { %v2459_v50 = vmul.f32 %v2451_v37, %v14906_v28  ;;  %v2460_v60 = vmul.f32 %v2447_v48, %v14907_v27  ;;  %v14912_v48 = vld [vmem:[#allocation34_spill] sm:$0xff]  ;;  %v2273_v56 = vadd.f32 %v2261_v1, %v11843_v33  ;;  %v2274_v12 = vadd.f32 %v2262_v9, %v2214_v55  ;;  %v14916_v1 = vld [vmem:[#allocation64_spill] sm:$0xff] }
 0x829   :  { %v2278_v2 = vadd.f32 %v2266_v43, %v11858_v20  ;;  %v2332_v49 = vsel %vm778_vm6, %v14908_v63, %v14913_v34  ;;  %v2276_v25 = vadd.f32 %v2264_v44, %v2216_v30  ;;  %v2328_v20 = vsel %vm778_vm6, %v14913_v34, %v14909_v10  ;;  %v14917_v43 = vld [vmem:[#allocation65_spill] sm:$0xff]  ;;  %v14918_v44 = vld [vmem:[#allocation62_spill] sm:$0xff] }
 0x82a   :  { %v11938_v32 = vpop.permute.xlu1 %2377  ;;  %v2471_v4 = vadd.f32 %v2459_v50, %v2411_v42  ;;  %v2472_v7 = vadd.f32 %v2460_v60, %v2412_v58  ;;  %v2277_v60 = vadd.f32 %v2265_v11, %v2217_v59  ;;  %v14915_v58 = vld [vmem:[#allocation26_spill] sm:$0xff]  ;;  %v2294_v9 = vadd.f32 %v14916_v1, %v2270_v3  ;;  %v14920_v59 = vld [vmem:[#allocation45_spill] sm:$0xff] }
 0x82b   :  { %v2492_v21 = vpop.permute.xlu0 %2491  ;;  %v2341_v33 = vmul.f32 %v2335_v61, %v14915_v58  ;;  %v2344_v55 = vmul.f32 %v2336_v22, %v14915_v58  ;;  %v2295_v30 = vadd.f32 %v14917_v43, %v2271_v31  ;;  %v2299_v63 = vadd.f32 %v14918_v44, %v2275_v53  ;;  %v14921_v61 = vld [vmem:[#allocation66_spill] sm:$0xff]  ;;  %v14924_v53 = vld [vmem:[#allocation36_spill] sm:$0xff]  ;;  %v14927_v1 = vld [vmem:[#allocation69_spill] sm:$0xff] }
 0x82c   :  { %v2507_v18 = vsel %vm14785_vm9, %v2492_v21, %v14910_v13  ;;  %v2511_v14 = vsel %vm14785_vm9, %v11923_v8, %v2492_v21  ;;  %v14914_v21 = vld [vmem:[#allocation60_spill] sm:$0xff]  ;;  %v2297_v22 = vadd.f32 %v14921_v61, %v2273_v56  ;;  %v2343_v31 = vmul.f32 %v2328_v20, %v14898_v57 }
 0x82d   :  { %v2519_v16 = vmul.f32 %v2511_v14, %v14911_v38  ;;  %v2520_v37 = vmul.f32 %v2507_v18, %v14912_v48  ;;  %v2296_v50 = vadd.f32 %v14914_v21, %v2272_v6  ;;  %v2342_v6 = vmul.f32 %v2332_v49, %v14897_v52  ;;  %v14925_v49 = vld [vmem:[#allocation68_spill] sm:$0xff]  ;;  %v14926_v21 = vld [vmem:[#allocation39_spill] sm:$0xff] }
 0x82e   :  { %v11964_v24 = vpop.permute.xlu1 %2435  ;;  %v2329_v34 = vsel %vm778_vm6, %v14924_v53, %v14920_v59  ;;  %v2395_v20 = vsel %vm14787_vm7, %v14896_v39, %v11687_v41  ;;  %v2301_v43 = vadd.f32 %v14927_v1, %v2277_v60  ;;  %v14931_v39 = vld [vmem:[#allocation47_spill] sm:$0xff]  ;;  %v2452_v1 = vsel %vm14786_vm8, %v11831_v62, %v11855_v35 }
 0x82f   :  { %v2531_v42 = vadd.f32 %v2519_v16, %v2471_v4  ;;  %v11967_v14 = vpop.permute.xlu0 %2385  ;;  %v2532_v18 = vadd.f32 %v2520_v37, %v2472_v7  ;;  %v14919_v4 = vld [vmem:[#allocation72_spill] sm:$0xff]  ;;  %v14922_v16 = vld [vmem:[#allocation67_spill] sm:$0xff]  ;;  %v14923_v7 = vld [vmem:[#allocation61_spill] sm:$0xff]  ;;  %v2354_v44 = vadd.f32 %v2342_v6, %v2294_v9  ;;  %v2346_v41 = vmul.f32 %v2329_v34, %v14898_v57 }
 0x830   :  { %v2337_v11 = vsel %vm778_vm6, %v14920_v59, %v14919_v4  ;;  %v2298_v37 = vadd.f32 %v14922_v16, %v2274_v12  ;;  %v11986_v10 = vadd.f32 %v14923_v7, %v2278_v2  ;;  %v2333_v56 = vsel %vm778_vm6, %v14919_v4, %v14924_v53  ;;  %v14928_v4 = vld [vmem:[#allocation49_spill] sm:$0xff] }
 0x831   :  { %2690 = vmatprep.mubr.f32.mxu1 %v2532_v18  ;;  %v2300_v12 = vadd.f32 %v14925_v49, %v2276_v25  ;;  %v12004_v18 = vadd.f32 %v2344_v55, %v2296_v50  ;;  %v2347_v25 = vmul.f32 %v2337_v11, %v14915_v58  ;;  %v14929_v59 = vld [vmem:[#allocation37_spill] sm:$0xff]  ;;  %v2388_v60 = vsel %vm14787_vm7, %v11781_v26, %v14931_v39  ;;  %v14934_v49 = vld [vmem:[#allocation52_spill] sm:$0xff] }
 0x832   :  { %v11988_v3 = vpop.permute.xlu1 %2369  ;;  %2691 = vmatmul.mubr.f32.vlgmr.msra.gmra.mrb[76].mxu1 %v2531_v42  ;;  %v2353_v42 = vadd.f32 %v2341_v33, %v11885_v0  ;;  %v2330_v61 = vsel %vm778_vm6, %v14929_v59, %v14928_v4  ;;  %v14930_v0 = vld [vmem:[#allocation38_spill] sm:$0xff]  ;;  %v2345_v33 = vmul.f32 %v2333_v56, %v14897_v52  ;;  %v2392_v55 = vsel %vm14787_vm7, %v11771_v40, %v11781_v26  ;;  %v14932_v11 = vld [vmem:[#allocation29_spill] sm:$0xff] }
 0x833   :  { %9919 = vmatpush3.bf16.msra.mxu1 %v14926_v21  ;;  %v12001_v2 = vpop.permute.xlu0 %2503  ;;  %v2334_v50 = vsel %vm778_vm6, %v14930_v0, %v14929_v59  ;;  %v2355_v6 = vadd.f32 %v2343_v31, %v2295_v30  ;;  %v2401_v16 = vmul.f32 %v2395_v20, %v14932_v11  ;;  %v14933_v7 = vld [vmem:[#allocation53_spill] sm:$0xff]  ;;  %v2393_v34 = vsel %vm14787_vm7, %v11819_v51, %v11851_v15 }
 0x834   :  { %9921 = vmatprep.subr.bf16.mxu1 %v11730_v36  ;;  %v2389_v53 = vsel %vm14787_vm7, %v11851_v15, %v14933_v7  ;;  %v2338_v26 = vsel %vm778_vm6, %v14928_v4, %v14930_v0  ;;  %v2348_v30 = vmul.f32 %v2334_v50, %v14897_v52  ;;  %v2349_v31 = vmul.f32 %v2330_v61, %v14898_v57 }
 0x835   :  { %v2448_v21 = vsel %vm14786_vm8, %v11855_v35, %v14934_v49  ;;  %v12054_v15 = vadd.f32 %v2347_v25, %v2299_v63  ;;  %v2403_v20 = vmul.f32 %v2388_v60, %v14903_v47  ;;  %v2357_v4 = vadd.f32 %v2345_v33, %v2297_v22 }
 0x836   :  { %v2438_v9 = vpop.permute.xlu1 %2437  ;;  %v2358_v59 = vadd.f32 %v2346_v41, %v2298_v37  ;;  %v2405_v61 = vmul.f32 %v2393_v34, %v14902_v45  ;;  %v2406_v0 = vmul.f32 %v2389_v53, %v14903_v47  ;;  %v12067_v63 = vmul.f32 %v2338_v26, %v14915_v58 }
 0x837   :  { %9923 = vmatpush3.bf16.msra.mxu1 %v11730_v36  ;;  %v12041_v56 = vpop.permute.xlu0 %2445  ;;  %v2402_v36 = vmul.f32 %v2392_v55, %v14902_v45  ;;  %v12069_v25 = vadd.f32 %v2401_v16, %v2353_v42  ;;  %v2463_v60 = vmul.f32 %v2448_v21, %v14907_v27  ;;  %v14935_v55 = vld [vmem:[#allocation59_spill] sm:$0xff]  ;;  %v2360_v37 = vadd.f32 %v2348_v30, %v2300_v12 }
 0x838   :  { %9925 = vmatprep.subr.bf16.mxu1 %v11743_v5  ;;  %v2449_v35 = vsel %vm14786_vm8, %v11964_v24, %v14935_v55  ;;  %v2361_v33 = vadd.f32 %v2349_v31, %v2301_v43  ;;  %v2462_v41 = vmul.f32 %v2452_v1, %v14906_v28  ;;  %v2453_v42 = vsel %vm14786_vm8, %v11887_v17, %v11964_v24 }
 0x839   :  { %v2396_v16 = vsel %vm14787_vm7, %v14931_v39, %v11771_v40  ;;  %v2414_v53 = vadd.f32 %v2402_v36, %v2354_v44  ;;  %v2397_v12 = vsel %vm14787_vm7, %v14933_v7, %v11819_v51  ;;  %v2417_v43 = vadd.f32 %v2405_v61, %v2357_v4  ;;  %v14936_v40 = vld [vmem:[#allocation63_spill] sm:$0xff] }
 0x83a   :  { %v12064_v50 = vpop.permute.xlu1 %2429  ;;  %v2418_v34 = vadd.f32 %v2406_v0, %v2358_v59  ;;  %v2466_v26 = vmul.f32 %v2449_v35, %v14907_v27  ;;  %v2390_v24 = vsel %vm14787_vm7, %v11938_v32, %v11967_v14  ;;  %v2465_v31 = vmul.f32 %v2453_v42, %v14906_v28 }
 0x83b   :  { %9927 = vmatpush3.bf16.msra.mxu1 %v11743_v5  ;;  %v12077_v22 = vpop.permute.xlu0 %2485  ;;  %v2415_v5 = vadd.f32 %v2403_v20, %v2355_v6  ;;  %v2394_v7 = vsel %vm14787_vm7, %v11988_v3, %v11938_v32  ;;  %v14937_v20 = vld [vmem:[#allocation56_spill] sm:$0xff]  ;;  %v2515_v4 = vsel %vm14785_vm9, %v14910_v13, %v11923_v8  ;;  %v2409_v59 = vmul.f32 %v2390_v24, %v14903_v47 }
 0x83c   :  { %9929 = vmatprep.subr.bf16.mxu1 %v11745_v46  ;;  %v2455_v1 = vsel %vm14786_vm8, %v14937_v20, %v11877_v29  ;;  %v2450_v32 = vsel %vm14786_vm8, %v2438_v9, %v12041_v56  ;;  %v2454_v61 = vsel %vm14786_vm8, %v12064_v50, %v2438_v9  ;;  %v2408_v29 = vmul.f32 %v2394_v7, %v14902_v45 }
 0x83d   :  { %v2475_v6 = vadd.f32 %v2463_v60, %v2415_v5  ;;  %v2469_v5 = vmul.f32 %v2450_v32, %v14907_v27 }
 0x83e   :  { %v2494_v30 = vpop.permute.xlu1 %2493 }
 0x83f   :  { %9931 = vmatpush3.bf16.msra.mxu1 %v11745_v46  ;;  %v2508_v44 = vsel %vm14785_vm9, %v2494_v30, %v14936_v40  ;;  %v2512_v51 = vsel %vm14785_vm9, %v12077_v22, %v2494_v30  ;;  %v2488_v39 = vpop.permute.xlu0 %2487  ;;  %v2474_v46 = vadd.f32 %v2462_v41, %v2414_v53  ;;  %v2478_v41 = vadd.f32 %v2466_v26, %v2418_v34  ;;  %v14938_v34 = vld [vmem:[#allocation73_spill] sm:$0xff] }
 0x840   :  { %v2522_v21 = vmul.f32 %v2512_v51, %v14911_v38  ;;  %v2523_v36 = vmul.f32 %v2508_v44, %v14912_v48  ;;  %9933 = vmatprep.subr.bf16.mxu1 %v11747_v23  ;;  %v2477_v53 = vadd.f32 %v2465_v31, %v2417_v43  ;;  %v2407_v26 = vmul.f32 %v2397_v12, %v14932_v11  ;;  %v14939_v31 = vld [vmem:[#allocation32_spill] sm:$0xff]  ;;  %v14940_v12 = vld [vmem:[#allocation35_spill] sm:$0xff] }
 0x841   :  { %v2456_v30 = vsel %vm14786_vm8, %v14934_v49, %v11831_v62  ;;  %v2468_v43 = vmul.f32 %v2454_v61, %v14906_v28  ;;  %v2461_v44 = vmul.f32 %v2455_v1, %v14939_v31  ;;  %v2421_v51 = vadd.f32 %v2409_v59, %v2361_v33  ;;  %v14941_v1 = vld [vmem:[#allocation74_spill] sm:$0xff] }
 0x842   :  { %v2496_v0 = vpop.permute.xlu1 %2495  ;;  %v2535_v60 = vadd.f32 %v2523_v36, %v2475_v6  ;;  %v2534_v35 = vadd.f32 %v2522_v21, %v2474_v46  ;;  %v2521_v36 = vmul.f32 %v2515_v4, %v14940_v12  ;;  %v2420_v46 = vadd.f32 %v2408_v29, %v2360_v37 }
 0x843   :  { %9935 = vmatpush3.bf16.msra.mxu1 %v11747_v23  ;;  %v2509_v8 = vsel %vm14785_vm9, %v2496_v0, %v12001_v2  ;;  %v2513_v13 = vsel %vm14785_vm9, %v2488_v39, %v2496_v0  ;;  %v2498_v42 = vpop.permute.xlu0 %2497  ;;  %v2404_v23 = vmul.f32 %v2396_v16, %v14932_v11  ;;  %v2457_v16 = vsel %vm14786_vm8, %v14935_v55, %v11887_v17 }
 0x844   :  { %v2525_v9 = vmul.f32 %v2513_v13, %v14911_v38  ;;  %v2526_v24 = vmul.f32 %v2509_v8, %v14912_v48  ;;  %2695 = vmatprep.mubr.f32.mxu1 %v2535_v60  ;;  %9937 = vmatprep.subr.bf16.mxu1 %v14938_v34  ;;  %v2481_v59 = vadd.f32 %v2469_v5, %v2421_v51 }
 0x845   :  { %2696 = vmatmul.mubr.f32.gmra.mrb[78].mxu1 %v2534_v35  ;;  %v2398_v17 = vsel %vm14787_vm7, %v11967_v14, %v11988_v3  ;;  %v2516_v55 = vsel %vm14785_vm9, %v14936_v40, %v12077_v22  ;;  %v2480_v4 = vadd.f32 %v2468_v43, %v2420_v46  ;;  %v2464_v32 = vmul.f32 %v2456_v30, %v14939_v31  ;;  %v8303_v43 = vld [vmem:[%s14643_s2 + $0x54] sm:$0x7] }
 0x846   :  { %v2506_v6 = vpop.permute.xlu1 %2505  ;;  %v2538_v7 = vadd.f32 %v2526_v24, %v2478_v41  ;;  %v2537_v21 = vadd.f32 %v2525_v9, %v2477_v53  ;;  %v2517_v61 = vsel %vm14785_vm9, %v12001_v2, %v2488_v39  ;;  %v2473_v60 = vadd.f32 %v2461_v44, %v12069_v25  ;;  %v14942_v2 = vld [vmem:[#allocation75_spill] sm:$0xff] }
 0x847   :  { %9939 = vmatpush3.bf16.msra.mxu1 %v14938_v34  ;;  %v2510_v62 = vsel %vm14785_vm9, %v2498_v42, %v2506_v6  ;;  %v2490_v49 = vpop.permute.xlu0 %2489  ;;  %v2416_v14 = vadd.f32 %v2404_v23, %v12004_v18  ;;  %v2467_v3 = vmul.f32 %v2457_v16, %v14939_v31  ;;  %v2458_v22 = vsel %vm14786_vm8, %v12041_v56, %v12064_v50 }
 0x848   :  { %v2529_v20 = vmul.f32 %v2510_v62, %v14912_v48  ;;  %v2514_v33 = vsel %vm14785_vm9, %v2490_v49, %v2498_v42  ;;  %2700 = vmatprep.mubr.f32.mxu1 %v2538_v7  ;;  %9941 = vmatprep.subr.bf16.mxu1 %v14941_v1  ;;  %v2410_v35 = vmul.f32 %v2398_v17, %v14932_v11  ;;  %v14943_v7 = vld [vmem:[#allocation3_spill] sm:$0xff] }
 0x849   :  { %v2528_v37 = vmul.f32 %v2514_v33, %v14911_v38  ;;  %2701 = vmatmul.mubr.f32.gmra.mrb[80].mxu1 %v2537_v21  ;;  %v2524_v41 = vmul.f32 %v2516_v55, %v14940_v12  ;;  %v2533_v25 = vadd.f32 %v2521_v36, %v2473_v60  ;;  %v2419_v18 = vadd.f32 %v2407_v26, %v12054_v15 }
 0x84a   :  { %v2541_v0 = vadd.f32 %v2529_v20, %v2481_v59  ;;  %v2527_v39 = vmul.f32 %v2517_v61, %v14940_v12  ;;  %v2518_v29 = vsel %vm14785_vm9, %v2506_v6, %v2490_v49  ;;  %v2362_v56 = vadd.f32 %v12067_v63, %v11986_v10 }
 0x84b   :  { %9943 = vmatpush3.bf16.msra.mxu1 %v14941_v1  ;;  %v2540_v40 = vadd.f32 %v2528_v37, %v2480_v4  ;;  %v2476_v50 = vadd.f32 %v2464_v32, %v2416_v14  ;;  %v2470_v8 = vmul.f32 %v2458_v22, %v14939_v31  ;;  %v2479_v13 = vadd.f32 %v2467_v3, %v2419_v18 }
 0x84c   :  { %2705 = vmatprep.mubr.f32.mxu1 %v2541_v0  ;;  %9945 = vmatprep.subr.bf16.mxu1 %v14942_v2  ;;  %v2422_v42 = vadd.f32 %v2410_v35, %v2362_v56  ;;  %v2530_v15 = vmul.f32 %v2518_v29, %v14940_v12  ;;  %v12196_v21 = vrot.slane %v8303_v43, %v14943_v7  ;;  %v8466_v29 = vld [vmem:[%s14641_s5 + $0x120] sm:$0xff]  ;;  %v8467_v56 = vld [vmem:[%s14641_s5 + $0x128] sm:$0xff] }
 0x84d   :  { %2706 = vmatmul.mubr.f32.gmra.mrb[82].mxu1 %v2540_v40  ;;  %v2536_v53 = vadd.f32 %v2524_v41, %v2476_v50  ;;  %v2539_v5 = vadd.f32 %v2527_v39, %v2479_v13 }
 0x84e   :  { %9415 = vmatprep.mubr.f32.mxu1 %v2533_v25  ;;  %v2482_v9 = vadd.f32 %v2470_v8, %v2422_v42 }
 0x84f   :  { %9947 = vmatpush3.bf16.msra.mxu1 %v14942_v2 }
 0x850   :  { %v2542_v24 = vadd.f32 %v2530_v15, %v2482_v9 }
 0x852   :  { %9416 = vmatmul.mubr.f32.vlgmr.msra.gmra.mrb[84].mxu1 %v2536_v53 }
 0x853   :  { %9418 = vmatprep.mubr.f32.mxu1 %v2539_v5 }
 0x856   :  { %9419 = vmatmul.mubr.f32.gmra.mrb[86].mxu1 %v2542_v24 }
 0x857   :  { %v2599_v16 = vpop.permute.xlu1 %2598 }
 0x858   :  { %v2604_v51 = vpop.permute.xlu0 %2603  ;;  %v2622_v33 = vmul.f32 %v12196_v21, %v2599_v16 }
 0x859   :  { %v2623_v49 = vmul.f32 %v12196_v21, %v2604_v51 }
 0x85b   :  { %v2609_v59 = vpop.permute.xlu1 %2608 }
 0x85c   :  { %v2614_v1 = vpop.permute.xlu0 %2613  ;;  %v2624_v0 = vmul.f32 %v12196_v21, %v2609_v59 }
 0x85d   :  { %v2625_v4 = vmul.f32 %v12196_v21, %v2614_v1 }
 0x905   :  { %v8985_v34 = vpop.f32.mrb[76].mxu1 }
 0x906   :  { %v8986_v23 = vpop.f32.mrb[77].mxu1 }
 0x907   :  { %v8987_v10 = vadd.f32 %v8986_v23, %v8985_v34 }
 0x909   :  { %v2693_v37 = vadd.f32 %v8987_v10, %v2622_v33 }
 0x918   :  { %v8988_v63 = vpop.f32.mrb[78].mxu1 }
 0x919   :  { %v8989_v26 = vpop.f32.mrb[79].mxu1 }
 0x91a   :  { %v8990_v30 = vadd.f32 %v8989_v26, %v8988_v63 }
 0x91c   :  { %v8991_v44 = vpop.f32.mrb[80].mxu1  ;;  %v2698_v17 = vadd.f32 %v8990_v30, %v2623_v49 }
 0x91d   :  { %v8992_v6 = vpop.f32.mrb[81].mxu1 }
 0x91e   :  { %v8993_v36 = vadd.f32 %v8992_v6, %v8991_v44 }
 0x920   :  { %v8994_v46 = vpop.f32.mrb[82].mxu1  ;;  %v2703_v22 = vadd.f32 %v8993_v36, %v2624_v0  ;;  %v8463_v0 = vld [vmem:[%s14641_s5 + $0x108] sm:$0xff] }
 0x921   :  { %v8995_v62 = vpop.f32.mrb[83].mxu1 }
 0x922   :  { %v8996_v20 = vadd.f32 %v8995_v62, %v8994_v46 }
 0x924   :  { %v2708_v14 = vadd.f32 %v8996_v20, %v2625_v4 }
 0x925   :  { %v9417_v55 = vpop.f32.mrb[84].mxu1 }
 0x926   :  { %v12201_v32 = vadd.f32 %v9417_v55, %v2698_v17  ;;  %v2777_v61 = vpop.f32.mrb[85].mxu1 }
 0x927   :  { %v12204_v60 = vadd.f32 %v2777_v61, %v2693_v37  ;;  %v8462_v61 = vld [vmem:[%s14641_s5 + $0x100] sm:$0xff] }
 0x928   :  { %2808 = vadd.xlane.f32.xlu0 %v12201_v32  ;;  %v2819_v25 = vmul.f32 %v12201_v32, %v12201_v32 }
 0x929   :  { %v9420_v3 = vpop.f32.mrb[86].mxu1  ;;  %2806 = vadd.xlane.f32.xlu1 %v12204_v60  ;;  %v2818_v40 = vmul.f32 %v12204_v60, %v12204_v60 }
 0x92a   :  { %v12210_v35 = vadd.f32 %v9420_v3, %v2708_v14  ;;  %v2787_v41 = vpop.f32.mrb[87].mxu1 }
 0x92b   :  { %v12212_v2 = vadd.f32 %v2787_v41, %v2703_v22  ;;  %v8464_v41 = vld [vmem:[%s14641_s5 + $0x110] sm:$0xff] }
 0x92c   :  { %2822 = vadd.xlane.f32.xlu0 %v2818_v40  ;;  %v2821_v39 = vmul.f32 %v12210_v35, %v12210_v35 }
 0x92d   :  { %2824 = vadd.xlane.f32.xlu1 %v2819_v25  ;;  %v2820_v18 = vmul.f32 %v12212_v2, %v12212_v2  ;;  %v8465_v25 = vld [vmem:[%s14641_s5 + $0x118] sm:$0xff] }
 0x930   :  { %2810 = vadd.xlane.f32.xlu0 %v12212_v2 }
 0x931   :  { %2812 = vadd.xlane.f32.xlu1 %v12210_v35 }
 0x934   :  { %2826 = vadd.xlane.f32.xlu0 %v2820_v18 }
 0x935   :  { %2828 = vadd.xlane.f32.xlu1 %v2821_v39 }
 0x946   :  { %2888 = vperm.xlu1 %10092, %v8466_v29  }
 0x94a   :  { %2893 = vperm.xlu0 %10091, %v8467_v56  }
 0x9b5   :  { %v2809_v50 = vpop.xlane.xlu0 %2808 }
 0x9b6   :  { %v2807_v8 = vpop.xlane.xlu1 %2806  ;;  %v12228_v13 = vmul.f32 0.03125, %v2809_v50  ;;  %v8468_v50 = vld [vmem:[%s14641_s5 + $0x130] sm:$0xff] }
 0x9b7   :  { %v12230_v42 = vmul.f32 0.03125, %v2807_v8  ;;  %v8469_v8 = vld [vmem:[%s14641_s5 + $0x138] sm:$0xff] }
 0x9b8   :  { %v2835_v24 = vmul.f32 %v12228_v13, %v12228_v13 }
 0x9b9   :  { %v2834_v53 = vmul.f32 %v12230_v42, %v12230_v42  ;;  %v2823_v15 = vpop.xlane.xlu0 %2822 }
 0x9ba   :  { %v2830_v5 = vmul.f32 0.03125, %v2823_v15  ;;  %v2825_v9 = vpop.xlane.xlu1 %2824 }
 0x9bb   :  { %v2831_v34 = vmul.f32 0.03125, %v2825_v9  ;;  %v2846_v9 = vsub.f32 %v12204_v60, %v12230_v42 }
 0x9bc   :  { %v2838_v23 = vsub.f32 %v2830_v5, %v2834_v53  ;;  %v2914_v53 = vld [vmem:[%s14647_s9] sm:$0xff] }
 0x9bd   :  { %v2839_v10 = vsub.f32 %v2831_v34, %v2835_v24  ;;  %v2811_v63 = vpop.xlane.xlu0 %2810  ;;  %9429 = vmatprep.mubr.msk.f32.mxu1 %vm2987_vm10, %v2914_v53  ;;  %v2847_v34 = vsub.f32 %v12201_v32, %v12228_v13  ;;  %v2936_v53 = vld [vmem:[%s14647_s9 + $0xb0] sm:$0xff] }
 0x9be   :  { %v2842_v26 = vmax.f32 %v2838_v23, 0.0  ;;  %v12236_v30 = vmul.f32 0.03125, %v2811_v63  ;;  %v2813_v43 = vpop.xlane.xlu1 %2812 }
 0x9bf   :  { %v2843_v44 = vmax.f32 %v2839_v10, 0.0  ;;  %v12238_v51 = vmul.f32 0.03125, %v2813_v43 }
 0x9c0   :  { %v2850_v6 = vadd.f32 1e-05, %v2842_v26  ;;  %v2836_v46 = vmul.f32 %v12236_v30, %v12236_v30  ;;  %v2848_v60 = vsub.f32 %v12212_v2, %v12236_v30  ;;  %v2916_v30 = vld [vmem:[%s14647_s9 + $0x10] sm:$0xff] }
 0x9c1   :  { %v2851_v16 = vadd.f32 1e-05, %v2843_v44  ;;  %v2827_v36 = vpop.xlane.xlu0 %2826  ;;  %v2837_v20 = vmul.f32 %v12238_v51, %v12238_v51  ;;  %v2849_v32 = vsub.f32 %v12210_v35, %v12238_v51  ;;  %v2915_v35 = vld [vmem:[%s14647_s9 + $0x8] sm:$0xff]  ;;  %v2917_v51 = vld [vmem:[%s14647_s9 + $0x18] sm:$0xff] }
 0x9c2   :  { %10097 = vrsqrt.f32 %v2850_v6  ;;  %v2832_v62 = vmul.f32 0.03125, %v2827_v36  ;;  %v2829_v49 = vpop.xlane.xlu1 %2828 }
 0x9c3   :  { %10099 = vrsqrt.f32 %v2851_v16  ;;  %v2833_v33 = vmul.f32 0.03125, %v2829_v49 }
 0x9c4   :  { %v2840_v1 = vsub.f32 %v2832_v62, %v2836_v46 }
 0x9c5   :  { %v2841_v59 = vsub.f32 %v2833_v33, %v2837_v20 }
 0x9c6   :  { %v2844_v17 = vmax.f32 %v2840_v1, 0.0  ;;  %v2889_v5 = vpop.permute.xlu1 %2888 }
 0x9c7   :  { %v2845_v55 = vmax.f32 %v2841_v59, 0.0 }
 0x9c8   :  { %v2852_v37 = vadd.f32 1e-05, %v2844_v17  ;;  %v2918_v17 = vld [vmem:[%s14647_s9 + $0x20] sm:$0xff] }
 0x9c9   :  { %v2853_v4 = vadd.f32 1e-05, %v2845_v55  ;;  %v2894_v15 = vpop.permute.xlu0 %2893  ;;  %v2919_v55 = vld [vmem:[%s14647_s9 + $0x28] sm:$0xff] }
 0x9ca   :  { %10101 = vrsqrt.f32 %v2852_v37  ;;  %v2920_v37 = vld [vmem:[%s14647_s9 + $0x30] sm:$0xff] }
 0x9cb   :  { %10103 = vrsqrt.f32 %v2853_v4  ;;  %v2921_v4 = vld [vmem:[%s14647_s9 + $0x38] sm:$0xff] }
 0x9cc   :  { %v10098_v14 = vpop.eup %10097 }
 0x9cd   :  { %v10100_v3 = vpop.eup %10099  ;;  %v2858_v22 = vmul.f32 %v10098_v14, %v8462_v61  ;;  %v2922_v61 = vld [vmem:[%s14647_s9 + $0x40] sm:$0xff]  ;;  %v2924_v14 = vld [vmem:[%s14647_s9 + $0x50] sm:$0xff] }
 0x9ce   :  { %v2859_v40 = vmul.f32 %v10100_v3, %v8463_v0  ;;  %v2923_v0 = vld [vmem:[%s14647_s9 + $0x48] sm:$0xff]  ;;  %v2925_v3 = vld [vmem:[%s14647_s9 + $0x58] sm:$0xff] }
 0x9cf   :  { %2864 = vperm.xlu0 %10091, %v2858_v22   ;;  %v2926_v22 = vld [vmem:[%s14647_s9 + $0x60] sm:$0xff] }
 0x9d0   :  { %2869 = vperm.xlu1 %10092, %v2859_v40   ;;  %v2927_v40 = vld [vmem:[%s14647_s9 + $0x68] sm:$0xff] }
 0x9d4   :  { %v10102_v18 = vpop.eup %10101 }
 0x9d5   :  { %v10104_v39 = vpop.eup %10103  ;;  %v2860_v29 = vmul.f32 %v10102_v18, %v8464_v41  ;;  %v2928_v41 = vld [vmem:[%s14647_s9 + $0x70] sm:$0xff]  ;;  %v2930_v18 = vld [vmem:[%s14647_s9 + $0x80] sm:$0xff] }
 0x9d6   :  { %v2861_v56 = vmul.f32 %v10104_v39, %v8465_v25  ;;  %v2929_v25 = vld [vmem:[%s14647_s9 + $0x78] sm:$0xff]  ;;  %v2931_v39 = vld [vmem:[%s14647_s9 + $0x88] sm:$0xff] }
 0x9d7   :  { %2874 = vperm.xlu1 %10092, %v2860_v29   ;;  %v2932_v29 = vld [vmem:[%s14647_s9 + $0x90] sm:$0xff] }
 0x9d8   :  { %2879 = vperm.xlu0 %10091, %v2861_v56   ;;  %v2933_v56 = vld [vmem:[%s14647_s9 + $0x98] sm:$0xff] }
 0x9db   :  { %2898 = vperm.xlu1 %10092, %v8468_v50   ;;  %v2934_v50 = vld [vmem:[%s14647_s9 + $0xa0] sm:$0xff] }
 0x9dc   :  { %2903 = vperm.xlu0 %10091, %v8469_v8   ;;  %v2935_v8 = vld [vmem:[%s14647_s9 + $0xa8] sm:$0xff] }
 0xa4e   :  { %v2865_v24 = vpop.permute.xlu0 %2864 }
 0xa4f   :  { %v2882_v23 = vmul.f32 %v2865_v24, %v2846_v9  ;;  %v2870_v10 = vpop.permute.xlu1 %2869  ;;  %v2939_v9 = vld [vmem:[%s14647_s9 + $0xc8] sm:$0xff]  ;;  %v2940_v24 = vld [vmem:[%s14647_s9 + $0xd0] sm:$0xff] }
 0xa50   :  { %v2883_v63 = vmul.f32 %v2870_v10, %v2847_v34  ;;  %v2941_v34 = vld [vmem:[%s14647_s9 + $0xd8] sm:$0xff]  ;;  %v2943_v10 = vld [vmem:[%s14647_s9 + $0xe8] sm:$0xff] }
 0xa51   :  { %v2906_v26 = vadd.f32 %v2889_v5, %v2882_v23  ;;  %v2938_v5 = vld [vmem:[%s14647_s9 + $0xc0] sm:$0xff] }
 0xa52   :  { %v2907_v43 = vadd.f32 %v2894_v15, %v2883_v63  ;;  %v2937_v15 = vld [vmem:[%s14647_s9 + $0xb8] sm:$0xff]  ;;  %v2942_v23 = vld [vmem:[%s14647_s9 + $0xe0] sm:$0xff]  ;;  %v2944_v63 = vld [vmem:[%s14647_s9 + $0xf0] sm:$0xff] }
 0xa53   :  { %v12271_v44 = vmul.f32 %v2906_v26, %v12196_v21  ;;  %v2945_v26 = vld [vmem:[%s14647_s9 + $0xf8] sm:$0xff] }
 0xa54   :  { %v12274_v6 = vmul.f32 %v2907_v43, %v12196_v21  ;;  %v2946_v43 = vld [vmem:[%s14647_s9 + $0x100] sm:$0xff] }
 0xa56   :  { %v2875_v16 = vpop.permute.xlu1 %2874  ;;  %v9948_v36 = vpack.c.bf16 %v12274_v6, %v12271_v44 }
 0xa57   :  { %v2880_v42 = vpop.permute.xlu0 %2879  ;;  %v2884_v13 = vmul.f32 %v2875_v16, %v2848_v60  ;;  %v2947_v16 = vld [vmem:[%s14647_s9 + $0x108] sm:$0xff]  ;;  %v2949_v60 = vld [vmem:[%s14647_s9 + $0x118] sm:$0xff] }
 0xa58   :  { %9949 = vmatprep.subr.bf16.mxu1 %v9948_v36  ;;  %v2885_v46 = vmul.f32 %v2880_v42, %v2849_v32  ;;  %v14944_v42 = vmov 0.0  }
 0xa59   :  { %9951 = vmatpush3.bf16.msra.mxu1 %v9948_v36  ;;  %v2948_v36 = vld [vmem:[%s14647_s9 + $0x110] sm:$0xff] }
 0xa5a   :  { %v2899_v62 = vpop.permute.xlu1 %2898 }
 0xa5b   :  { %v2908_v49 = vadd.f32 %v2899_v62, %v2884_v13  ;;  %v2904_v20 = vpop.permute.xlu0 %2903 }
 0xa5c   :  { %v2909_v33 = vadd.f32 %v2904_v20, %v2885_v46 }
 0xa5d   :  { %v12283_v1 = vmul.f32 %v2908_v49, %v12196_v21 }
 0xa5e   :  { %v12286_v59 = vmul.f32 %v2909_v33, %v12196_v21 }
 0xa60   :  { %v9952_v2 = vpack.c.bf16 %v12286_v59, %v12283_v1 }
 0xa62   :  { %9953 = vmatprep.subr.bf16.mxu1 %v9952_v2 }
 0xa63   :  { %9955 = vmatpush3.bf16.msra.mxu1 %v9952_v2 }
 0xa66   :  { %9430 = vmatmul.mubr.msk.f32.vlgmr.msra.gmra.mrb[88].mxu1 %vm2987_vm10, %v2915_v35 }
 0xa67   :  { %9432 = vmatprep.mubr.msk.f32.mxu1 %vm2987_vm10, %v2916_v30 }
 0xa6a   :  { %9433 = vmatmul.mubr.msk.f32.gmra.mrb[90].mxu1 %vm2987_vm10, %v2917_v51 }
 0xa6b   :  { %9435 = vmatprep.mubr.msk.f32.mxu1 %vm2987_vm10, %v2918_v17 }
 0xa6e   :  { %9436 = vmatmul.mubr.msk.f32.gmra.mrb[92].mxu1 %vm2987_vm10, %v2919_v55 }
 0xa6f   :  { %9438 = vmatprep.mubr.msk.f32.mxu1 %vm2987_vm10, %v2920_v37 }
 0xa72   :  { %9439 = vmatmul.mubr.msk.f32.gmra.mrb[94].mxu1 %vm2987_vm10, %v2921_v4 }
 0xa73   :  { %9441 = vmatprep.mubr.msk.f32.mxu1 %vm2987_vm10, %v2922_v61 }
 0xa76   :  { %9442 = vmatmul.mubr.msk.f32.gmra.mrb[96].mxu1 %vm2987_vm10, %v2923_v0 }
 0xa77   :  { %9444 = vmatprep.mubr.msk.f32.mxu1 %vm2987_vm10, %v2924_v14 }
 0xa7a   :  { %9445 = vmatmul.mubr.msk.f32.gmra.mrb[98].mxu1 %vm2987_vm10, %v2925_v3 }
 0xa7b   :  { %9447 = vmatprep.mubr.msk.f32.mxu1 %vm2987_vm10, %v2926_v22 }
 0xa7e   :  { %9448 = vmatmul.mubr.msk.f32.gmra.mrb[100].mxu1 %vm2987_vm10, %v2927_v40 }
 0xa7f   :  { %9450 = vmatprep.mubr.msk.f32.mxu1 %vm2987_vm10, %v2928_v41 }
 0xa82   :  { %9451 = vmatmul.mubr.msk.f32.gmra.mrb[102].mxu1 %vm2987_vm10, %v2929_v25 }
 0xa83   :  { %9453 = vmatprep.mubr.msk.f32.mxu1 %vm2987_vm10, %v2930_v18 }
 0xa86   :  { %9454 = vmatmul.mubr.msk.f32.gmra.mrb[104].mxu1 %vm2987_vm10, %v2931_v39 }
 0xa87   :  { %9456 = vmatprep.mubr.msk.f32.mxu1 %vm2987_vm10, %v2932_v29 }
 0xa8a   :  { %9457 = vmatmul.mubr.msk.f32.gmra.mrb[106].mxu1 %vm2987_vm10, %v2933_v56 }
 0xa8b   :  { %9459 = vmatprep.mubr.msk.f32.mxu1 %vm2987_vm10, %v2934_v50 }
 0xa8e   :  { %9460 = vmatmul.mubr.msk.f32.gmra.mrb[108].mxu1 %vm2987_vm10, %v2935_v8 }
 0xa8f   :  { %9462 = vmatprep.mubr.msk.f32.mxu1 %vm2987_vm10, %v2936_v53 }
 0xa92   :  { %9463 = vmatmul.mubr.msk.f32.gmra.mrb[110].mxu1 %vm2987_vm10, %v2937_v15 }
 0xa93   :  { %9465 = vmatprep.mubr.msk.f32.mxu1 %vm2987_vm10, %v2938_v5 }
 0xa96   :  { %9466 = vmatmul.mubr.msk.f32.gmra.mrb[112].mxu1 %vm2987_vm10, %v2939_v9 }
 0xa97   :  { %9468 = vmatprep.mubr.msk.f32.mxu1 %vm2987_vm10, %v2940_v24 }
 0xa9a   :  { %9469 = vmatmul.mubr.msk.f32.gmra.mrb[114].mxu1 %vm2987_vm10, %v2941_v34 }
 0xa9b   :  { %9471 = vmatprep.mubr.msk.f32.mxu1 %vm2987_vm10, %v2942_v23 }
 0xa9e   :  { %9472 = vmatmul.mubr.msk.f32.gmra.mrb[116].mxu1 %vm2987_vm10, %v2943_v10 }
 0xa9f   :  { %9474 = vmatprep.mubr.msk.f32.mxu1 %vm2987_vm10, %v2944_v63 }
 0xaa2   :  { %9475 = vmatmul.mubr.msk.f32.gmra.mrb[118].mxu1 %vm2987_vm10, %v2945_v26 }
 0xaa3   :  { %9477 = vmatprep.mubr.msk.f32.mxu1 %vm2987_vm10, %v2946_v43 }
 0xaa6   :  { %9478 = vmatmul.mubr.msk.f32.gmra.mrb[120].mxu1 %vm2987_vm10, %v2947_v16 }
 0xaa7   :  { %9480 = vmatprep.mubr.msk.f32.mxu1 %vm2987_vm10, %v2948_v36 }
 0xaaa   :  { %9481 = vmatmul.mubr.msk.f32.gmra.mrb[122].mxu1 %vm2987_vm10, %v2949_v60 }
 0xaab   :  { %9553 = vmatprep.mubr.msk.f32.mxu1 %vm10159_vm1, %v14944_v42 }
 0xb39   :  { %v9431_v32 = vpop.f32.mrb[88].mxu1 }
 0xb3a   :  { %3343 = vrot.lane.b32.xlu0 %v9431_v32, %s10168_s3  ;;  %v3162_v13 = vpop.f32.mrb[89].mxu1 }
 0xb3b   :  { %3341 = vrot.lane.b32.xlu1 %v3162_v13, %s10168_s3 }
 0xb3d   :  { %v9434_v46 = vpop.f32.mrb[90].mxu1 }
 0xb3e   :  { %3347 = vrot.lane.b32.xlu0 %v9434_v46, %s10168_s3  ;;  %v3172_v62 = vpop.f32.mrb[91].mxu1 }
 0xb3f   :  { %3345 = vrot.lane.b32.xlu1 %v3172_v62, %s10168_s3 }
 0xb41   :  { %v9437_v49 = vpop.f32.mrb[92].mxu1 }
 0xb42   :  { %3361 = vrot.lane.b32.xlu0 %v9437_v49, %s10169_s20  ;;  %v3182_v20 = vpop.f32.mrb[93].mxu1 }
 0xb43   :  { %3359 = vrot.lane.b32.xlu1 %v3182_v20, %s10169_s20 }
 0xb45   :  { %v9440_v33 = vpop.f32.mrb[94].mxu1 }
 0xb46   :  { %3365 = vrot.lane.b32.xlu0 %v9440_v33, %s10169_s20  ;;  %v3192_v2 = vpop.f32.mrb[95].mxu1 }
 0xb47   :  { %3363 = vrot.lane.b32.xlu1 %v3192_v2, %s10169_s20 }
 0xb49   :  { %v9443_v35 = vpop.f32.mrb[96].mxu1 }
 0xb4a   :  { %3383 = vrot.lane.b32.xlu0 %v9443_v35, %s10170_s21  ;;  %v3202_v30 = vpop.f32.mrb[97].mxu1 }
 0xb4b   :  { %3381 = vrot.lane.b32.xlu1 %v3202_v30, %s10170_s21  ;;  %v8313_v30 = vld [vmem:[%s14643_s2 + $0x1e] sm:$0x7] }
 0xb4d   :  { %v9446_v51 = vpop.f32.mrb[98].mxu1 }
 0xb4e   :  { %3387 = vrot.lane.b32.xlu0 %v9446_v51, %s10170_s21  ;;  %v3212_v17 = vpop.f32.mrb[99].mxu1 }
 0xb4f   :  { %3385 = vrot.lane.b32.xlu1 %v3212_v17, %s10170_s21 }
 0xb51   :  { %v9449_v55 = vpop.f32.mrb[100].mxu1 }
 0xb52   :  { %3405 = vrot.lane.b32.xlu0 %v9449_v55, %s10163_s0  ;;  %v3222_v37 = vpop.f32.mrb[101].mxu1  ;;  %v8312_v55 = vld [vmem:[%s14643_s2 + $0x1b] sm:$0x7] }
 0xb53   :  { %3403 = vrot.lane.b32.xlu1 %v3222_v37, %s10163_s0  ;;  %v8314_v37 = vld [vmem:[%s14643_s2 + $0x21] sm:$0x7] }
 0xb55   :  { %v9452_v4 = vpop.f32.mrb[102].mxu1 }
 0xb56   :  { %3409 = vrot.lane.b32.xlu0 %v9452_v4, %s10163_s0  ;;  %v3232_v61 = vpop.f32.mrb[103].mxu1  ;;  %v12482_v4 = vrot.slane %v8313_v30, %v14943_v7 }
 0xb57   :  { %3407 = vrot.lane.b32.xlu1 %v3232_v61, %s10163_s0  ;;  %v8315_v61 = vld [vmem:[%s14643_s2 + $0x24] sm:$0x7] }
 0xb59   :  { %v12448_v0 = vpop.f32.mrb[104].mxu1 }
 0xb5a   :  { %v12450_v14 = vpop.f32.mrb[105].mxu1 }
 0xb5d   :  { %v12452_v3 = vpop.f32.mrb[106].mxu1 }
 0xb5e   :  { %v12454_v22 = vpop.f32.mrb[107].mxu1 }
 0xb61   :  { %v9461_v40 = vpop.f32.mrb[108].mxu1 }
 0xb62   :  { %3441 = vrot.lane.b32.xlu0 %v9461_v40, %s10164_s17  ;;  %v3262_v41 = vpop.f32.mrb[109].mxu1 }
 0xb63   :  { %3439 = vrot.lane.b32.xlu1 %v3262_v41, %s10164_s17  ;;  %v12490_v41 = vrot.slane %v8312_v55, %v14943_v7 }
 0xb65   :  { %v9464_v25 = vpop.f32.mrb[110].mxu1 }
 0xb66   :  { %3445 = vrot.lane.b32.xlu0 %v9464_v25, %s10164_s17  ;;  %v3272_v18 = vpop.f32.mrb[111].mxu1  ;;  %v12493_v25 = vrot.slane %v8314_v37, %v14943_v7 }
 0xb67   :  { %3443 = vrot.lane.b32.xlu1 %v3272_v18, %s10164_s17 }
 0xb69   :  { %v9467_v39 = vpop.f32.mrb[112].mxu1 }
 0xb6a   :  { %3463 = vrot.lane.b32.xlu0 %v9467_v39, %s10171_s22  ;;  %v3282_v29 = vpop.f32.mrb[113].mxu1 }
 0xb6b   :  { %3461 = vrot.lane.b32.xlu1 %v3282_v29, %s10171_s22  ;;  %v12499_v29 = vrot.slane %v8315_v61, %v14943_v7 }
 0xb6d   :  { %v9470_v56 = vpop.f32.mrb[114].mxu1 }
 0xb6e   :  { %3467 = vrot.lane.b32.xlu0 %v9470_v56, %s10171_s22  ;;  %v3292_v50 = vpop.f32.mrb[115].mxu1 }
 0xb6f   :  { %3465 = vrot.lane.b32.xlu1 %v3292_v50, %s10171_s22 }
 0xb71   :  { %v9473_v8 = vpop.f32.mrb[116].mxu1 }
 0xb72   :  { %3485 = vrot.lane.b32.xlu0 %v9473_v8, %s10172_s23  ;;  %v3302_v53 = vpop.f32.mrb[117].mxu1  ;;  %v8316_v8 = vld [vmem:[%s14643_s2 + $0x27] sm:$0x7] }
 0xb73   :  { %3483 = vrot.lane.b32.xlu1 %v3302_v53, %s10172_s23 }
 0xb75   :  { %v9476_v15 = vpop.f32.mrb[118].mxu1 }
 0xb76   :  { %3489 = vrot.lane.b32.xlu0 %v9476_v15, %s10172_s23  ;;  %v3312_v5 = vpop.f32.mrb[119].mxu1 }
 0xb77   :  { %3487 = vrot.lane.b32.xlu1 %v3312_v5, %s10172_s23 }
 0xb79   :  { %v9479_v9 = vpop.f32.mrb[120].mxu1 }
 0xb7a   :  { %3507 = vrot.lane.b32.xlu0 %v9479_v9, %s10173_s8  ;;  %v3322_v24 = vpop.f32.mrb[121].mxu1 }
 0xb7b   :  { %3505 = vrot.lane.b32.xlu1 %v3322_v24, %s10173_s8 }
 0xb7d   :  { %v9482_v34 = vpop.f32.mrb[122].mxu1 }
 0xb7e   :  { %3511 = vrot.lane.b32.xlu0 %v9482_v34, %s10173_s8  ;;  %v3332_v23 = vpop.f32.mrb[123].mxu1  ;;  %v8317_v34 = vld [vmem:[%s14643_s2 + $0x2a] sm:$0x7] }
 0xb7f   :  { %3509 = vrot.lane.b32.xlu1 %v3332_v23, %s10173_s8 }
 0xbac   :  { %v3344_v10 = vpop.permute.xlu0 %3343 }
 0xbad   :  { %v3342_v63 = vpop.permute.xlu1 %3341  ;;  %v3356_v53 = vmul.f32 %v12490_v41, %v3344_v10 }
 0xbae   :  { %v3355_v9 = vmul.f32 %v12490_v41, %v3342_v63 }
 0xbb0   :  { %v3348_v26 = vpop.permute.xlu0 %3347 }
 0xbb1   :  { %v3346_v43 = vpop.permute.xlu1 %3345 }
 0xbb4   :  { %v3362_v16 = vpop.permute.xlu0 %3361 }
 0xbb5   :  { %v3360_v36 = vpop.permute.xlu1 %3359  ;;  %v3374_v39 = vmul.f32 %v12482_v4, %v3362_v16 }
 0xbb6   :  { %v3373_v56 = vmul.f32 %v12482_v4, %v3360_v36  ;;  %v12514_v36 = vrot.slane %v8316_v8, %v14943_v7 }
 0xbb7   :  { %v3378_v23 = vadd.f32 %v3374_v39, %v3356_v53 }
 0xbb8   :  { %v3366_v60 = vpop.permute.xlu0 %3365  ;;  %v3377_v30 = vadd.f32 %v3373_v56, %v3355_v9  ;;  %v3432_v8 = vmul.f32 %v12448_v0, %v12514_v36 }
 0xbb9   :  { %v3364_v32 = vpop.permute.xlu1 %3363  ;;  %v3376_v53 = vmul.f32 %v12482_v4, %v3366_v60 }
 0xbba   :  { %v3375_v39 = vmul.f32 %v12482_v4, %v3364_v32 }
 0xbbc   :  { %v3384_v13 = vpop.permute.xlu0 %3383 }
 0xbbd   :  { %v3382_v46 = vpop.permute.xlu1 %3381  ;;  %v3396_v15 = vmul.f32 %v12493_v25, %v3384_v13  ;;  %v8318_v13 = vld [vmem:[%s14643_s2 + $0x2d] sm:$0x7] }
 0xbbe   :  { %v3395_v24 = vmul.f32 %v12493_v25, %v3382_v46  ;;  %v12521_v46 = vrot.slane %v8317_v34, %v14943_v7  ;;  %v3357_v34 = vmul.f32 %v12490_v41, %v3346_v43  ;;  %v8320_v43 = vld [vmem:[%s14643_s2 + $0x33] sm:$0x7] }
 0xbbf   :  { %v3400_v55 = vadd.f32 %v3396_v15, %v3378_v23  ;;  %v12553_v31 = vrot.slane %v8320_v43, %v14943_v7 }
 0xbc0   :  { %v3388_v62 = vpop.permute.xlu0 %3387  ;;  %v3399_v61 = vadd.f32 %v3395_v24, %v3377_v30 }
 0xbc1   :  { %v3386_v49 = vpop.permute.xlu1 %3385  ;;  %v3398_v0 = vmul.f32 %v12493_v25, %v3388_v62 }
 0xbc2   :  { %v3397_v24 = vmul.f32 %v12493_v25, %v3386_v49  ;;  %v3379_v49 = vadd.f32 %v3375_v39, %v3357_v34 }
 0xbc4   :  { %v3406_v20 = vpop.permute.xlu0 %3405  ;;  %v3401_v62 = vadd.f32 %v3397_v24, %v3379_v49 }
 0xbc5   :  { %v3404_v33 = vpop.permute.xlu1 %3403  ;;  %v3418_v16 = vmul.f32 %v12499_v29, %v3406_v20  ;;  %v8319_v20 = vld [vmem:[%s14643_s2 + $0x30] sm:$0x7] }
 0xbc6   :  { %v3417_v10 = vmul.f32 %v12499_v29, %v3404_v33  ;;  %v12528_v33 = vrot.slane %v8318_v13, %v14943_v7  ;;  %v12537_v30 = vrot.slane %v8319_v20, %v14943_v7  ;;  %v3358_v13 = vmul.f32 %v12490_v41, %v3348_v26 }
 0xbc7   :  { %v3422_v56 = vadd.f32 %v3418_v16, %v3400_v55  ;;  %v3431_v16 = vmul.f32 %v12514_v36, %v12450_v14 }
 0xbc8   :  { %v3410_v2 = vpop.permute.xlu0 %3409  ;;  %v3421_v15 = vadd.f32 %v3417_v10, %v3399_v61  ;;  %v3380_v61 = vadd.f32 %v3376_v53, %v3358_v13 }
 0xbc9   :  { %v3408_v35 = vpop.permute.xlu1 %3407  ;;  %v3436_v10 = vadd.f32 %v3432_v8, %v3422_v56  ;;  %v3420_v20 = vmul.f32 %v12499_v29, %v3410_v2 }
 0xbca   :  { %v3435_v14 = vadd.f32 %v3431_v16, %v3421_v15  ;;  %v3402_v39 = vadd.f32 %v3398_v0, %v3380_v61  ;;  %v3434_v16 = vmul.f32 %v12452_v3, %v12514_v36 }
 0xbcc   :  { %v3424_v53 = vadd.f32 %v3420_v20, %v3402_v39 }
 0xbce   :  { %v3438_v43 = vadd.f32 %v3434_v16, %v3424_v53 }
 0xbd4   :  { %v3442_v51 = vpop.permute.xlu0 %3441 }
 0xbd5   :  { %v3440_v17 = vpop.permute.xlu1 %3439  ;;  %v3454_v23 = vmul.f32 %v12521_v46, %v3442_v51  ;;  %v3419_v51 = vmul.f32 %v12499_v29, %v3408_v35 }
 0xbd6   :  { %v3453_v60 = vmul.f32 %v12521_v46, %v3440_v17 }
 0xbd7   :  { %v3458_v48 = vadd.f32 %v3454_v23, %v3436_v10 }
 0xbd8   :  { %v12487_v40 = vpop.permute.xlu0 %3445  ;;  %v3457_v35 = vadd.f32 %v3453_v60, %v3435_v14 }
 0xbd9   :  { %v12495_v18 = vpop.permute.xlu1 %3443 }
 0xbda   :  { %v3455_v34 = vmul.f32 %v12521_v46, %v12495_v18 }
 0xbdc   :  { %v3464_v50 = vpop.permute.xlu0 %3463 }
 0xbdd   :  { %v3462_v5 = vpop.permute.xlu1 %3461  ;;  %v3476_v55 = vmul.f32 %v12528_v33, %v3464_v50  ;;  %v3423_v50 = vadd.f32 %v3419_v51, %v3401_v62 }
 0xbde   :  { %v3475_v26 = vmul.f32 %v12528_v33, %v3462_v5  ;;  %v3433_v5 = vmul.f32 %v12514_v36, %v12454_v22 }
 0xbdf   :  { %v3480_v8 = vadd.f32 %v3476_v55, %v3458_v48 }
 0xbe0   :  { %v3468_v63 = vpop.permute.xlu0 %3467  ;;  %v3479_v2 = vadd.f32 %v3475_v26, %v3457_v35  ;;  %v3437_v0 = vadd.f32 %v3433_v5, %v3423_v50  ;;  %v8546_v50 = vld [vmem:[%s14641_s5 + $0x160] sm:$0xff] }
 0xbe1   :  { %v3466_v37 = vpop.permute.xlu1 %3465  ;;  %v3478_v18 = vmul.f32 %v12528_v33, %v3468_v63 }
 0xbe2   :  { %v3477_v60 = vmul.f32 %v12528_v33, %v3466_v37  ;;  %v3459_v51 = vadd.f32 %v3455_v34, %v3437_v0 }
 0xbe4   :  { %v3486_v9 = vpop.permute.xlu0 %3485  ;;  %v3481_v20 = vadd.f32 %v3477_v60, %v3459_v51 }
 0xbe5   :  { %v3484_v32 = vpop.permute.xlu1 %3483  ;;  %v3498_v17 = vmul.f32 %v12537_v30, %v3486_v9 }
 0xbe6   :  { %v3497_v56 = vmul.f32 %v12537_v30, %v3484_v32  ;;  %v3456_v32 = vmul.f32 %v12521_v46, %v12487_v40 }
 0xbe7   :  { %v3502_v9 = vadd.f32 %v3498_v17, %v3480_v8  ;;  %v8547_v8 = vld [vmem:[%s14641_s5 + $0x168] sm:$0xff] }
 0xbe8   :  { %v3490_v12 = vpop.permute.xlu0 %3489  ;;  %v3501_v48 = vadd.f32 %v3497_v56, %v3479_v2  ;;  %v3460_v55 = vadd.f32 %v3456_v32, %v3438_v43 }
 0xbe9   :  { %v3488_v38 = vpop.permute.xlu1 %3487  ;;  %v3500_v61 = vmul.f32 %v12537_v30, %v3490_v12 }
 0xbea   :  { %v3499_v10 = vmul.f32 %v12537_v30, %v3488_v38  ;;  %v3482_v14 = vadd.f32 %v3478_v18, %v3460_v55 }
 0xbec   :  { %v3508_v15 = vpop.permute.xlu0 %3507  ;;  %v3503_v62 = vadd.f32 %v3499_v10, %v3481_v20  ;;  %v3504_v17 = vadd.f32 %v3500_v61, %v3482_v14 }
 0xbed   :  { %v3520_v24 = vmul.f32 %v12553_v31, %v3508_v15  ;;  %v3506_v23 = vpop.permute.xlu1 %3505 }
 0xbee   :  { %v3519_v13 = vmul.f32 %v12553_v31, %v3506_v23 }
 0xbef   :  { %v12567_v22 = vadd.f32 %v3520_v24, %v3502_v9 }
 0xbf0   :  { %v12570_v49 = vadd.f32 %v3519_v13, %v3501_v48  ;;  %v3512_v3 = vpop.permute.xlu0 %3511 }
 0xbf1   :  { %3539 = vadd.xlane.f32.xlu0 %v12567_v22  ;;  %v3510_v40 = vpop.permute.xlu1 %3509  ;;  %v3522_v26 = vmul.f32 %v12553_v31, %v3512_v3  ;;  %v3550_v38 = vmul.f32 %v12567_v22, %v12567_v22 }
 0xbf2   :  { %3537 = vadd.xlane.f32.xlu1 %v12570_v49  ;;  %v3549_v37 = vmul.f32 %v12570_v49, %v12570_v49  ;;  %v3521_v63 = vmul.f32 %v12553_v31, %v3510_v40 }
 0xbf3   :  { %v12584_v12 = vadd.f32 %v3522_v26, %v3504_v17 }
 0xbf4   :  { %v12582_v39 = vadd.f32 %v3521_v63, %v3503_v62 }
 0xbf5   :  { %3553 = vadd.xlane.f32.xlu0 %v3549_v37  ;;  %v3552_v56 = vmul.f32 %v12584_v12, %v12584_v12 }
 0xbf6   :  { %3555 = vadd.xlane.f32.xlu1 %v3550_v38  ;;  %v3551_v35 = vmul.f32 %v12582_v39, %v12582_v39 }
 0xbf9   :  { %3541 = vadd.xlane.f32.xlu0 %v12582_v39 }
 0xbfa   :  { %3543 = vadd.xlane.f32.xlu1 %v12584_v12 }
 0xbfd   :  { %3557 = vadd.xlane.f32.xlu0 %v3551_v35 }
 0xbfe   :  { %3559 = vadd.xlane.f32.xlu1 %v3552_v56 }
 0xc0f   :  { %3619 = vperm.xlu1 %10092, %v8546_v50   ;;  %v8542_v50 = vld [vmem:[%s14641_s5 + $0x140] sm:$0xff] }
 0xc13   :  { %3624 = vperm.xlu0 %10091, %v8547_v8   ;;  %v8543_v8 = vld [vmem:[%s14641_s5 + $0x148] sm:$0xff] }
 0xc7e   :  { %v3540_v53 = vpop.xlane.xlu0 %3539 }
 0xc7f   :  { %v3538_v2 = vpop.xlane.xlu1 %3537  ;;  %v12598_v15 = vmul.f32 0.03125, %v3540_v53 }
 0xc80   :  { %v3545_v5 = vmul.f32 0.03125, %v3538_v2 }
 0xc81   :  { %v3566_v16 = vmul.f32 %v12598_v15, %v12598_v15 }
 0xc82   :  { %v3565_v34 = vmul.f32 %v3545_v5, %v3545_v5  ;;  %v3554_v9 = vpop.xlane.xlu0 %3553 }
 0xc83   :  { %v3561_v24 = vmul.f32 0.03125, %v3554_v9  ;;  %v3556_v23 = vpop.xlane.xlu1 %3555 }
 0xc84   :  { %v3562_v32 = vmul.f32 0.03125, %v3556_v23  ;;  %v8545_v23 = vld [vmem:[%s14641_s5 + $0x158] sm:$0xff] }
 0xc85   :  { %v3569_v48 = vsub.f32 %v3561_v24, %v3565_v34  ;;  %v8544_v24 = vld [vmem:[%s14641_s5 + $0x150] sm:$0xff] }
 0xc86   :  { %v3570_v13 = vsub.f32 %v3562_v32, %v3566_v16  ;;  %v3542_v0 = vpop.xlane.xlu0 %3541 }
 0xc87   :  { %v3573_v60 = vmax.f32 %v3569_v48, 0.0  ;;  %v12602_v43 = vmul.f32 0.03125, %v3542_v0  ;;  %v3544_v18 = vpop.xlane.xlu1 %3543  ;;  %v8548_v0 = vld [vmem:[%s14641_s5 + $0x170] sm:$0xff] }
 0xc88   :  { %v3574_v51 = vmax.f32 %v3570_v13, 0.0  ;;  %v3548_v10 = vmul.f32 0.03125, %v3544_v18  ;;  %v8470_v18 = vld [vmem:[%s14647_s9 + $0x120] sm:$0xff] }
 0xc89   :  { %v3581_v3 = vadd.f32 1e-05, %v3573_v60  ;;  %v3567_v61 = vmul.f32 %v12602_v43, %v12602_v43  ;;  %v8549_v60 = vld [vmem:[%s14641_s5 + $0x178] sm:$0xff]  ;;  %9491 = vmatprep.mubr.msk.f32.mxu0 %vm2987_vm10, %v8470_v18  ;;  %v8478_v18 = vld [vmem:[%s14647_s9 + $0x160] sm:$0xff] }
 0xc8a   :  { %v3582_v40 = vadd.f32 1e-05, %v3574_v51  ;;  %v3558_v55 = vpop.xlane.xlu0 %3557  ;;  %v3568_v63 = vmul.f32 %v3548_v10, %v3548_v10 }
 0xc8b   :  { %10105 = vrsqrt.f32 %v3581_v3  ;;  %v3563_v37 = vmul.f32 0.03125, %v3558_v55  ;;  %v3560_v20 = vpop.xlane.xlu1 %3559 }
 0xc8c   :  { %10107 = vrsqrt.f32 %v3582_v40  ;;  %v3564_v14 = vmul.f32 0.03125, %v3560_v20  ;;  %v3577_v40 = vsub.f32 %v12570_v49, %v3545_v5  ;;  %v3580_v5 = vsub.f32 %v12584_v12, %v3548_v10  ;;  %v8472_v12 = vld [vmem:[%s14647_s9 + $0x130] sm:$0xff]  ;;  %v8474_v10 = vld [vmem:[%s14647_s9 + $0x140] sm:$0xff] }
 0xc8d   :  { %v3571_v26 = vsub.f32 %v3563_v37, %v3567_v61  ;;  %v3578_v61 = vsub.f32 %v12567_v22, %v12598_v15 }
 0xc8e   :  { %v3572_v38 = vsub.f32 %v3564_v14, %v3568_v63 }
 0xc8f   :  { %v3575_v62 = vmax.f32 %v3571_v26, 0.0  ;;  %v3620_v3 = vpop.permute.xlu1 %3619 }
 0xc90   :  { %v3576_v17 = vmax.f32 %v3572_v38, 0.0 }
 0xc91   :  { %v3583_v35 = vadd.f32 1e-05, %v3575_v62 }
 0xc92   :  { %v3584_v56 = vadd.f32 1e-05, %v3576_v17  ;;  %v3625_v51 = vpop.permute.xlu0 %3624 }
 0xc93   :  { %10109 = vrsqrt.f32 %v3583_v35 }
 0xc94   :  { %10111 = vrsqrt.f32 %v3584_v56 }
 0xc95   :  { %v10106_v53 = vpop.eup %10105 }
 0xc96   :  { %v10108_v2 = vpop.eup %10107  ;;  %v3589_v34 = vmul.f32 %v10106_v53, %v8542_v50  ;;  %v3579_v50 = vsub.f32 %v12582_v39, %v12602_v43  ;;  %v8471_v39 = vld [vmem:[%s14647_s9 + $0x128] sm:$0xff]  ;;  %v8473_v43 = vld [vmem:[%s14647_s9 + $0x138] sm:$0xff] }
 0xc97   :  { %v3590_v9 = vmul.f32 %v10108_v2, %v8543_v8 }
 0xc98   :  { %3595 = vperm.xlu0 %10091, %v3589_v34  }
 0xc99   :  { %3600 = vperm.xlu1 %10092, %v3590_v9  }
 0xc9d   :  { %v10110_v16 = vpop.eup %10109 }
 0xc9e   :  { %v10112_v32 = vpop.eup %10111  ;;  %v3591_v48 = vmul.f32 %v10110_v16, %v8544_v24 }
 0xc9f   :  { %v3592_v13 = vmul.f32 %v10112_v32, %v8545_v23 }
 0xca0   :  { %3605 = vperm.xlu1 %10092, %v3591_v48  }
 0xca1   :  { %3610 = vperm.xlu0 %10091, %v3592_v13   ;;  %v8475_v13 = vld [vmem:[%s14647_s9 + $0x148] sm:$0xff] }
 0xca4   :  { %3629 = vperm.xlu1 %10092, %v8548_v0   ;;  %v8476_v0 = vld [vmem:[%s14647_s9 + $0x150] sm:$0xff] }
 0xca5   :  { %3634 = vperm.xlu0 %10091, %v8549_v60   ;;  %v8477_v60 = vld [vmem:[%s14647_s9 + $0x158] sm:$0xff] }
 0xd17   :  { %v3596_v55 = vpop.permute.xlu0 %3595 }
 0xd18   :  { %v3613_v37 = vmul.f32 %v3596_v55, %v3577_v40  ;;  %v3601_v20 = vpop.permute.xlu1 %3600  ;;  %v8481_v40 = vld [vmem:[%s14647_s9 + $0x178] sm:$0xff]  ;;  %v8482_v55 = vld [vmem:[%s14647_s9 + $0x180] sm:$0xff] }
 0xd19   :  { %v3614_v63 = vmul.f32 %v3601_v20, %v3578_v61  ;;  %v8483_v61 = vld [vmem:[%s14647_s9 + $0x188] sm:$0xff]  ;;  %v8485_v20 = vld [vmem:[%s14647_s9 + $0x198] sm:$0xff] }
 0xd1a   :  { %v3637_v14 = vadd.f32 %v3620_v3, %v3613_v37  ;;  %v8480_v3 = vld [vmem:[%s14647_s9 + $0x170] sm:$0xff] }
 0xd1b   :  { %v3638_v26 = vadd.f32 %v3625_v51, %v3614_v63  ;;  %v8479_v51 = vld [vmem:[%s14647_s9 + $0x168] sm:$0xff]  ;;  %v8484_v37 = vld [vmem:[%s14647_s9 + $0x190] sm:$0xff]  ;;  %v8486_v63 = vld [vmem:[%s14647_s9 + $0x1a0] sm:$0xff] }
 0xd1c   :  { %v3641_v38 = vmul.f32 %v3637_v14, %v12196_v21  ;;  %v8487_v14 = vld [vmem:[%s14647_s9 + $0x1a8] sm:$0xff] }
 0xd1d   :  { %v3642_v62 = vmul.f32 %v3638_v26, %v12196_v21  ;;  %v8488_v26 = vld [vmem:[%s14647_s9 + $0x1b0] sm:$0xff] }
 0xd1e   :  { %v3645_v17 = vmax.f32 %v3641_v38, 0.0  ;;  %v8489_v38 = vld [vmem:[%s14647_s9 + $0x1b8] sm:$0xff] }
 0xd1f   :  { %v3606_v35 = vpop.permute.xlu1 %3605  ;;  %v3646_v56 = vmax.f32 %v3642_v62, 0.0  ;;  %v8490_v62 = vld [vmem:[%s14647_s9 + $0x1c0] sm:$0xff] }
 0xd20   :  { %v3611_v49 = vpop.permute.xlu0 %3610  ;;  %v3615_v22 = vmul.f32 %v3606_v35, %v3579_v50  ;;  %v8492_v35 = vld [vmem:[%s14647_s9 + $0x1d0] sm:$0xff]  ;;  %v8494_v50 = vld [vmem:[%s14647_s9 + $0x1e0] sm:$0xff] }
 0xd21   :  { %v9956_v8 = vpack.c.bf16 %v3646_v56, %v3645_v17  ;;  %v3616_v15 = vmul.f32 %v3611_v49, %v3580_v5  ;;  %v8491_v17 = vld [vmem:[%s14647_s9 + $0x1c8] sm:$0xff]  ;;  %v8493_v56 = vld [vmem:[%s14647_s9 + $0x1d8] sm:$0xff]  ;;  %v8496_v5 = vld [vmem:[%s14647_s9 + $0x1f0] sm:$0xff] }
 0xd22   :  { %v8495_v49 = vld [vmem:[%s14647_s9 + $0x1e8] sm:$0xff] }
 0xd23   :  { %9957 = vmatprep.subr.bf16.mxu0 %v9956_v8  ;;  %v3630_v53 = vpop.permute.xlu1 %3629 }
 0xd24   :  { %v3639_v2 = vadd.f32 %v3630_v53, %v3615_v22  ;;  %v3635_v34 = vpop.permute.xlu0 %3634  ;;  %9959 = vmatpush3.bf16.msra.mxu0 %v9956_v8  ;;  %v8497_v8 = vld [vmem:[%s14647_s9 + $0x1f8] sm:$0xff]  ;;  %v8498_v22 = vld [vmem:[%s14647_s9 + $0x200] sm:$0xff]  ;;  %v8500_v53 = vld [vmem:[%s14647_s9 + $0x210] sm:$0xff] }
 0xd25   :  { %v3640_v9 = vadd.f32 %v3635_v34, %v3616_v15  ;;  %v8499_v15 = vld [vmem:[%s14647_s9 + $0x208] sm:$0xff]  ;;  %v8502_v34 = vld [vmem:[%s14647_s9 + $0x220] sm:$0xff] }
 0xd26   :  { %v3643_v24 = vmul.f32 %v3639_v2, %v12196_v21  ;;  %v8501_v2 = vld [vmem:[%s14647_s9 + $0x218] sm:$0xff] }
 0xd27   :  { %v3644_v23 = vmul.f32 %v3640_v9, %v12196_v21  ;;  %v8503_v9 = vld [vmem:[%s14647_s9 + $0x228] sm:$0xff] }
 0xd28   :  { %v3647_v16 = vmax.f32 %v3643_v24, 0.0  ;;  %v8504_v24 = vld [vmem:[%s14647_s9 + $0x230] sm:$0xff] }
 0xd29   :  { %v3648_v32 = vmax.f32 %v3644_v23, 0.0  ;;  %v8505_v23 = vld [vmem:[%s14647_s9 + $0x238] sm:$0xff] }
 0xd2b   :  { %v9960_v48 = vpack.c.bf16 %v3648_v32, %v3647_v16 }
 0xd2d   :  { %9961 = vmatprep.subr.bf16.mxu0 %v9960_v48 }
 0xd2e   :  { %9963 = vmatpush3.bf16.msra.mxu0 %v9960_v48 }
 0xd31   :  { %9492 = vmatmul.mubr.msk.f32.vlgmr.msra.gmra.mrb[108].mxu0 %vm2987_vm10, %v8471_v39 }
 0xd32   :  { %9494 = vmatprep.mubr.msk.f32.mxu0 %vm2987_vm10, %v8472_v12 }
 0xd35   :  { %9495 = vmatmul.mubr.msk.f32.gmra.mrb[110].mxu0 %vm2987_vm10, %v8473_v43 }
 0xd36   :  { %9497 = vmatprep.mubr.msk.f32.mxu0 %vm2987_vm10, %v8474_v10 }
 0xd39   :  { %9498 = vmatmul.mubr.msk.f32.gmra.mrb[112].mxu0 %vm2987_vm10, %v8475_v13 }
 0xd3a   :  { %9500 = vmatprep.mubr.msk.f32.mxu0 %vm2987_vm10, %v8476_v0 }
 0xd3d   :  { %9501 = vmatmul.mubr.msk.f32.gmra.mrb[114].mxu0 %vm2987_vm10, %v8477_v60 }
 0xd3e   :  { %9503 = vmatprep.mubr.msk.f32.mxu0 %vm2987_vm10, %v8478_v18 }
 0xd41   :  { %9504 = vmatmul.mubr.msk.f32.gmra.mrb[116].mxu0 %vm2987_vm10, %v8479_v51 }
 0xd42   :  { %9506 = vmatprep.mubr.msk.f32.mxu0 %vm2987_vm10, %v8480_v3 }
 0xd45   :  { %9507 = vmatmul.mubr.msk.f32.gmra.mrb[118].mxu0 %vm2987_vm10, %v8481_v40 }
 0xd46   :  { %9509 = vmatprep.mubr.msk.f32.mxu0 %vm2987_vm10, %v8482_v55 }
 0xd49   :  { %9510 = vmatmul.mubr.msk.f32.gmra.mrb[120].mxu0 %vm2987_vm10, %v8483_v61 }
 0xd4a   :  { %9512 = vmatprep.mubr.msk.f32.mxu0 %vm2987_vm10, %v8484_v37 }
 0xd4d   :  { %9513 = vmatmul.mubr.msk.f32.gmra.mrb[122].mxu0 %vm2987_vm10, %v8485_v20 }
 0xd4e   :  { %9515 = vmatprep.mubr.msk.f32.mxu0 %vm2987_vm10, %v8486_v63 }
 0xd51   :  { %9516 = vmatmul.mubr.msk.f32.gmra.mrb[124].mxu0 %vm2987_vm10, %v8487_v14 }
 0xd52   :  { %9518 = vmatprep.mubr.msk.f32.mxu0 %vm2987_vm10, %v8488_v26 }
 0xd55   :  { %9519 = vmatmul.mubr.msk.f32.gmra.mrb[126].mxu0 %vm2987_vm10, %v8489_v38 }
 0xd56   :  { %9521 = vmatprep.mubr.msk.f32.mxu0 %vm2987_vm10, %v8490_v62 }
 0xd59   :  { %9522 = vmatmul.mubr.msk.f32.gmra.mrb[128].mxu0 %vm2987_vm10, %v8491_v17 }
 0xd5a   :  { %9524 = vmatprep.mubr.msk.f32.mxu0 %vm2987_vm10, %v8492_v35 }
 0xd5d   :  { %9525 = vmatmul.mubr.msk.f32.gmra.mrb[130].mxu0 %vm2987_vm10, %v8493_v56 }
 0xd5e   :  { %9527 = vmatprep.mubr.msk.f32.mxu0 %vm2987_vm10, %v8494_v50 }
 0xd61   :  { %9528 = vmatmul.mubr.msk.f32.gmra.mrb[132].mxu0 %vm2987_vm10, %v8495_v49 }
 0xd62   :  { %9530 = vmatprep.mubr.msk.f32.mxu0 %vm2987_vm10, %v8496_v5 }
 0xd65   :  { %9531 = vmatmul.mubr.msk.f32.gmra.mrb[134].mxu0 %vm2987_vm10, %v8497_v8 }
 0xd66   :  { %9533 = vmatprep.mubr.msk.f32.mxu0 %vm2987_vm10, %v8498_v22 }
 0xd69   :  { %9534 = vmatmul.mubr.msk.f32.gmra.mrb[136].mxu0 %vm2987_vm10, %v8499_v15 }
 0xd6a   :  { %9536 = vmatprep.mubr.msk.f32.mxu0 %vm2987_vm10, %v8500_v53 }
 0xd6d   :  { %9537 = vmatmul.mubr.msk.f32.gmra.mrb[138].mxu0 %vm2987_vm10, %v8501_v2 }
 0xd6e   :  { %9539 = vmatprep.mubr.msk.f32.mxu0 %vm2987_vm10, %v8502_v34 }
 0xd71   :  { %9540 = vmatmul.mubr.msk.f32.gmra.mrb[140].mxu0 %vm2987_vm10, %v8503_v9 }
 0xd72   :  { %9542 = vmatprep.mubr.msk.f32.mxu0 %vm2987_vm10, %v8504_v24 }
 0xd75   :  { %9543 = vmatmul.mubr.msk.f32.gmra.mrb[142].mxu0 %vm2987_vm10, %v8505_v23 }
 0xe04   :  { %v9493_v16 = vpop.f32.mrb[108].mxu0 }
 0xe05   :  { %4004 = vrot.lane.b32.xlu0 %v9493_v16, %s10168_s3  ;;  %v3823_v32 = vpop.f32.mrb[109].mxu0 }
 0xe06   :  { %4002 = vrot.lane.b32.xlu1 %v3823_v32, %s10168_s3 }
 0xe08   :  { %v9496_v48 = vpop.f32.mrb[110].mxu0 }
 0xe09   :  { %4008 = vrot.lane.b32.xlu0 %v9496_v48, %s10168_s3  ;;  %v3833_v39 = vpop.f32.mrb[111].mxu0 }
 0xe0a   :  { %4006 = vrot.lane.b32.xlu1 %v3833_v39, %s10168_s3 }
 0xe0c   :  { %v9499_v12 = vpop.f32.mrb[112].mxu0 }
 0xe0d   :  { %4016 = vrot.lane.b32.xlu0 %v9499_v12, %s10169_s20  ;;  %v3843_v43 = vpop.f32.mrb[113].mxu0 }
 0xe0e   :  { %4014 = vrot.lane.b32.xlu1 %v3843_v43, %s10169_s20 }
 0xe10   :  { %v9502_v10 = vpop.f32.mrb[114].mxu0 }
 0xe11   :  { %4020 = vrot.lane.b32.xlu0 %v9502_v10, %s10169_s20  ;;  %v3853_v13 = vpop.f32.mrb[115].mxu0 }
 0xe12   :  { %4018 = vrot.lane.b32.xlu1 %v3853_v13, %s10169_s20 }
 0xe14   :  { %v9505_v0 = vpop.f32.mrb[116].mxu0 }
 0xe15   :  { %4032 = vrot.lane.b32.xlu0 %v9505_v0, %s10170_s21  ;;  %v3863_v60 = vpop.f32.mrb[117].mxu0 }
 0xe16   :  { %4030 = vrot.lane.b32.xlu1 %v3863_v60, %s10170_s21 }
 0xe18   :  { %v9508_v18 = vpop.f32.mrb[118].mxu0 }
 0xe19   :  { %4036 = vrot.lane.b32.xlu0 %v9508_v18, %s10170_s21  ;;  %v3873_v51 = vpop.f32.mrb[119].mxu0 }
 0xe1a   :  { %4034 = vrot.lane.b32.xlu1 %v3873_v51, %s10170_s21 }
 0xe1c   :  { %v9511_v3 = vpop.f32.mrb[120].mxu0 }
 0xe1d   :  { %4048 = vrot.lane.b32.xlu0 %v9511_v3, %s10163_s0  ;;  %v3883_v40 = vpop.f32.mrb[121].mxu0 }
 0xe1e   :  { %4046 = vrot.lane.b32.xlu1 %v3883_v40, %s10163_s0 }
 0xe20   :  { %v9514_v55 = vpop.f32.mrb[122].mxu0 }
 0xe21   :  { %4052 = vrot.lane.b32.xlu0 %v9514_v55, %s10163_s0  ;;  %v3893_v61 = vpop.f32.mrb[123].mxu0 }
 0xe22   :  { %4050 = vrot.lane.b32.xlu1 %v3893_v61, %s10163_s0 }
 0xe24   :  { %v12794_v37 = vpop.f32.mrb[124].mxu0 }
 0xe25   :  { %v12796_v20 = vpop.f32.mrb[125].mxu0 }
 0xe28   :  { %v12798_v63 = vpop.f32.mrb[126].mxu0 }
 0xe29   :  { %v12800_v14 = vpop.f32.mrb[127].mxu0 }
 0xe2c   :  { %v9523_v26 = vpop.f32.mrb[128].mxu0 }
 0xe2d   :  { %4072 = vrot.lane.b32.xlu0 %v9523_v26, %s10164_s17  ;;  %v3923_v38 = vpop.f32.mrb[129].mxu0 }
 0xe2e   :  { %4070 = vrot.lane.b32.xlu1 %v3923_v38, %s10164_s17 }
 0xe30   :  { %v9526_v62 = vpop.f32.mrb[130].mxu0 }
 0xe31   :  { %4076 = vrot.lane.b32.xlu0 %v9526_v62, %s10164_s17  ;;  %v3933_v17 = vpop.f32.mrb[131].mxu0 }
 0xe32   :  { %4074 = vrot.lane.b32.xlu1 %v3933_v17, %s10164_s17 }
 0xe34   :  { %v9529_v35 = vpop.f32.mrb[132].mxu0 }
 0xe35   :  { %4088 = vrot.lane.b32.xlu0 %v9529_v35, %s10171_s22  ;;  %v3943_v56 = vpop.f32.mrb[133].mxu0 }
 0xe36   :  { %4086 = vrot.lane.b32.xlu1 %v3943_v56, %s10171_s22 }
 0xe38   :  { %v9532_v50 = vpop.f32.mrb[134].mxu0 }
 0xe39   :  { %4092 = vrot.lane.b32.xlu0 %v9532_v50, %s10171_s22  ;;  %v3953_v49 = vpop.f32.mrb[135].mxu0 }
 0xe3a   :  { %4090 = vrot.lane.b32.xlu1 %v3953_v49, %s10171_s22 }
 0xe3c   :  { %v9535_v5 = vpop.f32.mrb[136].mxu0 }
 0xe3d   :  { %4104 = vrot.lane.b32.xlu0 %v9535_v5, %s10172_s23  ;;  %v3963_v8 = vpop.f32.mrb[137].mxu0 }
 0xe3e   :  { %4102 = vrot.lane.b32.xlu1 %v3963_v8, %s10172_s23 }
 0xe40   :  { %v9538_v22 = vpop.f32.mrb[138].mxu0 }
 0xe41   :  { %4108 = vrot.lane.b32.xlu0 %v9538_v22, %s10172_s23  ;;  %v3973_v15 = vpop.f32.mrb[139].mxu0 }
 0xe42   :  { %4106 = vrot.lane.b32.xlu1 %v3973_v15, %s10172_s23 }
 0xe44   :  { %v9541_v53 = vpop.f32.mrb[140].mxu0 }
 0xe45   :  { %4120 = vrot.lane.b32.xlu0 %v9541_v53, %s10173_s8  ;;  %v3983_v2 = vpop.f32.mrb[141].mxu0 }
 0xe46   :  { %4118 = vrot.lane.b32.xlu1 %v3983_v2, %s10173_s8 }
 0xe48   :  { %v9544_v34 = vpop.f32.mrb[142].mxu0 }
 0xe49   :  { %4124 = vrot.lane.b32.xlu0 %v9544_v34, %s10173_s8  ;;  %v3993_v9 = vpop.f32.mrb[143].mxu0 }
 0xe4a   :  { %4122 = vrot.lane.b32.xlu1 %v3993_v9, %s10173_s8 }
 0xe77   :  { %v4005_v24 = vpop.permute.xlu0 %4004 }
 0xe78   :  { %v4003_v23 = vpop.permute.xlu1 %4002  ;;  %v4011_v56 = vmul.f32 %v4005_v24, %v12490_v41 }
 0xe79   :  { %v4010_v5 = vmul.f32 %v4003_v23, %v12490_v41  ;;  %v4063_v23 = vmul.f32 %v12794_v37, %v12514_v36 }
 0xe7b   :  { %v4009_v16 = vpop.permute.xlu0 %4008 }
 0xe7c   :  { %v4007_v32 = vpop.permute.xlu1 %4006 }
 0xe7f   :  { %v4017_v48 = vpop.permute.xlu0 %4016 }
 0xe80   :  { %v4015_v39 = vpop.permute.xlu1 %4014  ;;  %v4023_v62 = vmul.f32 %v4017_v48, %v12482_v4 }
 0xe81   :  { %v4022_v17 = vmul.f32 %v4015_v39, %v12482_v4 }
 0xe82   :  { %v4027_v22 = vadd.f32 %v4023_v62, %v4011_v56 }
 0xe83   :  { %v4021_v12 = vpop.permute.xlu0 %4020  ;;  %v4026_v53 = vadd.f32 %v4022_v17, %v4010_v5  ;;  %v4062_v17 = vmul.f32 %v12796_v20, %v12514_v36 }
 0xe84   :  { %v4019_v43 = vpop.permute.xlu1 %4018 }
 0xe85   :  { %v4024_v27 = vmul.f32 %v4019_v43, %v12482_v4  ;;  %v4013_v43 = vmul.f32 %v4009_v16, %v12490_v41 }
 0xe87   :  { %v4033_v10 = vpop.permute.xlu0 %4032 }
 0xe88   :  { %v4031_v13 = vpop.permute.xlu1 %4030  ;;  %v4039_v50 = vmul.f32 %v4033_v10, %v12493_v25  ;;  %v4025_v10 = vmul.f32 %v4021_v12, %v12482_v4 }
 0xe89   :  { %v4038_v8 = vmul.f32 %v4031_v13, %v12493_v25  ;;  %v4012_v13 = vmul.f32 %v4007_v32, %v12490_v41 }
 0xe8a   :  { %v4043_v9 = vadd.f32 %v4039_v50, %v4027_v22 }
 0xe8b   :  { %v4037_v0 = vpop.permute.xlu0 %4036  ;;  %v4042_v39 = vadd.f32 %v4038_v8, %v4026_v53  ;;  %v4028_v50 = vadd.f32 %v4024_v27, %v4012_v13  ;;  %v4029_v8 = vadd.f32 %v4025_v10, %v4013_v43 }
 0xe8c   :  { %v4035_v60 = vpop.permute.xlu1 %4034  ;;  %v4041_v56 = vmul.f32 %v4037_v0, %v12493_v25 }
 0xe8f   :  { %v4049_v18 = vpop.permute.xlu0 %4048 }
 0xe90   :  { %v4047_v51 = vpop.permute.xlu1 %4046  ;;  %v4055_v15 = vmul.f32 %v4049_v18, %v12499_v29  ;;  %v4040_v18 = vmul.f32 %v4035_v60, %v12493_v25 }
 0xe91   :  { %v4054_v2 = vmul.f32 %v4047_v51, %v12499_v29 }
 0xe92   :  { %v4059_v24 = vadd.f32 %v4055_v15, %v4043_v9  ;;  %v4044_v20 = vadd.f32 %v4040_v18, %v4028_v50 }
 0xe93   :  { %v4053_v3 = vpop.permute.xlu0 %4052  ;;  %v4058_v28 = vadd.f32 %v4054_v2, %v4042_v39  ;;  %v4045_v2 = vadd.f32 %v4041_v56, %v4029_v8 }
 0xe94   :  { %v4051_v40 = vpop.permute.xlu1 %4050  ;;  %v4067_v37 = vadd.f32 %v4063_v23, %v4059_v24  ;;  %v4057_v60 = vmul.f32 %v4053_v3, %v12499_v29 }
 0xe95   :  { %v4056_v5 = vmul.f32 %v4051_v40, %v12499_v29 }
 0xe96   :  { %v4061_v39 = vadd.f32 %v4057_v60, %v4045_v2  ;;  %v8590_v2 = vld [vmem:[%s14641_s5 + $0x1a0] sm:$0xff] }
 0xe97   :  { %v4060_v40 = vadd.f32 %v4056_v5, %v4044_v20 }
 0xe9f   :  { %v4073_v55 = vpop.permute.xlu0 %4072 }
 0xea0   :  { %v4071_v61 = vpop.permute.xlu1 %4070  ;;  %v4079_v51 = vmul.f32 %v4073_v55, %v12521_v46  ;;  %v4066_v55 = vadd.f32 %v4062_v17, %v4058_v28  ;;  %v4064_v28 = vmul.f32 %v12800_v14, %v12514_v36 }
 0xea1   :  { %v4078_v12 = vmul.f32 %v4071_v61, %v12521_v46 }
 0xea2   :  { %v4083_v53 = vadd.f32 %v4079_v51, %v4067_v37 }
 0xea3   :  { %v4077_v26 = vpop.permute.xlu0 %4076  ;;  %v4082_v61 = vadd.f32 %v4078_v12, %v4066_v55 }
 0xea4   :  { %v4075_v38 = vpop.permute.xlu1 %4074  ;;  %v4081_v13 = vmul.f32 %v4077_v26, %v12521_v46 }
 0xea5   :  { %v4080_v3 = vmul.f32 %v4075_v38, %v12521_v46 }
 0xea7   :  { %v4089_v35 = vpop.permute.xlu0 %4088 }
 0xea8   :  { %v4087_v49 = vpop.permute.xlu1 %4086  ;;  %v4095_v32 = vmul.f32 %v4089_v35, %v12528_v33 }
 0xea9   :  { %v4094_v22 = vmul.f32 %v4087_v49, %v12528_v33 }
 0xeaa   :  { %v4099_v9 = vadd.f32 %v4095_v32, %v4083_v53 }
 0xeab   :  { %v4093_v34 = vpop.permute.xlu0 %4092  ;;  %v4098_v35 = vadd.f32 %v4094_v22, %v4082_v61  ;;  %v8591_v61 = vld [vmem:[%s14641_s5 + $0x1a8] sm:$0xff] }
 0xeac   :  { %v4091_v48 = vpop.permute.xlu1 %4090  ;;  %v4097_v38 = vmul.f32 %v4093_v34, %v12528_v33 }
 0xead   :  { %v4096_v17 = vmul.f32 %v4091_v48, %v12528_v33 }
 0xeaf   :  { %v4105_v11 = vpop.permute.xlu0 %4104 }
 0xeb0   :  { %v4103_v62 = vpop.permute.xlu1 %4102  ;;  %v4111_v16 = vmul.f32 %v4105_v11, %v12537_v30  ;;  %v4065_v11 = vmul.f32 %v12798_v63, %v12514_v36 }
 0xeb1   :  { %v4110_v27 = vmul.f32 %v4103_v62, %v12537_v30  ;;  %v4068_v62 = vadd.f32 %v4064_v28, %v4060_v40 }
 0xeb2   :  { %v4115_v49 = vadd.f32 %v4111_v16, %v4099_v9  ;;  %v4069_v14 = vadd.f32 %v4065_v11, %v4061_v39 }
 0xeb3   :  { %v4109_v15 = vpop.permute.xlu0 %4108  ;;  %v4114_v18 = vadd.f32 %v4110_v27, %v4098_v35  ;;  %v4084_v12 = vadd.f32 %v4080_v3, %v4068_v62 }
 0xeb4   :  { %v4107_v0 = vpop.permute.xlu1 %4106  ;;  %v4085_v26 = vadd.f32 %v4081_v13, %v4069_v14  ;;  %v4113_v37 = vmul.f32 %v4109_v15, %v12537_v30 }
 0xeb5   :  { %v4112_v50 = vmul.f32 %v4107_v0, %v12537_v30  ;;  %v4100_v32 = vadd.f32 %v4096_v17, %v4084_v12 }
 0xeb6   :  { %v4101_v8 = vadd.f32 %v4097_v38, %v4085_v26 }
 0xeb7   :  { %v4121_v24 = vpop.permute.xlu0 %4120  ;;  %v4116_v22 = vadd.f32 %v4112_v50, %v4100_v32 }
 0xeb8   :  { %v4127_v10 = vmul.f32 %v4121_v24, %v12553_v31  ;;  %v4119_v23 = vpop.permute.xlu1 %4118  ;;  %v4117_v20 = vadd.f32 %v4113_v37, %v4101_v8 }
 0xeb9   :  { %v4126_v51 = vmul.f32 %v4119_v23, %v12553_v31 }
 0xeba   :  { %v12853_v43 = vadd.f32 %v4127_v10, %v4115_v49 }
 0xebb   :  { %v12856_v56 = vadd.f32 %v4126_v51, %v4114_v18  ;;  %v4125_v5 = vpop.permute.xlu0 %4124 }
 0xebc   :  { %4146 = vadd.xlane.f32.xlu0 %v12853_v43  ;;  %v4123_v63 = vpop.permute.xlu1 %4122  ;;  %v4129_v60 = vmul.f32 %v4125_v5, %v12553_v31  ;;  %v4157_v55 = vmul.f32 %v12853_v43, %v12853_v43 }
 0xebd   :  { %4144 = vadd.xlane.f32.xlu1 %v12856_v56  ;;  %v4156_v48 = vmul.f32 %v12856_v56, %v12856_v56  ;;  %v4128_v34 = vmul.f32 %v4123_v63, %v12553_v31 }
 0xebe   :  { %v12870_v15 = vadd.f32 %v4129_v60, %v4117_v20  ;;  %v8586_v20 = vld [vmem:[%s14641_s5 + $0x180] sm:$0xff] }
 0xebf   :  { %v12868_v53 = vadd.f32 %v4128_v34, %v4116_v22 }
 0xec0   :  { %4160 = vadd.xlane.f32.xlu0 %v4156_v48  ;;  %v4159_v0 = vmul.f32 %v12870_v15, %v12870_v15 }
 0xec1   :  { %4162 = vadd.xlane.f32.xlu1 %v4157_v55  ;;  %v4158_v16 = vmul.f32 %v12868_v53, %v12868_v53 }
 0xec4   :  { %4148 = vadd.xlane.f32.xlu0 %v12868_v53 }
 0xec5   :  { %4150 = vadd.xlane.f32.xlu1 %v12870_v15 }
 0xec8   :  { %4164 = vadd.xlane.f32.xlu0 %v4158_v16  ;;  %v8587_v16 = vld [vmem:[%s14641_s5 + $0x188] sm:$0xff] }
 0xec9   :  { %4166 = vadd.xlane.f32.xlu1 %v4159_v0 }
 0xeda   :  { %4226 = vperm.xlu1 %10092, %v8590_v2  }
 0xede   :  { %4231 = vperm.xlu0 %10091, %v8591_v61  }
 0xf49   :  { %v4147_v27 = vpop.xlane.xlu0 %4146 }
 0xf4a   :  { %v4145_v40 = vpop.xlane.xlu1 %4144  ;;  %v12884_v9 = vmul.f32 0.03125, %v4147_v27 }
 0xf4b   :  { %v4152_v39 = vmul.f32 0.03125, %v4145_v40  ;;  %v8588_v40 = vld [vmem:[%s14641_s5 + $0x190] sm:$0xff] }
 0xf4c   :  { %v4173_v49 = vmul.f32 %v12884_v9, %v12884_v9 }
 0xf4d   :  { %v4172_v35 = vmul.f32 %v4152_v39, %v4152_v39  ;;  %v4161_v24 = vpop.xlane.xlu0 %4160 }
 0xf4e   :  { %v4168_v28 = vmul.f32 0.03125, %v4161_v24  ;;  %v4163_v3 = vpop.xlane.xlu1 %4162 }
 0xf4f   :  { %v4169_v10 = vmul.f32 0.03125, %v4163_v3 }
 0xf50   :  { %v4176_v23 = vsub.f32 %v4168_v28, %v4172_v35  ;;  %v8589_v35 = vld [vmem:[%s14641_s5 + $0x198] sm:$0xff] }
 0xf51   :  { %v4177_v11 = vsub.f32 %v4169_v10, %v4173_v49  ;;  %v4149_v13 = vpop.xlane.xlu0 %4148  ;;  %v8592_v10 = vld [vmem:[%s14641_s5 + $0x1b0] sm:$0xff] }
 0xf52   :  { %v4180_v18 = vmax.f32 %v4176_v23, 0.0  ;;  %v12888_v51 = vmul.f32 0.03125, %v4149_v13  ;;  %v4151_v62 = vpop.xlane.xlu1 %4150  ;;  %v8593_v23 = vld [vmem:[%s14641_s5 + $0x1b8] sm:$0xff] }
 0xf53   :  { %v4181_v17 = vmax.f32 %v4177_v11, 0.0  ;;  %v12890_v14 = vmul.f32 0.03125, %v4151_v62  ;;  %v14788_v11 = vmov 0.0|0.0   ;;  %v4184_v62 = vsub.f32 %v12856_v56, %v4152_v39 }
 0xf54   :  { %v4188_v38 = vadd.f32 1e-05, %v4180_v18  ;;  %v4174_v5 = vmul.f32 %v12888_v51, %v12888_v51  ;;  %9964 = vmatprep.subr.bf16.mxu1 %v14788_v11  ;;  %v4186_v56 = vsub.f32 %v12868_v53, %v12888_v51 }
 0xf55   :  { %v4189_v12 = vadd.f32 1e-05, %v4181_v17  ;;  %v4165_v50 = vpop.xlane.xlu0 %4164  ;;  %v4175_v37 = vmul.f32 %v12890_v14, %v12890_v14 }
 0xf56   :  { %10113 = vrsqrt.f32 %v4188_v38  ;;  %v4170_v63 = vmul.f32 0.03125, %v4165_v50  ;;  %v4167_v26 = vpop.xlane.xlu1 %4166  ;;  %v4185_v38 = vsub.f32 %v12853_v43, %v12884_v9  ;;  %v4187_v9 = vsub.f32 %v12870_v15, %v12890_v14 }
 0xf57   :  { %10115 = vrsqrt.f32 %v4189_v12  ;;  %v4171_v48 = vmul.f32 0.03125, %v4167_v26 }
 0xf58   :  { %v4178_v32 = vsub.f32 %v4170_v63, %v4174_v5 }
 0xf59   :  { %v4179_v34 = vsub.f32 %v4171_v48, %v4175_v37 }
 0xf5a   :  { %v4182_v8 = vmax.f32 %v4178_v32, 0.0  ;;  %v4227_v18 = vpop.permute.xlu1 %4226 }
 0xf5b   :  { %v4183_v60 = vmax.f32 %v4179_v34, 0.0 }
 0xf5c   :  { %v4190_v55 = vadd.f32 1e-05, %v4182_v8 }
 0xf5d   :  { %v4191_v22 = vadd.f32 1e-05, %v4183_v60  ;;  %v4232_v13 = vpop.permute.xlu0 %4231 }
 0xf5e   :  { %10117 = vrsqrt.f32 %v4190_v55 }
 0xf5f   :  { %10119 = vrsqrt.f32 %v4191_v22 }
 0xf60   :  { %v10114_v0 = vpop.eup %10113 }
 0xf61   :  { %v10116_v2 = vpop.eup %10115  ;;  %v4196_v61 = vmul.f32 %v10114_v0, %v8586_v20 }
 0xf62   :  { %v4197_v27 = vmul.f32 %v10116_v2, %v8587_v16 }
 0xf63   :  { %4202 = vperm.xlu0 %10091, %v4196_v61  }
 0xf64   :  { %4207 = vperm.xlu1 %10092, %v4197_v27  }
 0xf68   :  { %v10118_v24 = vpop.eup %10117 }
 0xf69   :  { %v10120_v28 = vpop.eup %10119  ;;  %v4198_v3 = vmul.f32 %v10118_v24, %v8588_v40 }
 0xf6a   :  { %v4199_v49 = vmul.f32 %v10120_v28, %v8589_v35 }
 0xf6b   :  { %4212 = vperm.xlu1 %10092, %v4198_v3   ;;  %v4264_v3 = vld [vmem:[%s14648_s10] sm:$0xff] }
 0xf6c   :  { %4217 = vperm.xlu0 %10091, %v4199_v49   ;;  %v4265_v49 = vld [vmem:[%s14648_s10 + $0x8] sm:$0xff] }
 0xf6f   :  { %4236 = vperm.xlu1 %10092, %v8592_v10   ;;  %v4268_v10 = vld [vmem:[%s14648_s10 + $0x20] sm:$0xff] }
 0xf70   :  { %4241 = vperm.xlu0 %10091, %v8593_v23   ;;  %v4269_v23 = vld [vmem:[%s14648_s10 + $0x28] sm:$0xff] }
 0xfe2   :  { %v4203_v17 = vpop.permute.xlu0 %4202 }
 0xfe3   :  { %v4220_v12 = vmul.f32 %v4203_v17, %v4184_v62  ;;  %v4208_v50 = vpop.permute.xlu1 %4207  ;;  %v4272_v62 = vld [vmem:[%s14648_s10 + $0x40] sm:$0xff] }
 0xfe4   :  { %v4221_v5 = vmul.f32 %v4208_v50, %v4185_v38  ;;  %v4452_v17 = vld [vmem:[%s14649_s11] sm:$0xff] }
 0xfe5   :  { %v4244_v63 = vadd.f32 %v4227_v18, %v4220_v12  ;;  %v4271_v18 = vld [vmem:[%s14648_s10 + $0x38] sm:$0xff]  ;;  %9582 = vmatprep.mubr.msk.f32.mxu0 %vm145_vm0, %v4452_v17 }
 0xfe6   :  { %v4245_v26 = vadd.f32 %v4232_v13, %v4221_v5  ;;  %v4270_v13 = vld [vmem:[%s14648_s10 + $0x30] sm:$0xff] }
 0xfe7   :  { %v4248_v37 = vmul.f32 %v4244_v63, %v12196_v21 }
 0xfe8   :  { %v4249_v48 = vmul.f32 %v4245_v26, %v12196_v21 }
 0xfe9   :  { %v4252_v32 = vadd.f32 %v4248_v37, %v12271_v44 }
 0xfea   :  { %v4253_v34 = vadd.f32 %v4249_v48, %v12274_v6  ;;  %v4213_v8 = vpop.permute.xlu1 %4212 }
 0xfeb   :  { %v4256_v60 = vmax.f32 %v4252_v32, 0.0  ;;  %v4218_v39 = vpop.permute.xlu0 %4217  ;;  %v4222_v55 = vmul.f32 %v4213_v8, %v4186_v56  ;;  %v8603_v32 = vld [vmem:[%s14641_s5 + $0x1c0] sm:$0xff] }
 0xfec   :  { %v4257_v43 = vmax.f32 %v4253_v34, 0.0  ;;  %v4223_v20 = vmul.f32 %v4218_v39, %v4187_v9 }
 0xfed   :  { %v4260_v22 = vadd.f32 %v4256_v60, %v12271_v44 }
 0xfee   :  { %v4237_v16 = vpop.permute.xlu1 %4236  ;;  %v4261_v0 = vadd.f32 %v4257_v43, %v12274_v6 }
 0xfef   :  { %v4246_v2 = vadd.f32 %v4237_v16, %v4222_v55  ;;  %v4242_v61 = vpop.permute.xlu0 %4241  ;;  %v4462_v16 = vmul.f32 %v4452_v17, %v4452_v17 }
 0xff0   :  { %v4247_v27 = vadd.f32 %v4242_v61, %v4223_v20  ;;  %v9965_v40 = vpack.c.bf16 %v4261_v0, %v4260_v22 }
 0xff1   :  { %v4250_v35 = vmul.f32 %v4246_v2, %v12196_v21  ;;  %v4464_v0 = vsel %vm145_vm0, %v4462_v16, 0.0  ;;  %v4453_v2 = vld [vmem:[%s14649_s11 + $0x8] sm:$0xff] }
 0xff2   :  { %v4251_v53 = vmul.f32 %v4247_v27, %v12196_v21  ;;  %9966 = vmatpush3.bf16.msra.mxu1 %v9965_v40  ;;  %v4463_v61 = vmul.f32 %v4453_v2, %v4453_v2  ;;  %v8609_v40 = vld [vmem:[%s14641_s5 + $0x1e0] sm:$0xff] }
 0xff3   :  { %v4254_v51 = vadd.f32 %v4250_v35, %v12283_v1  ;;  %9967 = vmatprep.subr.bf16.mxu1 %v14788_v11  ;;  %v8617_v35 = vld [vmem:[%s14641_s5 + $0x200] sm:$0xff] }
 0xff4   :  { %v4255_v15 = vadd.f32 %v4251_v53, %v12286_v59  ;;  %v4467_v27 = vsel %vm145_vm0, %v4463_v61, 0.0  ;;  %v8610_v53 = vld [vmem:[%s14641_s5 + $0x1e8] sm:$0xff] }
 0xff5   :  { %v4258_v44 = vmax.f32 %v4254_v51, 0.0  ;;  %v8611_v51 = vld [vmem:[%s14641_s5 + $0x1f0] sm:$0xff] }
 0xff6   :  { %v4259_v14 = vmax.f32 %v4255_v15, 0.0  ;;  %v8618_v15 = vld [vmem:[%s14641_s5 + $0x208] sm:$0xff] }
 0xff7   :  { %v4262_v24 = vadd.f32 %v4258_v44, %v12283_v1  ;;  %v4266_v1 = vld [vmem:[%s14648_s10 + $0x10] sm:$0xff]  ;;  %v8621_v44 = vld [vmem:[%s14641_s5 + $0x220] sm:$0xff] }
 0xff8   :  { %v4263_v6 = vadd.f32 %v4259_v14, %v12286_v59  ;;  %v4267_v59 = vld [vmem:[%s14648_s10 + $0x18] sm:$0xff] }
 0xff9   :  { %v8612_v14 = vld [vmem:[%s14641_s5 + $0x1f8] sm:$0xff] }
 0xffa   :  { %v9968_v28 = vpack.c.bf16 %v4263_v6, %v4262_v24  ;;  %v8619_v24 = vld [vmem:[%s14641_s5 + $0x210] sm:$0xff]  ;;  %v8622_v6 = vld [vmem:[%s14641_s5 + $0x228] sm:$0xff] }
 0xffc   :  { %9969 = vmatpush3.bf16.msra.mxu1 %v9968_v28  ;;  %v8623_v28 = vld [vmem:[%s14641_s5 + $0x230] sm:$0xff] }
 0xfff   :  { %9554 = vmatmul.mubr.msk.f32.vlgmr.msra.gmra.mrb[124].mxu1 %vm2987_vm10, %v4264_v3  ;;  %v8620_v3 = vld [vmem:[%s14641_s5 + $0x218] sm:$0xff] }
0x1000   :  { %9556 = vmatprep.mubr.msk.f32.mxu1 %vm10159_vm1, %v14944_v42 }
0x1003   :  { %9557 = vmatmul.mubr.msk.f32.gmra.mrb[126].mxu1 %vm2987_vm10, %v4265_v49  ;;  %v8624_v49 = vld [vmem:[%s14641_s5 + $0x238] sm:$0xff] }
0x1004   :  { %9559 = vmatprep.mubr.msk.f32.mxu1 %vm10159_vm1, %v14944_v42 }
0x1007   :  { %9560 = vmatmul.mubr.msk.f32.gmra.mrb[128].mxu1 %vm2987_vm10, %v4266_v1 }
0x1008   :  { %9562 = vmatprep.mubr.msk.f32.mxu1 %vm10159_vm1, %v14944_v42 }
0x100b   :  { %9563 = vmatmul.mubr.msk.f32.gmra.mrb[130].mxu1 %vm2987_vm10, %v4267_v59 }
0x100c   :  { %9565 = vmatprep.mubr.msk.f32.mxu1 %vm10159_vm1, %v14944_v42 }
0x100f   :  { %9566 = vmatmul.mubr.msk.f32.gmra.mrb[132].mxu1 %vm2987_vm10, %v4268_v10 }
0x1010   :  { %9568 = vmatprep.mubr.msk.f32.mxu1 %vm10159_vm1, %v14944_v42 }
0x1013   :  { %9569 = vmatmul.mubr.msk.f32.gmra.mrb[134].mxu1 %vm2987_vm10, %v4269_v23 }
0x1014   :  { %9571 = vmatprep.mubr.msk.f32.mxu1 %vm10159_vm1, %v14944_v42 }
0x1017   :  { %9572 = vmatmul.mubr.msk.f32.gmra.mrb[136].mxu1 %vm2987_vm10, %v4270_v13 }
0x1018   :  { %9574 = vmatprep.mubr.msk.f32.mxu1 %vm10159_vm1, %v14944_v42 }
0x101b   :  { %9575 = vmatmul.mubr.msk.f32.gmra.mrb[138].mxu1 %vm2987_vm10, %v4271_v18 }
0x101c   :  { %9577 = vmatprep.mubr.msk.f32.mxu1 %vm10159_vm1, %v14944_v42 }
0x101f   :  { %9578 = vmatmul.mubr.msk.f32.gmra.mrb[140].mxu1 %vm2987_vm10, %v4272_v62 }
0x10d2   :  { %v4366_v38 = vpop.f32.mrb[124].mxu1 }
0x10d3   :  { %4410 = vrot.lane.b32.xlu1 %v4366_v38, %s10168_s3  ;;  %v9555_v12 = vpop.f32.mrb[125].mxu1 }
0x10d6   :  { %v4371_v50 = vpop.f32.mrb[126].mxu1 }
0x10d7   :  { %4413 = vrot.lane.b32.xlu0 %v4371_v50, %s10169_s20  ;;  %v9558_v5 = vpop.f32.mrb[127].mxu1 }
0x10da   :  { %v4376_v63 = vpop.f32.mrb[128].mxu1 }
0x10db   :  { %4417 = vrot.lane.b32.xlu1 %v4376_v63, %s10170_s21  ;;  %v9561_v26 = vpop.f32.mrb[129].mxu1 }
0x10de   :  { %v4381_v37 = vpop.f32.mrb[130].mxu1 }
0x10df   :  { %4421 = vrot.lane.b32.xlu0 %v4381_v37, %s10163_s0  ;;  %v9564_v48 = vpop.f32.mrb[131].mxu1 }
0x10e2   :  { %v4386_v34 = vpop.f32.mrb[132].mxu1 }
0x10e3   :  { %4447 = vperm.xlu0 %10091, %v8603_v32   ;;  %v9567_v8 = vpop.f32.mrb[133].mxu1  ;;  %v4425_v26 = vmul.f32 %v4386_v34, %v12514_v36 }
0x10e6   :  { %v4391_v60 = vpop.f32.mrb[134].mxu1 }
0x10e7   :  { %4427 = vrot.lane.b32.xlu1 %v4391_v60, %s10164_s17  ;;  %v9570_v56 = vpop.f32.mrb[135].mxu1 }
0x10ea   :  { %v4396_v39 = vpop.f32.mrb[136].mxu1 }
0x10eb   :  { %4431 = vrot.lane.b32.xlu1 %v4396_v39, %s10171_s22  ;;  %v9573_v43 = vpop.f32.mrb[137].mxu1 }
0x10ee   :  { %v4401_v9 = vpop.f32.mrb[138].mxu1 }
0x10ef   :  { %4435 = vrot.lane.b32.xlu0 %v4401_v9, %s10172_s23  ;;  %v9576_v55 = vpop.f32.mrb[139].mxu1 }
0x10f2   :  { %v4406_v22 = vpop.f32.mrb[140].mxu1 }
0x10f3   :  { %4439 = vrot.lane.b32.xlu1 %v4406_v22, %s10173_s8  ;;  %v9579_v20 = vpop.f32.mrb[141].mxu1 }
0x110e   :  { %4465 = vadd.xlane.f32.xlu0 %v4464_v0 }
0x1117   :  { %4468 = vadd.xlane.f32.xlu1 %v4467_v27 }
0x1124   :  { %4728 = vperm.xlu0 %10091, %v8609_v40  }
0x1128   :  { %4860 = vperm.xlu0 %10091, %v8617_v35   ;;  %4733 = vperm.xlu1 %10092, %v8610_v53  }
0x112c   :  { %4738 = vperm.xlu0 %10091, %v8611_v51   ;;  %4865 = vperm.xlu1 %10092, %v8618_v15  }
0x1130   :  { %4899 = vperm.xlu0 %10091, %v8621_v44   ;;  %4743 = vperm.xlu1 %10092, %v8612_v14  }
0x1134   :  { %4870 = vperm.xlu0 %10091, %v8619_v24   ;;  %4904 = vperm.xlu1 %10092, %v8622_v6  }
0x1138   :  { %4909 = vperm.xlu0 %10091, %v8623_v28   ;;  %4875 = vperm.xlu1 %10092, %v8620_v3  }
0x113c   :  { %4914 = vperm.xlu1 %10092, %v8624_v49  }
0x1145   :  { %v4411_v1 = vpop.permute.xlu1 %4410 }
0x1146   :  { %v4412_v18 = vmul.f32 %v4411_v1, %v12490_v41 }
0x1149   :  { %v4414_v59 = vpop.permute.xlu0 %4413 }
0x114a   :  { %v4415_v23 = vmul.f32 %v4414_v59, %v12482_v4 }
0x114c   :  { %v4416_v38 = vadd.f32 %v4415_v23, %v4412_v18 }
0x114d   :  { %v4418_v10 = vpop.permute.xlu1 %4417 }
0x114e   :  { %v4419_v62 = vmul.f32 %v4418_v10, %v12493_v25 }
0x1150   :  { %v4420_v50 = vadd.f32 %v4419_v62, %v4416_v38 }
0x1151   :  { %v4422_v13 = vpop.permute.xlu0 %4421 }
0x1152   :  { %v4423_v12 = vmul.f32 %v4422_v13, %v12499_v29 }
0x1154   :  { %v4424_v5 = vadd.f32 %v4423_v12, %v4420_v50 }
0x1156   :  { %v4426_v32 = vadd.f32 %v4425_v26, %v4424_v5 }
0x1159   :  { %v4428_v17 = vpop.permute.xlu1 %4427 }
0x115a   :  { %v4429_v37 = vmul.f32 %v4428_v17, %v12521_v46  ;;  %v14946_v17 = vld [vmem:[#allocation2_spill] sm:$0xff] }
0x115b   :  { %v4566_v38 = vadd.s32 8, %v14946_v17 }
0x115c   :  { %v4430_v60 = vadd.f32 %v4429_v37, %v4426_v32 }
0x115d   :  { %v4432_v63 = vpop.permute.xlu1 %4431 }
0x115e   :  { %v4433_v8 = vmul.f32 %v4432_v63, %v12528_v33 }
0x1160   :  { %v4434_v43 = vadd.f32 %v4433_v8, %v4430_v60 }
0x1162   :  { %v4448_v48 = vpop.permute.xlu0 %4447 }
0x1163   :  { %v4450_v20 = vmul.f32 %v4448_v48, %v12196_v21 }
0x1165   :  { %v4440_v56 = vpop.permute.xlu1 %4439 }
0x1166   :  { %v4436_v39 = vpop.permute.xlu0 %4435  ;;  %v4441_v55 = vmul.f32 %v4440_v56, %v12553_v31 }
0x1167   :  { %v4437_v9 = vmul.f32 %v4436_v39, %v12537_v30 }
0x1169   :  { %v4438_v22 = vadd.f32 %v4437_v9, %v4434_v43 }
0x116b   :  { %v4442_v16 = vadd.f32 %v4441_v55, %v4438_v22  ;;  %v4454_v22 = vld [vmem:[%s14650_s12] sm:$0xff] }
0x116d   :  { %v13053_v0 = vadd.f32 %v4450_v20, %v4442_v16  ;;  %v4717_v20 = vld [vmem:[%s14651_s13] sm:$0xff] }
0x116e   :  { %9594 = vmatprep.mubr.msk.f32.mxu1 %vm145_vm0, %v4717_v20 }
0x116f   :  { %14945 = vst [vmem:[#allocation46_spill] sm:$0xff] %v13053_v0  ;;  %9580 = vmatprep.subr.mxu0 %v13053_v0  ;;  %v4455_v34 = vmul.f32 %v13053_v0, %v13053_v0 }
0x1170   :  { %9581 = vmatpush3.msra.mxu0 %v13053_v0 }
0x1171   :  { %9583 = vmatmul.mubr.msk.f32.vlgmr.msra.gmra.mrb[144].mxu0 %vm145_vm0, %v4453_v2  ;;  %9970 = vmatprep.subr.bf16.mxu0 %v14788_v11  ;;  %v4456_v61 = vrot.slane %v4455_v34, 4 }
0x1172   :  { %9589 = vmatprep.mubr.msk.f32.mxu0 %vm10159_vm1, %v14944_v42 }
0x1173   :  { %v4457_v27 = vadd.f32 %v4456_v61, %v4455_v34  ;;  %v4718_v34 = vld [vmem:[%s14651_s13 + $0x8] sm:$0xff]  ;;  %v4719_v61 = vld [vmem:[%s14651_s13 + $0x10] sm:$0xff] }
0x1175   :  { %v4458_v40 = vrot.slane %v4457_v27, 2 }
0x1177   :  { %v4459_v35 = vadd.f32 %v4458_v40, %v4457_v27  ;;  %v4720_v40 = vld [vmem:[%s14651_s13 + $0x18] sm:$0xff] }
0x1179   :  { %v4460_v53 = vrot.slane %v4459_v35, 1 }
0x117b   :  { %v4461_v2 = vadd.f32 %v4460_v53, %v4459_v35  ;;  %v8625_v35 = vld [vmem:[%s14647_s9 + $0x240] sm:$0xff] }
0x119b   :  { %v4466_v6 = vpop.xlane.xlu0 %4465 }
0x11a4   :  { %v4469_v14 = vpop.xlane.xlu1 %4468 }
0x11a8   :  { %v4734_v53 = vpop.permute.xlu1 %4733 }
0x1244   :  { %v9584_v51 = vpop.f32.mrb[144].mxu0 }
0x1245   :  { %v4552_v15 = vmul.f32 2.0, %v9584_v51  ;;  %v4542_v44 = vpop.f32.mrb[145].mxu0  ;;  %v4729_v51 = vpop.permute.xlu0 %4728 }
0x1246   :  { %v4551_v24 = vmul.f32 2.0, %v4542_v44 }
0x1247   :  { %v4554_v28 = vsub.f32 %v4469_v14, %v4552_v15  ;;  %v4866_v15 = vpop.permute.xlu1 %4865 }
0x1248   :  { %v4553_v3 = vsub.f32 %v4466_v6, %v4551_v24 }
0x1249   :  { %v4556_v49 = vadd.f32 %v4554_v28, %v4461_v2  ;;  %v4861_v44 = vpop.permute.xlu0 %4860 }
0x124a   :  { %v4555_v1 = vadd.f32 %v4553_v3, %v4461_v2  ;;  %v8331_v2 = vld [vmem:[%s14642_s1 + $0x6] sm:$0x7]  ;;  %v8332_v3 = vld [vmem:[%s14642_s1 + $0x9] sm:$0x7] }
0x124b   :  { %v4744_v14 = vpop.permute.xlu1 %4743 }
0x124c   :  { %v4557_v59 = vmin.f32 %v4555_v1, %v4556_v49 }
0x124d   :  { %v4739_v24 = vpop.permute.xlu0 %4738 }
0x124e   :  { %v4558_v10 = vrot.slane %v4557_v59, 4 }
0x124f   :  { %v4905_v6 = vpop.permute.xlu1 %4904 }
0x1250   :  { %v4559_v23 = vmin.f32 %v4557_v59, %v4558_v10 }
0x1251   :  { %v4900_v28 = vpop.permute.xlu0 %4899 }
0x1252   :  { %v4560_v13 = vrot.slane %v4559_v23, 2 }
0x1253   :  { %v4876_v59 = vpop.permute.xlu1 %4875 }
0x1254   :  { %v4561_v18 = vmin.f32 %v4559_v23, %v4560_v13 }
0x1255   :  { %v4871_v23 = vpop.permute.xlu0 %4870 }
0x1256   :  { %v4562_v62 = vrot.slane %v4561_v18, 1 }
0x1258   :  { %v4563_v12 = vmin.f32 %v4561_v18, %v4562_v62 }
0x125a   :  { %vm4567_vm11 = vcmp.eq.f32.partialorder %v4555_v1, %v4563_v12  ;;  %vm4568_vm12 = vcmp.eq.f32.partialorder %v4556_v49, %v4563_v12  ;;  %v4750_v49 = vrot.slane %v8331_v2, %v14943_v7  ;;  %v4882_v1 = vrot.slane %v8332_v3, %v14943_v7  ;;  %v8627_v2 = vld [vmem:[%s14647_s9 + $0x250] sm:$0xff]  ;;  %v8629_v3 = vld [vmem:[%s14647_s9 + $0x260] sm:$0xff] }
0x125b   :  { %v4569_v50 = vsel %vm4567_vm11, %v14946_v17, 16  ;;  %v4570_v5 = vsel %vm4568_vm12, %v4566_v38, 16  ;;  %vm14977_vm11 = vcmp.lt.s32.totalorder %v10446_v54, 116 }
0x125c   :  { %vm4571_vm13 = vcmp.lt.s32.totalorder %v4569_v50, %v4570_v5  ;;  %v4753_v10 = vmul.f32 %v4750_v49, %v4734_v53  ;;  %v4752_v13 = vmul.f32 %v4750_v49, %v4729_v51  ;;  %v4885_v62 = vmul.f32 %v4882_v1, %v4866_v15  ;;  %vm14978_vm12 = vmmov %vm14977_vm11 }
0x125d   :  { %v4572_v63 = vsel %vm4571_vm13, %v4569_v50, %v4570_v5  ;;  %v4884_v12 = vmul.f32 %v4882_v1, %v4861_v44  ;;  %v4755_v5 = vmul.f32 %v4750_v49, %v4744_v14  ;;  %vm14979_vm13 = vmmov %vm14977_vm11 }
0x125e   :  { %v4573_v26 = vrot.slane %v4572_v63, 4 }
0x1260   :  { %vm4574_vm14 = vcmp.lt.s32.totalorder %v4572_v63, %v4573_v26 }
0x1261   :  { %v4575_v37 = vsel %vm4574_vm14, %v4572_v63, %v4573_v26  ;;  %v4918_v63 = vmul.f32 %v4905_v6, %v12196_v21  ;;  %v8626_v6 = vld [vmem:[%s14647_s9 + $0x248] sm:$0xff]  ;;  %vm14984_vm14 = vcmp.lt.s32.totalorder %v10446_v54, 115 }
0x1262   :  { %v4576_v48 = vrot.slane %v4575_v37, 2 }
0x1264   :  { %vm4577_vm15 = vcmp.lt.s32.totalorder %v4575_v37, %v4576_v48 }
0x1265   :  { %v4578_v32 = vsel %vm4577_vm15, %v4575_v37, %v4576_v48  ;;  %v4754_v37 = vmul.f32 %v4750_v49, %v4739_v24  ;;  %v4917_v48 = vmul.f32 %v4900_v28, %v12196_v21  ;;  %v8628_v28 = vld [vmem:[%s14647_s9 + $0x258] sm:$0xff]  ;;  %v8630_v49 = vld [vmem:[%s14647_s9 + $0x268] sm:$0xff]  ;;  %vm14986_vm15 = vmmov %vm14984_vm14 }
0x1266   :  { %v4579_v8 = vrot.slane %v4578_v32, 1 }
0x1268   :  { %vm4580_vm9 = vcmp.lt.s32.totalorder %v4578_v32, %v4579_v8 }
0x1269   :  { %v4581_v60 = vsel %vm4580_vm9, %v4578_v32, %v4579_v8  ;;  %vm4590_vm9 = vcmask 130048   ;;  %v4915_v32 = vpop.permute.xlu1 %4914 }
0x126a   :  { %vm4582_vm8 = vcmp.eq.s32.totalorder %v14946_v17, %v4581_v60  ;;  %vm4583_vm7 = vcmp.eq.s32.totalorder %v4566_v38, %v4581_v60 }
0x126b   :  { %v8606_v56 = vsel %vm4582_vm8, 1.0, %v14944_v42  ;;  %v8607_v39 = vsel %vm4583_vm7, 1.0, %v14944_v42  ;;  %vm14972_vm7 = vcmp.lt.s32.totalorder %v10446_v54, 117 }
0x126c   :  { %v13069_v43 = vmul.f32 %v8606_v56, %v12196_v21  ;;  %v13072_v9 = vmul.f32 %v8607_v39, %v12196_v21  ;;  %v4910_v56 = vpop.permute.xlu0 %4909  ;;  %v4887_v39 = vmul.f32 %v4882_v1, %v4876_v59  ;;  %v8632_v59 = vld [vmem:[%s14647_s9 + $0x278] sm:$0xff]  ;;  %vm14974_vm8 = vmmov %vm14972_vm7 }
0x126d   :  { %v4919_v53 = vmul.f32 %v4910_v56, %v12196_v21  ;;  %v8650_v56 = vld [vmem:[%s14647_s9 + $0x308] sm:$0xff] }
0x126e   :  { %14947 = vst [vmem:[#allocation48_spill] sm:$0xff] %v13069_v43  ;;  %14948 = vst [vmem:[#allocation21_spill] sm:$0xff] %v13072_v9  ;;  %v9971_v55 = vpack.c.bf16 %v13072_v9, %v13069_v43 }
0x1270   :  { %9972 = vmatpush3.bf16.msra.mxu0 %v9971_v55 }
0x1273   :  { %9590 = vmatmul.mubr.msk.f32.vlgmr.msra.gmra.mrb[146].mxu0 %vm4590_vm9, %v4454_v22  ;;  %vm14987_vm9 = vmmov %vm14984_vm14 }
0x1274   :  { %9608 = vmatprep.mubr.msk.f32.mxu0 %vm2987_vm10, %v8625_v35 }
0x1346   :  { %v13083_v16 = vpop.f32.mrb[146].mxu0 }
0x1347   :  { %14949 = vst [vmem:[#allocation40_spill] sm:$0xff] %v13083_v16  ;;  %9592 = vmatprep.subr.mxu1 %v13083_v16  ;;  %v9591_v27 = vpop.f32.mrb[147].mxu0 }
0x1348   :  { %9593 = vmatpush3.msra.mxu1 %v13083_v16 }
0x1349   :  { %9595 = vmatmul.mubr.msk.f32.vlgmr.msra.gmra.mrb[142].mxu1 %vm145_vm0, %v4718_v34  ;;  %v4886_v34 = vmul.f32 %v4882_v1, %v4871_v23  ;;  %v8631_v1 = vld [vmem:[%s14647_s9 + $0x270] sm:$0xff]  ;;  %v8634_v23 = vld [vmem:[%s14647_s9 + $0x288] sm:$0xff] }
0x134a   :  { %9597 = vmatprep.mubr.msk.f32.mxu1 %vm145_vm0, %v4719_v61 }
0x134d   :  { %9598 = vmatmul.mubr.msk.f32.gmra.mrb[144].mxu1 %vm145_vm0, %v4720_v40  ;;  %v4920_v40 = vmul.f32 %v4915_v32, %v12196_v21  ;;  %v8647_v32 = vld [vmem:[%s14647_s9 + $0x2f0] sm:$0xff] }
0x141c   :  { %v9596_v18 = vpop.f32.mrb[142].mxu1 }
0x141d   :  { %v4840_v17 = vadd.f32 %v9596_v18, %v4753_v10  ;;  %v4834_v38 = vpop.f32.mrb[143].mxu1  ;;  %v8633_v10 = vld [vmem:[%s14647_s9 + $0x280] sm:$0xff]  ;;  %v8636_v18 = vld [vmem:[%s14647_s9 + $0x298] sm:$0xff] }
0x141e   :  { %v4835_v50 = vadd.f32 %v4834_v38, %v4752_v13  ;;  %v8635_v13 = vld [vmem:[%s14647_s9 + $0x290] sm:$0xff] }
0x141f   :  { %v4889_v26 = vadd.f32 %v4885_v62, %v4840_v17  ;;  %v8637_v62 = vld [vmem:[%s14647_s9 + $0x2a0] sm:$0xff]  ;;  %v8638_v17 = vld [vmem:[%s14647_s9 + $0x2a8] sm:$0xff]  ;;  %v8639_v38 = vld [vmem:[%s14647_s9 + $0x2b0] sm:$0xff] }
0x1420   :  { %v4888_v8 = vadd.f32 %v4884_v12, %v4835_v50  ;;  %v9599_v60 = vpop.f32.mrb[144].mxu1  ;;  %v8640_v12 = vld [vmem:[%s14647_s9 + $0x2b8] sm:$0xff]  ;;  %v8641_v50 = vld [vmem:[%s14647_s9 + $0x2c0] sm:$0xff] }
0x1421   :  { %v13113_v55 = vadd.f32 %v4918_v63, %v4889_v26  ;;  %v4850_v22 = vadd.f32 %v9599_v60, %v4755_v5  ;;  %v4844_v20 = vpop.f32.mrb[145].mxu1  ;;  %v8642_v5 = vld [vmem:[%s14647_s9 + $0x2c8] sm:$0xff]  ;;  %v8643_v63 = vld [vmem:[%s14647_s9 + $0x2d0] sm:$0xff]  ;;  %v8644_v26 = vld [vmem:[%s14647_s9 + $0x2d8] sm:$0xff] }
0x1422   :  { %v13115_v61 = vadd.f32 %v4917_v48, %v4888_v8  ;;  %v4845_v27 = vadd.f32 %v4844_v20, %v4754_v37  ;;  %v8645_v37 = vld [vmem:[%s14647_s9 + $0x2e0] sm:$0xff]  ;;  %v8646_v48 = vld [vmem:[%s14647_s9 + $0x2e8] sm:$0xff]  ;;  %v8648_v8 = vld [vmem:[%s14647_s9 + $0x2f8] sm:$0xff] }
0x1423   :  { %v4891_v35 = vadd.f32 %v4887_v39, %v4850_v22  ;;  %v8649_v60 = vld [vmem:[%s14647_s9 + $0x300] sm:$0xff]  ;;  %v8651_v39 = vld [vmem:[%s14647_s9 + $0x310] sm:$0xff]  ;;  %v8652_v22 = vld [vmem:[%s14647_s9 + $0x318] sm:$0xff] }
0x1424   :  { %v4890_v51 = vadd.f32 %v4886_v34, %v4845_v27  ;;  %v9973_v15 = vpack.c.bf16 %v13113_v55, %v13115_v61  ;;  %v8653_v20 = vld [vmem:[%s14647_s9 + $0x320] sm:$0xff]  ;;  %v8654_v34 = vld [vmem:[%s14647_s9 + $0x328] sm:$0xff]  ;;  %v8655_v27 = vld [vmem:[%s14647_s9 + $0x330] sm:$0xff] }
0x1425   :  { %v13121_v44 = vadd.f32 %v4920_v40, %v4891_v35  ;;  %v8656_v40 = vld [vmem:[%s14647_s9 + $0x338] sm:$0xff]  ;;  %v8657_v35 = vld [vmem:[%s14647_s9 + $0x340] sm:$0xff] }
0x1426   :  { %v13123_v14 = vadd.f32 %v4919_v53, %v4890_v51  ;;  %9974 = vmatprep.subr.bf16.mxu0 %v9973_v15  ;;  %v8658_v53 = vld [vmem:[%s14647_s9 + $0x348] sm:$0xff]  ;;  %v8659_v51 = vld [vmem:[%s14647_s9 + $0x350] sm:$0xff] }
0x1427   :  { %9976 = vmatpush3.bf16.msra.mxu0 %v9973_v15  ;;  %v8660_v15 = vld [vmem:[%s14647_s9 + $0x358] sm:$0xff] }
0x1428   :  { %v9977_v24 = vpack.c.bf16 %v13121_v44, %v13123_v14 }
0x142a   :  { %9978 = vmatprep.subr.bf16.mxu0 %v9977_v24 }
0x142b   :  { %9980 = vmatpush3.bf16.msra.mxu0 %v9977_v24 }
0x142e   :  { %9609 = vmatmul.mubr.msk.f32.vlgmr.msra.gmra.mrb[148].mxu0 %vm2987_vm10, %v8626_v6 }
0x142f   :  { %9611 = vmatprep.mubr.msk.f32.mxu0 %vm2987_vm10, %v8627_v2 }
0x1432   :  { %9612 = vmatmul.mubr.msk.f32.gmra.mrb[150].mxu0 %vm2987_vm10, %v8628_v28 }
0x1433   :  { %9614 = vmatprep.mubr.msk.f32.mxu0 %vm2987_vm10, %v8629_v3 }
0x1436   :  { %9615 = vmatmul.mubr.msk.f32.gmra.mrb[152].mxu0 %vm2987_vm10, %v8630_v49 }
0x1437   :  { %9617 = vmatprep.mubr.msk.f32.mxu0 %vm2987_vm10, %v8631_v1 }
0x143a   :  { %9618 = vmatmul.mubr.msk.f32.gmra.mrb[154].mxu0 %vm2987_vm10, %v8632_v59 }
0x143b   :  { %9620 = vmatprep.mubr.msk.f32.mxu0 %vm2987_vm10, %v8633_v10 }
0x143e   :  { %9621 = vmatmul.mubr.msk.f32.gmra.mrb[156].mxu0 %vm2987_vm10, %v8634_v23 }
0x143f   :  { %9623 = vmatprep.mubr.msk.f32.mxu0 %vm2987_vm10, %v8635_v13 }
0x1442   :  { %9624 = vmatmul.mubr.msk.f32.gmra.mrb[158].mxu0 %vm2987_vm10, %v8636_v18 }
0x1443   :  { %9626 = vmatprep.mubr.msk.f32.mxu0 %vm2987_vm10, %v8637_v62 }
0x1446   :  { %9627 = vmatmul.mubr.msk.f32.gmra.mrb[160].mxu0 %vm2987_vm10, %v8638_v17 }
0x1447   :  { %9629 = vmatprep.mubr.msk.f32.mxu0 %vm2987_vm10, %v8639_v38 }
0x144a   :  { %9630 = vmatmul.mubr.msk.f32.gmra.mrb[162].mxu0 %vm2987_vm10, %v8640_v12 }
0x144b   :  { %9632 = vmatprep.mubr.msk.f32.mxu0 %vm2987_vm10, %v8641_v50 }
0x144e   :  { %9633 = vmatmul.mubr.msk.f32.gmra.mrb[164].mxu0 %vm2987_vm10, %v8642_v5 }
0x144f   :  { %9635 = vmatprep.mubr.msk.f32.mxu0 %vm2987_vm10, %v8643_v63 }
0x1452   :  { %9636 = vmatmul.mubr.msk.f32.gmra.mrb[166].mxu0 %vm2987_vm10, %v8644_v26 }
0x1453   :  { %9638 = vmatprep.mubr.msk.f32.mxu0 %vm2987_vm10, %v8645_v37 }
0x1456   :  { %9639 = vmatmul.mubr.msk.f32.gmra.mrb[168].mxu0 %vm2987_vm10, %v8646_v48 }
0x1457   :  { %9641 = vmatprep.mubr.msk.f32.mxu0 %vm2987_vm10, %v8647_v32 }
0x145a   :  { %9642 = vmatmul.mubr.msk.f32.gmra.mrb[170].mxu0 %vm2987_vm10, %v8648_v8 }
0x145b   :  { %9644 = vmatprep.mubr.msk.f32.mxu0 %vm2987_vm10, %v8649_v60 }
0x145e   :  { %9645 = vmatmul.mubr.msk.f32.gmra.mrb[172].mxu0 %vm2987_vm10, %v8650_v56 }
0x145f   :  { %9647 = vmatprep.mubr.msk.f32.mxu0 %vm2987_vm10, %v8651_v39 }
0x1462   :  { %9648 = vmatmul.mubr.msk.f32.gmra.mrb[174].mxu0 %vm2987_vm10, %v8652_v22 }
0x1463   :  { %9650 = vmatprep.mubr.msk.f32.mxu0 %vm2987_vm10, %v8653_v20 }
0x1466   :  { %9651 = vmatmul.mubr.msk.f32.gmra.mrb[176].mxu0 %vm2987_vm10, %v8654_v34 }
0x1467   :  { %9653 = vmatprep.mubr.msk.f32.mxu0 %vm2987_vm10, %v8655_v27 }
0x146a   :  { %9654 = vmatmul.mubr.msk.f32.gmra.mrb[178].mxu0 %vm2987_vm10, %v8656_v40 }
0x146b   :  { %9656 = vmatprep.mubr.msk.f32.mxu0 %vm2987_vm10, %v8657_v35 }
0x146e   :  { %9657 = vmatmul.mubr.msk.f32.gmra.mrb[180].mxu0 %vm2987_vm10, %v8658_v53 }
0x146f   :  { %9659 = vmatprep.mubr.msk.f32.mxu0 %vm2987_vm10, %v8659_v51 }
0x1472   :  { %9660 = vmatmul.mubr.msk.f32.gmra.mrb[182].mxu0 %vm2987_vm10, %v8660_v15 }
0x1473   :  { %6333 = vmatprep.mubr.f32.mxu0 %v14944_v42 }
0x1501   :  { %v9610_v24 = vpop.f32.mrb[148].mxu0 }
0x1502   :  { %5354 = vrot.lane.b32.xlu1 %v9610_v24, %s10168_s3  ;;  %v5173_v6 = vpop.f32.mrb[149].mxu0 }
0x1503   :  { %5352 = vrot.lane.b32.xlu0 %v5173_v6, %s10168_s3 }
0x1505   :  { %v9613_v2 = vpop.f32.mrb[150].mxu0 }
0x1506   :  { %5358 = vrot.lane.b32.xlu1 %v9613_v2, %s10168_s3  ;;  %v5183_v28 = vpop.f32.mrb[151].mxu0 }
0x1507   :  { %5356 = vrot.lane.b32.xlu0 %v5183_v28, %s10168_s3 }
0x1509   :  { %v9616_v3 = vpop.f32.mrb[152].mxu0 }
0x150a   :  { %5366 = vrot.lane.b32.xlu1 %v9616_v3, %s10169_s20  ;;  %v5193_v49 = vpop.f32.mrb[153].mxu0 }
0x150b   :  { %5364 = vrot.lane.b32.xlu0 %v5193_v49, %s10169_s20 }
0x150d   :  { %v9619_v1 = vpop.f32.mrb[154].mxu0 }
0x150e   :  { %5370 = vrot.lane.b32.xlu1 %v9619_v1, %s10169_s20  ;;  %v5203_v59 = vpop.f32.mrb[155].mxu0 }
0x150f   :  { %5368 = vrot.lane.b32.xlu0 %v5203_v59, %s10169_s20 }
0x1511   :  { %v9622_v10 = vpop.f32.mrb[156].mxu0 }
0x1512   :  { %5382 = vrot.lane.b32.xlu1 %v9622_v10, %s10170_s21  ;;  %v5213_v23 = vpop.f32.mrb[157].mxu0 }
0x1513   :  { %5380 = vrot.lane.b32.xlu0 %v5213_v23, %s10170_s21 }
0x1515   :  { %v9625_v13 = vpop.f32.mrb[158].mxu0 }
0x1516   :  { %5386 = vrot.lane.b32.xlu1 %v9625_v13, %s10170_s21  ;;  %v5223_v18 = vpop.f32.mrb[159].mxu0 }
0x1517   :  { %5384 = vrot.lane.b32.xlu0 %v5223_v18, %s10170_s21 }
0x1519   :  { %v9628_v62 = vpop.f32.mrb[160].mxu0 }
0x151a   :  { %5398 = vrot.lane.b32.xlu1 %v9628_v62, %s10163_s0  ;;  %v5233_v17 = vpop.f32.mrb[161].mxu0 }
0x151b   :  { %5396 = vrot.lane.b32.xlu0 %v5233_v17, %s10163_s0 }
0x151d   :  { %v9631_v38 = vpop.f32.mrb[162].mxu0 }
0x151e   :  { %5402 = vrot.lane.b32.xlu1 %v9631_v38, %s10163_s0  ;;  %v5243_v12 = vpop.f32.mrb[163].mxu0 }
0x151f   :  { %5400 = vrot.lane.b32.xlu0 %v5243_v12, %s10163_s0 }
0x1521   :  { %v13284_v50 = vpop.f32.mrb[164].mxu0 }
0x1522   :  { %v13286_v5 = vpop.f32.mrb[165].mxu0 }
0x1525   :  { %v13288_v63 = vpop.f32.mrb[166].mxu0 }
0x1526   :  { %v13290_v26 = vpop.f32.mrb[167].mxu0 }
0x1529   :  { %v9640_v37 = vpop.f32.mrb[168].mxu0 }
0x152a   :  { %5422 = vrot.lane.b32.xlu1 %v9640_v37, %s10164_s17  ;;  %v5273_v48 = vpop.f32.mrb[169].mxu0 }
0x152b   :  { %5420 = vrot.lane.b32.xlu0 %v5273_v48, %s10164_s17 }
0x152d   :  { %v9643_v32 = vpop.f32.mrb[170].mxu0 }
0x152e   :  { %5426 = vrot.lane.b32.xlu1 %v9643_v32, %s10164_s17  ;;  %v5283_v8 = vpop.f32.mrb[171].mxu0 }
0x152f   :  { %5424 = vrot.lane.b32.xlu0 %v5283_v8, %s10164_s17 }
0x1531   :  { %v9646_v60 = vpop.f32.mrb[172].mxu0 }
0x1532   :  { %5438 = vrot.lane.b32.xlu1 %v9646_v60, %s10171_s22  ;;  %v5293_v56 = vpop.f32.mrb[173].mxu0 }
0x1533   :  { %5436 = vrot.lane.b32.xlu0 %v5293_v56, %s10171_s22 }
0x1535   :  { %v9649_v39 = vpop.f32.mrb[174].mxu0 }
0x1536   :  { %5442 = vrot.lane.b32.xlu1 %v9649_v39, %s10171_s22  ;;  %v5303_v22 = vpop.f32.mrb[175].mxu0 }
0x1537   :  { %5440 = vrot.lane.b32.xlu0 %v5303_v22, %s10171_s22 }
0x1539   :  { %v9652_v20 = vpop.f32.mrb[176].mxu0 }
0x153a   :  { %5454 = vrot.lane.b32.xlu1 %v9652_v20, %s10172_s23  ;;  %v5313_v34 = vpop.f32.mrb[177].mxu0 }
0x153b   :  { %5452 = vrot.lane.b32.xlu0 %v5313_v34, %s10172_s23 }
0x153d   :  { %v9655_v27 = vpop.f32.mrb[178].mxu0 }
0x153e   :  { %5458 = vrot.lane.b32.xlu1 %v9655_v27, %s10172_s23  ;;  %v5323_v40 = vpop.f32.mrb[179].mxu0 }
0x153f   :  { %5456 = vrot.lane.b32.xlu0 %v5323_v40, %s10172_s23 }
0x1541   :  { %v9658_v35 = vpop.f32.mrb[180].mxu0 }
0x1542   :  { %5470 = vrot.lane.b32.xlu1 %v9658_v35, %s10173_s8  ;;  %v5333_v53 = vpop.f32.mrb[181].mxu0 }
0x1543   :  { %5468 = vrot.lane.b32.xlu0 %v5333_v53, %s10173_s8 }
0x1545   :  { %v9661_v51 = vpop.f32.mrb[182].mxu0 }
0x1546   :  { %5474 = vrot.lane.b32.xlu1 %v9661_v51, %s10173_s8  ;;  %v5343_v15 = vpop.f32.mrb[183].mxu0 }
0x1547   :  { %5472 = vrot.lane.b32.xlu0 %v5343_v15, %s10173_s8 }
0x1574   :  { %v5355_v24 = vpop.permute.xlu1 %5354 }
0x1575   :  { %v5353_v6 = vpop.permute.xlu0 %5352  ;;  %v5361_v22 = vmul.f32 %v5355_v24, %v12490_v41 }
0x1576   :  { %v5360_v27 = vmul.f32 %v5353_v6, %v12490_v41 }
0x1578   :  { %v5359_v2 = vpop.permute.xlu1 %5358 }
0x1579   :  { %v5357_v28 = vpop.permute.xlu0 %5356 }
0x157a   :  { %v5362_v24 = vmul.f32 %v5357_v28, %v12490_v41 }
0x157c   :  { %v5367_v3 = vpop.permute.xlu1 %5366 }
0x157d   :  { %v5365_v49 = vpop.permute.xlu0 %5364  ;;  %v5373_v60 = vmul.f32 %v5367_v3, %v12482_v4 }
0x157e   :  { %v5372_v56 = vmul.f32 %v5365_v49, %v12482_v4 }
0x157f   :  { %v5377_v35 = vadd.f32 %v5373_v60, %v5361_v22 }
0x1580   :  { %v5371_v1 = vpop.permute.xlu1 %5370  ;;  %v5376_v51 = vadd.f32 %v5372_v56, %v5360_v27  ;;  %v5412_v56 = vmul.f32 %v13286_v5, %v12514_v36 }
0x1581   :  { %v5369_v59 = vpop.permute.xlu0 %5368 }
0x1582   :  { %v5374_v15 = vmul.f32 %v5369_v59, %v12482_v4 }
0x1584   :  { %v5383_v10 = vpop.permute.xlu1 %5382  ;;  %v5378_v6 = vadd.f32 %v5374_v15, %v5362_v24 }
0x1585   :  { %v5381_v23 = vpop.permute.xlu0 %5380  ;;  %v5389_v20 = vmul.f32 %v5383_v10, %v12493_v25 }
0x1586   :  { %v5388_v40 = vmul.f32 %v5381_v23, %v12493_v25 }
0x1587   :  { %v5393_v49 = vadd.f32 %v5389_v20, %v5377_v35 }
0x1588   :  { %v5387_v13 = vpop.permute.xlu1 %5386  ;;  %v5392_v0 = vadd.f32 %v5388_v40, %v5376_v51 }
0x1589   :  { %v5385_v18 = vpop.permute.xlu0 %5384 }
0x158a   :  { %v5390_v10 = vmul.f32 %v5385_v18, %v12493_v25  ;;  %v5375_v18 = vmul.f32 %v5371_v1, %v12482_v4 }
0x158c   :  { %v5399_v62 = vpop.permute.xlu1 %5398  ;;  %v5394_v22 = vadd.f32 %v5390_v10, %v5378_v6 }
0x158d   :  { %v5397_v17 = vpop.permute.xlu0 %5396  ;;  %v5405_v53 = vmul.f32 %v5399_v62, %v12499_v29  ;;  %v5413_v62 = vmul.f32 %v13284_v50, %v12514_v36  ;;  %v5363_v50 = vmul.f32 %v5359_v2, %v12490_v41 }
0x158e   :  { %v5404_v3 = vmul.f32 %v5397_v17, %v12499_v29 }
0x158f   :  { %v5409_v9 = vadd.f32 %v5405_v53, %v5393_v49 }
0x1590   :  { %v5403_v38 = vpop.permute.xlu1 %5402  ;;  %v5408_v43 = vadd.f32 %v5404_v3, %v5392_v0 }
0x1591   :  { %v5401_v12 = vpop.permute.xlu0 %5400  ;;  %v5417_v20 = vadd.f32 %v5413_v62, %v5409_v9 }
0x1592   :  { %v5406_v23 = vmul.f32 %v5401_v12, %v12499_v29  ;;  %v5416_v12 = vadd.f32 %v5412_v56, %v5408_v43  ;;  %v5379_v43 = vadd.f32 %v5375_v18, %v5363_v50 }
0x1594   :  { %v5410_v27 = vadd.f32 %v5406_v23, %v5394_v22  ;;  %v5415_v22 = vmul.f32 %v13288_v63, %v12514_v36 }
0x159c   :  { %v5423_v37 = vpop.permute.xlu1 %5422 }
0x159d   :  { %v5421_v48 = vpop.permute.xlu0 %5420  ;;  %v5429_v59 = vmul.f32 %v5423_v37, %v12521_v46  ;;  %v5391_v37 = vmul.f32 %v5387_v13, %v12493_v25 }
0x159e   :  { %v5428_v28 = vmul.f32 %v5421_v48, %v12521_v46  ;;  %v5414_v48 = vmul.f32 %v13290_v26, %v12514_v36 }
0x159f   :  { %v5433_v53 = vadd.f32 %v5429_v59, %v5417_v20  ;;  %v5395_v24 = vadd.f32 %v5391_v37, %v5379_v43 }
0x15a0   :  { %v13308_v32 = vpop.permute.xlu1 %5426  ;;  %v5432_v1 = vadd.f32 %v5428_v28, %v5416_v12  ;;  %v5418_v3 = vadd.f32 %v5414_v48, %v5410_v27 }
0x15a1   :  { %v5425_v8 = vpop.permute.xlu0 %5424  ;;  %v5431_v28 = vmul.f32 %v13308_v32, %v12521_v46 }
0x15a2   :  { %v5430_v9 = vmul.f32 %v5425_v8, %v12521_v46 }
0x15a4   :  { %v5439_v39 = vpop.permute.xlu1 %5438  ;;  %v5434_v26 = vadd.f32 %v5430_v9, %v5418_v3  ;;  %v8738_v9 = vld [vmem:[%s14641_s5 + $0x268] sm:$0xff] }
0x15a5   :  { %v5437_v34 = vpop.permute.xlu0 %5436  ;;  %v5445_v0 = vmul.f32 %v5439_v39, %v12528_v33 }
0x15a6   :  { %v5444_v40 = vmul.f32 %v5437_v34, %v12528_v33  ;;  %v5407_v34 = vmul.f32 %v5403_v38, %v12499_v29 }
0x15a7   :  { %v5449_v15 = vadd.f32 %v5445_v0, %v5433_v53 }
0x15a8   :  { %v5443_v11 = vpop.permute.xlu1 %5442  ;;  %v5448_v2 = vadd.f32 %v5444_v40, %v5432_v1  ;;  %v8737_v1 = vld [vmem:[%s14641_s5 + $0x260] sm:$0xff] }
0x15a9   :  { %v5441_v16 = vpop.permute.xlu0 %5440  ;;  %v5447_v27 = vmul.f32 %v5443_v11, %v12528_v33 }
0x15aa   :  { %v5446_v13 = vmul.f32 %v5441_v16, %v12528_v33 }
0x15ac   :  { %v5455_v60 = vpop.permute.xlu1 %5454  ;;  %v5450_v38 = vadd.f32 %v5446_v13, %v5434_v26 }
0x15ad   :  { %v5453_v17 = vpop.permute.xlu0 %5452  ;;  %v5461_v5 = vmul.f32 %v5455_v60, %v12537_v30 }
0x15ae   :  { %v5460_v39 = vmul.f32 %v5453_v17, %v12537_v30  ;;  %v5411_v17 = vadd.f32 %v5407_v34, %v5395_v24 }
0x15af   :  { %v5465_v10 = vadd.f32 %v5461_v5, %v5449_v15 }
0x15b0   :  { %v5459_v35 = vpop.permute.xlu1 %5458  ;;  %v5464_v60 = vadd.f32 %v5460_v39, %v5448_v2  ;;  %v5419_v0 = vadd.f32 %v5415_v22, %v5411_v17 }
0x15b1   :  { %v5457_v51 = vpop.permute.xlu0 %5456  ;;  %v5463_v63 = vmul.f32 %v5459_v35, %v12537_v30 }
0x15b2   :  { %v5462_v8 = vmul.f32 %v5457_v51, %v12537_v30  ;;  %v5435_v37 = vadd.f32 %v5431_v28, %v5419_v0 }
0x15b4   :  { %v5471_v49 = vpop.permute.xlu1 %5470  ;;  %v5466_v18 = vadd.f32 %v5462_v8, %v5450_v38  ;;  %v5451_v32 = vadd.f32 %v5447_v27, %v5435_v37 }
0x15b5   :  { %v5477_v6 = vmul.f32 %v5471_v49, %v12553_v31  ;;  %v5469_v23 = vpop.permute.xlu0 %5468 }
0x15b6   :  { %v5476_v62 = vmul.f32 %v5469_v23, %v12553_v31  ;;  %v5467_v51 = vadd.f32 %v5463_v63, %v5451_v32 }
0x15b7   :  { %v13343_v59 = vadd.f32 %v5477_v6, %v5465_v10 }
0x15b8   :  { %v13345_v56 = vadd.f32 %v5476_v62, %v5464_v60  ;;  %v5475_v50 = vpop.permute.xlu1 %5474 }
0x15b9   :  { %5496 = vadd.xlane.f32.xlu1 %v13343_v59  ;;  %v5473_v16 = vpop.permute.xlu0 %5472  ;;  %v5507_v40 = vmul.f32 %v13343_v59, %v13343_v59  ;;  %v5479_v53 = vmul.f32 %v5475_v50, %v12553_v31 }
0x15ba   :  { %v5478_v20 = vmul.f32 %v5473_v16, %v12553_v31  ;;  %5494 = vadd.xlane.f32.xlu0 %v13345_v56  ;;  %v5506_v5 = vmul.f32 %v13345_v56, %v13345_v56 }
0x15bb   :  { %v13366_v48 = vadd.f32 %v5479_v53, %v5467_v51 }
0x15bc   :  { %v13355_v12 = vadd.f32 %v5478_v20, %v5466_v18 }
0x15bd   :  { %v5509_v35 = vmul.f32 %v13366_v48, %v13366_v48 }
0x15be   :  { %5512 = vadd.xlane.f32.xlu0 %v5507_v40  ;;  %5498 = vadd.xlane.f32.xlu1 %v13355_v12  ;;  %v5508_v11 = vmul.f32 %v13355_v12, %v13355_v12 }
0x15c2   :  { %5510 = vadd.xlane.f32.xlu0 %v5506_v5  ;;  %5514 = vadd.xlane.f32.xlu1 %v5508_v11  ;;  %v8734_v5 = vld [vmem:[%s14641_s5 + $0x248] sm:$0xff] }
0x15c6   :  { %5500 = vadd.xlane.f32.xlu0 %v13366_v48 }
0x15ca   :  { %5516 = vadd.xlane.f32.xlu0 %v5509_v35 }
0x15d3   :  { %5576 = vperm.xlu1 %10092, %v8737_v1   ;;  %v8735_v1 = vld [vmem:[%s14641_s5 + $0x250] sm:$0xff] }
0x15d7   :  { %5581 = vperm.xlu1 %10092, %v8738_v9   ;;  %v8733_v9 = vld [vmem:[%s14641_s5 + $0x240] sm:$0xff] }
0x1646   :  { %v5497_v39 = vpop.xlane.xlu1 %5496 }
0x1647   :  { %v5495_v43 = vpop.xlane.xlu0 %5494  ;;  %v5503_v15 = vmul.f32 0.03125, %v5497_v39 }
0x1648   :  { %v13377_v34 = vmul.f32 0.03125, %v5495_v43 }
0x1649   :  { %v5523_v13 = vmul.f32 %v5503_v15, %v5503_v15 }
0x164a   :  { %v5522_v6 = vmul.f32 %v13377_v34, %v13377_v34 }
0x164b   :  { %v5499_v3 = vpop.xlane.xlu1 %5498  ;;  %v5513_v2 = vpop.xlane.xlu0 %5512 }
0x164c   :  { %v13379_v49 = vmul.f32 0.03125, %v5499_v3  ;;  %v5519_v24 = vmul.f32 0.03125, %v5513_v2 }
0x164e   :  { %v5527_v10 = vsub.f32 %v5519_v24, %v5523_v13  ;;  %v5524_v60 = vmul.f32 %v13379_v49, %v13379_v49  ;;  %v8739_v13 = vld [vmem:[%s14641_s5 + $0x270] sm:$0xff]  ;;  %v8736_v24 = vld [vmem:[%s14641_s5 + $0x258] sm:$0xff] }
0x164f   :  { %v5515_v23 = vpop.xlane.xlu1 %5514  ;;  %v5511_v26 = vpop.xlane.xlu0 %5510 }
0x1650   :  { %v5531_v8 = vmax.f32 %v5527_v10, 0.0  ;;  %v5520_v62 = vmul.f32 0.03125, %v5515_v23  ;;  %v5518_v17 = vmul.f32 0.03125, %v5511_v26  ;;  %v8740_v23 = vld [vmem:[%s14641_s5 + $0x278] sm:$0xff]  ;;  %v8661_v26 = vld [vmem:[%s14647_s9 + $0x360] sm:$0xff] }
0x1651   :  { %9670 = vmatprep.mubr.msk.f32.mxu1 %vm2987_vm10, %v8661_v26  ;;  %v8672_v26 = vld [vmem:[%s14647_s9 + $0x3b8] sm:$0xff] }
0x1652   :  { %v5539_v38 = vadd.f32 1e-05, %v5531_v8  ;;  %v5528_v16 = vsub.f32 %v5520_v62, %v5524_v60  ;;  %v5526_v22 = vsub.f32 %v5518_v17, %v5522_v6  ;;  %v5535_v8 = vsub.f32 %v13343_v59, %v5503_v15 }
0x1653   :  { %v5501_v28 = vpop.xlane.xlu0 %5500  ;;  %v5577_v60 = vpop.permute.xlu1 %5576 }
0x1654   :  { %10121 = vrsqrt.f32 %v5539_v38  ;;  %v5532_v18 = vmax.f32 %v5528_v16, 0.0  ;;  %v5530_v20 = vmax.f32 %v5526_v22, 0.0  ;;  %v5505_v0 = vmul.f32 0.03125, %v5501_v28 }
0x1655   :  { %v5534_v22 = vsub.f32 %v13345_v56, %v13377_v34 }
0x1656   :  { %v5540_v27 = vadd.f32 1e-05, %v5532_v18  ;;  %v5538_v40 = vadd.f32 1e-05, %v5530_v20  ;;  %v5525_v37 = vmul.f32 %v5505_v0, %v5505_v0 }
0x1657   :  { %v5517_v50 = vpop.xlane.xlu0 %5516  ;;  %v5582_v17 = vpop.permute.xlu1 %5581 }
0x1658   :  { %10123 = vrsqrt.f32 %v5540_v27  ;;  %v5521_v63 = vmul.f32 0.03125, %v5517_v50  ;;  %v5536_v50 = vsub.f32 %v13355_v12, %v13379_v49 }
0x1659   :  { %10125 = vrsqrt.f32 %v5538_v40 }
0x165a   :  { %v5529_v32 = vsub.f32 %v5521_v63, %v5525_v37 }
0x165c   :  { %v5533_v53 = vmax.f32 %v5529_v32, 0.0 }
0x165e   :  { %v10122_v11 = vpop.eup %10121  ;;  %v5541_v51 = vadd.f32 1e-05, %v5533_v53 }
0x165f   :  { %v5547_v35 = vmul.f32 %v10122_v11, %v8734_v5  ;;  %v5537_v11 = vsub.f32 %v13366_v48, %v5505_v0  ;;  %v8663_v48 = vld [vmem:[%s14647_s9 + $0x370] sm:$0xff]  ;;  %v8664_v0 = vld [vmem:[%s14647_s9 + $0x378] sm:$0xff] }
0x1660   :  { %10127 = vrsqrt.f32 %v5541_v51 }
0x1661   :  { %5557 = vperm.xlu0 %10091, %v5547_v35  }
0x1662   :  { %v10124_v39 = vpop.eup %10123 }
0x1663   :  { %v10126_v43 = vpop.eup %10125  ;;  %v5548_v3 = vmul.f32 %v10124_v39, %v8735_v1 }
0x1664   :  { %v5546_v2 = vmul.f32 %v10126_v43, %v8733_v9  ;;  %v8662_v43 = vld [vmem:[%s14647_s9 + $0x368] sm:$0xff] }
0x1665   :  { %5562 = vperm.xlu0 %10091, %v5548_v3   ;;  %v8665_v3 = vld [vmem:[%s14647_s9 + $0x380] sm:$0xff] }
0x1666   :  { %5552 = vperm.xlu1 %10092, %v5546_v2   ;;  %v8666_v2 = vld [vmem:[%s14647_s9 + $0x388] sm:$0xff] }
0x1669   :  { %5586 = vperm.xlu0 %10091, %v8739_v13   ;;  %v8667_v13 = vld [vmem:[%s14647_s9 + $0x390] sm:$0xff] }
0x166a   :  { %v10128_v10 = vpop.eup %10127 }
0x166b   :  { %v5549_v6 = vmul.f32 %v10128_v10, %v8736_v24  ;;  %v8668_v24 = vld [vmem:[%s14647_s9 + $0x398] sm:$0xff]  ;;  %v8669_v10 = vld [vmem:[%s14647_s9 + $0x3a0] sm:$0xff] }
0x166d   :  { %5567 = vperm.xlu1 %10092, %v5549_v6   ;;  %v8670_v6 = vld [vmem:[%s14647_s9 + $0x3a8] sm:$0xff] }
0x1671   :  { %5591 = vperm.xlu1 %10092, %v8740_v23   ;;  %v8671_v23 = vld [vmem:[%s14647_s9 + $0x3b0] sm:$0xff] }
0x16e0   :  { %v5558_v62 = vpop.permute.xlu0 %5557 }
0x16e1   :  { %v5571_v38 = vmul.f32 %v5558_v62, %v5535_v8  ;;  %v8674_v8 = vld [vmem:[%s14647_s9 + $0x3c8] sm:$0xff]  ;;  %v8675_v62 = vld [vmem:[%s14647_s9 + $0x3d0] sm:$0xff] }
0x16e3   :  { %v5595_v16 = vadd.f32 %v5582_v17, %v5571_v38  ;;  %v8676_v17 = vld [vmem:[%s14647_s9 + $0x3d8] sm:$0xff]  ;;  %v8677_v38 = vld [vmem:[%s14647_s9 + $0x3e0] sm:$0xff] }
0x16e4   :  { %v5563_v28 = vpop.permute.xlu0 %5562 }
0x16e5   :  { %v5553_v18 = vpop.permute.xlu1 %5552  ;;  %v5599_v27 = vmul.f32 %v5595_v16, %v12196_v21  ;;  %v5572_v59 = vmul.f32 %v5563_v28, %v5536_v50  ;;  %v8678_v16 = vld [vmem:[%s14647_s9 + $0x3e8] sm:$0xff]  ;;  %v8680_v28 = vld [vmem:[%s14647_s9 + $0x3f8] sm:$0xff]  ;;  %v8685_v50 = vld [vmem:[%s14647_s9 + $0x420] sm:$0xff] }
0x16e6   :  { %v5570_v20 = vmul.f32 %v5553_v18, %v5534_v22  ;;  %v8679_v22 = vld [vmem:[%s14647_s9 + $0x3f0] sm:$0xff]  ;;  %v8681_v18 = vld [vmem:[%s14647_s9 + $0x400] sm:$0xff] }
0x16e7   :  { %v5603_v53 = vmax.f32 %v5599_v27, 0.0  ;;  %v8683_v27 = vld [vmem:[%s14647_s9 + $0x410] sm:$0xff] }
0x16e8   :  { %v5594_v40 = vadd.f32 %v5577_v60, %v5570_v20  ;;  %v5587_v63 = vpop.permute.xlu0 %5586  ;;  %v8673_v60 = vld [vmem:[%s14647_s9 + $0x3c0] sm:$0xff]  ;;  %v8682_v20 = vld [vmem:[%s14647_s9 + $0x408] sm:$0xff] }
0x16e9   :  { %v5596_v5 = vadd.f32 %v5587_v63, %v5572_v59  ;;  %v8687_v63 = vld [vmem:[%s14647_s9 + $0x430] sm:$0xff]  ;;  %v8688_v59 = vld [vmem:[%s14647_s9 + $0x438] sm:$0xff] }
0x16ea   :  { %v5598_v37 = vmul.f32 %v5594_v40, %v12196_v21  ;;  %v8684_v40 = vld [vmem:[%s14647_s9 + $0x418] sm:$0xff] }
0x16eb   :  { %v5600_v35 = vmul.f32 %v5596_v5, %v12196_v21  ;;  %v8692_v5 = vld [vmem:[%s14647_s9 + $0x458] sm:$0xff] }
0x16ec   :  { %v5568_v15 = vpop.permute.xlu1 %5567  ;;  %v5602_v32 = vmax.f32 %v5598_v37, 0.0  ;;  %v8686_v37 = vld [vmem:[%s14647_s9 + $0x428] sm:$0xff] }
0x16ed   :  { %v5573_v34 = vmul.f32 %v5568_v15, %v5537_v11  ;;  %v5604_v49 = vmax.f32 %v5600_v35, 0.0  ;;  %v8689_v15 = vld [vmem:[%s14647_s9 + $0x440] sm:$0xff] }
0x16ee   :  { %v9981_v56 = vpack.c.bf16 %v5603_v53, %v5602_v32  ;;  %v8690_v32 = vld [vmem:[%s14647_s9 + $0x448] sm:$0xff]  ;;  %v8691_v53 = vld [vmem:[%s14647_s9 + $0x450] sm:$0xff]  ;;  %v8693_v11 = vld [vmem:[%s14647_s9 + $0x460] sm:$0xff] }
0x16f0   :  { %9982 = vmatprep.subr.bf16.mxu1 %v9981_v56  ;;  %v5592_v51 = vpop.permute.xlu1 %5591 }
0x16f1   :  { %v5597_v1 = vadd.f32 %v5592_v51, %v5573_v34  ;;  %9984 = vmatpush3.bf16.msra.mxu1 %v9981_v56  ;;  %v8694_v56 = vld [vmem:[%s14647_s9 + $0x468] sm:$0xff]  ;;  %v8695_v34 = vld [vmem:[%s14647_s9 + $0x470] sm:$0xff]  ;;  %v8696_v51 = vld [vmem:[%s14647_s9 + $0x478] sm:$0xff] }
0x16f3   :  { %v5601_v12 = vmul.f32 %v5597_v1, %v12196_v21 }
0x16f5   :  { %v5605_v9 = vmax.f32 %v5601_v12, 0.0 }
0x16f7   :  { %v9985_v39 = vpack.c.bf16 %v5605_v9, %v5604_v49 }
0x16f9   :  { %9986 = vmatprep.subr.bf16.mxu1 %v9985_v39 }
0x16fa   :  { %9988 = vmatpush3.bf16.msra.mxu1 %v9985_v39 }
0x16fd   :  { %9671 = vmatmul.mubr.msk.f32.vlgmr.msra.gmra.mrb[146].mxu1 %vm2987_vm10, %v8662_v43 }
0x16fe   :  { %9673 = vmatprep.mubr.msk.f32.mxu1 %vm2987_vm10, %v8663_v48 }
0x1701   :  { %9674 = vmatmul.mubr.msk.f32.gmra.mrb[148].mxu1 %vm2987_vm10, %v8664_v0 }
0x1702   :  { %9676 = vmatprep.mubr.msk.f32.mxu1 %vm2987_vm10, %v8665_v3 }
0x1705   :  { %9677 = vmatmul.mubr.msk.f32.gmra.mrb[150].mxu1 %vm2987_vm10, %v8666_v2 }
0x1706   :  { %9679 = vmatprep.mubr.msk.f32.mxu1 %vm2987_vm10, %v8667_v13 }
0x1709   :  { %9680 = vmatmul.mubr.msk.f32.gmra.mrb[152].mxu1 %vm2987_vm10, %v8668_v24 }
0x170a   :  { %9682 = vmatprep.mubr.msk.f32.mxu1 %vm2987_vm10, %v8669_v10 }
0x170d   :  { %9683 = vmatmul.mubr.msk.f32.gmra.mrb[154].mxu1 %vm2987_vm10, %v8670_v6 }
0x170e   :  { %9685 = vmatprep.mubr.msk.f32.mxu1 %vm2987_vm10, %v8671_v23 }
0x1711   :  { %9686 = vmatmul.mubr.msk.f32.gmra.mrb[156].mxu1 %vm2987_vm10, %v8672_v26 }
0x1712   :  { %9688 = vmatprep.mubr.msk.f32.mxu1 %vm2987_vm10, %v8673_v60 }
0x1715   :  { %9689 = vmatmul.mubr.msk.f32.gmra.mrb[158].mxu1 %vm2987_vm10, %v8674_v8 }
0x1716   :  { %9691 = vmatprep.mubr.msk.f32.mxu1 %vm2987_vm10, %v8675_v62 }
0x1719   :  { %9692 = vmatmul.mubr.msk.f32.gmra.mrb[160].mxu1 %vm2987_vm10, %v8676_v17 }
0x171a   :  { %9694 = vmatprep.mubr.msk.f32.mxu1 %vm2987_vm10, %v8677_v38 }
0x171d   :  { %9695 = vmatmul.mubr.msk.f32.gmra.mrb[162].mxu1 %vm2987_vm10, %v8678_v16 }
0x171e   :  { %9697 = vmatprep.mubr.msk.f32.mxu1 %vm2987_vm10, %v8679_v22 }
0x1721   :  { %9698 = vmatmul.mubr.msk.f32.gmra.mrb[164].mxu1 %vm2987_vm10, %v8680_v28 }
0x1722   :  { %9700 = vmatprep.mubr.msk.f32.mxu1 %vm2987_vm10, %v8681_v18 }
0x1725   :  { %9701 = vmatmul.mubr.msk.f32.gmra.mrb[166].mxu1 %vm2987_vm10, %v8682_v20 }
0x1726   :  { %9703 = vmatprep.mubr.msk.f32.mxu1 %vm2987_vm10, %v8683_v27 }
0x1729   :  { %9704 = vmatmul.mubr.msk.f32.gmra.mrb[168].mxu1 %vm2987_vm10, %v8684_v40 }
0x172a   :  { %9706 = vmatprep.mubr.msk.f32.mxu1 %vm2987_vm10, %v8685_v50 }
0x172d   :  { %9707 = vmatmul.mubr.msk.f32.gmra.mrb[170].mxu1 %vm2987_vm10, %v8686_v37 }
0x172e   :  { %9709 = vmatprep.mubr.msk.f32.mxu1 %vm2987_vm10, %v8687_v63 }
0x1731   :  { %9710 = vmatmul.mubr.msk.f32.gmra.mrb[172].mxu1 %vm2987_vm10, %v8688_v59 }
0x1732   :  { %9712 = vmatprep.mubr.msk.f32.mxu1 %vm2987_vm10, %v8689_v15 }
0x1735   :  { %9713 = vmatmul.mubr.msk.f32.gmra.mrb[174].mxu1 %vm2987_vm10, %v8690_v32 }
0x1736   :  { %9715 = vmatprep.mubr.msk.f32.mxu1 %vm2987_vm10, %v8691_v53 }
0x1739   :  { %9716 = vmatmul.mubr.msk.f32.gmra.mrb[176].mxu1 %vm2987_vm10, %v8692_v5 }
0x173a   :  { %9718 = vmatprep.mubr.msk.f32.mxu1 %vm2987_vm10, %v8693_v11 }
0x173d   :  { %9719 = vmatmul.mubr.msk.f32.gmra.mrb[178].mxu1 %vm2987_vm10, %v8694_v56 }
0x173e   :  { %9721 = vmatprep.mubr.msk.f32.mxu1 %vm2987_vm10, %v8695_v34 }
0x1741   :  { %9722 = vmatmul.mubr.msk.f32.gmra.mrb[180].mxu1 %vm2987_vm10, %v8696_v51 }
0x17d0   :  { %v9672_v35 = vpop.f32.mrb[146].mxu1 }
0x17d1   :  { %5961 = vrot.lane.b32.xlu1 %v9672_v35, %s10168_s3  ;;  %v5780_v1 = vpop.f32.mrb[147].mxu1 }
0x17d2   :  { %5959 = vrot.lane.b32.xlu0 %v5780_v1, %s10168_s3 }
0x17d4   :  { %v9675_v12 = vpop.f32.mrb[148].mxu1 }
0x17d5   :  { %5965 = vrot.lane.b32.xlu1 %v9675_v12, %s10168_s3  ;;  %v5790_v49 = vpop.f32.mrb[149].mxu1 }
0x17d8   :  { %v9678_v9 = vpop.f32.mrb[150].mxu1 }
0x17d9   :  { %5973 = vrot.lane.b32.xlu0 %v9678_v9, %s10169_s20  ;;  %5963 = vrot.lane.b32.xlu1 %v5790_v49, %s10168_s3  ;;  %v5800_v39 = vpop.f32.mrb[151].mxu1 }
0x17dc   :  { %v9681_v43 = vpop.f32.mrb[152].mxu1 }
0x17dd   :  { %5977 = vrot.lane.b32.xlu0 %v9681_v43, %s10169_s20  ;;  %v5810_v48 = vpop.f32.mrb[153].mxu1  ;;  %5971 = vrot.lane.b32.xlu1 %v5800_v39, %s10169_s20 }
0x17e0   :  { %v9684_v0 = vpop.f32.mrb[154].mxu1 }
0x17e1   :  { %v5820_v3 = vpop.f32.mrb[155].mxu1  ;;  %5975 = vrot.lane.b32.xlu0 %v5810_v48, %s10169_s20 }
0x17e4   :  { %v9687_v2 = vpop.f32.mrb[156].mxu1 }
0x17e5   :  { %v5830_v13 = vpop.f32.mrb[157].mxu1  ;;  %5989 = vrot.lane.b32.xlu0 %v9684_v0, %s10170_s21 }
0x17e6   :  { %5991 = vrot.lane.b32.xlu1 %v5830_v13, %s10170_s21 }
0x17e8   :  { %v9690_v24 = vpop.f32.mrb[158].mxu1 }
0x17e9   :  { %5987 = vrot.lane.b32.xlu0 %v5820_v3, %s10170_s21  ;;  %v5840_v10 = vpop.f32.mrb[159].mxu1 }
0x17ea   :  { %6005 = vrot.lane.b32.xlu1 %v9690_v24, %s10163_s0 }
0x17ec   :  { %v9693_v6 = vpop.f32.mrb[160].mxu1 }
0x17ed   :  { %5993 = vrot.lane.b32.xlu0 %v9687_v2, %s10170_s21  ;;  %v5850_v23 = vpop.f32.mrb[161].mxu1 }
0x17ee   :  { %6003 = vrot.lane.b32.xlu1 %v5840_v10, %s10163_s0 }
0x17f0   :  { %v13571_v26 = vpop.f32.mrb[162].mxu1 }
0x17f1   :  { %v13573_v60 = vpop.f32.mrb[163].mxu1 }
0x17f2   :  { %6009 = vrot.lane.b32.xlu1 %v9693_v6, %s10163_s0 }
0x17f4   :  { %v13576_v8 = vpop.f32.mrb[164].mxu1 }
0x17f5   :  { %v13578_v62 = vpop.f32.mrb[165].mxu1 }
0x17f6   :  { %6007 = vrot.lane.b32.xlu1 %v5850_v23, %s10163_s0 }
0x17f8   :  { %v9702_v17 = vpop.f32.mrb[166].mxu1 }
0x17f9   :  { %6029 = vrot.lane.b32.xlu0 %v9702_v17, %s10164_s17  ;;  %v5880_v38 = vpop.f32.mrb[167].mxu1 }
0x17fc   :  { %v9705_v16 = vpop.f32.mrb[168].mxu1 }
0x17fd   :  { %6027 = vrot.lane.b32.xlu0 %v5880_v38, %s10164_s17  ;;  %v5890_v22 = vpop.f32.mrb[169].mxu1 }
0x1800   :  { %v9708_v28 = vpop.f32.mrb[170].mxu1 }
0x1801   :  { %6031 = vrot.lane.b32.xlu0 %v5890_v22, %s10164_s17  ;;  %6045 = vrot.lane.b32.xlu1 %v9708_v28, %s10171_s22  ;;  %v5900_v18 = vpop.f32.mrb[171].mxu1 }
0x1804   :  { %v9711_v20 = vpop.f32.mrb[172].mxu1 }
0x1805   :  { %6043 = vrot.lane.b32.xlu0 %v5900_v18, %s10171_s22  ;;  %v5910_v27 = vpop.f32.mrb[173].mxu1 }
0x1808   :  { %v9714_v40 = vpop.f32.mrb[174].mxu1 }
0x1809   :  { %6047 = vrot.lane.b32.xlu0 %v5910_v27, %s10171_s22  ;;  %6061 = vrot.lane.b32.xlu1 %v9714_v40, %s10172_s23  ;;  %v5920_v50 = vpop.f32.mrb[175].mxu1 }
0x180c   :  { %v9717_v37 = vpop.f32.mrb[176].mxu1 }
0x180d   :  { %6059 = vrot.lane.b32.xlu1 %v5920_v50, %s10172_s23  ;;  %v5930_v63 = vpop.f32.mrb[177].mxu1 }
0x1810   :  { %v9720_v59 = vpop.f32.mrb[178].mxu1 }
0x1811   :  { %6077 = vrot.lane.b32.xlu1 %v9720_v59, %s10173_s8  ;;  %v5940_v15 = vpop.f32.mrb[179].mxu1 }
0x1812   :  { %6075 = vrot.lane.b32.xlu0 %v5940_v15, %s10173_s8 }
0x1814   :  { %v9723_v32 = vpop.f32.mrb[180].mxu1 }
0x1815   :  { %6063 = vrot.lane.b32.xlu1 %v5930_v63, %s10172_s23  ;;  %v5950_v53 = vpop.f32.mrb[181].mxu1 }
0x1816   :  { %6033 = vrot.lane.b32.xlu0 %v9705_v16, %s10164_s17 }
0x1819   :  { %6079 = vrot.lane.b32.xlu1 %v5950_v53, %s10173_s8 }
0x181a   :  { %6049 = vrot.lane.b32.xlu0 %v9711_v20, %s10171_s22 }
0x181d   :  { %6081 = vrot.lane.b32.xlu1 %v9723_v32, %s10173_s8  ;;  %s14956_s8 = smov 11  }
0x181e   :  { %6065 = vrot.lane.b32.xlu0 %v9717_v37, %s10172_s23 }
0x1843   :  { %v5962_v5 = vpop.permute.xlu1 %5961 }
0x1844   :  { %v5960_v11 = vpop.permute.xlu0 %5959  ;;  %v5968_v18 = vmul.f32 %v5962_v5, %v12490_v41 }
0x1845   :  { %v5967_v23 = vmul.f32 %v5960_v11, %v12490_v41  ;;  %v6019_v11 = vmul.f32 %v13573_v60, %v12514_v36 }
0x1847   :  { %v5966_v56 = vpop.permute.xlu1 %5965 }
0x184b   :  { %v5974_v34 = vpop.permute.xlu0 %5973  ;;  %v5964_v35 = vpop.permute.xlu1 %5963 }
0x184c   :  { %v5980_v38 = vmul.f32 %v5974_v34, %v12482_v4  ;;  %v5969_v32 = vmul.f32 %v5964_v35, %v12490_v41 }
0x184e   :  { %v5984_v37 = vadd.f32 %v5980_v38, %v5968_v18  ;;  %v5970_v38 = vmul.f32 %v5966_v56, %v12490_v41 }
0x184f   :  { %v5978_v51 = vpop.permute.xlu0 %5977  ;;  %v5972_v12 = vpop.permute.xlu1 %5971 }
0x1850   :  { %v5979_v24 = vmul.f32 %v5972_v12, %v12482_v4 }
0x1852   :  { %v5983_v16 = vadd.f32 %v5979_v24, %v5967_v23  ;;  %v5982_v24 = vmul.f32 %v5978_v51, %v12482_v4  ;;  %v6021_v51 = vmul.f32 %v13578_v62, %v12514_v36 }
0x1853   :  { %v5976_v1 = vpop.permute.xlu0 %5975 }
0x1854   :  { %v5981_v40 = vmul.f32 %v5976_v1, %v12482_v4 }
0x1856   :  { %v5985_v12 = vadd.f32 %v5981_v40, %v5969_v32 }
0x1857   :  { %v5990_v9 = vpop.permute.xlu0 %5989 }
0x1858   :  { %v5992_v49 = vpop.permute.xlu1 %5991  ;;  %v5996_v20 = vmul.f32 %v5990_v9, %v12493_v25 }
0x1859   :  { %v5997_v53 = vmul.f32 %v5992_v49, %v12493_v25  ;;  %v6020_v49 = vmul.f32 %v13571_v26, %v12514_v36 }
0x185a   :  { %v6000_v34 = vadd.f32 %v5996_v20, %v5984_v37 }
0x185b   :  { %v5988_v43 = vpop.permute.xlu0 %5987  ;;  %v6001_v23 = vadd.f32 %v5997_v53, %v5985_v12 }
0x185c   :  { %v6006_v39 = vpop.permute.xlu1 %6005  ;;  %v5995_v17 = vmul.f32 %v5988_v43, %v12493_v25 }
0x185d   :  { %v6012_v63 = vmul.f32 %v6006_v39, %v12499_v29 }
0x185e   :  { %v5999_v27 = vadd.f32 %v5995_v17, %v5983_v16 }
0x185f   :  { %v5994_v0 = vpop.permute.xlu0 %5993  ;;  %v6016_v1 = vadd.f32 %v6012_v63, %v6000_v34 }
0x1860   :  { %v6004_v48 = vpop.permute.xlu1 %6003  ;;  %v5998_v16 = vmul.f32 %v5994_v0, %v12493_v25 }
0x1861   :  { %v6011_v22 = vmul.f32 %v6004_v48, %v12499_v29 }
0x1863   :  { %v6015_v59 = vadd.f32 %v6011_v22, %v5999_v27  ;;  %v6024_v22 = vadd.f32 %v6020_v49, %v6016_v1  ;;  %v5986_v27 = vadd.f32 %v5982_v24, %v5970_v38 }
0x1864   :  { %v6010_v2 = vpop.permute.xlu1 %6009 }
0x1865   :  { %v6023_v43 = vadd.f32 %v6019_v11, %v6015_v59  ;;  %v6014_v26 = vmul.f32 %v6010_v2, %v12499_v29  ;;  %v6002_v37 = vadd.f32 %v5998_v16, %v5986_v27  ;;  %v6231_v27 = vld [vmem:[%s14652_s4 + $0x50] sm:$0xff] }
0x1867   :  { %v6018_v53 = vadd.f32 %v6014_v26, %v6002_v37 }
0x1868   :  { %v6008_v10 = vpop.permute.xlu1 %6007 }
0x1869   :  { %v6013_v9 = vmul.f32 %v6008_v10, %v12499_v29 }
0x186b   :  { %v6030_v3 = vpop.permute.xlu0 %6029  ;;  %v6017_v10 = vadd.f32 %v6013_v9, %v6001_v23 }
0x186c   :  { %v6036_v60 = vmul.f32 %v6030_v3, %v12521_v46 }
0x186d   :  { %v6025_v0 = vadd.f32 %v6021_v51, %v6017_v10  ;;  %v6228_v51 = vld [vmem:[%s14652_s4 + $0x38] sm:$0xff] }
0x186f   :  { %v6028_v13 = vpop.permute.xlu0 %6027 }
0x1870   :  { %v6035_v5 = vmul.f32 %v6028_v13, %v12521_v46 }
0x1872   :  { %v6039_v17 = vadd.f32 %v6035_v5, %v6023_v43  ;;  %v6022_v5 = vmul.f32 %v13576_v8, %v12514_v36 }
0x1873   :  { %v6032_v6 = vpop.permute.xlu0 %6031  ;;  %v6046_v28 = vpop.permute.xlu1 %6045 }
0x1874   :  { %v6052_v18 = vmul.f32 %v6046_v28, %v12528_v33  ;;  %v6037_v3 = vmul.f32 %v6032_v6, %v12521_v46  ;;  %v6026_v24 = vadd.f32 %v6022_v5, %v6018_v53  ;;  %v6243_v53 = vld [vmem:[%s14652_s4 + $0xb0] sm:$0xff] }
0x1876   :  { %v6041_v29 = vadd.f32 %v6037_v3, %v6025_v0  ;;  %v9993_v3 = vpack.c.bf16 %v6231_v27, %v6228_v51  ;;  %v6226_v0 = vld [vmem:[%s14652_s4 + $0x28] sm:$0xff] }
0x1877   :  { %v6044_v50 = vpop.permute.xlu0 %6043 }
0x1878   :  { %v6051_v48 = vmul.f32 %v6044_v50, %v12528_v33  ;;  %v6040_v50 = vadd.f32 %v6036_v60, %v6024_v22  ;;  %v6225_v22 = vld [vmem:[%s14652_s4 + $0x20] sm:$0xff] }
0x187a   :  { %v6055_v20 = vadd.f32 %v6051_v48, %v6039_v17  ;;  %v6056_v63 = vadd.f32 %v6052_v18, %v6040_v50  ;;  %v6221_v18 = vld [vmem:[%s14652_s4] sm:$0xff]  ;;  %v6230_v50 = vld [vmem:[%s14652_s4 + $0x48] sm:$0xff] }
0x187b   :  { %v6062_v15 = vpop.permute.xlu1 %6061  ;;  %v6048_v35 = vpop.permute.xlu0 %6047 }
0x187c   :  { %v6068_v41 = vmul.f32 %v6062_v15, %v12537_v30  ;;  %v6053_v28 = vmul.f32 %v6048_v35, %v12528_v33 }
0x187e   :  { %v6072_v11 = vadd.f32 %v6068_v41, %v6056_v63  ;;  %v6057_v34 = vadd.f32 %v6053_v28, %v6041_v29  ;;  %v6234_v41 = vld [vmem:[%s14652_s4 + $0x68] sm:$0xff]  ;;  %v6233_v63 = vld [vmem:[%s14652_s4 + $0x60] sm:$0xff] }
0x187f   :  { %v6060_v39 = vpop.permute.xlu1 %6059  ;;  %v6229_v29 = vld [vmem:[%s14652_s4 + $0x40] sm:$0xff] }
0x1880   :  { %v6067_v13 = vmul.f32 %v6060_v39, %v12537_v30 }
0x1882   :  { %v6071_v56 = vadd.f32 %v6067_v13, %v6055_v20 }
0x1883   :  { %v6078_v4 = vpop.permute.xlu1 %6077 }
0x1884   :  { %v6076_v40 = vpop.permute.xlu0 %6075  ;;  %v6084_v59 = vmul.f32 %v6078_v4, %v12553_v31  ;;  %v6224_v4 = vld [vmem:[%s14652_s4 + $0x18] sm:$0xff] }
0x1885   :  { %v6083_v25 = vmul.f32 %v6076_v40, %v12553_v31  ;;  %v9991_v26 = vpack.c.bf16 %v6224_v4, %v6221_v18  ;;  %v6227_v40 = vld [vmem:[%s14652_s4 + $0x30] sm:$0xff] }
0x1886   :  { %v13637_v12 = vadd.f32 %v6084_v59, %v6072_v11  ;;  %v9995_v28 = vpack.c.bf16 %v6230_v50, %v6227_v40 }
0x1887   :  { %v13629_v62 = vadd.f32 %v6083_v25, %v6071_v56  ;;  %v6064_v32 = vpop.permute.xlu1 %6063  ;;  %v6237_v56 = vld [vmem:[%s14652_s4 + $0x80] sm:$0xff]  ;;  %v6223_v25 = vld [vmem:[%s14652_s4 + $0x10] sm:$0xff] }
0x1888   :  { %v6069_v2 = vmul.f32 %v6064_v32, %v12537_v30  ;;  %v6034_v6 = vpop.permute.xlu0 %6033  ;;  %v6114_v36 = vmul.f32 %v13637_v12, %v13637_v12  ;;  %v10021_v37 = vpack.c.bf16 %v6226_v0, %v6223_v25  ;;  %v9997_v59 = vpack.c.bf16 %v6237_v56, %v6234_v41  ;;  %v6236_v32 = vld [vmem:[%s14652_s4 + $0x78] sm:$0xff] }
0x1889   :  { %6101 = vadd.xlane.f32.xlu0 %v13629_v62  ;;  %v6113_v15 = vmul.f32 %v13629_v62, %v13629_v62  ;;  %v6038_v9 = vmul.f32 %v6034_v6, %v12521_v46  ;;  %v6240_v6 = vld [vmem:[%s14652_s4 + $0x98] sm:$0xff]  ;;  %v9999_v5 = vpack.c.bf16 %v6236_v32, %v6233_v63 }
0x188a   :  { %v6073_v43 = vadd.f32 %v6069_v2, %v6057_v34  ;;  %v6232_v2 = vld [vmem:[%s14652_s4 + $0x58] sm:$0xff]  ;;  %10022 = vmatprep.subr.bf16.mxu1 %v10021_v37  ;;  %v6238_v34 = vld [vmem:[%s14652_s4 + $0x88] sm:$0xff] }
0x188b   :  { %6117 = vadd.xlane.f32.xlu1 %v6113_v15  ;;  %v6080_v1 = vpop.permute.xlu1 %6079  ;;  %v6042_v49 = vadd.f32 %v6038_v9, %v6026_v24  ;;  %v10025_v11 = vpack.c.bf16 %v6232_v2, %v6229_v29  ;;  %10024 = vmatpush3.bf16.msra.mxu1 %v10021_v37  ;;  %v6235_v15 = vld [vmem:[%s14652_s4 + $0x70] sm:$0xff]  ;;  %v6249_v24 = vld [vmem:[%s14652_s4 + $0xe0] sm:$0xff] }
0x188c   :  { %v6085_v48 = vmul.f32 %v6080_v1, %v12553_v31  ;;  %v6050_v39 = vpop.permute.xlu0 %6049  ;;  %v10029_v9 = vpack.c.bf16 %v6238_v34, %v6235_v15  ;;  %v10001_v1 = vpack.c.bf16 %v6243_v53, %v6240_v6  ;;  %v8777_v53 = vld [vmem:[%s14641_s5 + $0x280] sm:$0xff] }
0x188d   :  { %v6054_v23 = vmul.f32 %v6050_v39, %v12528_v33  ;;  %6103 = vadd.xlane.f32.xlu0 %v13637_v12  ;;  %10026 = vmatprep.subr.bf16.mxu1 %v10025_v11  ;;  %v6246_v39 = vld [vmem:[%s14652_s4 + $0xc8] sm:$0xff] }
0x188e   :  { %v13643_v35 = vadd.f32 %v6085_v48, %v6073_v43  ;;  %v6239_v43 = vld [vmem:[%s14652_s4 + $0x90] sm:$0xff]  ;;  %v6242_v48 = vld [vmem:[%s14652_s4 + $0xa8] sm:$0xff] }
0x188f   :  { %v6082_v46 = vpop.permute.xlu1 %6081  ;;  %v6058_v60 = vadd.f32 %v6054_v23, %v6042_v49  ;;  %10028 = vmatpush3.bf16.msra.mxu1 %v10025_v11  ;;  %v10003_v23 = vpack.c.bf16 %v6242_v48, %v6239_v43  ;;  %v10005_v49 = vpack.c.bf16 %v6249_v24, %v6246_v39  ;;  %v6244_v39 = vld [vmem:[%s14652_s4 + $0xb8] sm:$0xff]  ;;  %v6251_v24 = vld [vmem:[%s14652_s4 + $0xf0] sm:$0xff] }
0x1890   :  { %v6066_v8 = vpop.permute.xlu0 %6065  ;;  %6105 = vadd.xlane.f32.xlu1 %v13643_v35  ;;  %v6086_v38 = vmul.f32 %v6082_v46, %v12553_v31  ;;  %v6115_v33 = vmul.f32 %v13643_v35, %v13643_v35  ;;  %v6222_v31 = vld [vmem:[%s14652_s4 + $0x8] sm:$0xff]  ;;  %10030 = vmatprep.subr.bf16.mxu1 %v10029_v9 }
0x1891   :  { %v6070_v17 = vmul.f32 %v6066_v8, %v12537_v30  ;;  %6119 = vadd.xlane.f32.xlu0 %v6114_v36  ;;  %v8781_v30 = vld [vmem:[%s14641_s5 + $0x2a0] sm:$0xff]  ;;  %v9989_v20 = vpack.c.bf16 %v6225_v22, %v6222_v31  ;;  %v6248_v8 = vld [vmem:[%s14652_s4 + $0xd8] sm:$0xff] }
0x1892   :  { %v6245_v36 = vld [vmem:[%s14652_s4 + $0xc0] sm:$0xff] }
0x1893   :  { %v6074_v13 = vadd.f32 %v6070_v17, %v6058_v60  ;;  %9990 = vmatprep.subr.bf16.mxu0 %v9989_v20  ;;  %10032 = vmatpush3.bf16.msra.mxu1 %v10029_v9  ;;  %v10007_v46 = vpack.c.bf16 %v6248_v8, %v6245_v36  ;;  %v6255_v9 = vld [vmem:[%s14652_s4 + $0x110] sm:$0xff]  ;;  %v8778_v8 = vld [vmem:[%s14641_s5 + $0x288] sm:$0xff] }
0x1894   :  { %9992 = vmatpush1.bf16.msra.mxu0 %v9991_v26 }
0x1895   :  { %v13652_v10 = vadd.f32 %v6086_v38, %v6074_v13  ;;  %6121 = vadd.xlane.f32.xlu0 %v6115_v33  ;;  %9994 = vmatprep.subr.bf16.mxu0 %v9993_v3 }
0x1897   :  { %6107 = vadd.xlane.f32.xlu1 %v13652_v10  ;;  %v6116_v16 = vmul.f32 %v13652_v10, %v13652_v10 }
0x1898   :  { %9996 = vmatpush1.bf16.msra.mxu0 %v9995_v28 }
0x1899   :  { %6123 = vadd.xlane.f32.xlu0 %v6116_v16  ;;  %9998 = vmatprep.subr.bf16.mxu0 %v9997_v59 }
0x189c   :  { %10000 = vmatpush1.bf16.msra.mxu0 %v9999_v5  ;;  %v6252_v5 = vld [vmem:[%s14652_s4 + $0xf8] sm:$0xff] }
0x189d   :  { %10002 = vmatprep.subr.bf16.mxu0 %v10001_v1  ;;  %v6241_v1 = vld [vmem:[%s14652_s4 + $0xa0] sm:$0xff]  ;;  %v10009_v48 = vpack.c.bf16 %v6255_v9, %v6252_v5  ;;  %v14950_v5 = vmov 0.0|0.0  }
0x189e   :  { %v6265_v9 = vld [vmem:[%s14652_s4 + $0x160] sm:$0xff] }
0x18a0   :  { %10004 = vmatpush1.bf16.msra.mxu0 %v10003_v23  ;;  %v6254_v23 = vld [vmem:[%s14652_s4 + $0x108] sm:$0xff] }
0x18a1   :  { %10006 = vmatprep.subr.bf16.mxu0 %v10005_v49  ;;  %v10033_v49 = vpack.c.bf16 %v6244_v39, %v6241_v1  ;;  %v10011_v36 = vpack.c.bf16 %v6254_v23, %v6251_v24  ;;  %v6268_v1 = vld [vmem:[%s14652_s4 + $0x178] sm:$0xff] }
0x18a2   :  { %v10049_v39 = vpack.c.bf16 %v6268_v1, %v6265_v9 }
0x18a3   :  { %10034 = vmatprep.subr.bf16.mxu1 %v10033_v49 }
0x18a4   :  { %10008 = vmatpush1.bf16.msra.mxu0 %v10007_v46  ;;  %v6258_v46 = vld [vmem:[%s14652_s4 + $0x128] sm:$0xff]  ;;  %10036 = vmatpush3.bf16.msra.mxu1 %v10033_v49 }
0x18a5   :  { %10010 = vmatprep.subr.bf16.mxu0 %v10009_v48  ;;  %v8803_v48 = vld [vmem:[%s14641_s5 + $0x2c0] sm:$0xff] }
0x18a8   :  { %10012 = vmatpush1.bf16.msra.mxu0 %v10011_v36 }
0x18af   :  { %6183 = vperm.xlu0 %10091, %v8781_v30  }
0x1916   :  { %v6102_v60 = vpop.xlane.xlu0 %6101 }
0x1917   :  { %v13738_v17 = vmul.f32 0.03125, %v6102_v60  ;;  %v6261_v60 = vld [vmem:[%s14652_s4 + $0x140] sm:$0xff] }
0x1918   :  { %v6118_v13 = vpop.xlane.xlu1 %6117 }
0x1919   :  { %v6129_v38 = vmul.f32 %v13738_v17, %v13738_v17  ;;  %v6125_v33 = vmul.f32 0.03125, %v6118_v13  ;;  %v6247_v13 = vld [vmem:[%s14652_s4 + $0xd0] sm:$0xff]  ;;  %v6141_v24 = vsub.f32 %v13629_v62, %v13738_v17 }
0x191a   :  { %v6104_v16 = vpop.xlane.xlu0 %6103 }
0x191b   :  { %v6133_v30 = vsub.f32 %v6125_v33, %v6129_v38  ;;  %v13742_v31 = vmul.f32 0.03125, %v6104_v16  ;;  %v10013_v33 = vpack.c.bf16 %v6261_v60, %v6258_v46  ;;  %v6250_v16 = vld [vmem:[%s14652_s4 + $0xe8] sm:$0xff] }
0x191d   :  { %v6137_v22 = vmax.f32 %v6133_v30, 0.0  ;;  %v6106_v18 = vpop.xlane.xlu1 %6105  ;;  %v6130_v51 = vmul.f32 %v13742_v31, %v13742_v31  ;;  %v6257_v30 = vld [vmem:[%s14652_s4 + $0x120] sm:$0xff]  ;;  %10014 = vmatprep.subr.bf16.mxu0 %v10013_v33 }
0x191e   :  { %v6120_v20 = vpop.xlane.xlu0 %6119  ;;  %v13746_v27 = vmul.f32 0.03125, %v6106_v18 }
0x191f   :  { %v6145_v4 = vadd.f32 1e-05, %v6137_v22  ;;  %v6126_v26 = vmul.f32 0.03125, %v6120_v20  ;;  %v6260_v22 = vld [vmem:[%s14652_s4 + $0x138] sm:$0xff]  ;;  %v10037_v20 = vpack.c.bf16 %v6250_v16, %v6247_v13 }
0x1920   :  { %v6131_v50 = vmul.f32 %v13746_v27, %v13746_v27  ;;  %v6143_v62 = vsub.f32 %v13643_v35, %v13746_v27 }
0x1921   :  { %10129 = vrsqrt.f32 %v6145_v4  ;;  %v6134_v3 = vsub.f32 %v6126_v26, %v6130_v51  ;;  %v10015_v4 = vpack.c.bf16 %v6260_v22, %v6257_v30  ;;  %v8782_v51 = vld [vmem:[%s14641_s5 + $0x2a8] sm:$0xff]  ;;  %v8779_v26 = vld [vmem:[%s14641_s5 + $0x290] sm:$0xff]  ;;  %10038 = vmatprep.subr.bf16.mxu1 %v10037_v20 }
0x1922   :  { %v6122_v40 = vpop.xlane.xlu0 %6121  ;;  %10040 = vmatpush3.bf16.msra.mxu1 %v10037_v20 }
0x1923   :  { %v6138_v41 = vmax.f32 %v6134_v3, 0.0  ;;  %v6127_v56 = vmul.f32 0.03125, %v6122_v40  ;;  %v6264_v3 = vld [vmem:[%s14652_s4 + $0x158] sm:$0xff]  ;;  %v6267_v40 = vld [vmem:[%s14652_s4 + $0x170] sm:$0xff]  ;;  %10016 = vmatpush1.bf16.msra.mxu0 %v10015_v4 }
0x1924   :  { %v6108_v25 = vpop.xlane.xlu1 %6107 }
0x1925   :  { %v6146_v0 = vadd.f32 1e-05, %v6138_v41  ;;  %v6135_v28 = vsub.f32 %v6127_v56, %v6131_v50  ;;  %v13750_v37 = vmul.f32 0.03125, %v6108_v25  ;;  %v6253_v50 = vld [vmem:[%s14652_s4 + $0x100] sm:$0xff]  ;;  %v10017_v56 = vpack.c.bf16 %v6267_v40, %v6264_v3  ;;  %v6256_v25 = vld [vmem:[%s14652_s4 + $0x118] sm:$0xff] }
0x1926   :  { %v6124_v63 = vpop.xlane.xlu0 %6123 }
0x1927   :  { %10131 = vrsqrt.f32 %v6146_v0  ;;  %v6139_v59 = vmax.f32 %v6135_v28, 0.0  ;;  %v6132_v32 = vmul.f32 %v13750_v37, %v13750_v37  ;;  %v6128_v29 = vmul.f32 0.03125, %v6124_v63  ;;  %v6263_v0 = vld [vmem:[%s14652_s4 + $0x150] sm:$0xff]  ;;  %v6266_v28 = vld [vmem:[%s14652_s4 + $0x168] sm:$0xff]  ;;  %10018 = vmatprep.subr.bf16.mxu0 %v10017_v56 }
0x1928   :  { %v6144_v3 = vsub.f32 %v13652_v10, %v13750_v37 }
0x1929   :  { %v6147_v2 = vadd.f32 1e-05, %v6139_v59  ;;  %v6136_v6 = vsub.f32 %v6128_v29, %v6132_v32  ;;  %v10041_v59 = vpack.c.bf16 %v6256_v25, %v6253_v50  ;;  %v10019_v32 = vpack.c.bf16 %v6266_v28, %v6263_v0  ;;  %v8780_v29 = vld [vmem:[%s14641_s5 + $0x298] sm:$0xff] }
0x192b   :  { %v10130_v11 = vpop.eup %10129  ;;  %10133 = vrsqrt.f32 %v6147_v2  ;;  %v6140_v15 = vmax.f32 %v6136_v6, 0.0  ;;  %v6259_v2 = vld [vmem:[%s14652_s4 + $0x130] sm:$0xff]  ;;  %v6262_v6 = vld [vmem:[%s14652_s4 + $0x148] sm:$0xff]  ;;  %10042 = vmatprep.subr.bf16.mxu1 %v10041_v59  ;;  %10020 = vmatpush1.bf16.msra.mxu0 %v10019_v32 }
0x192c   :  { %v6153_v34 = vmul.f32 %v10130_v11, %v8777_v53  ;;  %v8783_v11 = vld [vmem:[%s14641_s5 + $0x2b0] sm:$0xff]  ;;  %10044 = vmatpush3.bf16.msra.mxu1 %v10041_v59  ;;  %10061 = vmatprep.subr.bf16.mxu0 %v14950_v5 }
0x192d   :  { %v6148_v43 = vadd.f32 1e-05, %v6140_v15  ;;  %v10045_v15 = vpack.c.bf16 %v6262_v6, %v6259_v2 }
0x192e   :  { %6159 = vperm.xlu1 %10092, %v6153_v34   ;;  %v6184_v36 = vpop.permute.xlu0 %6183 }
0x192f   :  { %10135 = vrsqrt.f32 %v6148_v43  ;;  %10046 = vmatprep.subr.bf16.mxu1 %v10045_v15  ;;  %v8784_v43 = vld [vmem:[%s14641_s5 + $0x2b8] sm:$0xff] }
0x1930   :  { %10048 = vmatpush3.bf16.msra.mxu1 %v10045_v15 }
0x1931   :  { %v10132_v38 = vpop.eup %10131  ;;  %10050 = vmatprep.subr.bf16.mxu1 %v10049_v39 }
0x1932   :  { %v6154_v18 = vmul.f32 %v10132_v38, %v8778_v8  ;;  %v6142_v38 = vsub.f32 %v13637_v12, %v13742_v31 }
0x1934   :  { %6164 = vperm.xlu1 %10092, %v6154_v18   ;;  %10052 = vmatpush3.bf16.msra.mxu1 %v10049_v39 }
0x1935   :  { %v10134_v41 = vpop.eup %10133 }
0x1936   :  { %v6155_v63 = vmul.f32 %v10134_v41, %v8779_v26 }
0x1938   :  { %6188 = vperm.xlu1 %10092, %v8782_v51   ;;  %6169 = vperm.xlu0 %10091, %v6155_v63  }
0x1939   :  { %v10136_v53 = vpop.eup %10135 }
0x193a   :  { %v6156_v34 = vmul.f32 %v10136_v53, %v8780_v29 }
0x193c   :  { %6193 = vperm.xlu1 %10092, %v8783_v11   ;;  %6174 = vperm.xlu0 %10091, %v6156_v34  }
0x1940   :  { %6198 = vperm.xlu1 %10092, %v8784_v43   ;;  %6907 = vperm.xlu0 %10091, %v8803_v48  }
0x19ad   :  { %v6160_v23 = vpop.permute.xlu1 %6159 }
0x19ae   :  { %v6177_v49 = vmul.f32 %v6160_v23, %v6141_v24  ;;  %v6443_v24 = vld [vmem:[%s14653_s14] sm:$0xff]  ;;  %v6445_v23 = vld [vmem:[%s14653_s14 + $0x10] sm:$0xff] }
0x19b0   :  { %v6201_v8 = vadd.f32 %v6184_v36, %v6177_v49  ;;  %v6446_v49 = vld [vmem:[%s14653_s14 + $0x18] sm:$0xff]  ;;  %v6447_v36 = vld [vmem:[%s14653_s14 + $0x20] sm:$0xff] }
0x19b2   :  { %v6205_v46 = vmul.f32 %v6201_v8, %v12196_v21  ;;  %v6448_v8 = vld [vmem:[%s14653_s14 + $0x28] sm:$0xff] }
0x19b3   :  { %v6165_v60 = vpop.permute.xlu1 %6164 }
0x19b4   :  { %v6209_v13 = vadd.f32 %v6205_v46, %v13115_v61  ;;  %v6178_v16 = vmul.f32 %v6165_v60, %v6142_v38  ;;  %v6449_v46 = vld [vmem:[%s14653_s14 + $0x30] sm:$0xff]  ;;  %v6450_v60 = vld [vmem:[%s14653_s14 + $0x38] sm:$0xff] }
0x19b5   :  { %v8321_v38 = vld [vmem:[%s14643_s2 + $0x36] sm:$0x7] }
0x19b6   :  { %v6213_v33 = vmax.f32 %v6209_v13, 0.0  ;;  %v6451_v13 = vld [vmem:[%s14653_s14 + $0x40] sm:$0xff] }
0x19b7   :  { %v6170_v30 = vpop.permute.xlu0 %6169  ;;  %v6189_v22 = vpop.permute.xlu1 %6188 }
0x19b8   :  { %v6217_v18 = vadd.f32 %v6213_v33, %v13115_v61  ;;  %v6202_v17 = vadd.f32 %v6189_v22, %v6178_v16  ;;  %v6179_v20 = vmul.f32 %v6170_v30, %v6143_v62  ;;  %v8322_v33 = vld [vmem:[%s14643_s2 + $0x39] sm:$0x7] }
0x19b9   :  { %v14951_v16 = vld [vmem:[#allocation5_spill] sm:$0xff] }
0x19ba   :  { %v6206_v4 = vmul.f32 %v6202_v17, %v12196_v21  ;;  %6334 = vmatmul.mubr.f32.vlgmr.msra.gmra.mrb[184].mxu0 %v6217_v18  ;;  %9756 = vmatprep.mubr.f32.mxu1 %v6217_v18  ;;  %v6720_v30 = vrot.slane %v8321_v38, %v14951_v16  ;;  %v6739_v17 = vrot.slane %v8322_v33, %v14951_v16 }
0x19bb   :  { %v6194_v51 = vpop.permute.xlu1 %6193  ;;  %6339 = vmatprep.mubr.f32.mxu0 %v14944_v42  ;;  %v6175_v31 = vpop.permute.xlu0 %6174 }
0x19bc   :  { %v6210_v12 = vadd.f32 %v6206_v4, %v13113_v55  ;;  %v6203_v26 = vadd.f32 %v6194_v51, %v6179_v20  ;;  %v6180_v35 = vmul.f32 %v6175_v31, %v6144_v3  ;;  %v6712_v20 = vrot.slane %v8321_v38, %v14943_v7 }
0x19bd   :  { %v6731_v51 = vrot.slane %v8322_v33, %v14943_v7 }
0x19be   :  { %v6214_v61 = vmax.f32 %v6210_v12, 0.0  ;;  %v6207_v40 = vmul.f32 %v6203_v26, %v12196_v21  ;;  %v8323_v12 = vld [vmem:[%s14643_s2 + $0x3c] sm:$0x7]  ;;  %v14952_v26 = vld [vmem:[#allocation4_spill] sm:$0xff] }
0x19bf   :  { %v6199_v27 = vpop.permute.xlu1 %6198  ;;  %v6716_v3 = vrot.slane %v8321_v38, %v14952_v26 }
0x19c0   :  { %v6211_v50 = vadd.f32 %v6207_v40, %v13123_v14  ;;  %v6204_v41 = vadd.f32 %v6199_v27, %v6180_v35  ;;  %v6218_v56 = vadd.f32 %v6214_v61, %v13113_v55  ;;  %v6735_v61 = vrot.slane %v8322_v33, %v14952_v26 }
0x19c2   :  { %v6215_v25 = vmax.f32 %v6211_v50, 0.0  ;;  %v6208_v0 = vmul.f32 %v6204_v41, %v12196_v21  ;;  %6340 = vmatmul.mubr.f32.gmra.mrb[186].mxu0 %v6218_v56  ;;  %9757 = vmatmul.mubr.f32.vlgmr.msra.gmra.mrb[182].mxu1 %v6218_v56  ;;  %v6761_v41 = vrot.slane %v8323_v12, %v14951_v16 }
0x19c3   :  { %6345 = vmatprep.mubr.f32.mxu0 %v14944_v42 }
0x19c4   :  { %v6219_v28 = vadd.f32 %v6215_v25, %v13123_v14  ;;  %v6212_v10 = vadd.f32 %v6208_v0, %v13121_v44 }
0x19c6   :  { %9759 = vmatprep.mubr.f32.mxu1 %v6219_v28  ;;  %v6216_v37 = vmax.f32 %v6212_v10, 0.0  ;;  %6346 = vmatmul.mubr.f32.gmra.mrb[188].mxu0 %v6219_v28  ;;  %v6753_v28 = vrot.slane %v8323_v12, %v14943_v7  ;;  %v8324_v10 = vld [vmem:[%s14643_s2 + $0x3f] sm:$0x7] }
0x19c7   :  { %6351 = vmatprep.mubr.f32.mxu0 %v14944_v42 }
0x19c8   :  { %v6220_v63 = vadd.f32 %v6216_v37, %v13121_v44 }
0x19ca   :  { %6352 = vmatmul.mubr.f32.gmra.mrb[190].mxu0 %v6220_v63  ;;  %9760 = vmatmul.mubr.f32.gmra.mrb[184].mxu1 %v6220_v63 }
0x19cb   :  { %9770 = vmatprep.mubr.msk.f32.mxu0 %vm10159_vm1, %v14944_v42  ;;  %6543 = vmatprep.mubr.f32.mxu1 %v14944_v42 }
0x1a8d   :  { %v6335_v21 = vpop.f32.mrb[184].mxu0 }
0x1a8e   :  { %v6337_v55 = vpop.f32.mrb[185].mxu0 }
0x1a95   :  { %v6341_v59 = vpop.f32.mrb[186].mxu0  ;;  %v9758_v14 = vpop.f32.mrb[182].mxu1 }
0x1a96   :  { %v10055_v32 = vpack.c.bf16 %v6341_v59, %v6335_v21  ;;  %v6343_v29 = vpop.f32.mrb[187].mxu0  ;;  %v6424_v2 = vpop.f32.mrb[183].mxu1 }
0x1a97   :  { %v10053_v6 = vpack.c.bf16 %v6343_v29, %v6337_v55  ;;  %v10062_v53 = vpack.c.bf16 %v9758_v14, %v6424_v2  ;;  %v6757_v55 = vrot.slane %v8323_v12, %v14952_v26 }
0x1a99   :  { %v6347_v11 = vpop.f32.mrb[188].mxu0  ;;  %10054 = vmatprep.subr.bf16.mxu1 %v10053_v6  ;;  %10063 = vmatpush3.bf16.msra.mxu0 %v10062_v53  ;;  %v6783_v53 = vrot.slane %v8324_v10, %v14951_v16 }
0x1a9a   :  { %v6349_v44 = vpop.f32.mrb[189].mxu0  ;;  %10056 = vmatpush1.bf16.msra.mxu1 %v10055_v32  ;;  %10064 = vmatprep.subr.bf16.mxu0 %v14950_v5  ;;  %v6444_v5 = vld [vmem:[%s14653_s14 + $0x8] sm:$0xff] }
0x1a9d   :  { %v6353_v15 = vpop.f32.mrb[190].mxu0  ;;  %v9761_v34 = vpop.f32.mrb[184].mxu1 }
0x1a9e   :  { %v10059_v9 = vpack.c.bf16 %v6353_v15, %v6347_v11  ;;  %v6355_v1 = vpop.f32.mrb[191].mxu0  ;;  %v6434_v43 = vpop.f32.mrb[185].mxu1  ;;  %v6775_v15 = vrot.slane %v8324_v10, %v14943_v7 }
0x1a9f   :  { %v10057_v48 = vpack.c.bf16 %v6355_v1, %v6349_v44  ;;  %v10065_v39 = vpack.c.bf16 %v9761_v34, %v6434_v43  ;;  %v8325_v34 = vld [vmem:[%s14643_s2 + $0x42] sm:$0x7]  ;;  %v6779_v43 = vrot.slane %v8324_v10, %v14952_v26 }
0x1aa1   :  { %10058 = vmatprep.subr.bf16.mxu1 %v10057_v48  ;;  %10066 = vmatpush3.bf16.msra.mxu0 %v10065_v39 }
0x1aa2   :  { %10060 = vmatpush1.bf16.msra.mxu1 %v10059_v9  ;;  %9797 = vmatprep.subr.mxu0 %v14944_v42 }
0x1aa4   :  { %9771 = vmatmul.mubr.msk.f32.vlgmr.msra.gmra.mrb[192].mxu0 %vm2987_vm10, %v6443_v24 }
0x1aa5   :  { %8785 = vmatmul.mubr.msk.f32.vlgmr.msra.gmra.mrb[186].mxu1 %vm2987_vm10, %v6443_v24  ;;  %9773 = vmatprep.mubr.msk.f32.mxu0 %vm10159_vm1, %v14944_v42 }
0x1aa6   :  { %6549 = vmatprep.mubr.f32.mxu1 %v14944_v42 }
0x1aa8   :  { %9774 = vmatmul.mubr.msk.f32.gmra.mrb[194].mxu0 %vm2987_vm10, %v6444_v5 }
0x1aa9   :  { %8786 = vmatmul.mubr.msk.f32.gmra.mrb[188].mxu1 %vm2987_vm10, %v6444_v5  ;;  %9776 = vmatprep.mubr.msk.f32.mxu0 %vm10159_vm1, %v14944_v42 }
0x1aaa   :  { %6555 = vmatprep.mubr.f32.mxu1 %v14944_v42 }
0x1aac   :  { %9777 = vmatmul.mubr.msk.f32.gmra.mrb[196].mxu0 %vm2987_vm10, %v6445_v23 }
0x1aad   :  { %8787 = vmatmul.mubr.msk.f32.gmra.mrb[190].mxu1 %vm2987_vm10, %v6445_v23  ;;  %9779 = vmatprep.mubr.msk.f32.mxu0 %vm10159_vm1, %v14944_v42 }
0x1aae   :  { %6561 = vmatprep.mubr.f32.mxu1 %v14944_v42 }
0x1ab0   :  { %9780 = vmatmul.mubr.msk.f32.gmra.mrb[198].mxu0 %vm2987_vm10, %v6446_v49 }
0x1ab1   :  { %8788 = vmatmul.mubr.msk.f32.gmra.mrb[192].mxu1 %vm2987_vm10, %v6446_v49  ;;  %9782 = vmatprep.mubr.msk.f32.mxu0 %vm10159_vm1, %v14944_v42 }
0x1ab2   :  { %6567 = vmatprep.mubr.f32.mxu1 %v14944_v42 }
0x1ab4   :  { %9783 = vmatmul.mubr.msk.f32.gmra.mrb[200].mxu0 %vm2987_vm10, %v6447_v36 }
0x1ab5   :  { %8789 = vmatmul.mubr.msk.f32.gmra.mrb[194].mxu1 %vm2987_vm10, %v6447_v36  ;;  %9785 = vmatprep.mubr.msk.f32.mxu0 %vm10159_vm1, %v14944_v42  ;;  %v6805_v36 = vrot.slane %v8325_v34, %v14951_v16 }
0x1ab6   :  { %6573 = vmatprep.mubr.f32.mxu1 %v14944_v42 }
0x1ab8   :  { %9786 = vmatmul.mubr.msk.f32.gmra.mrb[202].mxu0 %vm2987_vm10, %v6448_v8 }
0x1ab9   :  { %8790 = vmatmul.mubr.msk.f32.gmra.mrb[196].mxu1 %vm2987_vm10, %v6448_v8  ;;  %9788 = vmatprep.mubr.msk.f32.mxu0 %vm10159_vm1, %v14944_v42 }
0x1aba   :  { %6579 = vmatprep.mubr.f32.mxu1 %v14944_v42 }
0x1abc   :  { %9789 = vmatmul.mubr.msk.f32.gmra.mrb[204].mxu0 %vm2987_vm10, %v6449_v46 }
0x1abd   :  { %8791 = vmatmul.mubr.msk.f32.gmra.mrb[198].mxu1 %vm2987_vm10, %v6449_v46  ;;  %9791 = vmatprep.mubr.msk.f32.mxu0 %vm10159_vm1, %v14944_v42 }
0x1abe   :  { %6585 = vmatprep.mubr.f32.mxu1 %v14944_v42 }
0x1ac0   :  { %9792 = vmatmul.mubr.msk.f32.gmra.mrb[206].mxu0 %vm2987_vm10, %v6450_v60 }
0x1ac1   :  { %8792 = vmatmul.mubr.msk.f32.gmra.mrb[200].mxu1 %vm2987_vm10, %v6450_v60  ;;  %9794 = vmatprep.mubr.msk.f32.mxu0 %vm10159_vm1, %v14944_v42  ;;  %v6797_v60 = vrot.slane %v8325_v34, %v14943_v7 }
0x1ac2   :  { %6591 = vmatprep.mubr.f32.mxu1 %v14944_v42 }
0x1ac4   :  { %9795 = vmatmul.mubr.msk.f32.gmra.mrb[208].mxu0 %vm2987_vm10, %v6451_v13 }
0x1ac5   :  { %8793 = vmatmul.mubr.msk.f32.gmra.mrb[202].mxu1 %vm2987_vm10, %v6451_v13  ;;  %9799 = vmatprep.mubr.msk.f32.mxu0 %vm10159_vm1, %v14944_v42  ;;  %v8326_v13 = vld [vmem:[%s14643_s2 + $0x45] sm:$0x7]  ;;  %vm14976_vm10 = vmmov %vm14972_vm7 }
0x1ac6   :  { %7072 = vmatprep.mubr.f32.mxu1 %v14944_v42 }
0x1b77   :  { %v6664_v22 = vpop.f32.mrb[192].mxu0 }
0x1b78   :  { %v6545_v18 = vpop.f32.mrb[186].mxu1  ;;  %v9772_v62 = vpop.f32.mrb[193].mxu0  ;;  %v6726_v31 = vmul.f32 %v6720_v30, %v6664_v22  ;;  %v6801_v30 = vrot.slane %v8325_v34, %v14952_v26 }
0x1b79   :  { %v6547_v4 = vpop.f32.mrb[187].mxu1  ;;  %v6724_v56 = vmul.f32 %v6712_v20, %v6545_v18 }
0x1b7a   :  { %v6725_v37 = vmul.f32 %v6716_v3, %v6547_v4  ;;  %v6819_v3 = vrot.slane %v8326_v13, %v14943_v7 }
0x1b7b   :  { %v6669_v40 = vpop.f32.mrb[194].mxu0 }
0x1b7c   :  { %v6745_v35 = vmul.f32 %v6739_v17, %v6669_v40  ;;  %v6551_v27 = vpop.f32.mrb[188].mxu1  ;;  %v9775_v50 = vpop.f32.mrb[195].mxu0 }
0x1b7d   :  { %v6743_v25 = vmul.f32 %v6731_v51, %v6551_v27  ;;  %v6553_v0 = vpop.f32.mrb[189].mxu1  ;;  %v6827_v51 = vrot.slane %v8326_v13, %v14951_v16  ;;  %v6823_v27 = vrot.slane %v8326_v13, %v14952_v26 }
0x1b7e   :  { %v6748_v63 = vadd.f32 %v6745_v35, %v6726_v31  ;;  %v6744_v21 = vmul.f32 %v6735_v61, %v6553_v0  ;;  %v8327_v61 = vld [vmem:[%s14643_s2 + $0x48] sm:$0x7] }
0x1b7f   :  { %v6746_v59 = vadd.f32 %v6743_v25, %v6724_v56  ;;  %v6674_v14 = vpop.f32.mrb[196].mxu0  ;;  %v6849_v10 = vrot.slane %v8327_v61, %v14951_v16 }
0x1b80   :  { %v6747_v32 = vadd.f32 %v6744_v21, %v6725_v37  ;;  %v6767_v29 = vmul.f32 %v6761_v41, %v6674_v14  ;;  %v6557_v2 = vpop.f32.mrb[190].mxu1  ;;  %v9778_v6 = vpop.f32.mrb[197].mxu0  ;;  %v6841_v21 = vrot.slane %v8327_v61, %v14943_v7 }
0x1b81   :  { %v6765_v11 = vmul.f32 %v6753_v28, %v6557_v2  ;;  %v6559_v44 = vpop.f32.mrb[191].mxu1 }
0x1b82   :  { %v6770_v9 = vadd.f32 %v6767_v29, %v6748_v63  ;;  %v6766_v1 = vmul.f32 %v6757_v55, %v6559_v44  ;;  %v8328_v55 = vld [vmem:[%s14643_s2 + $0x4b] sm:$0x7] }
0x1b83   :  { %v6768_v48 = vadd.f32 %v6765_v11, %v6746_v59  ;;  %v6679_v39 = vpop.f32.mrb[198].mxu0 }
0x1b84   :  { %v6769_v24 = vadd.f32 %v6766_v1, %v6747_v32  ;;  %v6789_v5 = vmul.f32 %v6783_v53, %v6679_v39  ;;  %v6563_v23 = vpop.f32.mrb[192].mxu1  ;;  %v9781_v49 = vpop.f32.mrb[199].mxu0  ;;  %v6845_v32 = vrot.slane %v8327_v61, %v14952_v26  ;;  %v6863_v1 = vrot.slane %v8328_v55, %v14943_v7 }
0x1b85   :  { %v6787_v8 = vmul.f32 %v6775_v15, %v6563_v23  ;;  %v6565_v46 = vpop.f32.mrb[193].mxu1  ;;  %v6871_v15 = vrot.slane %v8328_v55, %v14951_v16 }
0x1b86   :  { %v6792_v38 = vadd.f32 %v6789_v5, %v6770_v9  ;;  %v6788_v33 = vmul.f32 %v6779_v43, %v6565_v46  ;;  %v8329_v43 = vld [vmem:[%s14643_s2 + $0x4e] sm:$0x7]  ;;  %s14957_s2 = smov 117  }
0x1b87   :  { %v6790_v22 = vadd.f32 %v6787_v8, %v6768_v48  ;;  %v6684_v18 = vpop.f32.mrb[200].mxu0 }
0x1b88   :  { %v6791_v62 = vadd.f32 %v6788_v33, %v6769_v24  ;;  %v6811_v17 = vmul.f32 %v6805_v36, %v6684_v18  ;;  %v6569_v20 = vpop.f32.mrb[194].mxu1  ;;  %v9784_v4 = vpop.f32.mrb[201].mxu0  ;;  %v6867_v24 = vrot.slane %v8328_v55, %v14952_v26  ;;  %v6885_v33 = vrot.slane %v8329_v43, %v14943_v7 }
0x1b89   :  { %v6809_v12 = vmul.f32 %v6797_v60, %v6569_v20  ;;  %v6571_v31 = vpop.f32.mrb[195].mxu1  ;;  %v6893_v60 = vrot.slane %v8329_v43, %v14951_v16  ;;  %v6889_v18 = vrot.slane %v8329_v43, %v14952_v26  ;;  %v14953_v16 = vld [vmem:[#allocation7_spill] sm:$0xff] }
0x1b8a   :  { %v6814_v40 = vadd.f32 %v6811_v17, %v6792_v38  ;;  %v6810_v35 = vmul.f32 %v6801_v30, %v6571_v31 }
0x1b8b   :  { %v6812_v50 = vadd.f32 %v6809_v12, %v6790_v22  ;;  %v6689_v41 = vpop.f32.mrb[202].mxu0 }
0x1b8c   :  { %v6813_v56 = vadd.f32 %v6810_v35, %v6791_v62  ;;  %v6833_v25 = vmul.f32 %v6827_v51, %v6689_v41  ;;  %v6575_v0 = vpop.f32.mrb[196].mxu1  ;;  %v9787_v28 = vpop.f32.mrb[203].mxu0  ;;  %v14954_v41 = vld [vmem:[#allocation6_spill] sm:$0xff] }
0x1b8d   :  { %v6831_v37 = vmul.f32 %v6819_v3, %v6575_v0  ;;  %v6577_v63 = vpop.f32.mrb[197].mxu1  ;;  %v6908_v62 = vpop.permute.xlu0 %6907 }
0x1b8e   :  { %v6836_v59 = vadd.f32 %v6833_v25, %v6814_v40  ;;  %v6832_v14 = vmul.f32 %v6823_v27, %v6577_v63  ;;  %v6910_v27 = vmul.f32 %v6908_v62, %v14953_v16  ;;  %v6911_v7 = vmul.f32 %v6908_v62, %v14954_v41 }
0x1b8f   :  { %v6834_v29 = vadd.f32 %v6831_v37, %v6812_v50  ;;  %v6694_v2 = vpop.f32.mrb[204].mxu0 }
0x1b90   :  { %v6835_v6 = vadd.f32 %v6832_v14, %v6813_v56  ;;  %v6855_v53 = vmul.f32 %v6849_v10, %v6694_v2  ;;  %v6581_v11 = vpop.f32.mrb[198].mxu1  ;;  %v9790_v44 = vpop.f32.mrb[205].mxu0  ;;  %v14955_v56 = vld [vmem:[#allocation8_spill] sm:$0xff] }
0x1b91   :  { %v6853_v34 = vmul.f32 %v6841_v21, %v6581_v11  ;;  %v6583_v9 = vpop.f32.mrb[199].mxu1  ;;  %v6912_v25 = vmul.f32 %v6908_v62, %v14955_v56  ;;  %v8807_v62 = vld [vmem:[%s14644_s7 + $0x98] sm:$0xff] }
0x1b92   :  { %v6858_v48 = vadd.f32 %v6855_v53, %v6836_v59  ;;  %v6854_v39 = vmul.f32 %v6845_v32, %v6583_v9 }
0x1b93   :  { %v6856_v5 = vadd.f32 %v6853_v34, %v6834_v29  ;;  %v6699_v23 = vpop.f32.mrb[206].mxu0  ;;  %v8805_v29 = vld [vmem:[%s14641_s5 + $0x300] sm:$0xff] }
0x1b94   :  { %v6857_v49 = vadd.f32 %v6854_v39, %v6835_v6  ;;  %v6877_v36 = vmul.f32 %v6871_v15, %v6699_v23  ;;  %v6587_v8 = vpop.f32.mrb[200].mxu1  ;;  %v9793_v46 = vpop.f32.mrb[207].mxu0 }
0x1b95   :  { %v6875_v13 = vmul.f32 %v6863_v1, %v6587_v8  ;;  %v6589_v38 = vpop.f32.mrb[201].mxu1  ;;  %v8804_v1 = vld [vmem:[%s14641_s5 + $0x2e0] sm:$0xff] }
0x1b96   :  { %v6880_v30 = vadd.f32 %v6877_v36, %v6858_v48  ;;  %v6876_v22 = vmul.f32 %v6867_v24, %v6589_v38 }
0x1b97   :  { %v6878_v17 = vadd.f32 %v6875_v13, %v6856_v5  ;;  %v6704_v20 = vpop.f32.mrb[208].mxu0 }
0x1b98   :  { %v6879_v4 = vadd.f32 %v6876_v22, %v6857_v49  ;;  %v6899_v51 = vmul.f32 %v6893_v60, %v6704_v20  ;;  %v6593_v12 = vpop.f32.mrb[202].mxu1  ;;  %v9796_v31 = vpop.f32.mrb[209].mxu0  ;;  %v8809_v20 = vld [vmem:[%s14644_s7 + $0xa8] sm:$0xff] }
0x1b99   :  { %v6897_v3 = vmul.f32 %v6885_v33, %v6593_v12  ;;  %v6595_v61 = vpop.f32.mrb[203].mxu1  ;;  %v8812_v12 = vld [vmem:[%s14644_s7 + $0xc0] sm:$0xff]  ;;  %v8813_v31 = vld [vmem:[%s14644_s7 + $0xc8] sm:$0xff] }
0x1b9a   :  { %v6902_v40 = vadd.f32 %v6899_v51, %v6880_v30  ;;  %v6898_v35 = vmul.f32 %v6889_v18, %v6595_v61  ;;  %v8806_v18 = vld [vmem:[%s14644_s7 + $0x90] sm:$0xff]  ;;  %v8811_v51 = vld [vmem:[%s14644_s7 + $0xb8] sm:$0xff] }
0x1b9b   :  { %v6900_v50 = vadd.f32 %v6897_v3, %v6878_v17  ;;  %v8808_v17 = vld [vmem:[%s14644_s7 + $0xa0] sm:$0xff]  ;;  %v8814_v3 = vld [vmem:[%s14644_s7 + $0xd0] sm:$0xff] }
0x1b9c   :  { %v6901_v0 = vadd.f32 %v6898_v35, %v6879_v4  ;;  %v6915_v28 = vadd.f32 %v6912_v25, %v6902_v40  ;;  %v8810_v4 = vld [vmem:[%s14644_s7 + $0xb0] sm:$0xff] }
0x1b9d   :  { %v6913_v26 = vadd.f32 %v6910_v27, %v6900_v50 }
0x1b9e   :  { %v6914_v10 = vadd.f32 %v6911_v7, %v6901_v0  ;;  %v6927_v59 = vmul.f32 %v6915_v28, %v6915_v28 }
0x1b9f   :  { %v6925_v37 = vmul.f32 %v6913_v26, %v6913_v26 }
0x1ba0   :  { %v6920_v63 = vadd.f32 %v6914_v10, %v6913_v26  ;;  %v6926_v21 = vmul.f32 %v6914_v10, %v6914_v10 }
0x1ba2   :  { %v6921_v55 = vadd.f32 %v6920_v63, %v6915_v28  ;;  %v6928_v14 = vadd.f32 %v6926_v21, %v6925_v37 }
0x1ba4   :  { %6922 = vadd.xlane.f32.xlu1 %v6921_v55  ;;  %v6929_v32 = vadd.f32 %v6928_v14, %v6927_v59 }
0x1ba6   :  { %6930 = vadd.xlane.f32.xlu0 %v6929_v32 }
0x1bb5   :  { %6952 = vperm.xlu1 %10092, %v8805_v29  }
0x1c31   :  { %v6923_v2 = vpop.xlane.xlu1 %6922 }
0x1c32   :  { %v6924_v6 = vmul.f32 0.0034722222, %v6923_v2 }
0x1c33   :  { %v6931_v53 = vpop.xlane.xlu0 %6930 }
0x1c34   :  { %v6932_v11 = vmul.f32 0.0034722222, %v6931_v53  ;;  %v6933_v44 = vmul.f32 %v6924_v6, %v6924_v6  ;;  %v6936_v39 = vsub.f32 %v6913_v26, %v6924_v6  ;;  %v6937_v24 = vsub.f32 %v6914_v10, %v6924_v6 }
0x1c35   :  { %v6938_v5 = vsub.f32 %v6915_v28, %v6924_v6  ;;  %v6953_v46 = vpop.permute.xlu1 %6952 }
0x1c36   :  { %v6934_v15 = vsub.f32 %v6932_v11, %v6933_v44 }
0x1c38   :  { %v6935_v34 = vmax.f32 %v6934_v15, 0.0 }
0x1c3a   :  { %v6939_v9 = vadd.f32 1e-05, %v6935_v34 }
0x1c3c   :  { %10137 = vrsqrt.f32 %v6939_v9 }
0x1c46   :  { %v10138_v43 = vpop.eup %10137 }
0x1c47   :  { %v6941_v48 = vmul.f32 %v10138_v43, %v8804_v1 }
0x1c49   :  { %6944 = vperm.xlu0 %10091, %v6941_v48  }
0x1cc8   :  { %v6945_v23 = vpop.permute.xlu0 %6944 }
0x1cc9   :  { %v6947_v49 = vmul.f32 %v6945_v23, %v6936_v39  ;;  %v6948_v36 = vmul.f32 %v6945_v23, %v6937_v24  ;;  %v6949_v8 = vmul.f32 %v6945_v23, %v6938_v5 }
0x1ccb   :  { %v6955_v60 = vadd.f32 %v6953_v46, %v6947_v49  ;;  %v6956_v13 = vadd.f32 %v6953_v46, %v6948_v36  ;;  %v6957_v38 = vadd.f32 %v6953_v46, %v6949_v8 }
0x1ccd   :  { %v14009_v33 = vmul.f32 %v6956_v13, %v14954_v41  ;;  %v14012_v30 = vmul.f32 %v6957_v38, %v14955_v56  ;;  %v14015_v22 = vmul.f32 %v6955_v60, %v14953_v16 }
0x1ccf   :  { %7008 = vmatprep.subr.mxu1 %v14009_v33  ;;  %9798 = vmatpush3.msra.mxu0 %v14012_v30 }
0x1cd0   :  { %7009 = vmatpush1.msra.mxu1 %v14015_v22  ;;  %9800 = vmatmul.mubr.msk.f32.vlgmr.msra.gmra.mrb[210].mxu0 %vm145_vm0, %v8806_v18 }
0x1cd1   :  { %8824 = vmatmul.mubr.msk.f32.vlgmr.msra.gmra.mrb[204].mxu1 %vm145_vm0, %v8806_v18  ;;  %9802 = vmatprep.mubr.msk.f32.mxu0 %vm10159_vm1, %v14944_v42 }
0x1cd2   :  { %7078 = vmatprep.mubr.f32.mxu1 %v14944_v42  ;;  %9826 = vmatprep.subr.mxu0 %v14944_v42 }
0x1cd4   :  { %9803 = vmatmul.mubr.msk.f32.gmra.mrb[212].mxu0 %vm145_vm0, %v8807_v62 }
0x1cd5   :  { %8825 = vmatmul.mubr.msk.f32.gmra.mrb[206].mxu1 %vm145_vm0, %v8807_v62  ;;  %9805 = vmatprep.mubr.msk.f32.mxu0 %vm10159_vm1, %v14944_v42 }
0x1cd6   :  { %7084 = vmatprep.mubr.f32.mxu1 %v14944_v42 }
0x1cd8   :  { %9806 = vmatmul.mubr.msk.f32.gmra.mrb[214].mxu0 %vm145_vm0, %v8808_v17 }
0x1cd9   :  { %8826 = vmatmul.mubr.msk.f32.gmra.mrb[208].mxu1 %vm145_vm0, %v8808_v17  ;;  %9808 = vmatprep.mubr.msk.f32.mxu0 %vm10159_vm1, %v14944_v42 }
0x1cda   :  { %7090 = vmatprep.mubr.f32.mxu1 %v14944_v42 }
0x1cdc   :  { %9809 = vmatmul.mubr.msk.f32.gmra.mrb[216].mxu0 %vm145_vm0, %v8809_v20 }
0x1cdd   :  { %8827 = vmatmul.mubr.msk.f32.gmra.mrb[210].mxu1 %vm145_vm0, %v8809_v20  ;;  %9811 = vmatprep.mubr.msk.f32.mxu0 %vm10159_vm1, %v14944_v42 }
0x1cde   :  { %7096 = vmatprep.mubr.f32.mxu1 %v14944_v42 }
0x1ce0   :  { %9812 = vmatmul.mubr.msk.f32.gmra.mrb[218].mxu0 %vm145_vm0, %v8810_v4 }
0x1ce1   :  { %8828 = vmatmul.mubr.msk.f32.gmra.mrb[212].mxu1 %vm145_vm0, %v8810_v4  ;;  %9814 = vmatprep.mubr.msk.f32.mxu0 %vm10159_vm1, %v14944_v42 }
0x1ce2   :  { %7102 = vmatprep.mubr.f32.mxu1 %v14944_v42 }
0x1ce4   :  { %9815 = vmatmul.mubr.msk.f32.gmra.mrb[220].mxu0 %vm145_vm0, %v8811_v51 }
0x1ce5   :  { %8829 = vmatmul.mubr.msk.f32.gmra.mrb[214].mxu1 %vm145_vm0, %v8811_v51  ;;  %9817 = vmatprep.mubr.msk.f32.mxu0 %vm10159_vm1, %v14944_v42 }
0x1ce6   :  { %7108 = vmatprep.mubr.f32.mxu1 %v14944_v42 }
0x1ce8   :  { %9818 = vmatmul.mubr.msk.f32.gmra.mrb[222].mxu0 %vm145_vm0, %v8812_v12 }
0x1ce9   :  { %8830 = vmatmul.mubr.msk.f32.gmra.mrb[216].mxu1 %vm145_vm0, %v8812_v12  ;;  %9820 = vmatprep.mubr.msk.f32.mxu0 %vm10159_vm1, %v14944_v42 }
0x1cea   :  { %7114 = vmatprep.mubr.f32.mxu1 %v14944_v42 }
0x1cec   :  { %9821 = vmatmul.mubr.msk.f32.gmra.mrb[224].mxu0 %vm145_vm0, %v8813_v31 }
0x1ced   :  { %8831 = vmatmul.mubr.msk.f32.gmra.mrb[218].mxu1 %vm145_vm0, %v8813_v31  ;;  %9823 = vmatprep.mubr.msk.f32.mxu0 %vm10159_vm1, %v14944_v42 }
0x1cee   :  { %7120 = vmatprep.mubr.f32.mxu1 %v14944_v42 }
0x1cf0   :  { %9824 = vmatmul.mubr.msk.f32.gmra.mrb[226].mxu0 %vm145_vm0, %v8814_v3 }
0x1cf1   :  { %8832 = vmatmul.mubr.msk.f32.gmra.mrb[220].mxu1 %vm145_vm0, %v8814_v3  ;;  %9828 = vmatprep.mubr.msk.f32.mxu0 %vm10159_vm1, %v14944_v42 }
0x1cf2   :  { %7499 = vmatprep.mubr.f32.mxu1 %v14944_v42 }
0x1da3   :  { %v7193_v61 = vpop.f32.mrb[210].mxu0 }
0x1da4   :  { %7241 = vrot.lane.b32.xlu1 %v7193_v61, %s10160_s28  ;;  %v7074_v40 = vpop.f32.mrb[204].mxu1  ;;  %v9801_v35 = vpop.f32.mrb[211].mxu0 }
0x1da5   :  { %v7076_v27 = vpop.f32.mrb[205].mxu1 }
0x1da6   :  { %7239 = vrot.lane.b32.xlu0 %v7076_v27, %s10160_s28 }
0x1da7   :  { %v7198_v50 = vpop.f32.mrb[212].mxu0 }
0x1da8   :  { %7237 = vrot.lane.b32.xlu1 %v7074_v40, %s10160_s28  ;;  %v7080_v7 = vpop.f32.mrb[206].mxu1  ;;  %v9804_v25 = vpop.f32.mrb[213].mxu0 }
0x1da9   :  { %v7082_v0 = vpop.f32.mrb[207].mxu1  ;;  %v14960_v25 = vld [vmem:[#allocation15_spill] sm:$0xff] }
0x1daa   :  { %7253 = vrot.lane.b32.xlu0 %v7198_v50, %s10161_s29 }
0x1dab   :  { %v7203_v26 = vpop.f32.mrb[214].mxu0 }
0x1dac   :  { %7251 = vrot.lane.b32.xlu1 %v7082_v0, %s10161_s29  ;;  %v7086_v28 = vpop.f32.mrb[208].mxu1  ;;  %v9807_v10 = vpop.f32.mrb[215].mxu0 }
0x1dad   :  { %v7088_v37 = vpop.f32.mrb[209].mxu1  ;;  %v14961_v10 = vld [vmem:[#allocation16_spill] sm:$0xff] }
0x1dae   :  { %7249 = vrot.lane.b32.xlu0 %v7080_v7, %s10161_s29 }
0x1daf   :  { %v7208_v63 = vpop.f32.mrb[216].mxu0 }
0x1db0   :  { %7268 = vrot.lane.b32.xlu1 %v7203_v26, %s14956_s8  ;;  %v7092_v21 = vpop.f32.mrb[210].mxu1  ;;  %v9810_v55 = vpop.f32.mrb[217].mxu0 }
0x1db1   :  { %v7094_v59 = vpop.f32.mrb[211].mxu1  ;;  %v14962_v55 = vld [vmem:[#allocation12_spill] sm:$0xff] }
0x1db2   :  { %7266 = vrot.lane.b32.xlu0 %v7088_v37, %s14956_s8 }
0x1db3   :  { %v14101_v14 = vpop.f32.mrb[218].mxu0 }
0x1db4   :  { %7264 = vrot.lane.b32.xlu1 %v7086_v28, %s14956_s8  ;;  %v9813_v32 = vpop.f32.mrb[219].mxu0  ;;  %v14104_v29 = vpop.f32.mrb[212].mxu1 }
0x1db5   :  { %v14106_v2 = vpop.f32.mrb[213].mxu1 }
0x1db6   :  { %7283 = vrot.lane.b32.xlu0 %v7208_v63, %s10163_s0 }
0x1db7   :  { %v7218_v6 = vpop.f32.mrb[220].mxu0 }
0x1db8   :  { %7281 = vrot.lane.b32.xlu1 %v7094_v59, %s10163_s0  ;;  %v7104_v53 = vpop.f32.mrb[214].mxu1  ;;  %v9816_v11 = vpop.f32.mrb[221].mxu0 }
0x1db9   :  { %v7106_v44 = vpop.f32.mrb[215].mxu1 }
0x1dba   :  { %7279 = vrot.lane.b32.xlu0 %v7092_v21, %s10163_s0 }
0x1dbb   :  { %v7223_v15 = vpop.f32.mrb[222].mxu0 }
0x1dbc   :  { %7304 = vrot.lane.b32.xlu1 %v7218_v6, %s10164_s17  ;;  %v7110_v34 = vpop.f32.mrb[216].mxu1  ;;  %v9819_v9 = vpop.f32.mrb[223].mxu0  ;;  %v14963_v6 = vld [vmem:[#allocation18_spill] sm:$0xff] }
0x1dbd   :  { %v7112_v1 = vpop.f32.mrb[217].mxu1 }
0x1dbe   :  { %7302 = vrot.lane.b32.xlu0 %v7106_v44, %s10164_s17  ;;  %v14964_v44 = vld [vmem:[#allocation13_spill] sm:$0xff] }
0x1dbf   :  { %v7228_v43 = vpop.f32.mrb[224].mxu0 }
0x1dc0   :  { %7300 = vrot.lane.b32.xlu1 %v7104_v53, %s10164_s17  ;;  %v7116_v48 = vpop.f32.mrb[218].mxu1  ;;  %v9822_v39 = vpop.f32.mrb[225].mxu0 }
0x1dc1   :  { %v7118_v24 = vpop.f32.mrb[219].mxu1 }
0x1dc2   :  { %7319 = vrot.lane.b32.xlu0 %v7223_v15, %s14957_s2 }
0x1dc3   :  { %v7233_v5 = vpop.f32.mrb[226].mxu0 }
0x1dc4   :  { %7317 = vrot.lane.b32.xlu1 %v7112_v1, %s14957_s2  ;;  %v7122_v23 = vpop.f32.mrb[220].mxu1  ;;  %v9825_v49 = vpop.f32.mrb[227].mxu0  ;;  %v14966_v1 = vld [vmem:[#allocation19_spill] sm:$0xff] }
0x1dc5   :  { %v7124_v36 = vpop.f32.mrb[221].mxu1 }
0x1dc6   :  { %7315 = vrot.lane.b32.xlu0 %v7110_v34, %s14957_s2  ;;  %v14965_v34 = vld [vmem:[#allocation17_spill] sm:$0xff] }
0x1dc8   :  { %7334 = vrot.lane.b32.xlu1 %v7228_v43, %s14958_s30 }
0x1dca   :  { %7332 = vrot.lane.b32.xlu0 %v7118_v24, %s14958_s30 }
0x1dcc   :  { %7330 = vrot.lane.b32.xlu1 %v7116_v48, %s14958_s30 }
0x1dce   :  { %7345 = vrot.lane.b32.xlu0 %v7122_v23, %s14959_s18  ;;  %v14967_v23 = vld [vmem:[#allocation14_spill] sm:$0xff] }
0x1dd0   :  { %7347 = vrot.lane.b32.xlu1 %v7124_v36, %s14959_s18 }
0x1dd2   :  { %7349 = vrot.lane.b32.xlu0 %v7233_v5, %s14959_s18 }
0x1e16   :  { %v7242_v8 = vpop.permute.xlu1 %7241 }
0x1e18   :  { %v7240_v46 = vpop.permute.xlu0 %7239 }
0x1e19   :  { %v7243_v28 = vsel %vm631_vm3, %v7240_v46, %v7242_v8 }
0x1e1a   :  { %v7238_v60 = vpop.permute.xlu1 %7237  ;;  %v7248_v49 = vmul.f32 %v7243_v28, %v14967_v23 }
0x1e1b   :  { %v7244_v40 = vsel %vm631_vm3, %v7238_v60, %v7240_v46  ;;  %v7245_v50 = vsel %vm631_vm3, %v7242_v8, %v7238_v60  ;;  %v14968_v8 = vld [vmem:[#allocation20_spill] sm:$0xff]  ;;  %v14969_v60 = vld [vmem:[#allocation22_spill] sm:$0xff] }
0x1e1c   :  { %v7254_v13 = vpop.permute.xlu0 %7253  ;;  %v7247_v59 = vmul.f32 %v7244_v40, %v14962_v55  ;;  %v7246_v15 = vmul.f32 %v7245_v50, %v14964_v44 }
0x1e1e   :  { %v7252_v38 = vpop.permute.xlu1 %7251 }
0x1e1f   :  { %v7255_v7 = vsel %vm660_vm2, %v7252_v38, %v7254_v13 }
0x1e20   :  { %v7250_v18 = vpop.permute.xlu0 %7249  ;;  %v7260_v9 = vmul.f32 %v7255_v7, %v14965_v34  ;;  %v14971_v7 = vld [vmem:[#allocation10_spill] sm:$0xff] }
0x1e21   :  { %v7256_v31 = vsel %vm660_vm2, %v7250_v18, %v7252_v38  ;;  %v7257_v61 = vsel %vm660_vm2, %v7254_v13, %v7250_v18 }
0x1e22   :  { %v7269_v62 = vpop.permute.xlu1 %7268  ;;  %v7259_v0 = vmul.f32 %v7256_v31, %v14960_v25  ;;  %v7258_v37 = vmul.f32 %v7257_v61, %v14961_v10 }
0x1e24   :  { %v7267_v17 = vpop.permute.xlu0 %7266  ;;  %v7262_v39 = vadd.f32 %v7259_v0, %v7247_v59  ;;  %v7261_v36 = vadd.f32 %v7258_v37, %v7246_v15  ;;  %v7295_v0 = vmul.f32 %v14106_v2, %v14971_v7  ;;  %v14973_v37 = vld [vmem:[#allocation9_spill] sm:$0xff] }
0x1e25   :  { %v7270_v32 = vsel %vm692_vm4, %v7267_v17, %v7269_v62 }
0x1e26   :  { %v7265_v20 = vpop.permute.xlu1 %7264  ;;  %v7275_v46 = vmul.f32 %v7270_v32, %v14968_v8 }
0x1e27   :  { %v7271_v35 = vsel %vm692_vm4, %v7265_v20, %v7267_v17  ;;  %v7272_v26 = vsel %vm692_vm4, %v7269_v62, %v7265_v20  ;;  %v7263_v62 = vadd.f32 %v7260_v9, %v7248_v49  ;;  %v14970_v20 = vld [vmem:[#allocation23_spill] sm:$0xff] }
0x1e28   :  { %v7284_v4 = vpop.permute.xlu0 %7283  ;;  %v7274_v53 = vmul.f32 %v7271_v35, %v14963_v6  ;;  %v7273_v43 = vmul.f32 %v7272_v26, %v14966_v1 }
0x1e2a   :  { %v7282_v51 = vpop.permute.xlu1 %7281  ;;  %v7277_v18 = vadd.f32 %v7274_v53, %v7262_v39  ;;  %v7276_v17 = vadd.f32 %v7273_v43, %v7261_v36 }
0x1e2b   :  { %v7285_v24 = vsel %vm724_vm5, %v7282_v51, %v7284_v4 }
0x1e2c   :  { %v7280_v12 = vpop.permute.xlu0 %7279 }
0x1e2d   :  { %v7286_v63 = vsel %vm724_vm5, %v7280_v12, %v7282_v51  ;;  %v7287_v11 = vsel %vm724_vm5, %v7284_v4, %v7280_v12  ;;  %v7290_v12 = vmul.f32 %v7285_v24, %v14970_v20  ;;  %v7278_v51 = vadd.f32 %v7275_v46, %v7263_v62 }
0x1e2e   :  { %v7305_v3 = vpop.permute.xlu1 %7304  ;;  %v7289_v5 = vmul.f32 %v7286_v63, %v14891_v19  ;;  %v7288_v13 = vmul.f32 %v7287_v11, %v14969_v60  ;;  %v7294_v63 = vmul.f32 %v14104_v29, %v14973_v37  ;;  %v14975_v11 = vld [vmem:[#allocation11_spill] sm:$0xff] }
0x1e2f   :  { %v7293_v59 = vadd.f32 %v7290_v12, %v7278_v51  ;;  %v7296_v15 = vmul.f32 %v14101_v14, %v14975_v11  ;;  %v14982_v12 = vld [vmem:[#allocation31_spill] sm:$0xff]  ;;  %v14983_v51 = vld [vmem:[#allocation32_spill] sm:$0xff] }
0x1e30   :  { %v7303_v27 = vpop.permute.xlu0 %7302  ;;  %v7292_v61 = vadd.f32 %v7289_v5, %v7277_v18  ;;  %v7291_v40 = vadd.f32 %v7288_v13, %v7276_v17 }
0x1e31   :  { %v7306_v35 = vsel %vm778_vm6, %v7303_v27, %v7305_v3  ;;  %v7299_v36 = vadd.f32 %v7296_v15, %v7293_v59 }
0x1e32   :  { %v7301_v21 = vpop.permute.xlu1 %7300  ;;  %v7298_v2 = vadd.f32 %v7295_v0, %v7292_v61  ;;  %v7310_v9 = vmul.f32 %v7306_v35, %v14898_v57 }
0x1e33   :  { %v7307_v4 = vsel %vm778_vm6, %v7301_v21, %v7303_v27  ;;  %v7308_v26 = vsel %vm778_vm6, %v7305_v3, %v7301_v21  ;;  %v7297_v21 = vadd.f32 %v7294_v63, %v7291_v40  ;;  %v14985_v63 = vld [vmem:[#allocation33_spill] sm:$0xff] }
0x1e34   :  { %v7320_v48 = vpop.permute.xlu0 %7319  ;;  %v7309_v32 = vmul.f32 %v7307_v4, %v14897_v52  ;;  %v7311_v43 = vmul.f32 %v7308_v26, %v14915_v58  ;;  %v7313_v17 = vadd.f32 %v7310_v9, %v7298_v2 }
0x1e36   :  { %v7318_v38 = vpop.permute.xlu1 %7317  ;;  %v7312_v46 = vadd.f32 %v7309_v32, %v7297_v21  ;;  %v7314_v61 = vadd.f32 %v7311_v43, %v7299_v36  ;;  %v14989_v43 = vld [vmem:[#allocation35_spill] sm:$0xff] }
0x1e37   :  { %v7321_v53 = vsel %vm14974_vm8, %v7318_v38, %v7320_v48  ;;  %vm14990_vm8 = vmmov %vm14972_vm7 }
0x1e38   :  { %v7316_v31 = vpop.permute.xlu0 %7315  ;;  %v7325_v5 = vmul.f32 %v7321_v53, %v14903_v47 }
0x1e39   :  { %v7322_v28 = vsel %vm14972_vm7, %v7316_v31, %v7318_v38  ;;  %v7323_v3 = vsel %vm14976_vm10, %v7320_v48, %v7316_v31  ;;  %v14980_v48 = vld [vmem:[#allocation29_spill] sm:$0xff]  ;;  %v14981_v38 = vld [vmem:[#allocation30_spill] sm:$0xff]  ;;  %vm14991_vm10 = vmmov %vm14972_vm7 }
0x1e3a   :  { %v7335_v50 = vpop.permute.xlu1 %7334  ;;  %v7324_v29 = vmul.f32 %v7322_v28, %v14902_v45  ;;  %v7326_v13 = vmul.f32 %v7323_v3, %v14980_v48  ;;  %v7328_v0 = vadd.f32 %v7325_v5, %v7313_v17  ;;  %v14988_v3 = vld [vmem:[#allocation34_spill] sm:$0xff] }
0x1e3c   :  { %v7333_v27 = vpop.permute.xlu0 %7332  ;;  %v7327_v4 = vadd.f32 %v7324_v29, %v7312_v46 }
0x1e3d   :  { %v7336_v39 = vsel %vm14977_vm11, %v7333_v27, %v7335_v50 }
0x1e3e   :  { %v7331_v24 = vpop.permute.xlu1 %7330  ;;  %v7340_v31 = vmul.f32 %v7336_v39, %v14982_v12 }
0x1e3f   :  { %v7337_v14 = vsel %vm14978_vm12, %v7331_v24, %v7333_v27  ;;  %v7338_v49 = vsel %vm14979_vm13, %v7335_v50, %v7331_v24  ;;  %v7329_v50 = vadd.f32 %v7326_v13, %v7314_v61  ;;  %vm14992_vm12 = vmmov %vm14977_vm11 }
0x1e40   :  { %v7339_v18 = vmul.f32 %v7337_v14, %v14981_v38  ;;  %v7346_v62 = vpop.permute.xlu0 %7345  ;;  %v7341_v40 = vmul.f32 %v7338_v49, %v14983_v51  ;;  %v7343_v53 = vadd.f32 %v7340_v31, %v7328_v0  ;;  %vm14993_vm13 = vmmov %vm14977_vm11 }
0x1e42   :  { %v7348_v35 = vpop.permute.xlu1 %7347  ;;  %v7342_v28 = vadd.f32 %v7339_v18, %v7327_v4  ;;  %v7344_v2 = vadd.f32 %v7341_v40, %v7329_v50  ;;  %v8842_v50 = vld [vmem:[%s14641_s5 + $0x320] sm:$0xff] }
0x1e43   :  { %v7352_v26 = vsel %vm14984_vm14, %v7346_v62, %v7348_v35  ;;  %vm14994_vm14 = vmmov %vm14987_vm9 }
0x1e44   :  { %v7354_v59 = vmul.f32 %v7352_v26, %v14985_v63  ;;  %v7350_v32 = vpop.permute.xlu0 %7349 }
0x1e45   :  { %v7351_v27 = vsel %vm14986_vm15, %v7348_v35, %v7350_v32  ;;  %v7353_v15 = vsel %vm14987_vm9, %v7350_v32, %v7346_v62  ;;  %v8843_v62 = vld [vmem:[%s14641_s5 + $0x340] sm:$0xff]  ;;  %vm14995_vm15 = vmmov %vm14987_vm9 }
0x1e46   :  { %v7357_v9 = vadd.f32 %v7354_v59, %v7342_v28  ;;  %v7355_v21 = vmul.f32 %v7351_v27, %v14988_v3  ;;  %v7356_v29 = vmul.f32 %v7353_v15, %v14989_v43 }
0x1e48   :  { %v7358_v39 = vadd.f32 %v7355_v21, %v7343_v53  ;;  %v7359_v24 = vadd.f32 %v7356_v29, %v7344_v2  ;;  %v7369_v14 = vmul.f32 %v7357_v9, %v7357_v9 }
0x1e4a   :  { %v7364_v5 = vadd.f32 %v7358_v39, %v7357_v9  ;;  %v7370_v49 = vmul.f32 %v7358_v39, %v7358_v39  ;;  %v7371_v46 = vmul.f32 %v7359_v24, %v7359_v24 }
0x1e4c   :  { %v7365_v36 = vadd.f32 %v7364_v5, %v7359_v24  ;;  %v7372_v13 = vadd.f32 %v7370_v49, %v7369_v14 }
0x1e4e   :  { %7366 = vadd.xlane.f32.xlu1 %v7365_v36  ;;  %v7373_v18 = vadd.f32 %v7372_v13, %v7371_v46 }
0x1e50   :  { %7374 = vadd.xlane.f32.xlu0 %v7373_v18 }
0x1e5f   :  { %7396 = vperm.xlu1 %10092, %v8843_v62  }
0x1edb   :  { %v7367_v17 = vpop.xlane.xlu1 %7366 }
0x1edc   :  { %v7368_v31 = vmul.f32 0.0034722222, %v7367_v17 }
0x1edd   :  { %v7375_v61 = vpop.xlane.xlu0 %7374 }
0x1ede   :  { %v7376_v4 = vmul.f32 0.0034722222, %v7375_v61  ;;  %v7377_v40 = vmul.f32 %v7368_v31, %v7368_v31  ;;  %v7380_v32 = vsub.f32 %v7357_v9, %v7368_v31  ;;  %v7381_v53 = vsub.f32 %v7358_v39, %v7368_v31  ;;  %v8815_v9 = vld [vmem:[%s14644_s7 + $0xd8] sm:$0xff]  ;;  %v8816_v39 = vld [vmem:[%s14644_s7 + $0xe0] sm:$0xff] }
0x1edf   :  { %v7382_v27 = vsub.f32 %v7359_v24, %v7368_v31  ;;  %v7397_v5 = vpop.permute.xlu1 %7396  ;;  %v8817_v24 = vld [vmem:[%s14644_s7 + $0xe8] sm:$0xff]  ;;  %v8818_v31 = vld [vmem:[%s14644_s7 + $0xf0] sm:$0xff] }
0x1ee0   :  { %v7378_v35 = vsub.f32 %v7376_v4, %v7377_v40  ;;  %v8819_v4 = vld [vmem:[%s14644_s7 + $0xf8] sm:$0xff]  ;;  %v8820_v40 = vld [vmem:[%s14644_s7 + $0x100] sm:$0xff] }
0x1ee2   :  { %v7379_v0 = vmax.f32 %v7378_v35, 0.0  ;;  %v8821_v35 = vld [vmem:[%s14644_s7 + $0x108] sm:$0xff] }
0x1ee4   :  { %v7383_v26 = vadd.f32 1e-05, %v7379_v0  ;;  %v8822_v0 = vld [vmem:[%s14644_s7 + $0x110] sm:$0xff] }
0x1ee6   :  { %10139 = vrsqrt.f32 %v7383_v26  ;;  %v8823_v26 = vld [vmem:[%s14644_s7 + $0x118] sm:$0xff] }
0x1ef0   :  { %v10140_v28 = vpop.eup %10139 }
0x1ef1   :  { %v7385_v59 = vmul.f32 %v10140_v28, %v8842_v50 }
0x1ef3   :  { %7388 = vperm.xlu0 %10091, %v7385_v59  }
0x1f72   :  { %v7389_v15 = vpop.permute.xlu0 %7388 }
0x1f73   :  { %v7391_v2 = vmul.f32 %v7389_v15, %v7380_v32  ;;  %v7392_v21 = vmul.f32 %v7389_v15, %v7381_v53  ;;  %v7393_v29 = vmul.f32 %v7389_v15, %v7382_v27 }
0x1f75   :  { %v7399_v14 = vadd.f32 %v7397_v5, %v7391_v2  ;;  %v7400_v49 = vadd.f32 %v7397_v5, %v7392_v21  ;;  %v7401_v36 = vadd.f32 %v7397_v5, %v7393_v29 }
0x1f77   :  { %v7402_v46 = vmul.f32 %v7399_v14, %v14953_v16  ;;  %v7404_v13 = vmul.f32 %v7401_v36, %v14955_v56  ;;  %v7403_v18 = vmul.f32 %v7400_v49, %v14954_v41 }
0x1f79   :  { %v7406_v62 = vmax.f32 %v7403_v18, 0.0  ;;  %v7407_v17 = vmax.f32 %v7404_v13, 0.0  ;;  %v7405_v61 = vmax.f32 %v7402_v46, 0.0 }
0x1f7b   :  { %7435 = vmatprep.subr.mxu1 %v7406_v62  ;;  %9827 = vmatpush3.msra.mxu0 %v7407_v17 }
0x1f7c   :  { %7436 = vmatpush1.msra.mxu1 %v7405_v61  ;;  %9829 = vmatmul.mubr.msk.f32.vlgmr.msra.gmra.mrb[228].mxu0 %vm145_vm0, %v8815_v9 }
0x1f7d   :  { %8844 = vmatmul.mubr.msk.f32.vlgmr.msra.gmra.mrb[222].mxu1 %vm145_vm0, %v8815_v9  ;;  %9831 = vmatprep.mubr.msk.f32.mxu0 %vm10159_vm1, %v14944_v42 }
0x1f7e   :  { %7505 = vmatprep.mubr.f32.mxu1 %v14944_v42  ;;  %9855 = vmatprep.subr.mxu0 %v14944_v42 }
0x1f80   :  { %9832 = vmatmul.mubr.msk.f32.gmra.mrb[230].mxu0 %vm145_vm0, %v8816_v39 }
0x1f81   :  { %8845 = vmatmul.mubr.msk.f32.gmra.mrb[224].mxu1 %vm145_vm0, %v8816_v39  ;;  %9834 = vmatprep.mubr.msk.f32.mxu0 %vm10159_vm1, %v14944_v42 }
0x1f82   :  { %7511 = vmatprep.mubr.f32.mxu1 %v14944_v42 }
0x1f84   :  { %9835 = vmatmul.mubr.msk.f32.gmra.mrb[232].mxu0 %vm145_vm0, %v8817_v24 }
0x1f85   :  { %8846 = vmatmul.mubr.msk.f32.gmra.mrb[226].mxu1 %vm145_vm0, %v8817_v24  ;;  %9837 = vmatprep.mubr.msk.f32.mxu0 %vm10159_vm1, %v14944_v42 }
0x1f86   :  { %7517 = vmatprep.mubr.f32.mxu1 %v14944_v42 }
0x1f88   :  { %9838 = vmatmul.mubr.msk.f32.gmra.mrb[234].mxu0 %vm145_vm0, %v8818_v31 }
0x1f89   :  { %8847 = vmatmul.mubr.msk.f32.gmra.mrb[228].mxu1 %vm145_vm0, %v8818_v31  ;;  %9840 = vmatprep.mubr.msk.f32.mxu0 %vm10159_vm1, %v14944_v42 }
0x1f8a   :  { %7523 = vmatprep.mubr.f32.mxu1 %v14944_v42 }
0x1f8c   :  { %9841 = vmatmul.mubr.msk.f32.gmra.mrb[236].mxu0 %vm145_vm0, %v8819_v4 }
0x1f8d   :  { %8848 = vmatmul.mubr.msk.f32.gmra.mrb[230].mxu1 %vm145_vm0, %v8819_v4  ;;  %9843 = vmatprep.mubr.msk.f32.mxu0 %vm10159_vm1, %v14944_v42 }
0x1f8e   :  { %7529 = vmatprep.mubr.f32.mxu1 %v14944_v42 }
0x1f90   :  { %9844 = vmatmul.mubr.msk.f32.gmra.mrb[238].mxu0 %vm145_vm0, %v8820_v40 }
0x1f91   :  { %8849 = vmatmul.mubr.msk.f32.gmra.mrb[232].mxu1 %vm145_vm0, %v8820_v40  ;;  %9846 = vmatprep.mubr.msk.f32.mxu0 %vm10159_vm1, %v14944_v42 }
0x1f92   :  { %7535 = vmatprep.mubr.f32.mxu1 %v14944_v42 }
0x1f94   :  { %9847 = vmatmul.mubr.msk.f32.gmra.mrb[240].mxu0 %vm145_vm0, %v8821_v35 }
0x1f95   :  { %8850 = vmatmul.mubr.msk.f32.gmra.mrb[234].mxu1 %vm145_vm0, %v8821_v35  ;;  %9849 = vmatprep.mubr.msk.f32.mxu0 %vm10159_vm1, %v14944_v42 }
0x1f96   :  { %7541 = vmatprep.mubr.f32.mxu1 %v14944_v42 }
0x1f98   :  { %9850 = vmatmul.mubr.msk.f32.gmra.mrb[242].mxu0 %vm145_vm0, %v8822_v0 }
0x1f99   :  { %8851 = vmatmul.mubr.msk.f32.gmra.mrb[236].mxu1 %vm145_vm0, %v8822_v0  ;;  %9852 = vmatprep.mubr.msk.f32.mxu0 %vm10159_vm1, %v14944_v42 }
0x1f9a   :  { %7547 = vmatprep.mubr.f32.mxu1 %v14944_v42 }
0x1f9c   :  { %9853 = vmatmul.mubr.msk.f32.gmra.mrb[244].mxu0 %vm145_vm0, %v8823_v26 }
0x1f9d   :  { %8852 = vmatmul.mubr.msk.f32.gmra.mrb[238].mxu1 %vm145_vm0, %v8823_v26  ;;  %9857 = vmatprep.mubr.msk.f32.mxu0 %vm10159_vm1, %v14944_v42 }
0x1f9e   :  { %7942 = vmatprep.mubr.f32.mxu1 %v14944_v42 }
0x204f   :  { %v7620_v50 = vpop.f32.mrb[228].mxu0 }
0x2050   :  { %7668 = vrot.lane.b32.xlu1 %v7620_v50, %s10160_s28  ;;  %v7501_v28 = vpop.f32.mrb[222].mxu1  ;;  %v9830_v59 = vpop.f32.mrb[229].mxu0 }
0x2051   :  { %v7503_v32 = vpop.f32.mrb[223].mxu1 }
0x2052   :  { %7666 = vrot.lane.b32.xlu0 %v7503_v32, %s10160_s28 }
0x2053   :  { %v7625_v53 = vpop.f32.mrb[230].mxu0 }
0x2054   :  { %7664 = vrot.lane.b32.xlu1 %v7501_v28, %s10160_s28  ;;  %v7507_v27 = vpop.f32.mrb[224].mxu1  ;;  %v9833_v15 = vpop.f32.mrb[231].mxu0 }
0x2055   :  { %v7509_v2 = vpop.f32.mrb[225].mxu1 }
0x2056   :  { %7680 = vrot.lane.b32.xlu0 %v7625_v53, %s10161_s29 }
0x2057   :  { %v7630_v21 = vpop.f32.mrb[232].mxu0 }
0x2058   :  { %7678 = vrot.lane.b32.xlu1 %v7509_v2, %s10161_s29  ;;  %v7513_v29 = vpop.f32.mrb[226].mxu1  ;;  %v9836_v5 = vpop.f32.mrb[233].mxu0 }
0x2059   :  { %v7515_v14 = vpop.f32.mrb[227].mxu1 }
0x205a   :  { %7676 = vrot.lane.b32.xlu0 %v7507_v27, %s10161_s29 }
0x205b   :  { %v7635_v49 = vpop.f32.mrb[234].mxu0 }
0x205c   :  { %7695 = vrot.lane.b32.xlu1 %v7630_v21, %s14956_s8  ;;  %v7519_v36 = vpop.f32.mrb[228].mxu1  ;;  %v9839_v46 = vpop.f32.mrb[235].mxu0 }
0x205d   :  { %v7521_v13 = vpop.f32.mrb[229].mxu1 }
0x205e   :  { %7693 = vrot.lane.b32.xlu0 %v7515_v14, %s14956_s8 }
0x205f   :  { %v14291_v18 = vpop.f32.mrb[236].mxu0 }
0x2060   :  { %7691 = vrot.lane.b32.xlu1 %v7513_v29, %s14956_s8  ;;  %v9842_v62 = vpop.f32.mrb[237].mxu0  ;;  %v14294_v17 = vpop.f32.mrb[230].mxu1 }
0x2061   :  { %v14296_v61 = vpop.f32.mrb[231].mxu1 }
0x2062   :  { %7710 = vrot.lane.b32.xlu0 %v7635_v49, %s10163_s0 }
0x2063   :  { %v7645_v9 = vpop.f32.mrb[238].mxu0 }
0x2064   :  { %7708 = vrot.lane.b32.xlu1 %v7521_v13, %s10163_s0  ;;  %v7531_v39 = vpop.f32.mrb[232].mxu1  ;;  %v9845_v24 = vpop.f32.mrb[239].mxu0 }
0x2065   :  { %v7533_v31 = vpop.f32.mrb[233].mxu1 }
0x2066   :  { %7706 = vrot.lane.b32.xlu0 %v7519_v36, %s10163_s0 }
0x2067   :  { %v7650_v4 = vpop.f32.mrb[240].mxu0 }
0x2068   :  { %7731 = vrot.lane.b32.xlu1 %v7645_v9, %s10164_s17  ;;  %v7537_v40 = vpop.f32.mrb[234].mxu1  ;;  %v9848_v35 = vpop.f32.mrb[241].mxu0 }
0x2069   :  { %v7539_v0 = vpop.f32.mrb[235].mxu1 }
0x206a   :  { %7729 = vrot.lane.b32.xlu0 %v7533_v31, %s10164_s17 }
0x206b   :  { %v7655_v26 = vpop.f32.mrb[242].mxu0 }
0x206c   :  { %7727 = vrot.lane.b32.xlu1 %v7531_v39, %s10164_s17  ;;  %v7543_v50 = vpop.f32.mrb[236].mxu1  ;;  %v9851_v28 = vpop.f32.mrb[243].mxu0 }
0x206d   :  { %v7545_v59 = vpop.f32.mrb[237].mxu1 }
0x206e   :  { %7746 = vrot.lane.b32.xlu0 %v7650_v4, %s14957_s2 }
0x206f   :  { %v7660_v32 = vpop.f32.mrb[244].mxu0 }
0x2070   :  { %7744 = vrot.lane.b32.xlu1 %v7539_v0, %s14957_s2  ;;  %v7549_v53 = vpop.f32.mrb[238].mxu1  ;;  %v9854_v27 = vpop.f32.mrb[245].mxu0 }
0x2071   :  { %v7551_v15 = vpop.f32.mrb[239].mxu1 }
0x2072   :  { %7742 = vrot.lane.b32.xlu0 %v7537_v40, %s14957_s2 }
0x2074   :  { %7761 = vrot.lane.b32.xlu1 %v7655_v26, %s14958_s30 }
0x2076   :  { %7759 = vrot.lane.b32.xlu0 %v7545_v59, %s14958_s30 }
0x2078   :  { %7757 = vrot.lane.b32.xlu1 %v7543_v50, %s14958_s30 }
0x207a   :  { %7772 = vrot.lane.b32.xlu0 %v7549_v53, %s14959_s18 }
0x207c   :  { %7774 = vrot.lane.b32.xlu1 %v7551_v15, %s14959_s18 }
0x207e   :  { %7776 = vrot.lane.b32.xlu0 %v7660_v32, %s14959_s18 }
0x20c2   :  { %v7669_v2 = vpop.permute.xlu1 %7668 }
0x20c4   :  { %v7667_v21 = vpop.permute.xlu0 %7666 }
0x20c5   :  { %v7670_v32 = vsel %vm631_vm3, %v7667_v21, %v7669_v2 }
0x20c6   :  { %v7665_v29 = vpop.permute.xlu1 %7664 }
0x20c7   :  { %v7671_v40 = vsel %vm631_vm3, %v7665_v29, %v7667_v21  ;;  %v7672_v26 = vsel %vm631_vm3, %v7669_v2, %v7665_v29 }
0x20c8   :  { %v7681_v5 = vpop.permute.xlu0 %7680 }
0x20ca   :  { %v7679_v14 = vpop.permute.xlu1 %7678 }
0x20cb   :  { %v7682_v50 = vsel %vm660_vm2, %v7679_v14, %v7681_v5 }
0x20cc   :  { %v7677_v49 = vpop.permute.xlu0 %7676  ;;  %v7687_v2 = vmul.f32 %v7682_v50, %v14965_v34 }
0x20cd   :  { %v7683_v24 = vsel %vm660_vm2, %v7677_v49, %v7679_v14  ;;  %v7684_v4 = vsel %vm660_vm2, %v7681_v5, %v7677_v49  ;;  %v7674_v49 = vmul.f32 %v7671_v40, %v14962_v55 }
0x20ce   :  { %v7696_v36 = vpop.permute.xlu1 %7695  ;;  %v7686_v28 = vmul.f32 %v7683_v24, %v14960_v25  ;;  %v7685_v53 = vmul.f32 %v7684_v4, %v14961_v10 }
0x20d0   :  { %v7694_v46 = vpop.permute.xlu0 %7693  ;;  %v7689_v4 = vadd.f32 %v7686_v28, %v7674_v49  ;;  %v7722_v49 = vmul.f32 %v14296_v61, %v14971_v7 }
0x20d1   :  { %v7697_v29 = vsel %vm692_vm4, %v7694_v46, %v7696_v36 }
0x20d2   :  { %v7692_v13 = vpop.permute.xlu1 %7691 }
0x20d3   :  { %v7698_v35 = vsel %vm692_vm4, %v7692_v13, %v7694_v46  ;;  %v7699_v59 = vsel %vm692_vm4, %v7696_v36, %v7692_v13  ;;  %v7673_v13 = vmul.f32 %v7672_v26, %v14964_v44  ;;  %v7675_v36 = vmul.f32 %v7670_v32, %v14967_v23 }
0x20d4   :  { %v7711_v62 = vpop.permute.xlu0 %7710  ;;  %v7701_v5 = vmul.f32 %v7698_v35, %v14963_v6  ;;  %v7700_v21 = vmul.f32 %v7699_v59, %v14966_v1  ;;  %v7702_v35 = vmul.f32 %v7697_v29, %v14968_v8 }
0x20d5   :  { %v7688_v46 = vadd.f32 %v7685_v53, %v7673_v13  ;;  %v7690_v44 = vadd.f32 %v7687_v2, %v7675_v36  ;;  %v7723_v2 = vmul.f32 %v14291_v18, %v14975_v11 }
0x20d6   :  { %v7709_v9 = vpop.permute.xlu1 %7708  ;;  %v7704_v26 = vadd.f32 %v7701_v5, %v7689_v4  ;;  %v7721_v5 = vmul.f32 %v14294_v17, %v14973_v37 }
0x20d7   :  { %v7712_v10 = vsel %vm724_vm5, %v7709_v9, %v7711_v62  ;;  %v7703_v50 = vadd.f32 %v7700_v21, %v7688_v46 }
0x20d8   :  { %v7707_v39 = vpop.permute.xlu0 %7706  ;;  %v7717_v59 = vmul.f32 %v7712_v10, %v14970_v20 }
0x20d9   :  { %v7713_v27 = vsel %vm724_vm5, %v7707_v39, %v7709_v9  ;;  %v7714_v14 = vsel %vm724_vm5, %v7711_v62, %v7707_v39  ;;  %v7705_v9 = vadd.f32 %v7702_v35, %v7690_v44 }
0x20da   :  { %v7732_v31 = vpop.permute.xlu1 %7731  ;;  %v7716_v40 = vmul.f32 %v7713_v27, %v14891_v19  ;;  %v7715_v39 = vmul.f32 %v7714_v14, %v14969_v60 }
0x20db   :  { %v7720_v14 = vadd.f32 %v7717_v59, %v7705_v9 }
0x20dc   :  { %v7730_v0 = vpop.permute.xlu0 %7729  ;;  %v7719_v28 = vadd.f32 %v7716_v40, %v7704_v26  ;;  %v7718_v27 = vadd.f32 %v7715_v39, %v7703_v50 }
0x20dd   :  { %v7733_v32 = vsel %vm778_vm6, %v7730_v0, %v7732_v31  ;;  %v7726_v35 = vadd.f32 %v7723_v2, %v7720_v14 }
0x20de   :  { %v7728_v15 = vpop.permute.xlu1 %7727  ;;  %v7725_v61 = vadd.f32 %v7722_v49, %v7719_v28  ;;  %v7737_v21 = vmul.f32 %v7733_v32, %v14898_v57 }
0x20df   :  { %v7734_v62 = vsel %vm778_vm6, %v7728_v15, %v7730_v0  ;;  %v7735_v29 = vsel %vm778_vm6, %v7732_v31, %v7728_v15  ;;  %v7724_v15 = vadd.f32 %v7721_v5, %v7718_v27 }
0x20e0   :  { %v7747_v24 = vpop.permute.xlu0 %7746  ;;  %v7736_v44 = vmul.f32 %v7734_v62, %v14897_v52  ;;  %v7738_v4 = vmul.f32 %v7735_v29, %v14915_v58  ;;  %v7740_v50 = vadd.f32 %v7737_v21, %v7725_v61 }
0x20e2   :  { %v7745_v6 = vpop.permute.xlu1 %7744  ;;  %v7739_v39 = vadd.f32 %v7736_v44, %v7724_v15  ;;  %v7741_v28 = vadd.f32 %v7738_v4, %v7726_v35  ;;  %v8863_v35 = vld [vmem:[%s14641_s5 + $0x380] sm:$0xff] }
0x20e3   :  { %v7748_v13 = vsel %vm14990_vm8, %v7745_v6, %v7747_v24 }
0x20e4   :  { %v7743_v1 = vpop.permute.xlu0 %7742 }
0x20e5   :  { %v7749_v10 = vsel %vm14972_vm7, %v7743_v1, %v7745_v6  ;;  %v7750_v31 = vsel %vm14991_vm10, %v7747_v24, %v7743_v1  ;;  %v7752_v6 = vmul.f32 %v7748_v13, %v14903_v47 }
0x20e6   :  { %v7762_v53 = vpop.permute.xlu1 %7761  ;;  %v7751_v17 = vmul.f32 %v7749_v10, %v14902_v45  ;;  %v7753_v1 = vmul.f32 %v7750_v31, %v14980_v48 }
0x20e7   :  { %v7755_v32 = vadd.f32 %v7752_v6, %v7740_v50 }
0x20e8   :  { %v7760_v0 = vpop.permute.xlu0 %7759  ;;  %v7754_v62 = vadd.f32 %v7751_v17, %v7739_v39  ;;  %v14996_v39 = vld [vmem:[#allocation48_spill] sm:$0xff] }
0x20e9   :  { %v7763_v40 = vsel %vm14977_vm11, %v7760_v0, %v7762_v53 }
0x20ea   :  { %v7758_v36 = vpop.permute.xlu1 %7757  ;;  %v7767_v59 = vmul.f32 %v7763_v40, %v14982_v12 }
0x20eb   :  { %v7764_v18 = vsel %vm14992_vm12, %v7758_v36, %v7760_v0  ;;  %v7765_v46 = vsel %vm14993_vm13, %v7762_v53, %v7758_v36  ;;  %v7756_v53 = vadd.f32 %v7753_v1, %v7741_v28  ;;  %v8891_v1 = vld [vmem:[%s14641_s5 + $0x3a0] sm:$0xff]  ;;  %vm4712_vm12 = vcmp.eq.s32.totalorder %v10446_v54, 1 }
0x20ec   :  { %v7766_v24 = vmul.f32 %v7764_v18, %v14981_v38  ;;  %v7773_v26 = vpop.permute.xlu0 %7772  ;;  %v7768_v9 = vmul.f32 %v7765_v46, %v14983_v51  ;;  %v7770_v14 = vadd.f32 %v7767_v59, %v7755_v32  ;;  %v8862_v32 = vld [vmem:[%s14641_s5 + $0x360] sm:$0xff] }
0x20ee   :  { %v7775_v27 = vpop.permute.xlu1 %7774  ;;  %v7769_v29 = vadd.f32 %v7766_v24, %v7754_v62  ;;  %v7771_v0 = vadd.f32 %v7768_v9, %v7756_v53 }
0x20ef   :  { %v7779_v49 = vsel %vm14994_vm14, %v7773_v26, %v7775_v27 }
0x20f0   :  { %v7781_v10 = vmul.f32 %v7779_v49, %v14985_v63  ;;  %v7777_v5 = vpop.permute.xlu0 %7776 }
0x20f1   :  { %v7778_v44 = vsel %vm14995_vm15, %v7775_v27, %v7777_v5  ;;  %v7780_v13 = vsel %vm14987_vm9, %v7777_v5, %v7773_v26 }
0x20f2   :  { %v7784_v2 = vadd.f32 %v7781_v10, %v7769_v29  ;;  %v7782_v61 = vmul.f32 %v7778_v44, %v14988_v3  ;;  %v7783_v21 = vmul.f32 %v7780_v13, %v14989_v43  ;;  %v14997_v29 = vld [vmem:[#allocation21_spill] sm:$0xff] }
0x20f4   :  { %v7785_v31 = vadd.f32 %v7782_v61, %v7770_v14  ;;  %v7786_v15 = vadd.f32 %v7783_v21, %v7771_v0  ;;  %v7796_v17 = vmul.f32 %v7784_v2, %v7784_v2 }
0x20f6   :  { %v7791_v4 = vadd.f32 %v7785_v31, %v7784_v2  ;;  %v7797_v40 = vmul.f32 %v7785_v31, %v7785_v31  ;;  %v7798_v6 = vmul.f32 %v7786_v15, %v7786_v15 }
0x20f8   :  { %v7792_v36 = vadd.f32 %v7791_v4, %v7786_v15  ;;  %v7799_v18 = vadd.f32 %v7797_v40, %v7796_v17 }
0x20fa   :  { %7793 = vadd.xlane.f32.xlu1 %v7792_v36  ;;  %v7800_v46 = vadd.f32 %v7799_v18, %v7798_v6 }
0x20fc   :  { %7801 = vadd.xlane.f32.xlu0 %v7800_v46 }
0x210b   :  { %7823 = vperm.xlu1 %10092, %v8863_v35  }
0x212f   :  { %4677 = vadd.xlane.f32.xlu1 %v14996_v39 }
0x2140   :  { %8234 = vperm.xlu1 %10092, %v8891_v1  }
0x2187   :  { %v7794_v24 = vpop.xlane.xlu1 %7793 }
0x2188   :  { %v7795_v26 = vmul.f32 0.0034722222, %v7794_v24 }
0x2189   :  { %v7802_v50 = vpop.xlane.xlu0 %7801 }
0x218a   :  { %v7803_v59 = vmul.f32 0.0034722222, %v7802_v50  ;;  %v7804_v28 = vmul.f32 %v7795_v26, %v7795_v26  ;;  %v7807_v10 = vsub.f32 %v7784_v2, %v7795_v26  ;;  %v7808_v5 = vsub.f32 %v7785_v31, %v7795_v26  ;;  %v8864_v50 = vld [vmem:[%s14644_s7 + $0x120] sm:$0xff] }
0x218b   :  { %v7809_v14 = vsub.f32 %v7786_v15, %v7795_v26  ;;  %v7824_v21 = vpop.permute.xlu1 %7823 }
0x218c   :  { %v7805_v62 = vsub.f32 %v7803_v59, %v7804_v28  ;;  %v8868_v59 = vld [vmem:[%s14644_s7 + $0x140] sm:$0xff]  ;;  %v8869_v28 = vld [vmem:[%s14644_s7 + $0x148] sm:$0xff] }
0x218e   :  { %v7806_v9 = vmax.f32 %v7805_v62, 0.0  ;;  %v8870_v62 = vld [vmem:[%s14644_s7 + $0x150] sm:$0xff] }
0x2190   :  { %v7810_v27 = vadd.f32 1e-05, %v7806_v9  ;;  %v8871_v9 = vld [vmem:[%s14644_s7 + $0x158] sm:$0xff] }
0x2192   :  { %10141 = vrsqrt.f32 %v7810_v27  ;;  %v8872_v27 = vld [vmem:[%s14644_s7 + $0x160] sm:$0xff] }
0x219c   :  { %v10142_v49 = vpop.eup %10141 }
0x219d   :  { %v7812_v53 = vmul.f32 %v10142_v49, %v8862_v32 }
0x219f   :  { %7815 = vperm.xlu0 %10091, %v7812_v53  }
0x21be   :  { %4679 = vadd.xlane.f32.xlu0 %v14997_v29 }
0x221e   :  { %v7816_v44 = vpop.permute.xlu0 %7815 }
0x221f   :  { %v7818_v13 = vmul.f32 %v7816_v44, %v7807_v10  ;;  %v7819_v0 = vmul.f32 %v7816_v44, %v7808_v5  ;;  %v7820_v61 = vmul.f32 %v7816_v44, %v7809_v14 }
0x2221   :  { %v7826_v4 = vadd.f32 %v7824_v21, %v7818_v13  ;;  %v7827_v17 = vadd.f32 %v7824_v21, %v7819_v0  ;;  %v7828_v40 = vadd.f32 %v7824_v21, %v7820_v61 }
0x2223   :  { %v7829_v36 = vmul.f32 %v7826_v4, %v14953_v16  ;;  %v7830_v6 = vmul.f32 %v7827_v17, %v14954_v41  ;;  %v7831_v18 = vmul.f32 %v7828_v40, %v14955_v56 }
0x2225   :  { %v7832_v46 = vadd.f32 %v7829_v36, %v14015_v22  ;;  %v7834_v2 = vadd.f32 %v7831_v18, %v14012_v30  ;;  %v7833_v31 = vadd.f32 %v7830_v6, %v14009_v33 }
0x2227   :  { %v7836_v15 = vmax.f32 %v7833_v31, 0.0  ;;  %v7837_v35 = vmax.f32 %v7834_v2, 0.0  ;;  %v7835_v39 = vmax.f32 %v7832_v46, 0.0 }
0x2229   :  { %v7839_v1 = vadd.f32 %v7836_v15, %v14009_v33  ;;  %v7840_v24 = vadd.f32 %v7837_v35, %v14012_v30  ;;  %v7838_v26 = vadd.f32 %v7835_v39, %v14015_v22  ;;  %v8865_v33 = vld [vmem:[%s14644_s7 + $0x128] sm:$0xff]  ;;  %v8866_v30 = vld [vmem:[%s14644_s7 + $0x130] sm:$0xff]  ;;  %v8867_v22 = vld [vmem:[%s14644_s7 + $0x138] sm:$0xff] }
0x222b   :  { %7878 = vmatprep.subr.mxu1 %v7839_v1  ;;  %9856 = vmatpush3.msra.mxu0 %v7840_v24 }
0x222c   :  { %7879 = vmatpush1.msra.mxu1 %v7838_v26  ;;  %9858 = vmatmul.mubr.msk.f32.vlgmr.msra.gmra.mrb[246].mxu0 %vm145_vm0, %v8864_v50 }
0x222d   :  { %8873 = vmatmul.mubr.msk.f32.vlgmr.msra.gmra.mrb[240].mxu1 %vm145_vm0, %v8864_v50  ;;  %9860 = vmatprep.mubr.msk.f32.mxu0 %vm10159_vm1, %v14944_v42 }
0x222e   :  { %7948 = vmatprep.mubr.f32.mxu1 %v14944_v42 }
0x2230   :  { %9861 = vmatmul.mubr.msk.f32.gmra.mrb[248].mxu0 %vm145_vm0, %v8865_v33 }
0x2231   :  { %8874 = vmatmul.mubr.msk.f32.gmra.mrb[242].mxu1 %vm145_vm0, %v8865_v33  ;;  %9863 = vmatprep.mubr.msk.f32.mxu0 %vm10159_vm1, %v14944_v42 }
0x2232   :  { %7954 = vmatprep.mubr.f32.mxu1 %v14944_v42 }
0x2234   :  { %9864 = vmatmul.mubr.msk.f32.gmra.mrb[250].mxu0 %vm145_vm0, %v8866_v30 }
0x2235   :  { %8875 = vmatmul.mubr.msk.f32.gmra.mrb[244].mxu1 %vm145_vm0, %v8866_v30  ;;  %9866 = vmatprep.mubr.msk.f32.mxu0 %vm10159_vm1, %v14944_v42 }
0x2236   :  { %7960 = vmatprep.mubr.f32.mxu1 %v14944_v42 }
0x2238   :  { %9867 = vmatmul.mubr.msk.f32.gmra.mrb[252].mxu0 %vm145_vm0, %v8867_v22 }
0x2239   :  { %8876 = vmatmul.mubr.msk.f32.gmra.mrb[246].mxu1 %vm145_vm0, %v8867_v22  ;;  %9869 = vmatprep.mubr.msk.f32.mxu0 %vm10159_vm1, %v14944_v42 }
0x223a   :  { %7966 = vmatprep.mubr.f32.mxu1 %v14944_v42 }
0x223c   :  { %9870 = vmatmul.mubr.msk.f32.gmra.mrb[254].mxu0 %vm145_vm0, %v8868_v59 }
0x223d   :  { %8877 = vmatmul.mubr.msk.f32.gmra.mrb[248].mxu1 %vm145_vm0, %v8868_v59  ;;  %9872 = vmatprep.mubr.msk.f32.mxu0 %vm10159_vm1, %v14944_v42 }
0x223e   :  { %7972 = vmatprep.mubr.f32.mxu1 %v14944_v42 }
0x2240   :  { %9873 = vmatmul.mubr.msk.f32.gmra.mrb[0].mxu0 %vm145_vm0, %v8869_v28 }
0x2241   :  { %8878 = vmatmul.mubr.msk.f32.gmra.mrb[250].mxu1 %vm145_vm0, %v8869_v28  ;;  %9875 = vmatprep.mubr.msk.f32.mxu0 %vm10159_vm1, %v14944_v42 }
0x2242   :  { %7978 = vmatprep.mubr.f32.mxu1 %v14944_v42 }
0x2244   :  { %9876 = vmatmul.mubr.msk.f32.gmra.mrb[2].mxu0 %vm145_vm0, %v8870_v62 }
0x2245   :  { %8879 = vmatmul.mubr.msk.f32.gmra.mrb[252].mxu1 %vm145_vm0, %v8870_v62  ;;  %9878 = vmatprep.mubr.msk.f32.mxu0 %vm10159_vm1, %v14944_v42 }
0x2246   :  { %7984 = vmatprep.mubr.f32.mxu1 %v14944_v42 }
0x2248   :  { %9879 = vmatmul.mubr.msk.f32.gmra.mrb[4].mxu0 %vm145_vm0, %v8871_v9 }
0x2249   :  { %8880 = vmatmul.mubr.msk.f32.gmra.mrb[254].mxu1 %vm145_vm0, %v8871_v9  ;;  %9881 = vmatprep.mubr.msk.f32.mxu0 %vm10159_vm1, %v14944_v42  ;;  %vm15004_vm1 = vmmov %vm14972_vm7 }
0x224a   :  { %7990 = vmatprep.mubr.f32.mxu1 %v14944_v42  ;;  %vm15010_vm7 = vmmov %vm14987_vm9 }
0x224b   :  { %vm15011_vm8 = vmmov %vm15010_vm7 }
0x224c   :  { %9882 = vmatmul.mubr.msk.f32.gmra.mrb[6].mxu0 %vm145_vm0, %v8872_v27  ;;  %vm15012_vm10 = vmmov %vm15010_vm7 }
0x224d   :  { %8881 = vmatmul.mubr.msk.f32.gmra.mrb[0].mxu1 %vm145_vm0, %v8872_v27  ;;  %v4680_v27 = vpop.xlane.xlu0 %4679  ;;  %vm4691_vm0 = vcmask 7168  }
0x22ff   :  { %v8063_v32 = vpop.f32.mrb[246].mxu0 }
0x2300   :  { %8111 = vrot.lane.b32.xlu1 %v8063_v32, %s10160_s28  ;;  %v7944_v49 = vpop.f32.mrb[240].mxu1  ;;  %v9859_v53 = vpop.f32.mrb[247].mxu0 }
0x2301   :  { %8107 = vrot.lane.b32.xlu0 %v7944_v49, %s10160_s28  ;;  %v7946_v29 = vpop.f32.mrb[241].mxu1  ;;  %v4678_v32 = vpop.xlane.xlu1 %4677  ;;  %v4682_v49 = vmul.f32 0.03125, %v4680_v27 }
0x2302   :  { %v4681_v53 = vmul.f32 0.03125, %v4678_v32 }
0x2303   :  { %v8068_v10 = vpop.f32.mrb[248].mxu0 }
0x2304   :  { %8109 = vrot.lane.b32.xlu1 %v7946_v29, %s10160_s28  ;;  %v7950_v42 = vpop.f32.mrb[242].mxu1  ;;  %v9862_v5 = vpop.f32.mrb[249].mxu0  ;;  %v4684_v29 = vadd.f32 1e-10, %v4682_v49 }
0x2305   :  { %8123 = vrot.lane.b32.xlu0 %v8068_v10, %s10161_s29  ;;  %v7952_v14 = vpop.f32.mrb[243].mxu1  ;;  %v4683_v10 = vadd.f32 1e-10, %v4681_v53 }
0x2306   :  { %10143 = vlog2.f32 %v4684_v29 }
0x2307   :  { %v8073_v44 = vpop.f32.mrb[250].mxu0  ;;  %10145 = vlog2.f32 %v4683_v10 }
0x2308   :  { %8121 = vrot.lane.b32.xlu1 %v7952_v14, %s10161_s29  ;;  %v7956_v13 = vpop.f32.mrb[244].mxu1  ;;  %v9865_v0 = vpop.f32.mrb[251].mxu0 }
0x2309   :  { %8119 = vrot.lane.b32.xlu0 %v7950_v42, %s10161_s29  ;;  %v7958_v61 = vpop.f32.mrb[245].mxu1  ;;  %v14999_v0 = vld [vmem:[#allocation40_spill] sm:$0xff] }
0x230b   :  { %v8078_v21 = vpop.f32.mrb[252].mxu0 }
0x230c   :  { %8138 = vrot.lane.b32.xlu1 %v8073_v44, %s14956_s8  ;;  %v7962_v4 = vpop.f32.mrb[246].mxu1  ;;  %v9868_v17 = vpop.f32.mrb[253].mxu0 }
0x230d   :  { %8136 = vrot.lane.b32.xlu0 %v7958_v61, %s14956_s8  ;;  %v7964_v40 = vpop.f32.mrb[247].mxu1 }
0x230f   :  { %v14488_v36 = vpop.f32.mrb[254].mxu0 }
0x2310   :  { %8134 = vrot.lane.b32.xlu1 %v7956_v13, %s14956_s8  ;;  %v14491_v6 = vpop.f32.mrb[248].mxu1  ;;  %v9871_v18 = vpop.f32.mrb[255].mxu0  ;;  %v14998_v13 = vld [vmem:[#allocation46_spill] sm:$0xff] }
0x2311   :  { %8153 = vrot.lane.b32.xlu0 %v8078_v21, %s10163_s0  ;;  %v14494_v46 = vpop.f32.mrb[249].mxu1  ;;  %v10144_v42 = vpop.eup %10143  ;;  %v4664_v61 = vsub.f32 %v14999_v0, %v14998_v13 }
0x2312   :  { %v10146_v5 = vpop.eup %10145  ;;  %v4688_v14 = vmul.f32 0.6931472, %v10144_v42 }
0x2313   :  { %v8088_v2 = vpop.f32.mrb[0].mxu0  ;;  %v4686_v44 = vmul.f32 0.6931472, %v10146_v5  ;;  %v4665_v17 = vmul.f32 %v4664_v61, %v4664_v61 }
0x2314   :  { %8151 = vrot.lane.b32.xlu1 %v7964_v40, %s10163_s0  ;;  %v7974_v31 = vpop.f32.mrb[250].mxu1  ;;  %v9874_v15 = vpop.f32.mrb[1].mxu0  ;;  %v4690_v21 = vmul.f32 %v4688_v14, %v4682_v49 }
0x2315   :  { %8149 = vrot.lane.b32.xlu0 %v7962_v4, %s10163_s0  ;;  %v7976_v35 = vpop.f32.mrb[251].mxu1  ;;  %v4689_v4 = vmul.f32 %v4686_v44, %v4681_v53 }
0x2316   :  { %v4693_v40 = vsel %vm4691_vm0, %v4690_v21, 0.0  ;;  %v15000_v21 = vld [vmem:[#allocation18_spill] sm:$0xff] }
0x2317   :  { %v8093_v39 = vpop.f32.mrb[2].mxu0  ;;  %v4692_v18 = vsel %vm4691_vm0, %v4689_v4, 0.0 }
0x2318   :  { %8174 = vrot.lane.b32.xlu1 %v8088_v2, %s10164_s17  ;;  %v7980_v1 = vpop.f32.mrb[252].mxu1  ;;  %v9877_v24 = vpop.f32.mrb[3].mxu0  ;;  %v4694_v2 = vadd.f32 %v4693_v40, %v4692_v18 }
0x2319   :  { %8172 = vrot.lane.b32.xlu0 %v7976_v35, %s10164_s17  ;;  %v7982_v26 = vpop.f32.mrb[253].mxu1 }
0x231b   :  { %v8098_v50 = vpop.f32.mrb[4].mxu0 }
0x231c   :  { %8170 = vrot.lane.b32.xlu1 %v7974_v31, %s10164_s17  ;;  %v7986_v33 = vpop.f32.mrb[254].mxu1  ;;  %v9880_v30 = vpop.f32.mrb[5].mxu0 }
0x231d   :  { %8189 = vrot.lane.b32.xlu0 %v8093_v39, %s14957_s2  ;;  %v7988_v22 = vpop.f32.mrb[255].mxu1  ;;  %v14512_v31 = vpop.permute.xlu1 %8234 }
0x231f   :  { %v8103_v59 = vpop.f32.mrb[6].mxu0 }
0x2320   :  { %8187 = vrot.lane.b32.xlu1 %v7982_v26, %s14957_s2  ;;  %v7992_v28 = vpop.f32.mrb[0].mxu1  ;;  %v9883_v62 = vpop.f32.mrb[7].mxu0 }
0x2321   :  { %8185 = vrot.lane.b32.xlu0 %v7980_v1, %s14957_s2  ;;  %v7994_v9 = vpop.f32.mrb[1].mxu1 }
0x2324   :  { %8202 = vrot.lane.b32.xlu1 %v7988_v22, %s14958_s30 }
0x2325   :  { %8204 = vrot.lane.b32.xlu0 %v8098_v50, %s14958_s30 }
0x2328   :  { %8215 = vrot.lane.b32.xlu1 %v7992_v28, %s14959_s18 }
0x2329   :  { %8200 = vrot.lane.b32.xlu0 %v7986_v33, %s14958_s30 }
0x232c   :  { %8219 = vrot.lane.b32.xlu1 %v8103_v59, %s14959_s18 }
0x232d   :  { %8217 = vrot.lane.b32.xlu0 %v7994_v9, %s14959_s18 }
0x234c   :  { %4666 = vadd.xlane.f32.xlu0 %v4665_v17  ;;  %v15001_v17 = vld [vmem:[#allocation16_spill] sm:$0xff] }
0x2350   :  { %4695 = vadd.xlane.f32.xlu1 %v4694_v2 }
0x2372   :  { %v8112_v15 = vpop.permute.xlu1 %8111 }
0x2373   :  { %v8108_v35 = vpop.permute.xlu0 %8107 }
0x2374   :  { %v8115_v5 = vsel %vm631_vm3, %v8112_v15, %v8108_v35 }
0x2376   :  { %v8110_v39 = vpop.permute.xlu1 %8109 }
0x2377   :  { %v8124_v1 = vpop.permute.xlu0 %8123  ;;  %v8114_v9 = vsel %vm631_vm3, %v8108_v35, %v8110_v39  ;;  %v8113_v53 = vsel %vm631_vm3, %v8110_v39, %v8112_v15  ;;  %vm15006_vm3 = vmmov %vm15004_vm1 }
0x2378   :  { %v8117_v13 = vmul.f32 %v8114_v9, %v14962_v55 }
0x237a   :  { %v8122_v24 = vpop.permute.xlu1 %8121 }
0x237b   :  { %v8120_v26 = vpop.permute.xlu0 %8119  ;;  %v8125_v27 = vsel %vm660_vm2, %v8122_v24, %v8124_v1 }
0x237c   :  { %v8126_v62 = vsel %vm660_vm2, %v8120_v26, %v8122_v24  ;;  %v8127_v29 = vsel %vm660_vm2, %v8124_v1, %v8120_v26  ;;  %v8130_v0 = vmul.f32 %v8125_v27, %v14965_v34  ;;  %v15002_v1 = vld [vmem:[#allocation13_spill] sm:$0xff]  ;;  %v15003_v26 = vld [vmem:[#allocation19_spill] sm:$0xff]  ;;  %vm15005_vm2 = vmmov %vm15004_vm1 }
0x237d   :  { %v8129_v10 = vmul.f32 %v8126_v62, %v14960_v25  ;;  %v8118_v25 = vmul.f32 %v8113_v53, %v14967_v23  ;;  %v8128_v40 = vmul.f32 %v8127_v29, %v15001_v17  ;;  %v8116_v24 = vmul.f32 %v8115_v5, %v15002_v1 }
0x237e   :  { %v8139_v50 = vpop.permute.xlu1 %8138 }
0x237f   :  { %v8137_v33 = vpop.permute.xlu0 %8136  ;;  %v8132_v15 = vadd.f32 %v8129_v10, %v8117_v13  ;;  %v8133_v23 = vadd.f32 %v8130_v0, %v8118_v25  ;;  %v8131_v62 = vadd.f32 %v8128_v40, %v8116_v24 }
0x2380   :  { %v8140_v14 = vsel %vm692_vm4, %v8137_v33, %v8139_v50 }
0x2381   :  { %v8145_v35 = vmul.f32 %v8140_v14, %v14968_v8  ;;  %v8166_v14 = vmul.f32 %v14488_v36, %v14975_v11 }
0x2382   :  { %v8135_v30 = vpop.permute.xlu1 %8134 }
0x2383   :  { %v8154_v22 = vpop.permute.xlu0 %8153  ;;  %v8141_v32 = vsel %vm692_vm4, %v8135_v30, %v8137_v33  ;;  %v8142_v61 = vsel %vm692_vm4, %v8139_v50, %v8135_v30  ;;  %v8148_v27 = vadd.f32 %v8145_v35, %v8133_v23  ;;  %vm15007_vm4 = vmmov %vm14977_vm11  ;;  %vm4709_vm11 = vcmp.eq.s32.totalorder %v10446_v54, 0 }
0x2384   :  { %v8144_v4 = vmul.f32 %v8141_v32, %v15000_v21  ;;  %v8143_v50 = vmul.f32 %v8142_v61, %v15003_v26 }
0x2386   :  { %v8152_v59 = vpop.permute.xlu1 %8151  ;;  %v8147_v33 = vadd.f32 %v8144_v4, %v8132_v15  ;;  %v8146_v53 = vadd.f32 %v8143_v50, %v8131_v62 }
0x2387   :  { %v8150_v28 = vpop.permute.xlu0 %8149  ;;  %v8155_v18 = vsel %vm724_vm5, %v8152_v59, %v8154_v22 }
0x2388   :  { %v8156_v44 = vsel %vm724_vm5, %v8150_v28, %v8152_v59  ;;  %v8157_v55 = vsel %vm724_vm5, %v8154_v22, %v8150_v28  ;;  %v8160_v30 = vmul.f32 %v8155_v18, %v14970_v20  ;;  %v8165_v22 = vmul.f32 %v14494_v46, %v14971_v7  ;;  %vm15008_vm5 = vmmov %vm15007_vm4 }
0x2389   :  { %v8159_v34 = vmul.f32 %v8156_v44, %v14891_v19  ;;  %v8158_v59 = vmul.f32 %v8157_v55, %v14969_v60  ;;  %v8164_v44 = vmul.f32 %v14491_v6, %v14973_v37 }
0x238a   :  { %v8175_v49 = vpop.permute.xlu1 %8174  ;;  %v8163_v28 = vadd.f32 %v8160_v30, %v8148_v27  ;;  %v8238_v30 = vmul.f32 %v14512_v31, %v14954_v41 }
0x238b   :  { %v8173_v42 = vpop.permute.xlu0 %8172  ;;  %v8162_v8 = vadd.f32 %v8159_v34, %v8147_v33  ;;  %v8161_v10 = vadd.f32 %v8158_v59, %v8146_v53  ;;  %v8237_v33 = vmul.f32 %v14512_v31, %v14953_v16 }
0x238c   :  { %v8176_v29 = vsel %vm778_vm6, %v8173_v42, %v8175_v49  ;;  %v8169_v21 = vadd.f32 %v8166_v14, %v8163_v28 }
0x238d   :  { %v8168_v13 = vadd.f32 %v8165_v22, %v8162_v8  ;;  %v8167_v36 = vadd.f32 %v8164_v44, %v8161_v10 }
0x238e   :  { %v8171_v2 = vpop.permute.xlu1 %8170 }
0x238f   :  { %v8190_v39 = vpop.permute.xlu0 %8189  ;;  %v8178_v19 = vsel %vm778_vm6, %v8175_v49, %v8171_v2  ;;  %v8177_v20 = vsel %vm778_vm6, %v8171_v2, %v8173_v42  ;;  %v8180_v49 = vmul.f32 %v8176_v29, %v14898_v57  ;;  %vm15009_vm6 = vmmov %vm15007_vm4  ;;  %v8893_v29 = vld [vmem:[%s14641_s5 + $0x3e0] sm:$0xff] }
0x2390   :  { %v8181_v7 = vmul.f32 %v8178_v19, %v14915_v58  ;;  %v8179_v0 = vmul.f32 %v8177_v20, %v14897_v52 }
0x2391   :  { %v8183_v25 = vadd.f32 %v8180_v49, %v8168_v13 }
0x2392   :  { %v8188_v9 = vpop.permute.xlu1 %8187  ;;  %v8184_v58 = vadd.f32 %v8181_v7, %v8169_v21  ;;  %v8182_v17 = vadd.f32 %v8179_v0, %v8167_v36 }
0x2393   :  { %v8186_v32 = vpop.permute.xlu0 %8185  ;;  %v8191_v42 = vsel %vm15005_vm2, %v8188_v9, %v8190_v39 }
0x2394   :  { %v8193_v60 = vsel %vm15004_vm1, %v8190_v39, %v8186_v32  ;;  %v8192_v61 = vsel %vm15006_vm3, %v8186_v32, %v8188_v9  ;;  %v8195_v4 = vmul.f32 %v8191_v42, %v14903_v47  ;;  %v8239_v9 = vmul.f32 %v14512_v31, %v14955_v56 }
0x2395   :  { %v8196_v11 = vmul.f32 %v8193_v60, %v14980_v48  ;;  %v8194_v57 = vmul.f32 %v8192_v61, %v14902_v45 }
0x2396   :  { %v8203_v5 = vpop.permute.xlu1 %8202  ;;  %v8198_v47 = vadd.f32 %v8195_v4, %v8183_v25 }
0x2397   :  { %v8205_v46 = vpop.permute.xlu0 %8204  ;;  %v8199_v48 = vadd.f32 %v8196_v11, %v8184_v58  ;;  %v8197_v34 = vadd.f32 %v8194_v57, %v8182_v17 }
0x2398   :  { %v8206_v37 = vsel %vm15007_vm4, %v8203_v5, %v8205_v46 }
0x2399   :  { %v8210_v2 = vmul.f32 %v8206_v37, %v14982_v12 }
0x239a   :  { %v8216_v6 = vpop.permute.xlu1 %8215 }
0x239b   :  { %v8201_v52 = vpop.permute.xlu0 %8200  ;;  %v8213_v50 = vadd.f32 %v8210_v2, %v8198_v47 }
0x239c   :  { %v8207_v40 = vsel %vm15008_vm5, %v8201_v52, %v8203_v5  ;;  %v8208_v18 = vsel %vm15009_vm6, %v8205_v46, %v8201_v52 }
0x239d   :  { %v8209_v15 = vmul.f32 %v8207_v40, %v14981_v38  ;;  %v8211_v35 = vmul.f32 %v8208_v18, %v14983_v51  ;;  %v8892_v18 = vld [vmem:[%s14641_s5 + $0x3c0] sm:$0xff] }
0x239e   :  { %v8220_v55 = vpop.permute.xlu1 %8219 }
0x239f   :  { %v8214_v45 = vadd.f32 %v8211_v35, %v8199_v48  ;;  %v8223_v39 = vsel %vm15010_vm7, %v8220_v55, %v8216_v6  ;;  %v8218_v1 = vpop.permute.xlu0 %8217  ;;  %v8212_v38 = vadd.f32 %v8209_v15, %v8197_v34 }
0x23a0   :  { %v8226_v24 = vmul.f32 %v8223_v39, %v14989_v43  ;;  %v8221_v26 = vsel %vm15011_vm8, %v8218_v1, %v8220_v55  ;;  %v8222_v12 = vsel %vm15012_vm10, %v8216_v6, %v8218_v1 }
0x23a1   :  { %v8224_v51 = vmul.f32 %v8222_v12, %v14985_v63  ;;  %v8225_v23 = vmul.f32 %v8221_v26, %v14988_v3 }
0x23a2   :  { %v8229_v62 = vadd.f32 %v8226_v24, %v8214_v45 }
0x23a3   :  { %v8227_v43 = vadd.f32 %v8224_v51, %v8212_v38  ;;  %v8228_v59 = vadd.f32 %v8225_v23, %v8213_v50 }
0x23a4   :  { %v14602_v32 = vadd.f32 %v8239_v9, %v8229_v62 }
0x23a5   :  { %v14598_v27 = vadd.f32 %v8237_v33, %v8227_v43  ;;  %v14600_v8 = vadd.f32 %v8238_v30, %v8228_v59 }
0x23a6   :  { %v8254_v31 = vmul.f32 %v14602_v32, %v14602_v32 }
0x23a7   :  { %v8247_v63 = vadd.f32 %v14600_v8, %v14598_v27  ;;  %v8252_v3 = vmul.f32 %v14598_v27, %v14598_v27  ;;  %v8253_v53 = vmul.f32 %v14600_v8, %v14600_v8 }
0x23a9   :  { %v8248_v19 = vadd.f32 %v8247_v63, %v14602_v32  ;;  %v8255_v22 = vadd.f32 %v8253_v53, %v8252_v3 }
0x23ab   :  { %8249 = vadd.xlane.f32.xlu0 %v8248_v19  ;;  %v8256_v28 = vadd.f32 %v8255_v22, %v8254_v31 }
0x23af   :  { %8257 = vadd.xlane.f32.xlu0 %v8256_v28 }
0x23c5   :  { %8279 = vperm.xlu0 %10091, %v8893_v29  }
0x23d9   :  { %v4667_v20 = vpop.xlane.xlu0 %4666 }
0x23da   :  { %v4668_v10 = vrot.slane %v4667_v20, 4 }
0x23dc   :  { %v4669_v60 = vadd.f32 %v4668_v10, %v4667_v20 }
0x23dd   :  { %v4696_v5 = vpop.xlane.xlu1 %4695 }
0x23de   :  { %v4670_v14 = vrot.slane %v4669_v60, 2  ;;  %v4697_v44 = vrot.slane %v4696_v5, 4 }
0x23e0   :  { %v4698_v13 = vadd.f32 %v4697_v44, %v4696_v5  ;;  %v4671_v7 = vadd.f32 %v4670_v14, %v4669_v60 }
0x23e2   :  { %v4699_v46 = vrot.slane %v4698_v13, 2  ;;  %v4672_v49 = vrot.slane %v4671_v7, 1 }
0x23e4   :  { %v4673_v0 = vadd.f32 %v4672_v49, %v4671_v7  ;;  %v4700_v42 = vadd.f32 %v4699_v46, %v4698_v13 }
0x23e6   :  { %10067 = vpush %v4673_v0  ;;  %v4701_v61 = vrot.slane %v4700_v42, 1 }
0x23e8   :  { %v4702_v21 = vadd.f32 %v4701_v61, %v4700_v42 }
0x23ea   :  { %10069 = vpush %v4702_v21 }
0x2417   :  { %s10068_s29 = spop %10067 }
0x2418   :  { %s4675_s30 = smul.f32 0.00390625, %s10068_s29 }
0x241a   :  { %s4676_s18 = smul.f32 1.25, %s4675_s30 }
0x241b   :  { %s10070_s0 = spop %10069 }
0x241c   :  { %s4704_s17 = ssub.f32 0.0, %s10070_s0  ;;  %v4710_v15 = vstv %s4676_s18 }
0x241d   :  { %v4711_v55 = vsel %vm4709_vm11, %v4710_v15, 0.0 }
0x241e   :  { %v4705_v11 = vstv %s4704_s17 }
0x241f   :  { %v4706_v36 = vmul.f32 1.442695, %v4705_v11 }
0x2421   :  { %10147 = vpow2.f32 %v4706_v36 }
0x242b   :  { %v10148_v37 = vpop.eup %10147 }
0x242c   :  { %10071 = vpush %v10148_v37 }
0x2438   :  { %v8250_v6 = vpop.xlane.xlu0 %8249 }
0x2439   :  { %v8251_v58 = vmul.f32 0.0034722222, %v8250_v6 }
0x243b   :  { %v8260_v57 = vmul.f32 %v8251_v58, %v8251_v58  ;;  %v8263_v45 = vsub.f32 %v14598_v27, %v8251_v58  ;;  %v8264_v39 = vsub.f32 %v14600_v8, %v8251_v58  ;;  %v8265_v1 = vsub.f32 %v14602_v32, %v8251_v58 }
0x243c   :  { %v8258_v4 = vpop.xlane.xlu0 %8257 }
0x243d   :  { %v8259_v52 = vmul.f32 0.0034722222, %v8258_v4 }
0x243f   :  { %v8261_v25 = vsub.f32 %v8259_v52, %v8260_v57 }
0x2441   :  { %v8262_v17 = vmax.f32 %v8261_v25, 0.0 }
0x2443   :  { %v8266_v40 = vadd.f32 1e-05, %v8262_v17 }
0x2444   :  { %v8280_v54 = vpop.permute.xlu0 %8279 }
0x2445   :  { %10149 = vrsqrt.f32 %v8266_v40 }
0x244f   :  { %v10150_v48 = vpop.eup %10149 }
0x2450   :  { %v8268_v2 = vmul.f32 %v10150_v48, %v8892_v18 }
0x2452   :  { %8271 = vperm.xlu1 %10092, %v8268_v2  }
0x245d   :  { %s10072_s11 = spop %10071 }
0x245e   :  { %v4713_v35 = vstv %s10072_s11 }
0x245f   :  { %v4714_v47 = vsel %vm4712_vm12, %v4713_v35, 0.0 }
0x2460   :  { %v4715_v34 = vadd.f32 %v4714_v47, %v4711_v55 }
0x2462   :  { %4716 = vst [vmem:[%s14654_s16] sm:$0x1] %v4715_v34 }
0x24d1   :  { %v8272_v24 = vpop.permute.xlu1 %8271 }
0x24d2   :  { %v8274_v26 = vmul.f32 %v8272_v24, %v8263_v45  ;;  %v8275_v12 = vmul.f32 %v8272_v24, %v8264_v39  ;;  %v8276_v50 = vmul.f32 %v8272_v24, %v8265_v1 }
0x24d4   :  { %v8282_v38 = vadd.f32 %v8280_v54, %v8274_v26  ;;  %v8283_v51 = vadd.f32 %v8280_v54, %v8275_v12  ;;  %v8284_v23 = vadd.f32 %v8280_v54, %v8276_v50 }
0x24d6   :  { %v8285_v33 = vmul.f32 %v8282_v38, %v14953_v16  ;;  %v8286_v30 = vmul.f32 %v8283_v51, %v14954_v41  ;;  %v8287_v62 = vmul.f32 %v8284_v23, %v14955_v56 }
0x24d8   :  { %10151 = vtanh.f32 %v8285_v33 }
0x24d9   :  { %10153 = vtanh.f32 %v8286_v30 }
0x24da   :  { %10155 = vtanh.f32 %v8287_v62 }
0x24e2   :  { %v10152_v43 = vpop.eup %10151 }
0x24e3   :  { %v10154_v59 = vpop.eup %10153  ;;  %8291 = vst [vmem:[%s14655_s15] sm:$0xff] %v10152_v43 }
0x24e4   :  { %v10156_v9 = vpop.eup %10155  ;;  %8292 = vst [vmem:[%s14655_s15 + $0x8] sm:$0xff] %v10154_v59 }
0x24e5   :  { %8293 = vst [vmem:[%s14655_s15 + $0x10] sm:$0xff] %v10156_v9 }

</bundles_post_ra>
